<compile_context>
chip_gen: v5e
topology: v5e:2x2
jax: 0.10.0
libtpu: 0.0.40
codegen_flags: <defaults>
</compile_context>

<pallas_src>
import numpy as np
import jax
import jax.numpy as jnp
from jax.experimental import pallas as pl
from jax.experimental.pallas import tpu as pltpu


# ----------------------------------------------------------------------------
# Host-side (trace-time) constant builders
# ----------------------------------------------------------------------------
def _bilinear_matrix(out_size, in_size, scale):
    """nn.Upsample(mode='bilinear', align_corners=False) interpolation matrix."""
    dst = np.arange(out_size, dtype=np.float64)
    src = (dst + 0.5) / scale - 0.5
    src = np.clip(src, 0.0, None)
    i0 = np.minimum(np.floor(src).astype(np.int64), in_size - 1)
    i1 = np.minimum(i0 + 1, in_size - 1)
    frac = src - i0
    a = np.zeros((out_size, in_size), dtype=np.float32)
    a[np.arange(out_size), i0] += (1.0 - frac).astype(np.float32)
    a[np.arange(out_size), i1] += frac.astype(np.float32)
    return a


def _upsample_mat(n, h, w, scale):
    """(n*h*w, n*(h*scale)*(w*scale)) matrix: row = classifier pixel (i,y,x),
    column = upsampled pixel (i,oy,ox); bilinear align_corners=False."""
    a_h = _bilinear_matrix(h * scale, h, scale)          # (OH, h)
    a_w = _bilinear_matrix(w * scale, w, scale)          # (OW, w)
    u = np.kron(a_h, a_w)                                # (OH*OW, h*w)
    return np.kron(np.eye(n, dtype=np.float32), u.T).astype(np.float32)


def _gather_mats(n, h, w):
    """16 tap-gather matrices P[t]: cols_t = act @ P[t].

    act is (cin, n*h*w) in raster (i,y,x) order; cols_t is (cin, n*oh*ow) with
    cols_t[c, (i,oy,ox)] = act[c, (i, 2oy+di-1, 2ox+dj-1)] (0 outside = conv
    zero padding), t = di*4 + dj.
    """
    oh, ow = h // 2, w // 2
    p = np.zeros((16, n * h * w, n * oh * ow), np.float32)
    for di in range(4):
        for dj in range(4):
            t = di * 4 + dj
            for oy in range(oh):
                y = 2 * oy + di - 1
                if y < 0 or y >= h:
                    continue
                for ox in range(ow):
                    x = 2 * ox + dj - 1
                    if x < 0 or x >= w:
                        continue
                    for i in range(n):
                        p[t, (i * h + y) * w + x, (i * oh + oy) * ow + ox] = 1.0
    return p


def _im2col_first_layer(x_cf):
    """(cin, n, H, W) -> (16*cin, n*OH*OW) patch matrix for conv1.

    Uses a space-to-depth reshape so every tap is a contiguous slice (no
    stride-2 lane gathers in XLA); feature order is (kh, kw, cin)."""
    cin, n, h, w = x_cf.shape
    oh, ow = h // 2, w // 2
    xp = jnp.pad(x_cf, ((0, 0), (0, 0), (1, 1), (1, 1)))
    s2d = xp.reshape(cin, n, oh + 1, 2, ow + 1, 2)
    taps = []
    for di in range(4):
        qi, ri = di // 2, di % 2
        for dj in range(4):
            qj, rj = dj // 2, dj % 2
            taps.append(s2d[:, :, qi:qi + oh, ri, qj:qj + ow, rj])
    cols = jnp.concatenate(taps, axis=0)                 # (16*cin, n, oh, ow)
    return cols.reshape(16 * cin, n * oh * ow)


# ----------------------------------------------------------------------------
# The single fused kernel
# ----------------------------------------------------------------------------
def _disc_kernel(cols1_ref, w1_ref, b1_ref,
                 p2_ref, w2_ref, b2_ref,
                 p3_ref, w3_ref, b3_ref,
                 p4_ref, w4_ref, b4_ref,
                 p5_ref, w5_ref, b5_ref,
                 up_ref, out_ref):
    f32 = jnp.float32

    def leaky(v):
        return jnp.where(v >= 0.0, v, 0.2 * v)

    def conv_taps(a_prev, p_ref, w_ref, b_ref):
        # a_prev: (cin, npix_prev); p_ref: (16, npix_prev, npix);
        # w_ref: (16, cout, cin); b_ref: (cout, 1).
        cout = w_ref.shape[1]
        npix = p_ref.shape[2]
        acc = jnp.zeros((cout, npix), f32)
        for t in range(16):                      # static 16-tap unroll
            cols_t = jnp.dot(a_prev, p_ref[t], preferred_element_type=f32)
            acc = acc + jnp.dot(w_ref[t], cols_t, preferred_element_type=f32)
        return acc + b_ref[...]

    # conv1: patch matrix built by the wrapper -> one MXU matmul.
    a = jnp.dot(w1_ref[...], cols1_ref[...], preferred_element_type=f32)
    a = leaky(a + b1_ref[...])
    # conv2..conv4 (+LeakyReLU): activations never leave VMEM/vregs.
    a = leaky(conv_taps(a, p2_ref, w2_ref, b2_ref))
    a = leaky(conv_taps(a, p3_ref, w3_ref, b3_ref))
    a = leaky(conv_taps(a, p4_ref, w4_ref, b4_ref))
    # classifier (Cout=1, no activation) -> fused bilinear x32 upsample -> sigmoid.
    logits = conv_taps(a, p5_ref, w5_ref, b5_ref)        # (1, n*h5*w5)
    y = jnp.dot(logits, up_ref[...], preferred_element_type=f32)
    out_ref[...] = jax.nn.sigmoid(y)


def _full_spec(shape):
    nd = len(shape)
    return pl.BlockSpec(tuple(shape), lambda i, _nd=nd: (0,) * _nd)


# ----------------------------------------------------------------------------
# Forward pass (matches Discriminator.forward)
# ----------------------------------------------------------------------------
def discriminator_forward(x_nchw, params):
    n, cin, h0, w0 = x_nchw.shape
    assert h0 % 32 == 0 and w0 % 32 == 0, "spatial dims must be divisible by 32"
    weights = [p[0] for p in params]
    biases = [p[1] for p in params]
    hs = [h0 // (2 ** (i + 1)) for i in range(5)]
    ws = [w0 // (2 ** (i + 1)) for i in range(5)]

    # Channels-first (C, N, H, W): pixels stay the fast axis for the gather.
    x_cf = jnp.transpose(x_nchw, (1, 0, 2, 3)).astype(jnp.float32)
    cols1 = _im2col_first_layer(x_cf)                    # (16*cin, n*oh1*ow1)

    cout1 = weights[0].shape[0]
    w1m = jnp.transpose(weights[0], (0, 2, 3, 1)).reshape(cout1, -1)
    args = [cols1,
            w1m.astype(jnp.float32),
            biases[0].reshape(-1, 1).astype(jnp.float32)]

    for l in range(1, 5):                                # conv2..conv4 + classifier
        wt = weights[l]
        cout, cin_l = wt.shape[0], wt.shape[1]
        p = _gather_mats(n, hs[l - 1], ws[l - 1])        # host-built constant
        wtaps = jnp.transpose(wt, (2, 3, 0, 1)).reshape(16, cout, cin_l)
        args += [jnp.asarray(p),
                 wtaps.astype(jnp.float32),
                 biases[l].reshape(-1, 1).astype(jnp.float32)]

    up = _upsample_mat(n, hs[4], ws[4], scale=32)        # (n*h5*w5, n*OH*OW)
    args.append(jnp.asarray(up))

    ohf, owf = hs[4] * 32, ws[4] * 32
    out_shape = (1, n * ohf * owf)

    out_flat = pl.pallas_call(
        _disc_kernel,
        out_shape=jax.ShapeDtypeStruct(out_shape, jnp.float32),
        grid=(1,),
        in_specs=[_full_spec(a.shape) for a in args],
        out_specs=_full_spec(out_shape),
        compiler_params=pltpu.CompilerParams(
            dimension_semantics=("arbitrary",),
            vmem_limit_bytes=32 * 1024 * 1024),
    )(*args)

    return out_flat.reshape(n, 1, ohf, owf)


# ----------------------------------------------------------------------------
# Deterministic parameter init + smoke test
# ----------------------------------------------------------------------------
def _init_params(key, num_classes, ndf):
    chans = [num_classes, ndf, ndf * 2, ndf * 4, ndf * 8, 1]
    params = []
    for li in range(5):
        key, kw, kb = jax.random.split(key, 3)
        cin, cout = chans[li], chans[li + 1]
        w = jax.random.normal(kw, (cout, cin, 4, 4), jnp.float32) * 0.05
        b = jax.random.normal(kb, (cout,), jnp.float32) * 0.05
        params.append((w, b))
    return params


if __name__ == "__main__":
    num_classes, ndf = 4, 8
    N, H, W = 2, 32, 32      # 32 -> 16 -> 8 -> 4 -> 2 -> 1 -> (x32) -> 32

    key = jax.random.PRNGKey(0)
    key, kx = jax.random.split(key)
    x = jax.random.normal(kx, (N, num_classes, H, W), jnp.float32)
    params = _init_params(key, num_classes, ndf)

    fwd = jax.jit(discriminator_forward)
    out = jax.block_until_ready(fwd(x, params))

    assert out.shape == (N, 1, H, W), out.shape
    assert bool(jnp.all(jnp.isfinite(out)))
    assert bool(jnp.all((out >= 0.0) & (out <= 1.0)))
    print("KERNEL_OK")
</pallas_src>

<mosaic_0001>
module attributes {stable_mosaic.version = 11 : i64} {
  func.func @_disc_kernel(%arg0: i32, %arg1: memref<64x512xf32, #tpu.memory_space<vmem>>, %arg2: memref<8x64xf32, #tpu.memory_space<vmem>>, %arg3: memref<8x1xf32, #tpu.memory_space<vmem>>, %arg4: memref<16x512x128xf32, #tpu.memory_space<vmem>>, %arg5: memref<16x16x8xf32, #tpu.memory_space<vmem>>, %arg6: memref<16x1xf32, #tpu.memory_space<vmem>>, %arg7: memref<16x128x32xf32, #tpu.memory_space<vmem>>, %arg8: memref<16x32x16xf32, #tpu.memory_space<vmem>>, %arg9: memref<32x1xf32, #tpu.memory_space<vmem>>, %arg10: memref<16x32x8xf32, #tpu.memory_space<vmem>>, %arg11: memref<16x64x32xf32, #tpu.memory_space<vmem>>, %arg12: memref<64x1xf32, #tpu.memory_space<vmem>>, %arg13: memref<16x8x2xf32, #tpu.memory_space<vmem>>, %arg14: memref<16x1x64xf32, #tpu.memory_space<vmem>>, %arg15: memref<1x1xf32, #tpu.memory_space<vmem>>, %arg16: memref<2x2048xf32, #tpu.memory_space<vmem>>, %arg17: memref<1x2048xf32, #tpu.memory_space<vmem>>) attributes {dimension_semantics = [#tpu.dimension_semantics<arbitrary>], iteration_bounds = array<i64: 1>, scalar_prefetch = 0 : i64, scratch_operands = 0 : i64, tpu.core_type = #tpu.core_type<tc>, window_params = [{pipeline_mode = #tpu.pipeline_mode<synchronous>, transform_indices = @transform_0, window_bounds = array<i64: 64, 512>}, {pipeline_mode = #tpu.pipeline_mode<synchronous>, transform_indices = @transform_1, window_bounds = array<i64: 8, 64>}, {pipeline_mode = #tpu.pipeline_mode<synchronous>, transform_indices = @transform_2, window_bounds = array<i64: 8, 1>}, {pipeline_mode = #tpu.pipeline_mode<synchronous>, transform_indices = @transform_3, window_bounds = array<i64: 16, 512, 128>}, {pipeline_mode = #tpu.pipeline_mode<synchronous>, transform_indices = @transform_4, window_bounds = array<i64: 16, 16, 8>}, {pipeline_mode = #tpu.pipeline_mode<synchronous>, transform_indices = @transform_5, window_bounds = array<i64: 16, 1>}, {pipeline_mode = #tpu.pipeline_mode<synchronous>, transform_indices = @transform_6, window_bounds = array<i64: 16, 128, 32>}, {pipeline_mode = #tpu.pipeline_mode<synchronous>, transform_indices = @transform_7, window_bounds = array<i64: 16, 32, 16>}, {pipeline_mode = #tpu.pipeline_mode<synchronous>, transform_indices = @transform_8, window_bounds = array<i64: 32, 1>}, {pipeline_mode = #tpu.pipeline_mode<synchronous>, transform_indices = @transform_9, window_bounds = array<i64: 16, 32, 8>}, {pipeline_mode = #tpu.pipeline_mode<synchronous>, transform_indices = @transform_10, window_bounds = array<i64: 16, 64, 32>}, {pipeline_mode = #tpu.pipeline_mode<synchronous>, transform_indices = @transform_11, window_bounds = array<i64: 64, 1>}, {pipeline_mode = #tpu.pipeline_mode<synchronous>, transform_indices = @transform_12, window_bounds = array<i64: 16, 8, 2>}, {pipeline_mode = #tpu.pipeline_mode<synchronous>, transform_indices = @transform_13, window_bounds = array<i64: 16, 1, 64>}, {pipeline_mode = #tpu.pipeline_mode<synchronous>, transform_indices = @transform_14, window_bounds = array<i64: 1, 1>}, {pipeline_mode = #tpu.pipeline_mode<synchronous>, transform_indices = @transform_15, window_bounds = array<i64: 2, 2048>}, {pipeline_mode = #tpu.pipeline_mode<synchronous>, transform_indices = @transform_16, window_bounds = array<i64: 1, 2048>}]} {
    %c0 = arith.constant 0 : index
    %c0_0 = arith.constant 0 : index
    %0 = vector.load %arg2[%c0, %c0_0] : memref<8x64xf32, #tpu.memory_space<vmem>>, vector<8x64xf32>
    %c0_1 = arith.constant 0 : index
    %c0_2 = arith.constant 0 : index
    %1 = vector.load %arg1[%c0_1, %c0_2] : memref<64x512xf32, #tpu.memory_space<vmem>>, vector<64x512xf32>
    %cst = arith.constant dense<0.000000e+00> : vector<8x512xf32>
    %2 = tpu.matmul %0, %1, %cst {dimension_numbers = #tpu.dot_dimension_numbers<[1], [0], [0], [1], [0, 0, 1, 1], [], []>} : vector<8x64xf32>, vector<64x512xf32>, vector<8x512xf32> -> vector<8x512xf32>
    %c0_3 = arith.constant 0 : index
    %c0_4 = arith.constant 0 : index
    %3 = vector.load %arg3[%c0_3, %c0_4] : memref<8x1xf32, #tpu.memory_space<vmem>>, vector<8x1xf32>
    %4 = vector.broadcast %3 : vector<8x1xf32> to vector<8x512xf32>
    %5 = arith.addf %2, %4 : vector<8x512xf32>
    %cst_5 = arith.constant 0.000000e+00 : f32
    %6 = vector.broadcast %cst_5 : f32 to vector<8x512xf32>
    %7 = arith.cmpf oge, %5, %6 : vector<8x512xf32>
    %cst_6 = arith.constant 2.000000e-01 : f32
    %8 = vector.broadcast %cst_6 : f32 to vector<8x512xf32>
    %9 = arith.mulf %8, %5 : vector<8x512xf32>
    %10 = arith.select %7, %5, %9 : vector<8x512xi1>, vector<8x512xf32>
    %cst_7 = arith.constant 0.000000e+00 : f32
    %11 = vector.broadcast %cst_7 : f32 to vector<16x128xf32>
    %c0_8 = arith.constant 0 : index
    %c0_9 = arith.constant 0 : index
    %c0_10 = arith.constant 0 : index
    %12 = vector.load %arg4[%c0_8, %c0_9, %c0_10] : memref<16x512x128xf32, #tpu.memory_space<vmem>>, vector<1x512x128xf32>
    %13 = vector.shape_cast %12 : vector<1x512x128xf32> to vector<512x128xf32>
    %cst_11 = arith.constant dense<0.000000e+00> : vector<8x128xf32>
    %14 = tpu.matmul %10, %13, %cst_11 {dimension_numbers = #tpu.dot_dimension_numbers<[1], [0], [0], [1], [0, 0, 1, 1], [], []>} : vector<8x512xf32>, vector<512x128xf32>, vector<8x128xf32> -> vector<8x128xf32>
    %c0_12 = arith.constant 0 : index
    %c0_13 = arith.constant 0 : index
    %c0_14 = arith.constant 0 : index
    %15 = vector.load %arg5[%c0_12, %c0_13, %c0_14] : memref<16x16x8xf32, #tpu.memory_space<vmem>>, vector<1x16x8xf32>
    %16 = vector.shape_cast %15 : vector<1x16x8xf32> to vector<16x8xf32>
    %cst_15 = arith.constant dense<0.000000e+00> : vector<16x128xf32>
    %17 = tpu.matmul %16, %14, %cst_15 {dimension_numbers = #tpu.dot_dimension_numbers<[1], [0], [0], [1], [0, 0, 1, 1], [], []>} : vector<16x8xf32>, vector<8x128xf32>, vector<16x128xf32> -> vector<16x128xf32>
    %18 = arith.addf %11, %17 : vector<16x128xf32>
    %c1 = arith.constant 1 : index
    %c0_16 = arith.constant 0 : index
    %c0_17 = arith.constant 0 : index
    %19 = vector.load %arg4[%c1, %c0_16, %c0_17] : memref<16x512x128xf32, #tpu.memory_space<vmem>>, vector<1x512x128xf32>
    %20 = vector.shape_cast %19 : vector<1x512x128xf32> to vector<512x128xf32>
    %cst_18 = arith.constant dense<0.000000e+00> : vector<8x128xf32>
    %21 = tpu.matmul %10, %20, %cst_18 {dimension_numbers = #tpu.dot_dimension_numbers<[1], [0], [0], [1], [0, 0, 1, 1], [], []>} : vector<8x512xf32>, vector<512x128xf32>, vector<8x128xf32> -> vector<8x128xf32>
    %c1_19 = arith.constant 1 : index
    %c0_20 = arith.constant 0 : index
    %c0_21 = arith.constant 0 : index
    %22 = vector.load %arg5[%c1_19, %c0_20, %c0_21] : memref<16x16x8xf32, #tpu.memory_space<vmem>>, vector<1x16x8xf32>
    %23 = vector.shape_cast %22 : vector<1x16x8xf32> to vector<16x8xf32>
    %cst_22 = arith.constant dense<0.000000e+00> : vector<16x128xf32>
    %24 = tpu.matmul %23, %21, %cst_22 {dimension_numbers = #tpu.dot_dimension_numbers<[1], [0], [0], [1], [0, 0, 1, 1], [], []>} : vector<16x8xf32>, vector<8x128xf32>, vector<16x128xf32> -> vector<16x128xf32>
    %25 = arith.addf %18, %24 : vector<16x128xf32>
    %c2 = arith.constant 2 : index
    %c0_23 = arith.constant 0 : index
    %c0_24 = arith.constant 0 : index
    %26 = vector.load %arg4[%c2, %c0_23, %c0_24] : memref<16x512x128xf32, #tpu.memory_space<vmem>>, vector<1x512x128xf32>
    %27 = vector.shape_cast %26 : vector<1x512x128xf32> to vector<512x128xf32>
    %cst_25 = arith.constant dense<0.000000e+00> : vector<8x128xf32>
    %28 = tpu.matmul %10, %27, %cst_25 {dimension_numbers = #tpu.dot_dimension_numbers<[1], [0], [0], [1], [0, 0, 1, 1], [], []>} : vector<8x512xf32>, vector<512x128xf32>, vector<8x128xf32> -> vector<8x128xf32>
    %c2_26 = arith.constant 2 : index
    %c0_27 = arith.constant 0 : index
    %c0_28 = arith.constant 0 : index
    %29 = vector.load %arg5[%c2_26, %c0_27, %c0_28] : memref<16x16x8xf32, #tpu.memory_space<vmem>>, vector<1x16x8xf32>
    %30 = vector.shape_cast %29 : vector<1x16x8xf32> to vector<16x8xf32>
    %cst_29 = arith.constant dense<0.000000e+00> : vector<16x128xf32>
    %31 = tpu.matmul %30, %28, %cst_29 {dimension_numbers = #tpu.dot_dimension_numbers<[1], [0], [0], [1], [0, 0, 1, 1], [], []>} : vector<16x8xf32>, vector<8x128xf32>, vector<16x128xf32> -> vector<16x128xf32>
    %32 = arith.addf %25, %31 : vector<16x128xf32>
    %c3 = arith.constant 3 : index
    %c0_30 = arith.constant 0 : index
    %c0_31 = arith.constant 0 : index
    %33 = vector.load %arg4[%c3, %c0_30, %c0_31] : memref<16x512x128xf32, #tpu.memory_space<vmem>>, vector<1x512x128xf32>
    %34 = vector.shape_cast %33 : vector<1x512x128xf32> to vector<512x128xf32>
    %cst_32 = arith.constant dense<0.000000e+00> : vector<8x128xf32>
    %35 = tpu.matmul %10, %34, %cst_32 {dimension_numbers = #tpu.dot_dimension_numbers<[1], [0], [0], [1], [0, 0, 1, 1], [], []>} : vector<8x512xf32>, vector<512x128xf32>, vector<8x128xf32> -> vector<8x128xf32>
    %c3_33 = arith.constant 3 : index
    %c0_34 = arith.constant 0 : index
    %c0_35 = arith.constant 0 : index
    %36 = vector.load %arg5[%c3_33, %c0_34, %c0_35] : memref<16x16x8xf32, #tpu.memory_space<vmem>>, vector<1x16x8xf32>
    %37 = vector.shape_cast %36 : vector<1x16x8xf32> to vector<16x8xf32>
    %cst_36 = arith.constant dense<0.000000e+00> : vector<16x128xf32>
    %38 = tpu.matmul %37, %35, %cst_36 {dimension_numbers = #tpu.dot_dimension_numbers<[1], [0], [0], [1], [0, 0, 1, 1], [], []>} : vector<16x8xf32>, vector<8x128xf32>, vector<16x128xf32> -> vector<16x128xf32>
    %39 = arith.addf %32, %38 : vector<16x128xf32>
    %c4 = arith.constant 4 : index
    %c0_37 = arith.constant 0 : index
    %c0_38 = arith.constant 0 : index
    %40 = vector.load %arg4[%c4, %c0_37, %c0_38] : memref<16x512x128xf32, #tpu.memory_space<vmem>>, vector<1x512x128xf32>
    %41 = vector.shape_cast %40 : vector<1x512x128xf32> to vector<512x128xf32>
    %cst_39 = arith.constant dense<0.000000e+00> : vector<8x128xf32>
    %42 = tpu.matmul %10, %41, %cst_39 {dimension_numbers = #tpu.dot_dimension_numbers<[1], [0], [0], [1], [0, 0, 1, 1], [], []>} : vector<8x512xf32>, vector<512x128xf32>, vector<8x128xf32> -> vector<8x128xf32>
    %c4_40 = arith.constant 4 : index
    %c0_41 = arith.constant 0 : index
    %c0_42 = arith.constant 0 : index
    %43 = vector.load %arg5[%c4_40, %c0_41, %c0_42] : memref<16x16x8xf32, #tpu.memory_space<vmem>>, vector<1x16x8xf32>
    %44 = vector.shape_cast %43 : vector<1x16x8xf32> to vector<16x8xf32>
    %cst_43 = arith.constant dense<0.000000e+00> : vector<16x128xf32>
    %45 = tpu.matmul %44, %42, %cst_43 {dimension_numbers = #tpu.dot_dimension_numbers<[1], [0], [0], [1], [0, 0, 1, 1], [], []>} : vector<16x8xf32>, vector<8x128xf32>, vector<16x128xf32> -> vector<16x128xf32>
    %46 = arith.addf %39, %45 : vector<16x128xf32>
    %c5 = arith.constant 5 : index
    %c0_44 = arith.constant 0 : index
    %c0_45 = arith.constant 0 : index
    %47 = vector.load %arg4[%c5, %c0_44, %c0_45] : memref<16x512x128xf32, #tpu.memory_space<vmem>>, vector<1x512x128xf32>
    %48 = vector.shape_cast %47 : vector<1x512x128xf32> to vector<512x128xf32>
    %cst_46 = arith.constant dense<0.000000e+00> : vector<8x128xf32>
    %49 = tpu.matmul %10, %48, %cst_46 {dimension_numbers = #tpu.dot_dimension_numbers<[1], [0], [0], [1], [0, 0, 1, 1], [], []>} : vector<8x512xf32>, vector<512x128xf32>, vector<8x128xf32> -> vector<8x128xf32>
    %c5_47 = arith.constant 5 : index
    %c0_48 = arith.constant 0 : index
    %c0_49 = arith.constant 0 : index
    %50 = vector.load %arg5[%c5_47, %c0_48, %c0_49] : memref<16x16x8xf32, #tpu.memory_space<vmem>>, vector<1x16x8xf32>
    %51 = vector.shape_cast %50 : vector<1x16x8xf32> to vector<16x8xf32>
    %cst_50 = arith.constant dense<0.000000e+00> : vector<16x128xf32>
    %52 = tpu.matmul %51, %49, %cst_50 {dimension_numbers = #tpu.dot_dimension_numbers<[1], [0], [0], [1], [0, 0, 1, 1], [], []>} : vector<16x8xf32>, vector<8x128xf32>, vector<16x128xf32> -> vector<16x128xf32>
    %53 = arith.addf %46, %52 : vector<16x128xf32>
    %c6 = arith.constant 6 : index
    %c0_51 = arith.constant 0 : index
    %c0_52 = arith.constant 0 : index
    %54 = vector.load %arg4[%c6, %c0_51, %c0_52] : memref<16x512x128xf32, #tpu.memory_space<vmem>>, vector<1x512x128xf32>
    %55 = vector.shape_cast %54 : vector<1x512x128xf32> to vector<512x128xf32>
    %cst_53 = arith.constant dense<0.000000e+00> : vector<8x128xf32>
    %56 = tpu.matmul %10, %55, %cst_53 {dimension_numbers = #tpu.dot_dimension_numbers<[1], [0], [0], [1], [0, 0, 1, 1], [], []>} : vector<8x512xf32>, vector<512x128xf32>, vector<8x128xf32> -> vector<8x128xf32>
    %c6_54 = arith.constant 6 : index
    %c0_55 = arith.constant 0 : index
    %c0_56 = arith.constant 0 : index
    %57 = vector.load %arg5[%c6_54, %c0_55, %c0_56] : memref<16x16x8xf32, #tpu.memory_space<vmem>>, vector<1x16x8xf32>
    %58 = vector.shape_cast %57 : vector<1x16x8xf32> to vector<16x8xf32>
    %cst_57 = arith.constant dense<0.000000e+00> : vector<16x128xf32>
    %59 = tpu.matmul %58, %56, %cst_57 {dimension_numbers = #tpu.dot_dimension_numbers<[1], [0], [0], [1], [0, 0, 1, 1], [], []>} : vector<16x8xf32>, vector<8x128xf32>, vector<16x128xf32> -> vector<16x128xf32>
    %60 = arith.addf %53, %59 : vector<16x128xf32>
    %c7 = arith.constant 7 : index
    %c0_58 = arith.constant 0 : index
    %c0_59 = arith.constant 0 : index
    %61 = vector.load %arg4[%c7, %c0_58, %c0_59] : memref<16x512x128xf32, #tpu.memory_space<vmem>>, vector<1x512x128xf32>
    %62 = vector.shape_cast %61 : vector<1x512x128xf32> to vector<512x128xf32>
    %cst_60 = arith.constant dense<0.000000e+00> : vector<8x128xf32>
    %63 = tpu.matmul %10, %62, %cst_60 {dimension_numbers = #tpu.dot_dimension_numbers<[1], [0], [0], [1], [0, 0, 1, 1], [], []>} : vector<8x512xf32>, vector<512x128xf32>, vector<8x128xf32> -> vector<8x128xf32>
    %c7_61 = arith.constant 7 : index
    %c0_62 = arith.constant 0 : index
    %c0_63 = arith.constant 0 : index
    %64 = vector.load %arg5[%c7_61, %c0_62, %c0_63] : memref<16x16x8xf32, #tpu.memory_space<vmem>>, vector<1x16x8xf32>
    %65 = vector.shape_cast %64 : vector<1x16x8xf32> to vector<16x8xf32>
    %cst_64 = arith.constant dense<0.000000e+00> : vector<16x128xf32>
    %66 = tpu.matmul %65, %63, %cst_64 {dimension_numbers = #tpu.dot_dimension_numbers<[1], [0], [0], [1], [0, 0, 1, 1], [], []>} : vector<16x8xf32>, vector<8x128xf32>, vector<16x128xf32> -> vector<16x128xf32>
    %67 = arith.addf %60, %66 : vector<16x128xf32>
    %c8 = arith.constant 8 : index
    %c0_65 = arith.constant 0 : index
    %c0_66 = arith.constant 0 : index
    %68 = vector.load %arg4[%c8, %c0_65, %c0_66] : memref<16x512x128xf32, #tpu.memory_space<vmem>>, vector<1x512x128xf32>
    %69 = vector.shape_cast %68 : vector<1x512x128xf32> to vector<512x128xf32>
    %cst_67 = arith.constant dense<0.000000e+00> : vector<8x128xf32>
    %70 = tpu.matmul %10, %69, %cst_67 {dimension_numbers = #tpu.dot_dimension_numbers<[1], [0], [0], [1], [0, 0, 1, 1], [], []>} : vector<8x512xf32>, vector<512x128xf32>, vector<8x128xf32> -> vector<8x128xf32>
    %c8_68 = arith.constant 8 : index
    %c0_69 = arith.constant 0 : index
    %c0_70 = arith.constant 0 : index
    %71 = vector.load %arg5[%c8_68, %c0_69, %c0_70] : memref<16x16x8xf32, #tpu.memory_space<vmem>>, vector<1x16x8xf32>
    %72 = vector.shape_cast %71 : vector<1x16x8xf32> to vector<16x8xf32>
    %cst_71 = arith.constant dense<0.000000e+00> : vector<16x128xf32>
    %73 = tpu.matmul %72, %70, %cst_71 {dimension_numbers = #tpu.dot_dimension_numbers<[1], [0], [0], [1], [0, 0, 1, 1], [], []>} : vector<16x8xf32>, vector<8x128xf32>, vector<16x128xf32> -> vector<16x128xf32>
    %74 = arith.addf %67, %73 : vector<16x128xf32>
    %c9 = arith.constant 9 : index
    %c0_72 = arith.constant 0 : index
    %c0_73 = arith.constant 0 : index
    %75 = vector.load %arg4[%c9, %c0_72, %c0_73] : memref<16x512x128xf32, #tpu.memory_space<vmem>>, vector<1x512x128xf32>
    %76 = vector.shape_cast %75 : vector<1x512x128xf32> to vector<512x128xf32>
    %cst_74 = arith.constant dense<0.000000e+00> : vector<8x128xf32>
    %77 = tpu.matmul %10, %76, %cst_74 {dimension_numbers = #tpu.dot_dimension_numbers<[1], [0], [0], [1], [0, 0, 1, 1], [], []>} : vector<8x512xf32>, vector<512x128xf32>, vector<8x128xf32> -> vector<8x128xf32>
    %c9_75 = arith.constant 9 : index
    %c0_76 = arith.constant 0 : index
    %c0_77 = arith.constant 0 : index
    %78 = vector.load %arg5[%c9_75, %c0_76, %c0_77] : memref<16x16x8xf32, #tpu.memory_space<vmem>>, vector<1x16x8xf32>
    %79 = vector.shape_cast %78 : vector<1x16x8xf32> to vector<16x8xf32>
    %cst_78 = arith.constant dense<0.000000e+00> : vector<16x128xf32>
    %80 = tpu.matmul %79, %77, %cst_78 {dimension_numbers = #tpu.dot_dimension_numbers<[1], [0], [0], [1], [0, 0, 1, 1], [], []>} : vector<16x8xf32>, vector<8x128xf32>, vector<16x128xf32> -> vector<16x128xf32>
    %81 = arith.addf %74, %80 : vector<16x128xf32>
    %c10 = arith.constant 10 : index
    %c0_79 = arith.constant 0 : index
    %c0_80 = arith.constant 0 : index
    %82 = vector.load %arg4[%c10, %c0_79, %c0_80] : memref<16x512x128xf32, #tpu.memory_space<vmem>>, vector<1x512x128xf32>
    %83 = vector.shape_cast %82 : vector<1x512x128xf32> to vector<512x128xf32>
    %cst_81 = arith.constant dense<0.000000e+00> : vector<8x128xf32>
    %84 = tpu.matmul %10, %83, %cst_81 {dimension_numbers = #tpu.dot_dimension_numbers<[1], [0], [0], [1], [0, 0, 1, 1], [], []>} : vector<8x512xf32>, vector<512x128xf32>, vector<8x128xf32> -> vector<8x128xf32>
    %c10_82 = arith.constant 10 : index
    %c0_83 = arith.constant 0 : index
    %c0_84 = arith.constant 0 : index
    %85 = vector.load %arg5[%c10_82, %c0_83, %c0_84] : memref<16x16x8xf32, #tpu.memory_space<vmem>>, vector<1x16x8xf32>
    %86 = vector.shape_cast %85 : vector<1x16x8xf32> to vector<16x8xf32>
    %cst_85 = arith.constant dense<0.000000e+00> : vector<16x128xf32>
    %87 = tpu.matmul %86, %84, %cst_85 {dimension_numbers = #tpu.dot_dimension_numbers<[1], [0], [0], [1], [0, 0, 1, 1], [], []>} : vector<16x8xf32>, vector<8x128xf32>, vector<16x128xf32> -> vector<16x128xf32>
    %88 = arith.addf %81, %87 : vector<16x128xf32>
    %c11 = arith.constant 11 : index
    %c0_86 = arith.constant 0 : index
    %c0_87 = arith.constant 0 : index
    %89 = vector.load %arg4[%c11, %c0_86, %c0_87] : memref<16x512x128xf32, #tpu.memory_space<vmem>>, vector<1x512x128xf32>
    %90 = vector.shape_cast %89 : vector<1x512x128xf32> to vector<512x128xf32>
    %cst_88 = arith.constant dense<0.000000e+00> : vector<8x128xf32>
    %91 = tpu.matmul %10, %90, %cst_88 {dimension_numbers = #tpu.dot_dimension_numbers<[1], [0], [0], [1], [0, 0, 1, 1], [], []>} : vector<8x512xf32>, vector<512x128xf32>, vector<8x128xf32> -> vector<8x128xf32>
    %c11_89 = arith.constant 11 : index
    %c0_90 = arith.constant 0 : index
    %c0_91 = arith.constant 0 : index
    %92 = vector.load %arg5[%c11_89, %c0_90, %c0_91] : memref<16x16x8xf32, #tpu.memory_space<vmem>>, vector<1x16x8xf32>
    %93 = vector.shape_cast %92 : vector<1x16x8xf32> to vector<16x8xf32>
    %cst_92 = arith.constant dense<0.000000e+00> : vector<16x128xf32>
    %94 = tpu.matmul %93, %91, %cst_92 {dimension_numbers = #tpu.dot_dimension_numbers<[1], [0], [0], [1], [0, 0, 1, 1], [], []>} : vector<16x8xf32>, vector<8x128xf32>, vector<16x128xf32> -> vector<16x128xf32>
    %95 = arith.addf %88, %94 : vector<16x128xf32>
    %c12 = arith.constant 12 : index
    %c0_93 = arith.constant 0 : index
    %c0_94 = arith.constant 0 : index
    %96 = vector.load %arg4[%c12, %c0_93, %c0_94] : memref<16x512x128xf32, #tpu.memory_space<vmem>>, vector<1x512x128xf32>
    %97 = vector.shape_cast %96 : vector<1x512x128xf32> to vector<512x128xf32>
    %cst_95 = arith.constant dense<0.000000e+00> : vector<8x128xf32>
    %98 = tpu.matmul %10, %97, %cst_95 {dimension_numbers = #tpu.dot_dimension_numbers<[1], [0], [0], [1], [0, 0, 1, 1], [], []>} : vector<8x512xf32>, vector<512x128xf32>, vector<8x128xf32> -> vector<8x128xf32>
    %c12_96 = arith.constant 12 : index
    %c0_97 = arith.constant 0 : index
    %c0_98 = arith.constant 0 : index
    %99 = vector.load %arg5[%c12_96, %c0_97, %c0_98] : memref<16x16x8xf32, #tpu.memory_space<vmem>>, vector<1x16x8xf32>
    %100 = vector.shape_cast %99 : vector<1x16x8xf32> to vector<16x8xf32>
    %cst_99 = arith.constant dense<0.000000e+00> : vector<16x128xf32>
    %101 = tpu.matmul %100, %98, %cst_99 {dimension_numbers = #tpu.dot_dimension_numbers<[1], [0], [0], [1], [0, 0, 1, 1], [], []>} : vector<16x8xf32>, vector<8x128xf32>, vector<16x128xf32> -> vector<16x128xf32>
    %102 = arith.addf %95, %101 : vector<16x128xf32>
    %c13 = arith.constant 13 : index
    %c0_100 = arith.constant 0 : index
    %c0_101 = arith.constant 0 : index
    %103 = vector.load %arg4[%c13, %c0_100, %c0_101] : memref<16x512x128xf32, #tpu.memory_space<vmem>>, vector<1x512x128xf32>
    %104 = vector.shape_cast %103 : vector<1x512x128xf32> to vector<512x128xf32>
    %cst_102 = arith.constant dense<0.000000e+00> : vector<8x128xf32>
    %105 = tpu.matmul %10, %104, %cst_102 {dimension_numbers = #tpu.dot_dimension_numbers<[1], [0], [0], [1], [0, 0, 1, 1], [], []>} : vector<8x512xf32>, vector<512x128xf32>, vector<8x128xf32> -> vector<8x128xf32>
    %c13_103 = arith.constant 13 : index
    %c0_104 = arith.constant 0 : index
    %c0_105 = arith.constant 0 : index
    %106 = vector.load %arg5[%c13_103, %c0_104, %c0_105] : memref<16x16x8xf32, #tpu.memory_space<vmem>>, vector<1x16x8xf32>
    %107 = vector.shape_cast %106 : vector<1x16x8xf32> to vector<16x8xf32>
    %cst_106 = arith.constant dense<0.000000e+00> : vector<16x128xf32>
    %108 = tpu.matmul %107, %105, %cst_106 {dimension_numbers = #tpu.dot_dimension_numbers<[1], [0], [0], [1], [0, 0, 1, 1], [], []>} : vector<16x8xf32>, vector<8x128xf32>, vector<16x128xf32> -> vector<16x128xf32>
    %109 = arith.addf %102, %108 : vector<16x128xf32>
    %c14 = arith.constant 14 : index
    %c0_107 = arith.constant 0 : index
    %c0_108 = arith.constant 0 : index
    %110 = vector.load %arg4[%c14, %c0_107, %c0_108] : memref<16x512x128xf32, #tpu.memory_space<vmem>>, vector<1x512x128xf32>
    %111 = vector.shape_cast %110 : vector<1x512x128xf32> to vector<512x128xf32>
    %cst_109 = arith.constant dense<0.000000e+00> : vector<8x128xf32>
    %112 = tpu.matmul %10, %111, %cst_109 {dimension_numbers = #tpu.dot_dimension_numbers<[1], [0], [0], [1], [0, 0, 1, 1], [], []>} : vector<8x512xf32>, vector<512x128xf32>, vector<8x128xf32> -> vector<8x128xf32>
    %c14_110 = arith.constant 14 : index
    %c0_111 = arith.constant 0 : index
    %c0_112 = arith.constant 0 : index
    %113 = vector.load %arg5[%c14_110, %c0_111, %c0_112] : memref<16x16x8xf32, #tpu.memory_space<vmem>>, vector<1x16x8xf32>
    %114 = vector.shape_cast %113 : vector<1x16x8xf32> to vector<16x8xf32>
    %cst_113 = arith.constant dense<0.000000e+00> : vector<16x128xf32>
    %115 = tpu.matmul %114, %112, %cst_113 {dimension_numbers = #tpu.dot_dimension_numbers<[1], [0], [0], [1], [0, 0, 1, 1], [], []>} : vector<16x8xf32>, vector<8x128xf32>, vector<16x128xf32> -> vector<16x128xf32>
    %116 = arith.addf %109, %115 : vector<16x128xf32>
    %c15 = arith.constant 15 : index
    %c0_114 = arith.constant 0 : index
    %c0_115 = arith.constant 0 : index
    %117 = vector.load %arg4[%c15, %c0_114, %c0_115] : memref<16x512x128xf32, #tpu.memory_space<vmem>>, vector<1x512x128xf32>
    %118 = vector.shape_cast %117 : vector<1x512x128xf32> to vector<512x128xf32>
    %cst_116 = arith.constant dense<0.000000e+00> : vector<8x128xf32>
    %119 = tpu.matmul %10, %118, %cst_116 {dimension_numbers = #tpu.dot_dimension_numbers<[1], [0], [0], [1], [0, 0, 1, 1], [], []>} : vector<8x512xf32>, vector<512x128xf32>, vector<8x128xf32> -> vector<8x128xf32>
    %c15_117 = arith.constant 15 : index
    %c0_118 = arith.constant 0 : index
    %c0_119 = arith.constant 0 : index
    %120 = vector.load %arg5[%c15_117, %c0_118, %c0_119] : memref<16x16x8xf32, #tpu.memory_space<vmem>>, vector<1x16x8xf32>
    %121 = vector.shape_cast %120 : vector<1x16x8xf32> to vector<16x8xf32>
    %cst_120 = arith.constant dense<0.000000e+00> : vector<16x128xf32>
    %122 = tpu.matmul %121, %119, %cst_120 {dimension_numbers = #tpu.dot_dimension_numbers<[1], [0], [0], [1], [0, 0, 1, 1], [], []>} : vector<16x8xf32>, vector<8x128xf32>, vector<16x128xf32> -> vector<16x128xf32>
    %123 = arith.addf %116, %122 : vector<16x128xf32>
    %c0_121 = arith.constant 0 : index
    %c0_122 = arith.constant 0 : index
    %124 = vector.load %arg6[%c0_121, %c0_122] : memref<16x1xf32, #tpu.memory_space<vmem>>, vector<16x1xf32>
    %125 = vector.broadcast %124 : vector<16x1xf32> to vector<16x128xf32>
    %126 = arith.addf %123, %125 : vector<16x128xf32>
    %cst_123 = arith.constant 0.000000e+00 : f32
    %127 = vector.broadcast %cst_123 : f32 to vector<16x128xf32>
    %128 = arith.cmpf oge, %126, %127 : vector<16x128xf32>
    %cst_124 = arith.constant 2.000000e-01 : f32
    %129 = vector.broadcast %cst_124 : f32 to vector<16x128xf32>
    %130 = arith.mulf %129, %126 : vector<16x128xf32>
    %131 = arith.select %128, %126, %130 : vector<16x128xi1>, vector<16x128xf32>
    %cst_125 = arith.constant 0.000000e+00 : f32
    %132 = vector.broadcast %cst_125 : f32 to vector<32x32xf32>
    %c0_126 = arith.constant 0 : index
    %c0_127 = arith.constant 0 : index
    %c0_128 = arith.constant 0 : index
    %133 = vector.load %arg7[%c0_126, %c0_127, %c0_128] : memref<16x128x32xf32, #tpu.memory_space<vmem>>, vector<1x128x32xf32>
    %134 = vector.shape_cast %133 : vector<1x128x32xf32> to vector<128x32xf32>
    %cst_129 = arith.constant dense<0.000000e+00> : vector<16x32xf32>
    %135 = tpu.matmul %131, %134, %cst_129 {dimension_numbers = #tpu.dot_dimension_numbers<[1], [0], [0], [1], [0, 0, 1, 1], [], []>} : vector<16x128xf32>, vector<128x32xf32>, vector<16x32xf32> -> vector<16x32xf32>
    %c0_130 = arith.constant 0 : index
    %c0_131 = arith.constant 0 : index
    %c0_132 = arith.constant 0 : index
    %136 = vector.load %arg8[%c0_130, %c0_131, %c0_132] : memref<16x32x16xf32, #tpu.memory_space<vmem>>, vector<1x32x16xf32>
    %137 = vector.shape_cast %136 : vector<1x32x16xf32> to vector<32x16xf32>
    %cst_133 = arith.constant dense<0.000000e+00> : vector<32x32xf32>
    %138 = tpu.matmul %137, %135, %cst_133 {dimension_numbers = #tpu.dot_dimension_numbers<[1], [0], [0], [1], [0, 0, 1, 1], [], []>} : vector<32x16xf32>, vector<16x32xf32>, vector<32x32xf32> -> vector<32x32xf32>
    %139 = arith.addf %132, %138 : vector<32x32xf32>
    %c1_134 = arith.constant 1 : index
    %c0_135 = arith.constant 0 : index
    %c0_136 = arith.constant 0 : index
    %140 = vector.load %arg7[%c1_134, %c0_135, %c0_136] : memref<16x128x32xf32, #tpu.memory_space<vmem>>, vector<1x128x32xf32>
    %141 = vector.shape_cast %140 : vector<1x128x32xf32> to vector<128x32xf32>
    %cst_137 = arith.constant dense<0.000000e+00> : vector<16x32xf32>
    %142 = tpu.matmul %131, %141, %cst_137 {dimension_numbers = #tpu.dot_dimension_numbers<[1], [0], [0], [1], [0, 0, 1, 1], [], []>} : vector<16x128xf32>, vector<128x32xf32>, vector<16x32xf32> -> vector<16x32xf32>
    %c1_138 = arith.constant 1 : index
    %c0_139 = arith.constant 0 : index
    %c0_140 = arith.constant 0 : index
    %143 = vector.load %arg8[%c1_138, %c0_139, %c0_140] : memref<16x32x16xf32, #tpu.memory_space<vmem>>, vector<1x32x16xf32>
    %144 = vector.shape_cast %143 : vector<1x32x16xf32> to vector<32x16xf32>
    %cst_141 = arith.constant dense<0.000000e+00> : vector<32x32xf32>
    %145 = tpu.matmul %144, %142, %cst_141 {dimension_numbers = #tpu.dot_dimension_numbers<[1], [0], [0], [1], [0, 0, 1, 1], [], []>} : vector<32x16xf32>, vector<16x32xf32>, vector<32x32xf32> -> vector<32x32xf32>
    %146 = arith.addf %139, %145 : vector<32x32xf32>
    %c2_142 = arith.constant 2 : index
    %c0_143 = arith.constant 0 : index
    %c0_144 = arith.constant 0 : index
    %147 = vector.load %arg7[%c2_142, %c0_143, %c0_144] : memref<16x128x32xf32, #tpu.memory_space<vmem>>, vector<1x128x32xf32>
    %148 = vector.shape_cast %147 : vector<1x128x32xf32> to vector<128x32xf32>
    %cst_145 = arith.constant dense<0.000000e+00> : vector<16x32xf32>
    %149 = tpu.matmul %131, %148, %cst_145 {dimension_numbers = #tpu.dot_dimension_numbers<[1], [0], [0], [1], [0, 0, 1, 1], [], []>} : vector<16x128xf32>, vector<128x32xf32>, vector<16x32xf32> -> vector<16x32xf32>
    %c2_146 = arith.constant 2 : index
    %c0_147 = arith.constant 0 : index
    %c0_148 = arith.constant 0 : index
    %150 = vector.load %arg8[%c2_146, %c0_147, %c0_148] : memref<16x32x16xf32, #tpu.memory_space<vmem>>, vector<1x32x16xf32>
    %151 = vector.shape_cast %150 : vector<1x32x16xf32> to vector<32x16xf32>
    %cst_149 = arith.constant dense<0.000000e+00> : vector<32x32xf32>
    %152 = tpu.matmul %151, %149, %cst_149 {dimension_numbers = #tpu.dot_dimension_numbers<[1], [0], [0], [1], [0, 0, 1, 1], [], []>} : vector<32x16xf32>, vector<16x32xf32>, vector<32x32xf32> -> vector<32x32xf32>
    %153 = arith.addf %146, %152 : vector<32x32xf32>
    %c3_150 = arith.constant 3 : index
    %c0_151 = arith.constant 0 : index
    %c0_152 = arith.constant 0 : index
    %154 = vector.load %arg7[%c3_150, %c0_151, %c0_152] : memref<16x128x32xf32, #tpu.memory_space<vmem>>, vector<1x128x32xf32>
    %155 = vector.shape_cast %154 : vector<1x128x32xf32> to vector<128x32xf32>
    %cst_153 = arith.constant dense<0.000000e+00> : vector<16x32xf32>
    %156 = tpu.matmul %131, %155, %cst_153 {dimension_numbers = #tpu.dot_dimension_numbers<[1], [0], [0], [1], [0, 0, 1, 1], [], []>} : vector<16x128xf32>, vector<128x32xf32>, vector<16x32xf32> -> vector<16x32xf32>
    %c3_154 = arith.constant 3 : index
    %c0_155 = arith.constant 0 : index
    %c0_156 = arith.constant 0 : index
    %157 = vector.load %arg8[%c3_154, %c0_155, %c0_156] : memref<16x32x16xf32, #tpu.memory_space<vmem>>, vector<1x32x16xf32>
    %158 = vector.shape_cast %157 : vector<1x32x16xf32> to vector<32x16xf32>
    %cst_157 = arith.constant dense<0.000000e+00> : vector<32x32xf32>
    %159 = tpu.matmul %158, %156, %cst_157 {dimension_numbers = #tpu.dot_dimension_numbers<[1], [0], [0], [1], [0, 0, 1, 1], [], []>} : vector<32x16xf32>, vector<16x32xf32>, vector<32x32xf32> -> vector<32x32xf32>
    %160 = arith.addf %153, %159 : vector<32x32xf32>
    %c4_158 = arith.constant 4 : index
    %c0_159 = arith.constant 0 : index
    %c0_160 = arith.constant 0 : index
    %161 = vector.load %arg7[%c4_158, %c0_159, %c0_160] : memref<16x128x32xf32, #tpu.memory_space<vmem>>, vector<1x128x32xf32>
    %162 = vector.shape_cast %161 : vector<1x128x32xf32> to vector<128x32xf32>
    %cst_161 = arith.constant dense<0.000000e+00> : vector<16x32xf32>
    %163 = tpu.matmul %131, %162, %cst_161 {dimension_numbers = #tpu.dot_dimension_numbers<[1], [0], [0], [1], [0, 0, 1, 1], [], []>} : vector<16x128xf32>, vector<128x32xf32>, vector<16x32xf32> -> vector<16x32xf32>
    %c4_162 = arith.constant 4 : index
    %c0_163 = arith.constant 0 : index
    %c0_164 = arith.constant 0 : index
    %164 = vector.load %arg8[%c4_162, %c0_163, %c0_164] : memref<16x32x16xf32, #tpu.memory_space<vmem>>, vector<1x32x16xf32>
    %165 = vector.shape_cast %164 : vector<1x32x16xf32> to vector<32x16xf32>
    %cst_165 = arith.constant dense<0.000000e+00> : vector<32x32xf32>
    %166 = tpu.matmul %165, %163, %cst_165 {dimension_numbers = #tpu.dot_dimension_numbers<[1], [0], [0], [1], [0, 0, 1, 1], [], []>} : vector<32x16xf32>, vector<16x32xf32>, vector<32x32xf32> -> vector<32x32xf32>
    %167 = arith.addf %160, %166 : vector<32x32xf32>
    %c5_166 = arith.constant 5 : index
    %c0_167 = arith.constant 0 : index
    %c0_168 = arith.constant 0 : index
    %168 = vector.load %arg7[%c5_166, %c0_167, %c0_168] : memref<16x128x32xf32, #tpu.memory_space<vmem>>, vector<1x128x32xf32>
    %169 = vector.shape_cast %168 : vector<1x128x32xf32> to vector<128x32xf32>
    %cst_169 = arith.constant dense<0.000000e+00> : vector<16x32xf32>
    %170 = tpu.matmul %131, %169, %cst_169 {dimension_numbers = #tpu.dot_dimension_numbers<[1], [0], [0], [1], [0, 0, 1, 1], [], []>} : vector<16x128xf32>, vector<128x32xf32>, vector<16x32xf32> -> vector<16x32xf32>
    %c5_170 = arith.constant 5 : index
    %c0_171 = arith.constant 0 : index
    %c0_172 = arith.constant 0 : index
    %171 = vector.load %arg8[%c5_170, %c0_171, %c0_172] : memref<16x32x16xf32, #tpu.memory_space<vmem>>, vector<1x32x16xf32>
    %172 = vector.shape_cast %171 : vector<1x32x16xf32> to vector<32x16xf32>
    %cst_173 = arith.constant dense<0.000000e+00> : vector<32x32xf32>
    %173 = tpu.matmul %172, %170, %cst_173 {dimension_numbers = #tpu.dot_dimension_numbers<[1], [0], [0], [1], [0, 0, 1, 1], [], []>} : vector<32x16xf32>, vector<16x32xf32>, vector<32x32xf32> -> vector<32x32xf32>
    %174 = arith.addf %167, %173 : vector<32x32xf32>
    %c6_174 = arith.constant 6 : index
    %c0_175 = arith.constant 0 : index
    %c0_176 = arith.constant 0 : index
    %175 = vector.load %arg7[%c6_174, %c0_175, %c0_176] : memref<16x128x32xf32, #tpu.memory_space<vmem>>, vector<1x128x32xf32>
    %176 = vector.shape_cast %175 : vector<1x128x32xf32> to vector<128x32xf32>
    %cst_177 = arith.constant dense<0.000000e+00> : vector<16x32xf32>
    %177 = tpu.matmul %131, %176, %cst_177 {dimension_numbers = #tpu.dot_dimension_numbers<[1], [0], [0], [1], [0, 0, 1, 1], [], []>} : vector<16x128xf32>, vector<128x32xf32>, vector<16x32xf32> -> vector<16x32xf32>
    %c6_178 = arith.constant 6 : index
    %c0_179 = arith.constant 0 : index
    %c0_180 = arith.constant 0 : index
    %178 = vector.load %arg8[%c6_178, %c0_179, %c0_180] : memref<16x32x16xf32, #tpu.memory_space<vmem>>, vector<1x32x16xf32>
    %179 = vector.shape_cast %178 : vector<1x32x16xf32> to vector<32x16xf32>
    %cst_181 = arith.constant dense<0.000000e+00> : vector<32x32xf32>
    %180 = tpu.matmul %179, %177, %cst_181 {dimension_numbers = #tpu.dot_dimension_numbers<[1], [0], [0], [1], [0, 0, 1, 1], [], []>} : vector<32x16xf32>, vector<16x32xf32>, vector<32x32xf32> -> vector<32x32xf32>
    %181 = arith.addf %174, %180 : vector<32x32xf32>
    %c7_182 = arith.constant 7 : index
    %c0_183 = arith.constant 0 : index
    %c0_184 = arith.constant 0 : index
    %182 = vector.load %arg7[%c7_182, %c0_183, %c0_184] : memref<16x128x32xf32, #tpu.memory_space<vmem>>, vector<1x128x32xf32>
    %183 = vector.shape_cast %182 : vector<1x128x32xf32> to vector<128x32xf32>
    %cst_185 = arith.constant dense<0.000000e+00> : vector<16x32xf32>
    %184 = tpu.matmul %131, %183, %cst_185 {dimension_numbers = #tpu.dot_dimension_numbers<[1], [0], [0], [1], [0, 0, 1, 1], [], []>} : vector<16x128xf32>, vector<128x32xf32>, vector<16x32xf32> -> vector<16x32xf32>
    %c7_186 = arith.constant 7 : index
    %c0_187 = arith.constant 0 : index
    %c0_188 = arith.constant 0 : index
    %185 = vector.load %arg8[%c7_186, %c0_187, %c0_188] : memref<16x32x16xf32, #tpu.memory_space<vmem>>, vector<1x32x16xf32>
    %186 = vector.shape_cast %185 : vector<1x32x16xf32> to vector<32x16xf32>
    %cst_189 = arith.constant dense<0.000000e+00> : vector<32x32xf32>
    %187 = tpu.matmul %186, %184, %cst_189 {dimension_numbers = #tpu.dot_dimension_numbers<[1], [0], [0], [1], [0, 0, 1, 1], [], []>} : vector<32x16xf32>, vector<16x32xf32>, vector<32x32xf32> -> vector<32x32xf32>
    %188 = arith.addf %181, %187 : vector<32x32xf32>
    %c8_190 = arith.constant 8 : index
    %c0_191 = arith.constant 0 : index
    %c0_192 = arith.constant 0 : index
    %189 = vector.load %arg7[%c8_190, %c0_191, %c0_192] : memref<16x128x32xf32, #tpu.memory_space<vmem>>, vector<1x128x32xf32>
    %190 = vector.shape_cast %189 : vector<1x128x32xf32> to vector<128x32xf32>
    %cst_193 = arith.constant dense<0.000000e+00> : vector<16x32xf32>
    %191 = tpu.matmul %131, %190, %cst_193 {dimension_numbers = #tpu.dot_dimension_numbers<[1], [0], [0], [1], [0, 0, 1, 1], [], []>} : vector<16x128xf32>, vector<128x32xf32>, vector<16x32xf32> -> vector<16x32xf32>
    %c8_194 = arith.constant 8 : index
    %c0_195 = arith.constant 0 : index
    %c0_196 = arith.constant 0 : index
    %192 = vector.load %arg8[%c8_194, %c0_195, %c0_196] : memref<16x32x16xf32, #tpu.memory_space<vmem>>, vector<1x32x16xf32>
    %193 = vector.shape_cast %192 : vector<1x32x16xf32> to vector<32x16xf32>
    %cst_197 = arith.constant dense<0.000000e+00> : vector<32x32xf32>
    %194 = tpu.matmul %193, %191, %cst_197 {dimension_numbers = #tpu.dot_dimension_numbers<[1], [0], [0], [1], [0, 0, 1, 1], [], []>} : vector<32x16xf32>, vector<16x32xf32>, vector<32x32xf32> -> vector<32x32xf32>
    %195 = arith.addf %188, %194 : vector<32x32xf32>
    %c9_198 = arith.constant 9 : index
    %c0_199 = arith.constant 0 : index
    %c0_200 = arith.constant 0 : index
    %196 = vector.load %arg7[%c9_198, %c0_199, %c0_200] : memref<16x128x32xf32, #tpu.memory_space<vmem>>, vector<1x128x32xf32>
    %197 = vector.shape_cast %196 : vector<1x128x32xf32> to vector<128x32xf32>
    %cst_201 = arith.constant dense<0.000000e+00> : vector<16x32xf32>
    %198 = tpu.matmul %131, %197, %cst_201 {dimension_numbers = #tpu.dot_dimension_numbers<[1], [0], [0], [1], [0, 0, 1, 1], [], []>} : vector<16x128xf32>, vector<128x32xf32>, vector<16x32xf32> -> vector<16x32xf32>
    %c9_202 = arith.constant 9 : index
    %c0_203 = arith.constant 0 : index
    %c0_204 = arith.constant 0 : index
    %199 = vector.load %arg8[%c9_202, %c0_203, %c0_204] : memref<16x32x16xf32, #tpu.memory_space<vmem>>, vector<1x32x16xf32>
    %200 = vector.shape_cast %199 : vector<1x32x16xf32> to vector<32x16xf32>
    %cst_205 = arith.constant dense<0.000000e+00> : vector<32x32xf32>
    %201 = tpu.matmul %200, %198, %cst_205 {dimension_numbers = #tpu.dot_dimension_numbers<[1], [0], [0], [1], [0, 0, 1, 1], [], []>} : vector<32x16xf32>, vector<16x32xf32>, vector<32x32xf32> -> vector<32x32xf32>
    %202 = arith.addf %195, %201 : vector<32x32xf32>
    %c10_206 = arith.constant 10 : index
    %c0_207 = arith.constant 0 : index
    %c0_208 = arith.constant 0 : index
    %203 = vector.load %arg7[%c10_206, %c0_207, %c0_208] : memref<16x128x32xf32, #tpu.memory_space<vmem>>, vector<1x128x32xf32>
    %204 = vector.shape_cast %203 : vector<1x128x32xf32> to vector<128x32xf32>
    %cst_209 = arith.constant dense<0.000000e+00> : vector<16x32xf32>
    %205 = tpu.matmul %131, %204, %cst_209 {dimension_numbers = #tpu.dot_dimension_numbers<[1], [0], [0], [1], [0, 0, 1, 1], [], []>} : vector<16x128xf32>, vector<128x32xf32>, vector<16x32xf32> -> vector<16x32xf32>
    %c10_210 = arith.constant 10 : index
    %c0_211 = arith.constant 0 : index
    %c0_212 = arith.constant 0 : index
    %206 = vector.load %arg8[%c10_210, %c0_211, %c0_212] : memref<16x32x16xf32, #tpu.memory_space<vmem>>, vector<1x32x16xf32>
    %207 = vector.shape_cast %206 : vector<1x32x16xf32> to vector<32x16xf32>
    %cst_213 = arith.constant dense<0.000000e+00> : vector<32x32xf32>
    %208 = tpu.matmul %207, %205, %cst_213 {dimension_numbers = #tpu.dot_dimension_numbers<[1], [0], [0], [1], [0, 0, 1, 1], [], []>} : vector<32x16xf32>, vector<16x32xf32>, vector<32x32xf32> -> vector<32x32xf32>
    %209 = arith.addf %202, %208 : vector<32x32xf32>
    %c11_214 = arith.constant 11 : index
    %c0_215 = arith.constant 0 : index
    %c0_216 = arith.constant 0 : index
    %210 = vector.load %arg7[%c11_214, %c0_215, %c0_216] : memref<16x128x32xf32, #tpu.memory_space<vmem>>, vector<1x128x32xf32>
    %211 = vector.shape_cast %210 : vector<1x128x32xf32> to vector<128x32xf32>
    %cst_217 = arith.constant dense<0.000000e+00> : vector<16x32xf32>
    %212 = tpu.matmul %131, %211, %cst_217 {dimension_numbers = #tpu.dot_dimension_numbers<[1], [0], [0], [1], [0, 0, 1, 1], [], []>} : vector<16x128xf32>, vector<128x32xf32>, vector<16x32xf32> -> vector<16x32xf32>
    %c11_218 = arith.constant 11 : index
    %c0_219 = arith.constant 0 : index
    %c0_220 = arith.constant 0 : index
    %213 = vector.load %arg8[%c11_218, %c0_219, %c0_220] : memref<16x32x16xf32, #tpu.memory_space<vmem>>, vector<1x32x16xf32>
    %214 = vector.shape_cast %213 : vector<1x32x16xf32> to vector<32x16xf32>
    %cst_221 = arith.constant dense<0.000000e+00> : vector<32x32xf32>
    %215 = tpu.matmul %214, %212, %cst_221 {dimension_numbers = #tpu.dot_dimension_numbers<[1], [0], [0], [1], [0, 0, 1, 1], [], []>} : vector<32x16xf32>, vector<16x32xf32>, vector<32x32xf32> -> vector<32x32xf32>
    %216 = arith.addf %209, %215 : vector<32x32xf32>
    %c12_222 = arith.constant 12 : index
    %c0_223 = arith.constant 0 : index
    %c0_224 = arith.constant 0 : index
    %217 = vector.load %arg7[%c12_222, %c0_223, %c0_224] : memref<16x128x32xf32, #tpu.memory_space<vmem>>, vector<1x128x32xf32>
    %218 = vector.shape_cast %217 : vector<1x128x32xf32> to vector<128x32xf32>
    %cst_225 = arith.constant dense<0.000000e+00> : vector<16x32xf32>
    %219 = tpu.matmul %131, %218, %cst_225 {dimension_numbers = #tpu.dot_dimension_numbers<[1], [0], [0], [1], [0, 0, 1, 1], [], []>} : vector<16x128xf32>, vector<128x32xf32>, vector<16x32xf32> -> vector<16x32xf32>
    %c12_226 = arith.constant 12 : index
    %c0_227 = arith.constant 0 : index
    %c0_228 = arith.constant 0 : index
    %220 = vector.load %arg8[%c12_226, %c0_227, %c0_228] : memref<16x32x16xf32, #tpu.memory_space<vmem>>, vector<1x32x16xf32>
    %221 = vector.shape_cast %220 : vector<1x32x16xf32> to vector<32x16xf32>
    %cst_229 = arith.constant dense<0.000000e+00> : vector<32x32xf32>
    %222 = tpu.matmul %221, %219, %cst_229 {dimension_numbers = #tpu.dot_dimension_numbers<[1], [0], [0], [1], [0, 0, 1, 1], [], []>} : vector<32x16xf32>, vector<16x32xf32>, vector<32x32xf32> -> vector<32x32xf32>
    %223 = arith.addf %216, %222 : vector<32x32xf32>
    %c13_230 = arith.constant 13 : index
    %c0_231 = arith.constant 0 : index
    %c0_232 = arith.constant 0 : index
    %224 = vector.load %arg7[%c13_230, %c0_231, %c0_232] : memref<16x128x32xf32, #tpu.memory_space<vmem>>, vector<1x128x32xf32>
    %225 = vector.shape_cast %224 : vector<1x128x32xf32> to vector<128x32xf32>
    %cst_233 = arith.constant dense<0.000000e+00> : vector<16x32xf32>
    %226 = tpu.matmul %131, %225, %cst_233 {dimension_numbers = #tpu.dot_dimension_numbers<[1], [0], [0], [1], [0, 0, 1, 1], [], []>} : vector<16x128xf32>, vector<128x32xf32>, vector<16x32xf32> -> vector<16x32xf32>
    %c13_234 = arith.constant 13 : index
    %c0_235 = arith.constant 0 : index
    %c0_236 = arith.constant 0 : index
    %227 = vector.load %arg8[%c13_234, %c0_235, %c0_236] : memref<16x32x16xf32, #tpu.memory_space<vmem>>, vector<1x32x16xf32>
    %228 = vector.shape_cast %227 : vector<1x32x16xf32> to vector<32x16xf32>
    %cst_237 = arith.constant dense<0.000000e+00> : vector<32x32xf32>
    %229 = tpu.matmul %228, %226, %cst_237 {dimension_numbers = #tpu.dot_dimension_numbers<[1], [0], [0], [1], [0, 0, 1, 1], [], []>} : vector<32x16xf32>, vector<16x32xf32>, vector<32x32xf32> -> vector<32x32xf32>
    %230 = arith.addf %223, %229 : vector<32x32xf32>
    %c14_238 = arith.constant 14 : index
    %c0_239 = arith.constant 0 : index
    %c0_240 = arith.constant 0 : index
    %231 = vector.load %arg7[%c14_238, %c0_239, %c0_240] : memref<16x128x32xf32, #tpu.memory_space<vmem>>, vector<1x128x32xf32>
    %232 = vector.shape_cast %231 : vector<1x128x32xf32> to vector<128x32xf32>
    %cst_241 = arith.constant dense<0.000000e+00> : vector<16x32xf32>
    %233 = tpu.matmul %131, %232, %cst_241 {dimension_numbers = #tpu.dot_dimension_numbers<[1], [0], [0], [1], [0, 0, 1, 1], [], []>} : vector<16x128xf32>, vector<128x32xf32>, vector<16x32xf32> -> vector<16x32xf32>
    %c14_242 = arith.constant 14 : index
    %c0_243 = arith.constant 0 : index
    %c0_244 = arith.constant 0 : index
    %234 = vector.load %arg8[%c14_242, %c0_243, %c0_244] : memref<16x32x16xf32, #tpu.memory_space<vmem>>, vector<1x32x16xf32>
    %235 = vector.shape_cast %234 : vector<1x32x16xf32> to vector<32x16xf32>
    %cst_245 = arith.constant dense<0.000000e+00> : vector<32x32xf32>
    %236 = tpu.matmul %235, %233, %cst_245 {dimension_numbers = #tpu.dot_dimension_numbers<[1], [0], [0], [1], [0, 0, 1, 1], [], []>} : vector<32x16xf32>, vector<16x32xf32>, vector<32x32xf32> -> vector<32x32xf32>
    %237 = arith.addf %230, %236 : vector<32x32xf32>
    %c15_246 = arith.constant 15 : index
    %c0_247 = arith.constant 0 : index
    %c0_248 = arith.constant 0 : index
    %238 = vector.load %arg7[%c15_246, %c0_247, %c0_248] : memref<16x128x32xf32, #tpu.memory_space<vmem>>, vector<1x128x32xf32>
    %239 = vector.shape_cast %238 : vector<1x128x32xf32> to vector<128x32xf32>
    %cst_249 = arith.constant dense<0.000000e+00> : vector<16x32xf32>
    %240 = tpu.matmul %131, %239, %cst_249 {dimension_numbers = #tpu.dot_dimension_numbers<[1], [0], [0], [1], [0, 0, 1, 1], [], []>} : vector<16x128xf32>, vector<128x32xf32>, vector<16x32xf32> -> vector<16x32xf32>
    %c15_250 = arith.constant 15 : index
    %c0_251 = arith.constant 0 : index
    %c0_252 = arith.constant 0 : index
    %241 = vector.load %arg8[%c15_250, %c0_251, %c0_252] : memref<16x32x16xf32, #tpu.memory_space<vmem>>, vector<1x32x16xf32>
    %242 = vector.shape_cast %241 : vector<1x32x16xf32> to vector<32x16xf32>
    %cst_253 = arith.constant dense<0.000000e+00> : vector<32x32xf32>
    %243 = tpu.matmul %242, %240, %cst_253 {dimension_numbers = #tpu.dot_dimension_numbers<[1], [0], [0], [1], [0, 0, 1, 1], [], []>} : vector<32x16xf32>, vector<16x32xf32>, vector<32x32xf32> -> vector<32x32xf32>
    %244 = arith.addf %237, %243 : vector<32x32xf32>
    %c0_254 = arith.constant 0 : index
    %c0_255 = arith.constant 0 : index
    %245 = vector.load %arg9[%c0_254, %c0_255] : memref<32x1xf32, #tpu.memory_space<vmem>>, vector<32x1xf32>
    %246 = vector.broadcast %245 : vector<32x1xf32> to vector<32x32xf32>
    %247 = arith.addf %244, %246 : vector<32x32xf32>
    %cst_256 = arith.constant 0.000000e+00 : f32
    %248 = vector.broadcast %cst_256 : f32 to vector<32x32xf32>
    %249 = arith.cmpf oge, %247, %248 : vector<32x32xf32>
    %cst_257 = arith.constant 2.000000e-01 : f32
    %250 = vector.broadcast %cst_257 : f32 to vector<32x32xf32>
    %251 = arith.mulf %250, %247 : vector<32x32xf32>
    %252 = arith.select %249, %247, %251 : vector<32x32xi1>, vector<32x32xf32>
    %cst_258 = arith.constant 0.000000e+00 : f32
    %253 = vector.broadcast %cst_258 : f32 to vector<64x8xf32>
    %c0_259 = arith.constant 0 : index
    %c0_260 = arith.constant 0 : index
    %c0_261 = arith.constant 0 : index
    %254 = vector.load %arg10[%c0_259, %c0_260, %c0_261] : memref<16x32x8xf32, #tpu.memory_space<vmem>>, vector<1x32x8xf32>
    %255 = vector.shape_cast %254 : vector<1x32x8xf32> to vector<32x8xf32>
    %cst_262 = arith.constant dense<0.000000e+00> : vector<32x8xf32>
    %256 = tpu.matmul %252, %255, %cst_262 {dimension_numbers = #tpu.dot_dimension_numbers<[1], [0], [0], [1], [0, 0, 1, 1], [], []>} : vector<32x32xf32>, vector<32x8xf32>, vector<32x8xf32> -> vector<32x8xf32>
    %c0_263 = arith.constant 0 : index
    %c0_264 = arith.constant 0 : index
    %c0_265 = arith.constant 0 : index
    %257 = vector.load %arg11[%c0_263, %c0_264, %c0_265] : memref<16x64x32xf32, #tpu.memory_space<vmem>>, vector<1x64x32xf32>
    %258 = vector.shape_cast %257 : vector<1x64x32xf32> to vector<64x32xf32>
    %cst_266 = arith.constant dense<0.000000e+00> : vector<64x8xf32>
    %259 = tpu.matmul %258, %256, %cst_266 {dimension_numbers = #tpu.dot_dimension_numbers<[1], [0], [0], [1], [0, 0, 1, 1], [], []>} : vector<64x32xf32>, vector<32x8xf32>, vector<64x8xf32> -> vector<64x8xf32>
    %260 = arith.addf %253, %259 : vector<64x8xf32>
    %c1_267 = arith.constant 1 : index
    %c0_268 = arith.constant 0 : index
    %c0_269 = arith.constant 0 : index
    %261 = vector.load %arg10[%c1_267, %c0_268, %c0_269] : memref<16x32x8xf32, #tpu.memory_space<vmem>>, vector<1x32x8xf32>
    %262 = vector.shape_cast %261 : vector<1x32x8xf32> to vector<32x8xf32>
    %cst_270 = arith.constant dense<0.000000e+00> : vector<32x8xf32>
    %263 = tpu.matmul %252, %262, %cst_270 {dimension_numbers = #tpu.dot_dimension_numbers<[1], [0], [0], [1], [0, 0, 1, 1], [], []>} : vector<32x32xf32>, vector<32x8xf32>, vector<32x8xf32> -> vector<32x8xf32>
    %c1_271 = arith.constant 1 : index
    %c0_272 = arith.constant 0 : index
    %c0_273 = arith.constant 0 : index
    %264 = vector.load %arg11[%c1_271, %c0_272, %c0_273] : memref<16x64x32xf32, #tpu.memory_space<vmem>>, vector<1x64x32xf32>
    %265 = vector.shape_cast %264 : vector<1x64x32xf32> to vector<64x32xf32>
    %cst_274 = arith.constant dense<0.000000e+00> : vector<64x8xf32>
    %266 = tpu.matmul %265, %263, %cst_274 {dimension_numbers = #tpu.dot_dimension_numbers<[1], [0], [0], [1], [0, 0, 1, 1], [], []>} : vector<64x32xf32>, vector<32x8xf32>, vector<64x8xf32> -> vector<64x8xf32>
    %267 = arith.addf %260, %266 : vector<64x8xf32>
    %c2_275 = arith.constant 2 : index
    %c0_276 = arith.constant 0 : index
    %c0_277 = arith.constant 0 : index
    %268 = vector.load %arg10[%c2_275, %c0_276, %c0_277] : memref<16x32x8xf32, #tpu.memory_space<vmem>>, vector<1x32x8xf32>
    %269 = vector.shape_cast %268 : vector<1x32x8xf32> to vector<32x8xf32>
    %cst_278 = arith.constant dense<0.000000e+00> : vector<32x8xf32>
    %270 = tpu.matmul %252, %269, %cst_278 {dimension_numbers = #tpu.dot_dimension_numbers<[1], [0], [0], [1], [0, 0, 1, 1], [], []>} : vector<32x32xf32>, vector<32x8xf32>, vector<32x8xf32> -> vector<32x8xf32>
    %c2_279 = arith.constant 2 : index
    %c0_280 = arith.constant 0 : index
    %c0_281 = arith.constant 0 : index
    %271 = vector.load %arg11[%c2_279, %c0_280, %c0_281] : memref<16x64x32xf32, #tpu.memory_space<vmem>>, vector<1x64x32xf32>
    %272 = vector.shape_cast %271 : vector<1x64x32xf32> to vector<64x32xf32>
    %cst_282 = arith.constant dense<0.000000e+00> : vector<64x8xf32>
    %273 = tpu.matmul %272, %270, %cst_282 {dimension_numbers = #tpu.dot_dimension_numbers<[1], [0], [0], [1], [0, 0, 1, 1], [], []>} : vector<64x32xf32>, vector<32x8xf32>, vector<64x8xf32> -> vector<64x8xf32>
    %274 = arith.addf %267, %273 : vector<64x8xf32>
    %c3_283 = arith.constant 3 : index
    %c0_284 = arith.constant 0 : index
    %c0_285 = arith.constant 0 : index
    %275 = vector.load %arg10[%c3_283, %c0_284, %c0_285] : memref<16x32x8xf32, #tpu.memory_space<vmem>>, vector<1x32x8xf32>
    %276 = vector.shape_cast %275 : vector<1x32x8xf32> to vector<32x8xf32>
    %cst_286 = arith.constant dense<0.000000e+00> : vector<32x8xf32>
    %277 = tpu.matmul %252, %276, %cst_286 {dimension_numbers = #tpu.dot_dimension_numbers<[1], [0], [0], [1], [0, 0, 1, 1], [], []>} : vector<32x32xf32>, vector<32x8xf32>, vector<32x8xf32> -> vector<32x8xf32>
    %c3_287 = arith.constant 3 : index
    %c0_288 = arith.constant 0 : index
    %c0_289 = arith.constant 0 : index
    %278 = vector.load %arg11[%c3_287, %c0_288, %c0_289] : memref<16x64x32xf32, #tpu.memory_space<vmem>>, vector<1x64x32xf32>
    %279 = vector.shape_cast %278 : vector<1x64x32xf32> to vector<64x32xf32>
    %cst_290 = arith.constant dense<0.000000e+00> : vector<64x8xf32>
    %280 = tpu.matmul %279, %277, %cst_290 {dimension_numbers = #tpu.dot_dimension_numbers<[1], [0], [0], [1], [0, 0, 1, 1], [], []>} : vector<64x32xf32>, vector<32x8xf32>, vector<64x8xf32> -> vector<64x8xf32>
    %281 = arith.addf %274, %280 : vector<64x8xf32>
    %c4_291 = arith.constant 4 : index
    %c0_292 = arith.constant 0 : index
    %c0_293 = arith.constant 0 : index
    %282 = vector.load %arg10[%c4_291, %c0_292, %c0_293] : memref<16x32x8xf32, #tpu.memory_space<vmem>>, vector<1x32x8xf32>
    %283 = vector.shape_cast %282 : vector<1x32x8xf32> to vector<32x8xf32>
    %cst_294 = arith.constant dense<0.000000e+00> : vector<32x8xf32>
    %284 = tpu.matmul %252, %283, %cst_294 {dimension_numbers = #tpu.dot_dimension_numbers<[1], [0], [0], [1], [0, 0, 1, 1], [], []>} : vector<32x32xf32>, vector<32x8xf32>, vector<32x8xf32> -> vector<32x8xf32>
    %c4_295 = arith.constant 4 : index
    %c0_296 = arith.constant 0 : index
    %c0_297 = arith.constant 0 : index
    %285 = vector.load %arg11[%c4_295, %c0_296, %c0_297] : memref<16x64x32xf32, #tpu.memory_space<vmem>>, vector<1x64x32xf32>
    %286 = vector.shape_cast %285 : vector<1x64x32xf32> to vector<64x32xf32>
    %cst_298 = arith.constant dense<0.000000e+00> : vector<64x8xf32>
    %287 = tpu.matmul %286, %284, %cst_298 {dimension_numbers = #tpu.dot_dimension_numbers<[1], [0], [0], [1], [0, 0, 1, 1], [], []>} : vector<64x32xf32>, vector<32x8xf32>, vector<64x8xf32> -> vector<64x8xf32>
    %288 = arith.addf %281, %287 : vector<64x8xf32>
    %c5_299 = arith.constant 5 : index
    %c0_300 = arith.constant 0 : index
    %c0_301 = arith.constant 0 : index
    %289 = vector.load %arg10[%c5_299, %c0_300, %c0_301] : memref<16x32x8xf32, #tpu.memory_space<vmem>>, vector<1x32x8xf32>
    %290 = vector.shape_cast %289 : vector<1x32x8xf32> to vector<32x8xf32>
    %cst_302 = arith.constant dense<0.000000e+00> : vector<32x8xf32>
    %291 = tpu.matmul %252, %290, %cst_302 {dimension_numbers = #tpu.dot_dimension_numbers<[1], [0], [0], [1], [0, 0, 1, 1], [], []>} : vector<32x32xf32>, vector<32x8xf32>, vector<32x8xf32> -> vector<32x8xf32>
    %c5_303 = arith.constant 5 : index
    %c0_304 = arith.constant 0 : index
    %c0_305 = arith.constant 0 : index
    %292 = vector.load %arg11[%c5_303, %c0_304, %c0_305] : memref<16x64x32xf32, #tpu.memory_space<vmem>>, vector<1x64x32xf32>
    %293 = vector.shape_cast %292 : vector<1x64x32xf32> to vector<64x32xf32>
    %cst_306 = arith.constant dense<0.000000e+00> : vector<64x8xf32>
    %294 = tpu.matmul %293, %291, %cst_306 {dimension_numbers = #tpu.dot_dimension_numbers<[1], [0], [0], [1], [0, 0, 1, 1], [], []>} : vector<64x32xf32>, vector<32x8xf32>, vector<64x8xf32> -> vector<64x8xf32>
    %295 = arith.addf %288, %294 : vector<64x8xf32>
    %c6_307 = arith.constant 6 : index
    %c0_308 = arith.constant 0 : index
    %c0_309 = arith.constant 0 : index
    %296 = vector.load %arg10[%c6_307, %c0_308, %c0_309] : memref<16x32x8xf32, #tpu.memory_space<vmem>>, vector<1x32x8xf32>
    %297 = vector.shape_cast %296 : vector<1x32x8xf32> to vector<32x8xf32>
    %cst_310 = arith.constant dense<0.000000e+00> : vector<32x8xf32>
    %298 = tpu.matmul %252, %297, %cst_310 {dimension_numbers = #tpu.dot_dimension_numbers<[1], [0], [0], [1], [0, 0, 1, 1], [], []>} : vector<32x32xf32>, vector<32x8xf32>, vector<32x8xf32> -> vector<32x8xf32>
    %c6_311 = arith.constant 6 : index
    %c0_312 = arith.constant 0 : index
    %c0_313 = arith.constant 0 : index
    %299 = vector.load %arg11[%c6_311, %c0_312, %c0_313] : memref<16x64x32xf32, #tpu.memory_space<vmem>>, vector<1x64x32xf32>
    %300 = vector.shape_cast %299 : vector<1x64x32xf32> to vector<64x32xf32>
    %cst_314 = arith.constant dense<0.000000e+00> : vector<64x8xf32>
    %301 = tpu.matmul %300, %298, %cst_314 {dimension_numbers = #tpu.dot_dimension_numbers<[1], [0], [0], [1], [0, 0, 1, 1], [], []>} : vector<64x32xf32>, vector<32x8xf32>, vector<64x8xf32> -> vector<64x8xf32>
    %302 = arith.addf %295, %301 : vector<64x8xf32>
    %c7_315 = arith.constant 7 : index
    %c0_316 = arith.constant 0 : index
    %c0_317 = arith.constant 0 : index
    %303 = vector.load %arg10[%c7_315, %c0_316, %c0_317] : memref<16x32x8xf32, #tpu.memory_space<vmem>>, vector<1x32x8xf32>
    %304 = vector.shape_cast %303 : vector<1x32x8xf32> to vector<32x8xf32>
    %cst_318 = arith.constant dense<0.000000e+00> : vector<32x8xf32>
    %305 = tpu.matmul %252, %304, %cst_318 {dimension_numbers = #tpu.dot_dimension_numbers<[1], [0], [0], [1], [0, 0, 1, 1], [], []>} : vector<32x32xf32>, vector<32x8xf32>, vector<32x8xf32> -> vector<32x8xf32>
    %c7_319 = arith.constant 7 : index
    %c0_320 = arith.constant 0 : index
    %c0_321 = arith.constant 0 : index
    %306 = vector.load %arg11[%c7_319, %c0_320, %c0_321] : memref<16x64x32xf32, #tpu.memory_space<vmem>>, vector<1x64x32xf32>
    %307 = vector.shape_cast %306 : vector<1x64x32xf32> to vector<64x32xf32>
    %cst_322 = arith.constant dense<0.000000e+00> : vector<64x8xf32>
    %308 = tpu.matmul %307, %305, %cst_322 {dimension_numbers = #tpu.dot_dimension_numbers<[1], [0], [0], [1], [0, 0, 1, 1], [], []>} : vector<64x32xf32>, vector<32x8xf32>, vector<64x8xf32> -> vector<64x8xf32>
    %309 = arith.addf %302, %308 : vector<64x8xf32>
    %c8_323 = arith.constant 8 : index
    %c0_324 = arith.constant 0 : index
    %c0_325 = arith.constant 0 : index
    %310 = vector.load %arg10[%c8_323, %c0_324, %c0_325] : memref<16x32x8xf32, #tpu.memory_space<vmem>>, vector<1x32x8xf32>
    %311 = vector.shape_cast %310 : vector<1x32x8xf32> to vector<32x8xf32>
    %cst_326 = arith.constant dense<0.000000e+00> : vector<32x8xf32>
    %312 = tpu.matmul %252, %311, %cst_326 {dimension_numbers = #tpu.dot_dimension_numbers<[1], [0], [0], [1], [0, 0, 1, 1], [], []>} : vector<32x32xf32>, vector<32x8xf32>, vector<32x8xf32> -> vector<32x8xf32>
    %c8_327 = arith.constant 8 : index
    %c0_328 = arith.constant 0 : index
    %c0_329 = arith.constant 0 : index
    %313 = vector.load %arg11[%c8_327, %c0_328, %c0_329] : memref<16x64x32xf32, #tpu.memory_space<vmem>>, vector<1x64x32xf32>
    %314 = vector.shape_cast %313 : vector<1x64x32xf32> to vector<64x32xf32>
    %cst_330 = arith.constant dense<0.000000e+00> : vector<64x8xf32>
    %315 = tpu.matmul %314, %312, %cst_330 {dimension_numbers = #tpu.dot_dimension_numbers<[1], [0], [0], [1], [0, 0, 1, 1], [], []>} : vector<64x32xf32>, vector<32x8xf32>, vector<64x8xf32> -> vector<64x8xf32>
    %316 = arith.addf %309, %315 : vector<64x8xf32>
    %c9_331 = arith.constant 9 : index
    %c0_332 = arith.constant 0 : index
    %c0_333 = arith.constant 0 : index
    %317 = vector.load %arg10[%c9_331, %c0_332, %c0_333] : memref<16x32x8xf32, #tpu.memory_space<vmem>>, vector<1x32x8xf32>
    %318 = vector.shape_cast %317 : vector<1x32x8xf32> to vector<32x8xf32>
    %cst_334 = arith.constant dense<0.000000e+00> : vector<32x8xf32>
    %319 = tpu.matmul %252, %318, %cst_334 {dimension_numbers = #tpu.dot_dimension_numbers<[1], [0], [0], [1], [0, 0, 1, 1], [], []>} : vector<32x32xf32>, vector<32x8xf32>, vector<32x8xf32> -> vector<32x8xf32>
    %c9_335 = arith.constant 9 : index
    %c0_336 = arith.constant 0 : index
    %c0_337 = arith.constant 0 : index
    %320 = vector.load %arg11[%c9_335, %c0_336, %c0_337] : memref<16x64x32xf32, #tpu.memory_space<vmem>>, vector<1x64x32xf32>
    %321 = vector.shape_cast %320 : vector<1x64x32xf32> to vector<64x32xf32>
    %cst_338 = arith.constant dense<0.000000e+00> : vector<64x8xf32>
    %322 = tpu.matmul %321, %319, %cst_338 {dimension_numbers = #tpu.dot_dimension_numbers<[1], [0], [0], [1], [0, 0, 1, 1], [], []>} : vector<64x32xf32>, vector<32x8xf32>, vector<64x8xf32> -> vector<64x8xf32>
    %323 = arith.addf %316, %322 : vector<64x8xf32>
    %c10_339 = arith.constant 10 : index
    %c0_340 = arith.constant 0 : index
    %c0_341 = arith.constant 0 : index
    %324 = vector.load %arg10[%c10_339, %c0_340, %c0_341] : memref<16x32x8xf32, #tpu.memory_space<vmem>>, vector<1x32x8xf32>
    %325 = vector.shape_cast %324 : vector<1x32x8xf32> to vector<32x8xf32>
    %cst_342 = arith.constant dense<0.000000e+00> : vector<32x8xf32>
    %326 = tpu.matmul %252, %325, %cst_342 {dimension_numbers = #tpu.dot_dimension_numbers<[1], [0], [0], [1], [0, 0, 1, 1], [], []>} : vector<32x32xf32>, vector<32x8xf32>, vector<32x8xf32> -> vector<32x8xf32>
    %c10_343 = arith.constant 10 : index
    %c0_344 = arith.constant 0 : index
    %c0_345 = arith.constant 0 : index
    %327 = vector.load %arg11[%c10_343, %c0_344, %c0_345] : memref<16x64x32xf32, #tpu.memory_space<vmem>>, vector<1x64x32xf32>
    %328 = vector.shape_cast %327 : vector<1x64x32xf32> to vector<64x32xf32>
    %cst_346 = arith.constant dense<0.000000e+00> : vector<64x8xf32>
    %329 = tpu.matmul %328, %326, %cst_346 {dimension_numbers = #tpu.dot_dimension_numbers<[1], [0], [0], [1], [0, 0, 1, 1], [], []>} : vector<64x32xf32>, vector<32x8xf32>, vector<64x8xf32> -> vector<64x8xf32>
    %330 = arith.addf %323, %329 : vector<64x8xf32>
    %c11_347 = arith.constant 11 : index
    %c0_348 = arith.constant 0 : index
    %c0_349 = arith.constant 0 : index
    %331 = vector.load %arg10[%c11_347, %c0_348, %c0_349] : memref<16x32x8xf32, #tpu.memory_space<vmem>>, vector<1x32x8xf32>
    %332 = vector.shape_cast %331 : vector<1x32x8xf32> to vector<32x8xf32>
    %cst_350 = arith.constant dense<0.000000e+00> : vector<32x8xf32>
    %333 = tpu.matmul %252, %332, %cst_350 {dimension_numbers = #tpu.dot_dimension_numbers<[1], [0], [0], [1], [0, 0, 1, 1], [], []>} : vector<32x32xf32>, vector<32x8xf32>, vector<32x8xf32> -> vector<32x8xf32>
    %c11_351 = arith.constant 11 : index
    %c0_352 = arith.constant 0 : index
    %c0_353 = arith.constant 0 : index
    %334 = vector.load %arg11[%c11_351, %c0_352, %c0_353] : memref<16x64x32xf32, #tpu.memory_space<vmem>>, vector<1x64x32xf32>
    %335 = vector.shape_cast %334 : vector<1x64x32xf32> to vector<64x32xf32>
    %cst_354 = arith.constant dense<0.000000e+00> : vector<64x8xf32>
    %336 = tpu.matmul %335, %333, %cst_354 {dimension_numbers = #tpu.dot_dimension_numbers<[1], [0], [0], [1], [0, 0, 1, 1], [], []>} : vector<64x32xf32>, vector<32x8xf32>, vector<64x8xf32> -> vector<64x8xf32>
    %337 = arith.addf %330, %336 : vector<64x8xf32>
    %c12_355 = arith.constant 12 : index
    %c0_356 = arith.constant 0 : index
    %c0_357 = arith.constant 0 : index
    %338 = vector.load %arg10[%c12_355, %c0_356, %c0_357] : memref<16x32x8xf32, #tpu.memory_space<vmem>>, vector<1x32x8xf32>
    %339 = vector.shape_cast %338 : vector<1x32x8xf32> to vector<32x8xf32>
    %cst_358 = arith.constant dense<0.000000e+00> : vector<32x8xf32>
    %340 = tpu.matmul %252, %339, %cst_358 {dimension_numbers = #tpu.dot_dimension_numbers<[1], [0], [0], [1], [0, 0, 1, 1], [], []>} : vector<32x32xf32>, vector<32x8xf32>, vector<32x8xf32> -> vector<32x8xf32>
    %c12_359 = arith.constant 12 : index
    %c0_360 = arith.constant 0 : index
    %c0_361 = arith.constant 0 : index
    %341 = vector.load %arg11[%c12_359, %c0_360, %c0_361] : memref<16x64x32xf32, #tpu.memory_space<vmem>>, vector<1x64x32xf32>
    %342 = vector.shape_cast %341 : vector<1x64x32xf32> to vector<64x32xf32>
    %cst_362 = arith.constant dense<0.000000e+00> : vector<64x8xf32>
    %343 = tpu.matmul %342, %340, %cst_362 {dimension_numbers = #tpu.dot_dimension_numbers<[1], [0], [0], [1], [0, 0, 1, 1], [], []>} : vector<64x32xf32>, vector<32x8xf32>, vector<64x8xf32> -> vector<64x8xf32>
    %344 = arith.addf %337, %343 : vector<64x8xf32>
    %c13_363 = arith.constant 13 : index
    %c0_364 = arith.constant 0 : index
    %c0_365 = arith.constant 0 : index
    %345 = vector.load %arg10[%c13_363, %c0_364, %c0_365] : memref<16x32x8xf32, #tpu.memory_space<vmem>>, vector<1x32x8xf32>
    %346 = vector.shape_cast %345 : vector<1x32x8xf32> to vector<32x8xf32>
    %cst_366 = arith.constant dense<0.000000e+00> : vector<32x8xf32>
    %347 = tpu.matmul %252, %346, %cst_366 {dimension_numbers = #tpu.dot_dimension_numbers<[1], [0], [0], [1], [0, 0, 1, 1], [], []>} : vector<32x32xf32>, vector<32x8xf32>, vector<32x8xf32> -> vector<32x8xf32>
    %c13_367 = arith.constant 13 : index
    %c0_368 = arith.constant 0 : index
    %c0_369 = arith.constant 0 : index
    %348 = vector.load %arg11[%c13_367, %c0_368, %c0_369] : memref<16x64x32xf32, #tpu.memory_space<vmem>>, vector<1x64x32xf32>
    %349 = vector.shape_cast %348 : vector<1x64x32xf32> to vector<64x32xf32>
    %cst_370 = arith.constant dense<0.000000e+00> : vector<64x8xf32>
    %350 = tpu.matmul %349, %347, %cst_370 {dimension_numbers = #tpu.dot_dimension_numbers<[1], [0], [0], [1], [0, 0, 1, 1], [], []>} : vector<64x32xf32>, vector<32x8xf32>, vector<64x8xf32> -> vector<64x8xf32>
    %351 = arith.addf %344, %350 : vector<64x8xf32>
    %c14_371 = arith.constant 14 : index
    %c0_372 = arith.constant 0 : index
    %c0_373 = arith.constant 0 : index
    %352 = vector.load %arg10[%c14_371, %c0_372, %c0_373] : memref<16x32x8xf32, #tpu.memory_space<vmem>>, vector<1x32x8xf32>
    %353 = vector.shape_cast %352 : vector<1x32x8xf32> to vector<32x8xf32>
    %cst_374 = arith.constant dense<0.000000e+00> : vector<32x8xf32>
    %354 = tpu.matmul %252, %353, %cst_374 {dimension_numbers = #tpu.dot_dimension_numbers<[1], [0], [0], [1], [0, 0, 1, 1], [], []>} : vector<32x32xf32>, vector<32x8xf32>, vector<32x8xf32> -> vector<32x8xf32>
    %c14_375 = arith.constant 14 : index
    %c0_376 = arith.constant 0 : index
    %c0_377 = arith.constant 0 : index
    %355 = vector.load %arg11[%c14_375, %c0_376, %c0_377] : memref<16x64x32xf32, #tpu.memory_space<vmem>>, vector<1x64x32xf32>
    %356 = vector.shape_cast %355 : vector<1x64x32xf32> to vector<64x32xf32>
    %cst_378 = arith.constant dense<0.000000e+00> : vector<64x8xf32>
    %357 = tpu.matmul %356, %354, %cst_378 {dimension_numbers = #tpu.dot_dimension_numbers<[1], [0], [0], [1], [0, 0, 1, 1], [], []>} : vector<64x32xf32>, vector<32x8xf32>, vector<64x8xf32> -> vector<64x8xf32>
    %358 = arith.addf %351, %357 : vector<64x8xf32>
    %c15_379 = arith.constant 15 : index
    %c0_380 = arith.constant 0 : index
    %c0_381 = arith.constant 0 : index
    %359 = vector.load %arg10[%c15_379, %c0_380, %c0_381] : memref<16x32x8xf32, #tpu.memory_space<vmem>>, vector<1x32x8xf32>
    %360 = vector.shape_cast %359 : vector<1x32x8xf32> to vector<32x8xf32>
    %cst_382 = arith.constant dense<0.000000e+00> : vector<32x8xf32>
    %361 = tpu.matmul %252, %360, %cst_382 {dimension_numbers = #tpu.dot_dimension_numbers<[1], [0], [0], [1], [0, 0, 1, 1], [], []>} : vector<32x32xf32>, vector<32x8xf32>, vector<32x8xf32> -> vector<32x8xf32>
    %c15_383 = arith.constant 15 : index
    %c0_384 = arith.constant 0 : index
    %c0_385 = arith.constant 0 : index
    %362 = vector.load %arg11[%c15_383, %c0_384, %c0_385] : memref<16x64x32xf32, #tpu.memory_space<vmem>>, vector<1x64x32xf32>
    %363 = vector.shape_cast %362 : vector<1x64x32xf32> to vector<64x32xf32>
    %cst_386 = arith.constant dense<0.000000e+00> : vector<64x8xf32>
    %364 = tpu.matmul %363, %361, %cst_386 {dimension_numbers = #tpu.dot_dimension_numbers<[1], [0], [0], [1], [0, 0, 1, 1], [], []>} : vector<64x32xf32>, vector<32x8xf32>, vector<64x8xf32> -> vector<64x8xf32>
    %365 = arith.addf %358, %364 : vector<64x8xf32>
    %c0_387 = arith.constant 0 : index
    %c0_388 = arith.constant 0 : index
    %366 = vector.load %arg12[%c0_387, %c0_388] : memref<64x1xf32, #tpu.memory_space<vmem>>, vector<64x1xf32>
    %367 = vector.broadcast %366 : vector<64x1xf32> to vector<64x8xf32>
    %368 = arith.addf %365, %367 : vector<64x8xf32>
    %cst_389 = arith.constant 0.000000e+00 : f32
    %369 = vector.broadcast %cst_389 : f32 to vector<64x8xf32>
    %370 = arith.cmpf oge, %368, %369 : vector<64x8xf32>
    %cst_390 = arith.constant 2.000000e-01 : f32
    %371 = vector.broadcast %cst_390 : f32 to vector<64x8xf32>
    %372 = arith.mulf %371, %368 : vector<64x8xf32>
    %373 = arith.select %370, %368, %372 : vector<64x8xi1>, vector<64x8xf32>
    %cst_391 = arith.constant 0.000000e+00 : f32
    %374 = vector.broadcast %cst_391 : f32 to vector<1x2xf32>
    %c0_392 = arith.constant 0 : index
    %c0_393 = arith.constant 0 : index
    %c0_394 = arith.constant 0 : index
    %375 = vector.load %arg13[%c0_392, %c0_393, %c0_394] : memref<16x8x2xf32, #tpu.memory_space<vmem>>, vector<1x8x2xf32>
    %376 = vector.shape_cast %375 : vector<1x8x2xf32> to vector<8x2xf32>
    %cst_395 = arith.constant dense<0.000000e+00> : vector<64x2xf32>
    %377 = tpu.matmul %373, %376, %cst_395 {dimension_numbers = #tpu.dot_dimension_numbers<[1], [0], [0], [1], [0, 0, 1, 1], [], []>} : vector<64x8xf32>, vector<8x2xf32>, vector<64x2xf32> -> vector<64x2xf32>
    %c0_396 = arith.constant 0 : index
    %c0_397 = arith.constant 0 : index
    %c0_398 = arith.constant 0 : index
    %378 = vector.load %arg14[%c0_396, %c0_397, %c0_398] : memref<16x1x64xf32, #tpu.memory_space<vmem>>, vector<1x1x64xf32>
    %379 = vector.shape_cast %378 : vector<1x1x64xf32> to vector<1x64xf32>
    %cst_399 = arith.constant dense<0.000000e+00> : vector<1x2xf32>
    %380 = tpu.matmul %379, %377, %cst_399 {dimension_numbers = #tpu.dot_dimension_numbers<[1], [0], [0], [1], [0, 0, 1, 1], [], []>} : vector<1x64xf32>, vector<64x2xf32>, vector<1x2xf32> -> vector<1x2xf32>
    %381 = arith.addf %374, %380 : vector<1x2xf32>
    %c1_400 = arith.constant 1 : index
    %c0_401 = arith.constant 0 : index
    %c0_402 = arith.constant 0 : index
    %382 = vector.load %arg13[%c1_400, %c0_401, %c0_402] : memref<16x8x2xf32, #tpu.memory_space<vmem>>, vector<1x8x2xf32>
    %383 = vector.shape_cast %382 : vector<1x8x2xf32> to vector<8x2xf32>
    %cst_403 = arith.constant dense<0.000000e+00> : vector<64x2xf32>
    %384 = tpu.matmul %373, %383, %cst_403 {dimension_numbers = #tpu.dot_dimension_numbers<[1], [0], [0], [1], [0, 0, 1, 1], [], []>} : vector<64x8xf32>, vector<8x2xf32>, vector<64x2xf32> -> vector<64x2xf32>
    %c1_404 = arith.constant 1 : index
    %c0_405 = arith.constant 0 : index
    %c0_406 = arith.constant 0 : index
    %385 = vector.load %arg14[%c1_404, %c0_405, %c0_406] : memref<16x1x64xf32, #tpu.memory_space<vmem>>, vector<1x1x64xf32>
    %386 = vector.shape_cast %385 : vector<1x1x64xf32> to vector<1x64xf32>
    %cst_407 = arith.constant dense<0.000000e+00> : vector<1x2xf32>
    %387 = tpu.matmul %386, %384, %cst_407 {dimension_numbers = #tpu.dot_dimension_numbers<[1], [0], [0], [1], [0, 0, 1, 1], [], []>} : vector<1x64xf32>, vector<64x2xf32>, vector<1x2xf32> -> vector<1x2xf32>
    %388 = arith.addf %381, %387 : vector<1x2xf32>
    %c2_408 = arith.constant 2 : index
    %c0_409 = arith.constant 0 : index
    %c0_410 = arith.constant 0 : index
    %389 = vector.load %arg13[%c2_408, %c0_409, %c0_410] : memref<16x8x2xf32, #tpu.memory_space<vmem>>, vector<1x8x2xf32>
    %390 = vector.shape_cast %389 : vector<1x8x2xf32> to vector<8x2xf32>
    %cst_411 = arith.constant dense<0.000000e+00> : vector<64x2xf32>
    %391 = tpu.matmul %373, %390, %cst_411 {dimension_numbers = #tpu.dot_dimension_numbers<[1], [0], [0], [1], [0, 0, 1, 1], [], []>} : vector<64x8xf32>, vector<8x2xf32>, vector<64x2xf32> -> vector<64x2xf32>
    %c2_412 = arith.constant 2 : index
    %c0_413 = arith.constant 0 : index
    %c0_414 = arith.constant 0 : index
    %392 = vector.load %arg14[%c2_412, %c0_413, %c0_414] : memref<16x1x64xf32, #tpu.memory_space<vmem>>, vector<1x1x64xf32>
    %393 = vector.shape_cast %392 : vector<1x1x64xf32> to vector<1x64xf32>
    %cst_415 = arith.constant dense<0.000000e+00> : vector<1x2xf32>
    %394 = tpu.matmul %393, %391, %cst_415 {dimension_numbers = #tpu.dot_dimension_numbers<[1], [0], [0], [1], [0, 0, 1, 1], [], []>} : vector<1x64xf32>, vector<64x2xf32>, vector<1x2xf32> -> vector<1x2xf32>
    %395 = arith.addf %388, %394 : vector<1x2xf32>
    %c3_416 = arith.constant 3 : index
    %c0_417 = arith.constant 0 : index
    %c0_418 = arith.constant 0 : index
    %396 = vector.load %arg13[%c3_416, %c0_417, %c0_418] : memref<16x8x2xf32, #tpu.memory_space<vmem>>, vector<1x8x2xf32>
    %397 = vector.shape_cast %396 : vector<1x8x2xf32> to vector<8x2xf32>
    %cst_419 = arith.constant dense<0.000000e+00> : vector<64x2xf32>
    %398 = tpu.matmul %373, %397, %cst_419 {dimension_numbers = #tpu.dot_dimension_numbers<[1], [0], [0], [1], [0, 0, 1, 1], [], []>} : vector<64x8xf32>, vector<8x2xf32>, vector<64x2xf32> -> vector<64x2xf32>
    %c3_420 = arith.constant 3 : index
    %c0_421 = arith.constant 0 : index
    %c0_422 = arith.constant 0 : index
    %399 = vector.load %arg14[%c3_420, %c0_421, %c0_422] : memref<16x1x64xf32, #tpu.memory_space<vmem>>, vector<1x1x64xf32>
    %400 = vector.shape_cast %399 : vector<1x1x64xf32> to vector<1x64xf32>
    %cst_423 = arith.constant dense<0.000000e+00> : vector<1x2xf32>
    %401 = tpu.matmul %400, %398, %cst_423 {dimension_numbers = #tpu.dot_dimension_numbers<[1], [0], [0], [1], [0, 0, 1, 1], [], []>} : vector<1x64xf32>, vector<64x2xf32>, vector<1x2xf32> -> vector<1x2xf32>
    %402 = arith.addf %395, %401 : vector<1x2xf32>
    %c4_424 = arith.constant 4 : index
    %c0_425 = arith.constant 0 : index
    %c0_426 = arith.constant 0 : index
    %403 = vector.load %arg13[%c4_424, %c0_425, %c0_426] : memref<16x8x2xf32, #tpu.memory_space<vmem>>, vector<1x8x2xf32>
    %404 = vector.shape_cast %403 : vector<1x8x2xf32> to vector<8x2xf32>
    %cst_427 = arith.constant dense<0.000000e+00> : vector<64x2xf32>
    %405 = tpu.matmul %373, %404, %cst_427 {dimension_numbers = #tpu.dot_dimension_numbers<[1], [0], [0], [1], [0, 0, 1, 1], [], []>} : vector<64x8xf32>, vector<8x2xf32>, vector<64x2xf32> -> vector<64x2xf32>
    %c4_428 = arith.constant 4 : index
    %c0_429 = arith.constant 0 : index
    %c0_430 = arith.constant 0 : index
    %406 = vector.load %arg14[%c4_428, %c0_429, %c0_430] : memref<16x1x64xf32, #tpu.memory_space<vmem>>, vector<1x1x64xf32>
    %407 = vector.shape_cast %406 : vector<1x1x64xf32> to vector<1x64xf32>
    %cst_431 = arith.constant dense<0.000000e+00> : vector<1x2xf32>
    %408 = tpu.matmul %407, %405, %cst_431 {dimension_numbers = #tpu.dot_dimension_numbers<[1], [0], [0], [1], [0, 0, 1, 1], [], []>} : vector<1x64xf32>, vector<64x2xf32>, vector<1x2xf32> -> vector<1x2xf32>
    %409 = arith.addf %402, %408 : vector<1x2xf32>
    %c5_432 = arith.constant 5 : index
    %c0_433 = arith.constant 0 : index
    %c0_434 = arith.constant 0 : index
    %410 = vector.load %arg13[%c5_432, %c0_433, %c0_434] : memref<16x8x2xf32, #tpu.memory_space<vmem>>, vector<1x8x2xf32>
    %411 = vector.shape_cast %410 : vector<1x8x2xf32> to vector<8x2xf32>
    %cst_435 = arith.constant dense<0.000000e+00> : vector<64x2xf32>
    %412 = tpu.matmul %373, %411, %cst_435 {dimension_numbers = #tpu.dot_dimension_numbers<[1], [0], [0], [1], [0, 0, 1, 1], [], []>} : vector<64x8xf32>, vector<8x2xf32>, vector<64x2xf32> -> vector<64x2xf32>
    %c5_436 = arith.constant 5 : index
    %c0_437 = arith.constant 0 : index
    %c0_438 = arith.constant 0 : index
    %413 = vector.load %arg14[%c5_436, %c0_437, %c0_438] : memref<16x1x64xf32, #tpu.memory_space<vmem>>, vector<1x1x64xf32>
    %414 = vector.shape_cast %413 : vector<1x1x64xf32> to vector<1x64xf32>
    %cst_439 = arith.constant dense<0.000000e+00> : vector<1x2xf32>
    %415 = tpu.matmul %414, %412, %cst_439 {dimension_numbers = #tpu.dot_dimension_numbers<[1], [0], [0], [1], [0, 0, 1, 1], [], []>} : vector<1x64xf32>, vector<64x2xf32>, vector<1x2xf32> -> vector<1x2xf32>
    %416 = arith.addf %409, %415 : vector<1x2xf32>
    %c6_440 = arith.constant 6 : index
    %c0_441 = arith.constant 0 : index
    %c0_442 = arith.constant 0 : index
    %417 = vector.load %arg13[%c6_440, %c0_441, %c0_442] : memref<16x8x2xf32, #tpu.memory_space<vmem>>, vector<1x8x2xf32>
    %418 = vector.shape_cast %417 : vector<1x8x2xf32> to vector<8x2xf32>
    %cst_443 = arith.constant dense<0.000000e+00> : vector<64x2xf32>
    %419 = tpu.matmul %373, %418, %cst_443 {dimension_numbers = #tpu.dot_dimension_numbers<[1], [0], [0], [1], [0, 0, 1, 1], [], []>} : vector<64x8xf32>, vector<8x2xf32>, vector<64x2xf32> -> vector<64x2xf32>
    %c6_444 = arith.constant 6 : index
    %c0_445 = arith.constant 0 : index
    %c0_446 = arith.constant 0 : index
    %420 = vector.load %arg14[%c6_444, %c0_445, %c0_446] : memref<16x1x64xf32, #tpu.memory_space<vmem>>, vector<1x1x64xf32>
    %421 = vector.shape_cast %420 : vector<1x1x64xf32> to vector<1x64xf32>
    %cst_447 = arith.constant dense<0.000000e+00> : vector<1x2xf32>
    %422 = tpu.matmul %421, %419, %cst_447 {dimension_numbers = #tpu.dot_dimension_numbers<[1], [0], [0], [1], [0, 0, 1, 1], [], []>} : vector<1x64xf32>, vector<64x2xf32>, vector<1x2xf32> -> vector<1x2xf32>
    %423 = arith.addf %416, %422 : vector<1x2xf32>
    %c7_448 = arith.constant 7 : index
    %c0_449 = arith.constant 0 : index
    %c0_450 = arith.constant 0 : index
    %424 = vector.load %arg13[%c7_448, %c0_449, %c0_450] : memref<16x8x2xf32, #tpu.memory_space<vmem>>, vector<1x8x2xf32>
    %425 = vector.shape_cast %424 : vector<1x8x2xf32> to vector<8x2xf32>
    %cst_451 = arith.constant dense<0.000000e+00> : vector<64x2xf32>
    %426 = tpu.matmul %373, %425, %cst_451 {dimension_numbers = #tpu.dot_dimension_numbers<[1], [0], [0], [1], [0, 0, 1, 1], [], []>} : vector<64x8xf32>, vector<8x2xf32>, vector<64x2xf32> -> vector<64x2xf32>
    %c7_452 = arith.constant 7 : index
    %c0_453 = arith.constant 0 : index
    %c0_454 = arith.constant 0 : index
    %427 = vector.load %arg14[%c7_452, %c0_453, %c0_454] : memref<16x1x64xf32, #tpu.memory_space<vmem>>, vector<1x1x64xf32>
    %428 = vector.shape_cast %427 : vector<1x1x64xf32> to vector<1x64xf32>
    %cst_455 = arith.constant dense<0.000000e+00> : vector<1x2xf32>
    %429 = tpu.matmul %428, %426, %cst_455 {dimension_numbers = #tpu.dot_dimension_numbers<[1], [0], [0], [1], [0, 0, 1, 1], [], []>} : vector<1x64xf32>, vector<64x2xf32>, vector<1x2xf32> -> vector<1x2xf32>
    %430 = arith.addf %423, %429 : vector<1x2xf32>
    %c8_456 = arith.constant 8 : index
    %c0_457 = arith.constant 0 : index
    %c0_458 = arith.constant 0 : index
    %431 = vector.load %arg13[%c8_456, %c0_457, %c0_458] : memref<16x8x2xf32, #tpu.memory_space<vmem>>, vector<1x8x2xf32>
    %432 = vector.shape_cast %431 : vector<1x8x2xf32> to vector<8x2xf32>
    %cst_459 = arith.constant dense<0.000000e+00> : vector<64x2xf32>
    %433 = tpu.matmul %373, %432, %cst_459 {dimension_numbers = #tpu.dot_dimension_numbers<[1], [0], [0], [1], [0, 0, 1, 1], [], []>} : vector<64x8xf32>, vector<8x2xf32>, vector<64x2xf32> -> vector<64x2xf32>
    %c8_460 = arith.constant 8 : index
    %c0_461 = arith.constant 0 : index
    %c0_462 = arith.constant 0 : index
    %434 = vector.load %arg14[%c8_460, %c0_461, %c0_462] : memref<16x1x64xf32, #tpu.memory_space<vmem>>, vector<1x1x64xf32>
    %435 = vector.shape_cast %434 : vector<1x1x64xf32> to vector<1x64xf32>
    %cst_463 = arith.constant dense<0.000000e+00> : vector<1x2xf32>
    %436 = tpu.matmul %435, %433, %cst_463 {dimension_numbers = #tpu.dot_dimension_numbers<[1], [0], [0], [1], [0, 0, 1, 1], [], []>} : vector<1x64xf32>, vector<64x2xf32>, vector<1x2xf32> -> vector<1x2xf32>
    %437 = arith.addf %430, %436 : vector<1x2xf32>
    %c9_464 = arith.constant 9 : index
    %c0_465 = arith.constant 0 : index
    %c0_466 = arith.constant 0 : index
    %438 = vector.load %arg13[%c9_464, %c0_465, %c0_466] : memref<16x8x2xf32, #tpu.memory_space<vmem>>, vector<1x8x2xf32>
    %439 = vector.shape_cast %438 : vector<1x8x2xf32> to vector<8x2xf32>
    %cst_467 = arith.constant dense<0.000000e+00> : vector<64x2xf32>
    %440 = tpu.matmul %373, %439, %cst_467 {dimension_numbers = #tpu.dot_dimension_numbers<[1], [0], [0], [1], [0, 0, 1, 1], [], []>} : vector<64x8xf32>, vector<8x2xf32>, vector<64x2xf32> -> vector<64x2xf32>
    %c9_468 = arith.constant 9 : index
    %c0_469 = arith.constant 0 : index
    %c0_470 = arith.constant 0 : index
    %441 = vector.load %arg14[%c9_468, %c0_469, %c0_470] : memref<16x1x64xf32, #tpu.memory_space<vmem>>, vector<1x1x64xf32>
    %442 = vector.shape_cast %441 : vector<1x1x64xf32> to vector<1x64xf32>
    %cst_471 = arith.constant dense<0.000000e+00> : vector<1x2xf32>
    %443 = tpu.matmul %442, %440, %cst_471 {dimension_numbers = #tpu.dot_dimension_numbers<[1], [0], [0], [1], [0, 0, 1, 1], [], []>} : vector<1x64xf32>, vector<64x2xf32>, vector<1x2xf32> -> vector<1x2xf32>
    %444 = arith.addf %437, %443 : vector<1x2xf32>
    %c10_472 = arith.constant 10 : index
    %c0_473 = arith.constant 0 : index
    %c0_474 = arith.constant 0 : index
    %445 = vector.load %arg13[%c10_472, %c0_473, %c0_474] : memref<16x8x2xf32, #tpu.memory_space<vmem>>, vector<1x8x2xf32>
    %446 = vector.shape_cast %445 : vector<1x8x2xf32> to vector<8x2xf32>
    %cst_475 = arith.constant dense<0.000000e+00> : vector<64x2xf32>
    %447 = tpu.matmul %373, %446, %cst_475 {dimension_numbers = #tpu.dot_dimension_numbers<[1], [0], [0], [1], [0, 0, 1, 1], [], []>} : vector<64x8xf32>, vector<8x2xf32>, vector<64x2xf32> -> vector<64x2xf32>
    %c10_476 = arith.constant 10 : index
    %c0_477 = arith.constant 0 : index
    %c0_478 = arith.constant 0 : index
    %448 = vector.load %arg14[%c10_476, %c0_477, %c0_478] : memref<16x1x64xf32, #tpu.memory_space<vmem>>, vector<1x1x64xf32>
    %449 = vector.shape_cast %448 : vector<1x1x64xf32> to vector<1x64xf32>
    %cst_479 = arith.constant dense<0.000000e+00> : vector<1x2xf32>
    %450 = tpu.matmul %449, %447, %cst_479 {dimension_numbers = #tpu.dot_dimension_numbers<[1], [0], [0], [1], [0, 0, 1, 1], [], []>} : vector<1x64xf32>, vector<64x2xf32>, vector<1x2xf32> -> vector<1x2xf32>
    %451 = arith.addf %444, %450 : vector<1x2xf32>
    %c11_480 = arith.constant 11 : index
    %c0_481 = arith.constant 0 : index
    %c0_482 = arith.constant 0 : index
    %452 = vector.load %arg13[%c11_480, %c0_481, %c0_482] : memref<16x8x2xf32, #tpu.memory_space<vmem>>, vector<1x8x2xf32>
    %453 = vector.shape_cast %452 : vector<1x8x2xf32> to vector<8x2xf32>
    %cst_483 = arith.constant dense<0.000000e+00> : vector<64x2xf32>
    %454 = tpu.matmul %373, %453, %cst_483 {dimension_numbers = #tpu.dot_dimension_numbers<[1], [0], [0], [1], [0, 0, 1, 1], [], []>} : vector<64x8xf32>, vector<8x2xf32>, vector<64x2xf32> -> vector<64x2xf32>
    %c11_484 = arith.constant 11 : index
    %c0_485 = arith.constant 0 : index
    %c0_486 = arith.constant 0 : index
    %455 = vector.load %arg14[%c11_484, %c0_485, %c0_486] : memref<16x1x64xf32, #tpu.memory_space<vmem>>, vector<1x1x64xf32>
    %456 = vector.shape_cast %455 : vector<1x1x64xf32> to vector<1x64xf32>
    %cst_487 = arith.constant dense<0.000000e+00> : vector<1x2xf32>
    %457 = tpu.matmul %456, %454, %cst_487 {dimension_numbers = #tpu.dot_dimension_numbers<[1], [0], [0], [1], [0, 0, 1, 1], [], []>} : vector<1x64xf32>, vector<64x2xf32>, vector<1x2xf32> -> vector<1x2xf32>
    %458 = arith.addf %451, %457 : vector<1x2xf32>
    %c12_488 = arith.constant 12 : index
    %c0_489 = arith.constant 0 : index
    %c0_490 = arith.constant 0 : index
    %459 = vector.load %arg13[%c12_488, %c0_489, %c0_490] : memref<16x8x2xf32, #tpu.memory_space<vmem>>, vector<1x8x2xf32>
    %460 = vector.shape_cast %459 : vector<1x8x2xf32> to vector<8x2xf32>
    %cst_491 = arith.constant dense<0.000000e+00> : vector<64x2xf32>
    %461 = tpu.matmul %373, %460, %cst_491 {dimension_numbers = #tpu.dot_dimension_numbers<[1], [0], [0], [1], [0, 0, 1, 1], [], []>} : vector<64x8xf32>, vector<8x2xf32>, vector<64x2xf32> -> vector<64x2xf32>
    %c12_492 = arith.constant 12 : index
    %c0_493 = arith.constant 0 : index
    %c0_494 = arith.constant 0 : index
    %462 = vector.load %arg14[%c12_492, %c0_493, %c0_494] : memref<16x1x64xf32, #tpu.memory_space<vmem>>, vector<1x1x64xf32>
    %463 = vector.shape_cast %462 : vector<1x1x64xf32> to vector<1x64xf32>
    %cst_495 = arith.constant dense<0.000000e+00> : vector<1x2xf32>
    %464 = tpu.matmul %463, %461, %cst_495 {dimension_numbers = #tpu.dot_dimension_numbers<[1], [0], [0], [1], [0, 0, 1, 1], [], []>} : vector<1x64xf32>, vector<64x2xf32>, vector<1x2xf32> -> vector<1x2xf32>
    %465 = arith.addf %458, %464 : vector<1x2xf32>
    %c13_496 = arith.constant 13 : index
    %c0_497 = arith.constant 0 : index
    %c0_498 = arith.constant 0 : index
    %466 = vector.load %arg13[%c13_496, %c0_497, %c0_498] : memref<16x8x2xf32, #tpu.memory_space<vmem>>, vector<1x8x2xf32>
    %467 = vector.shape_cast %466 : vector<1x8x2xf32> to vector<8x2xf32>
    %cst_499 = arith.constant dense<0.000000e+00> : vector<64x2xf32>
    %468 = tpu.matmul %373, %467, %cst_499 {dimension_numbers = #tpu.dot_dimension_numbers<[1], [0], [0], [1], [0, 0, 1, 1], [], []>} : vector<64x8xf32>, vector<8x2xf32>, vector<64x2xf32> -> vector<64x2xf32>
    %c13_500 = arith.constant 13 : index
    %c0_501 = arith.constant 0 : index
    %c0_502 = arith.constant 0 : index
    %469 = vector.load %arg14[%c13_500, %c0_501, %c0_502] : memref<16x1x64xf32, #tpu.memory_space<vmem>>, vector<1x1x64xf32>
    %470 = vector.shape_cast %469 : vector<1x1x64xf32> to vector<1x64xf32>
    %cst_503 = arith.constant dense<0.000000e+00> : vector<1x2xf32>
    %471 = tpu.matmul %470, %468, %cst_503 {dimension_numbers = #tpu.dot_dimension_numbers<[1], [0], [0], [1], [0, 0, 1, 1], [], []>} : vector<1x64xf32>, vector<64x2xf32>, vector<1x2xf32> -> vector<1x2xf32>
    %472 = arith.addf %465, %471 : vector<1x2xf32>
    %c14_504 = arith.constant 14 : index
    %c0_505 = arith.constant 0 : index
    %c0_506 = arith.constant 0 : index
    %473 = vector.load %arg13[%c14_504, %c0_505, %c0_506] : memref<16x8x2xf32, #tpu.memory_space<vmem>>, vector<1x8x2xf32>
    %474 = vector.shape_cast %473 : vector<1x8x2xf32> to vector<8x2xf32>
    %cst_507 = arith.constant dense<0.000000e+00> : vector<64x2xf32>
    %475 = tpu.matmul %373, %474, %cst_507 {dimension_numbers = #tpu.dot_dimension_numbers<[1], [0], [0], [1], [0, 0, 1, 1], [], []>} : vector<64x8xf32>, vector<8x2xf32>, vector<64x2xf32> -> vector<64x2xf32>
    %c14_508 = arith.constant 14 : index
    %c0_509 = arith.constant 0 : index
    %c0_510 = arith.constant 0 : index
    %476 = vector.load %arg14[%c14_508, %c0_509, %c0_510] : memref<16x1x64xf32, #tpu.memory_space<vmem>>, vector<1x1x64xf32>
    %477 = vector.shape_cast %476 : vector<1x1x64xf32> to vector<1x64xf32>
    %cst_511 = arith.constant dense<0.000000e+00> : vector<1x2xf32>
    %478 = tpu.matmul %477, %475, %cst_511 {dimension_numbers = #tpu.dot_dimension_numbers<[1], [0], [0], [1], [0, 0, 1, 1], [], []>} : vector<1x64xf32>, vector<64x2xf32>, vector<1x2xf32> -> vector<1x2xf32>
    %479 = arith.addf %472, %478 : vector<1x2xf32>
    %c15_512 = arith.constant 15 : index
    %c0_513 = arith.constant 0 : index
    %c0_514 = arith.constant 0 : index
    %480 = vector.load %arg13[%c15_512, %c0_513, %c0_514] : memref<16x8x2xf32, #tpu.memory_space<vmem>>, vector<1x8x2xf32>
    %481 = vector.shape_cast %480 : vector<1x8x2xf32> to vector<8x2xf32>
    %cst_515 = arith.constant dense<0.000000e+00> : vector<64x2xf32>
    %482 = tpu.matmul %373, %481, %cst_515 {dimension_numbers = #tpu.dot_dimension_numbers<[1], [0], [0], [1], [0, 0, 1, 1], [], []>} : vector<64x8xf32>, vector<8x2xf32>, vector<64x2xf32> -> vector<64x2xf32>
    %c15_516 = arith.constant 15 : index
    %c0_517 = arith.constant 0 : index
    %c0_518 = arith.constant 0 : index
    %483 = vector.load %arg14[%c15_516, %c0_517, %c0_518] : memref<16x1x64xf32, #tpu.memory_space<vmem>>, vector<1x1x64xf32>
    %484 = vector.shape_cast %483 : vector<1x1x64xf32> to vector<1x64xf32>
    %cst_519 = arith.constant dense<0.000000e+00> : vector<1x2xf32>
    %485 = tpu.matmul %484, %482, %cst_519 {dimension_numbers = #tpu.dot_dimension_numbers<[1], [0], [0], [1], [0, 0, 1, 1], [], []>} : vector<1x64xf32>, vector<64x2xf32>, vector<1x2xf32> -> vector<1x2xf32>
    %486 = arith.addf %479, %485 : vector<1x2xf32>
    %c0_520 = arith.constant 0 : index
    %c0_521 = arith.constant 0 : index
    %487 = vector.load %arg15[%c0_520, %c0_521] : memref<1x1xf32, #tpu.memory_space<vmem>>, vector<1x1xf32>
    %488 = vector.broadcast %487 : vector<1x1xf32> to vector<1x2xf32>
    %489 = arith.addf %486, %488 : vector<1x2xf32>
    %c0_522 = arith.constant 0 : index
    %c0_523 = arith.constant 0 : index
    %490 = vector.load %arg16[%c0_522, %c0_523] : memref<2x2048xf32, #tpu.memory_space<vmem>>, vector<2x2048xf32>
    %cst_524 = arith.constant dense<0.000000e+00> : vector<1x2048xf32>
    %491 = tpu.matmul %489, %490, %cst_524 {dimension_numbers = #tpu.dot_dimension_numbers<[1], [0], [0], [1], [0, 0, 1, 1], [], []>} : vector<1x2xf32>, vector<2x2048xf32>, vector<1x2048xf32> -> vector<1x2048xf32>
    %492 = arith.negf %491 : vector<1x2048xf32>
    %493 = math.exp %492 : vector<1x2048xf32>
    %cst_525 = arith.constant 1.000000e+00 : f32
    %494 = vector.broadcast %cst_525 : f32 to vector<1x2048xf32>
    %495 = arith.addf %494, %493 : vector<1x2048xf32>
    %496 = arith.divf %494, %495 : vector<1x2048xf32>
    %c0_526 = arith.constant 0 : index
    %c0_527 = arith.constant 0 : index
    %497 = vector.load %arg17[%c0_526, %c0_527] : memref<1x2048xf32, #tpu.memory_space<vmem>>, vector<1x2048xf32>
    tpu.vector_store %arg17[%c0_526, %c0_527], %496 {strides = array<i32>} : memref<1x2048xf32, #tpu.memory_space<vmem>>, vector<1x2048xf32>,
    return
  }
  func.func @transform_0(%arg0: i32) -> (i32, i32) {
    %c0_i32 = arith.constant 0 : i32
    %c0_i32_0 = arith.constant 0 : i32
    %c0_i32_1 = arith.constant 0 : i32
    return %c0_i32, %c0_i32_0 : i32, i32
  }
  func.func @transform_1(%arg0: i32) -> (i32, i32) {
    %c0_i32 = arith.constant 0 : i32
    %c0_i32_0 = arith.constant 0 : i32
    %c0_i32_1 = arith.constant 0 : i32
    return %c0_i32, %c0_i32_0 : i32, i32
  }
  func.func @transform_2(%arg0: i32) -> (i32, i32) {
    %c0_i32 = arith.constant 0 : i32
    %c0_i32_0 = arith.constant 0 : i32
    %c0_i32_1 = arith.constant 0 : i32
    return %c0_i32, %c0_i32_0 : i32, i32
  }
  func.func @transform_3(%arg0: i32) -> (i32, i32, i32) {
    %c0_i32 = arith.constant 0 : i32
    %c0_i32_0 = arith.constant 0 : i32
    %c0_i32_1 = arith.constant 0 : i32
    %c0_i32_2 = arith.constant 0 : i32
    return %c0_i32, %c0_i32_0, %c0_i32_1 : i32, i32, i32
  }
  func.func @transform_4(%arg0: i32) -> (i32, i32, i32) {
    %c0_i32 = arith.constant 0 : i32
    %c0_i32_0 = arith.constant 0 : i32
    %c0_i32_1 = arith.constant 0 : i32
    %c0_i32_2 = arith.constant 0 : i32
    return %c0_i32, %c0_i32_0, %c0_i32_1 : i32, i32, i32
  }
  func.func @transform_5(%arg0: i32) -> (i32, i32) {
    %c0_i32 = arith.constant 0 : i32
    %c0_i32_0 = arith.constant 0 : i32
    %c0_i32_1 = arith.constant 0 : i32
    return %c0_i32, %c0_i32_0 : i32, i32
  }
  func.func @transform_6(%arg0: i32) -> (i32, i32, i32) {
    %c0_i32 = arith.constant 0 : i32
    %c0_i32_0 = arith.constant 0 : i32
    %c0_i32_1 = arith.constant 0 : i32
    %c0_i32_2 = arith.constant 0 : i32
    return %c0_i32, %c0_i32_0, %c0_i32_1 : i32, i32, i32
  }
  func.func @transform_7(%arg0: i32) -> (i32, i32, i32) {
    %c0_i32 = arith.constant 0 : i32
    %c0_i32_0 = arith.constant 0 : i32
    %c0_i32_1 = arith.constant 0 : i32
    %c0_i32_2 = arith.constant 0 : i32
    return %c0_i32, %c0_i32_0, %c0_i32_1 : i32, i32, i32
  }
  func.func @transform_8(%arg0: i32) -> (i32, i32) {
    %c0_i32 = arith.constant 0 : i32
    %c0_i32_0 = arith.constant 0 : i32
    %c0_i32_1 = arith.constant 0 : i32
    return %c0_i32, %c0_i32_0 : i32, i32
  }
  func.func @transform_9(%arg0: i32) -> (i32, i32, i32) {
    %c0_i32 = arith.constant 0 : i32
    %c0_i32_0 = arith.constant 0 : i32
    %c0_i32_1 = arith.constant 0 : i32
    %c0_i32_2 = arith.constant 0 : i32
    return %c0_i32, %c0_i32_0, %c0_i32_1 : i32, i32, i32
  }
  func.func @transform_10(%arg0: i32) -> (i32, i32, i32) {
    %c0_i32 = arith.constant 0 : i32
    %c0_i32_0 = arith.constant 0 : i32
    %c0_i32_1 = arith.constant 0 : i32
    %c0_i32_2 = arith.constant 0 : i32
    return %c0_i32, %c0_i32_0, %c0_i32_1 : i32, i32, i32
  }
  func.func @transform_11(%arg0: i32) -> (i32, i32) {
    %c0_i32 = arith.constant 0 : i32
    %c0_i32_0 = arith.constant 0 : i32
    %c0_i32_1 = arith.constant 0 : i32
    return %c0_i32, %c0_i32_0 : i32, i32
  }
  func.func @transform_12(%arg0: i32) -> (i32, i32, i32) {
    %c0_i32 = arith.constant 0 : i32
    %c0_i32_0 = arith.constant 0 : i32
    %c0_i32_1 = arith.constant 0 : i32
    %c0_i32_2 = arith.constant 0 : i32
    return %c0_i32, %c0_i32_0, %c0_i32_1 : i32, i32, i32
  }
  func.func @transform_13(%arg0: i32) -> (i32, i32, i32) {
    %c0_i32 = arith.constant 0 : i32
    %c0_i32_0 = arith.constant 0 : i32
    %c0_i32_1 = arith.constant 0 : i32
    %c0_i32_2 = arith.constant 0 : i32
    return %c0_i32, %c0_i32_0, %c0_i32_1 : i32, i32, i32
  }
  func.func @transform_14(%arg0: i32) -> (i32, i32) {
    %c0_i32 = arith.constant 0 : i32
    %c0_i32_0 = arith.constant 0 : i32
    %c0_i32_1 = arith.constant 0 : i32
    return %c0_i32, %c0_i32_0 : i32, i32
  }
  func.func @transform_15(%arg0: i32) -> (i32, i32) {
    %c0_i32 = arith.constant 0 : i32
    %c0_i32_0 = arith.constant 0 : i32
    %c0_i32_1 = arith.constant 0 : i32
    return %c0_i32, %c0_i32_0 : i32, i32
  }
  func.func @transform_16(%arg0: i32) -> (i32, i32) {
    %c0_i32 = arith.constant 0 : i32
    %c0_i32_0 = arith.constant 0 : i32
    %c0_i32_1 = arith.constant 0 : i32
    return %c0_i32, %c0_i32_0 : i32, i32
  }
}

</mosaic_0001>

<bundles_post_ra>
// kernel: discriminator_forward.1
= control target key start
LH: loop header
LB: loop body
LE: loop exit
PB: predicated region body
PF: predicated region fallthrough
CT: control target
= control target key end

     0   :  { %v10403_v0 = vmov 0   ;;  %vm94_vm0 = vcmask 523264   ;;  %vm484_vm5 = vcmask 64512   ;;  %vm3157_vm8 = vcmask 130048   ;;  %s17275_s2 = inlined_call_operand.vmem [shape: f32[8,1], index: 2, kind: input, shape index: {}]   ;;  %s17276_s0 = inlined_call_operand.vmem [shape: f32[64,512], index: 0, kind: input, shape index: {}]   ;;  %s17277_s14 = inlined_call_operand.<no memory space> [shape: f32[1,1], index: 14, kind: input, shape index: {}]   ;;  %s17278_s5 = inlined_call_operand.vmem [shape: f32[16,1], index: 5, kind: input, shape index: {}]   ;;  %s17279_s1 = inlined_call_operand.vmem [shape: f32[8,64], index: 1, kind: input, shape index: {}]   ;;  %s17280_s8 = inlined_call_operand.vmem [shape: f32[32,1], index: 8, kind: input, shape index: {}]   ;;  %s17281_s3 = inlined_call_operand.vmem [shape: f32[16,512,128], index: 3, kind: input, shape index: {}]   ;;  %s17282_s11 = inlined_call_operand.vmem [shape: f32[64,1], index: 11, kind: input, shape index: {}]   ;;  %s17283_s4 = inlined_call_operand.vmem [shape: f32[16,16,8], index: 4, kind: input, shape index: {}]   ;;  %s17284_s6 = inlined_call_operand.vmem [shape: f32[16,128,32], index: 6, kind: input, shape index: {}]   ;;  %s17285_s7 = inlined_call_operand.vmem [shape: f32[16,32,16], index: 7, kind: input, shape index: {}]   ;;  %s17286_s9 = inlined_call_operand.vmem [shape: f32[16,32,8], index: 9, kind: input, shape index: {}]   ;;  %s17287_s10 = inlined_call_operand.vmem [shape: f32[16,64,32], index: 10, kind: input, shape index: {}]   ;;  %s17288_s12 = inlined_call_operand.vmem [shape: f32[16,8,2], index: 12, kind: input, shape index: {}]   ;;  %s17289_s13 = inlined_call_operand.vmem [shape: f32[16,1,64], index: 13, kind: input, shape index: {}]   ;;  %s17290_s15 = inlined_call_operand.vmem [shape: f32[2,2048], index: 15, kind: input, shape index: {}]   ;;  %s17291_s16 = inlined_call_operand.vmem [shape: f32[1,2048], index: 16, kind: output, shape index: {}]  }
   0x1   :  { %17292 = sst [smem:[#allocation54_spill]] %s17275_s2  ;;  %10336 = vset.pattern.permute.xlu0 %v10403_v0  ;;  %v84_v2 = vld [vmem:[%s17276_s0 + $0xe0] sm:$0xff]  ;;  %v85_v3 = vld [vmem:[%s17276_s0 + $0xe8] sm:$0xff]  ;;  %10337 = vset.pattern.permute.xlu1 %v10403_v0  ;;  %v86_v4 = vld [vmem:[%s17276_s0 + $0xf0] sm:$0xff]  ;;  %v21_v13 = vstv %s17277_s14  ;;  %vm4544_vm10 = vcmask 261120  }
   0x2   :  { %s17293_s23 = sld [smem:[#allocation54_spill]]  ;;  %106 = vmatpush.msra.mxu0 %v84_v2  ;;  %v87_v5 = vld [vmem:[%s17276_s0 + $0xf8] sm:$0xff]  ;;  %v80_v6 = vld [vmem:[%s17276_s0 + $0xc0] sm:$0xff]  ;;  %126 = vmatpush.msra.mxu1 %v85_v3  ;;  %v81_v7 = vld [vmem:[%s17276_s0 + $0xc8] sm:$0xff]  ;;  %22 = vst [vmem:[#allocation2] sm:$0x1] %v21_v13 }
   0x3   :  { %146 = vmatpush.msra.mxu2 %v86_v4  ;;  %v82_v8 = vld [vmem:[%s17276_s0 + $0xd0] sm:$0xff]  ;;  %v83_v9 = vld [vmem:[%s17276_s0 + $0xd8] sm:$0xff]  ;;  %166 = vmatpush.msra.mxu3 %v87_v5  ;;  %v76_v10 = vld [vmem:[%s17276_s0 + $0xa0] sm:$0xff] }
   0x4   :  { %107 = vmatpush.msra.mxu0 %v80_v6  ;;  %v77_v11 = vld [vmem:[%s17276_s0 + $0xa8] sm:$0xff]  ;;  %v78_v12 = vld [vmem:[%s17276_s0 + $0xb0] sm:$0xff]  ;;  %127 = vmatpush.msra.mxu1 %v81_v7  ;;  %v79_v14 = vld [vmem:[%s17276_s0 + $0xb8] sm:$0xff] }
   0x5   :  { %147 = vmatpush.msra.mxu2 %v82_v8  ;;  %v72_v15 = vld [vmem:[%s17276_s0 + $0x80] sm:$0xff]  ;;  %167 = vmatpush.msra.mxu3 %v83_v9  ;;  %v73_v16 = vld [vmem:[%s17276_s0 + $0x88] sm:$0xff]  ;;  %v74_v17 = vld [vmem:[%s17276_s0 + $0x90] sm:$0xff] }
   0x6   :  { %108 = vmatpush.msra.mxu0 %v76_v10  ;;  %128 = vmatpush.msra.mxu1 %v77_v11  ;;  %v75_v18 = vld [vmem:[%s17276_s0 + $0x98] sm:$0xff]  ;;  %v3049_v19 = vld [vmem:[%s17278_s5] sm:$0xff]  ;;  %v69_v21 = vld [vmem:[%s17276_s0 + $0x68] sm:$0xff] }
   0x7   :  { %148 = vmatpush.msra.mxu2 %v78_v12  ;;  %168 = vmatpush.msra.mxu3 %v79_v14  ;;  %v68_v20 = vld [vmem:[%s17276_s0 + $0x60] sm:$0xff]  ;;  %v70_v22 = vld [vmem:[%s17276_s0 + $0x70] sm:$0xff]  ;;  %v71_v23 = vld [vmem:[%s17276_s0 + $0x78] sm:$0xff] }
   0x8   :  { %v88_v1 = vld [vmem:[%s17293_s23] sm:$0xff]  ;;  %109 = vmatpush.msra.mxu0 %v72_v15  ;;  %129 = vmatpush.msra.mxu1 %v73_v16  ;;  %v65_v25 = vld [vmem:[%s17276_s0 + $0x48] sm:$0xff]  ;;  %v66_v26 = vld [vmem:[%s17276_s0 + $0x50] sm:$0xff] }
   0x9   :  { %91 = vperm.xlu0 %10336, %v88_v1   ;;  %149 = vmatpush.msra.mxu2 %v74_v17  ;;  %v64_v24 = vld [vmem:[%s17276_s0 + $0x40] sm:$0xff]  ;;  %v67_v27 = vld [vmem:[%s17276_s0 + $0x58] sm:$0xff]  ;;  %v61_v29 = vld [vmem:[%s17276_s0 + $0x28] sm:$0xff] }
   0xa   :  { %169 = vmatpush.msra.mxu3 %v75_v18  ;;  %110 = vmatpush.msra.mxu0 %v68_v20  ;;  %v60_v28 = vld [vmem:[%s17276_s0 + $0x20] sm:$0xff]  ;;  %v62_v30 = vld [vmem:[%s17276_s0 + $0x30] sm:$0xff]  ;;  %v63_v31 = vld [vmem:[%s17276_s0 + $0x38] sm:$0xff] }
   0xb   :  { %130 = vmatpush.msra.mxu1 %v69_v21  ;;  %150 = vmatpush.msra.mxu2 %v70_v22  ;;  %v56_v32 = vld [vmem:[%s17276_s0] sm:$0xff]  ;;  %v57_v33 = vld [vmem:[%s17276_s0 + $0x8] sm:$0xff]  ;;  %v58_v34 = vld [vmem:[%s17276_s0 + $0x10] sm:$0xff] }
   0xc   :  { %170 = vmatpush.msra.mxu3 %v71_v23  ;;  %111 = vmatpush.msra.mxu0 %v64_v24  ;;  %v59_v35 = vld [vmem:[%s17276_s0 + $0x18] sm:$0xff]  ;;  %v55_v36 = vld [vmem:[%s17279_s1] sm:$0xff]  ;;  %v236_v42 = vld [vmem:[%s17281_s3 + $0x170] sm:$0xff] }
   0xd   :  { %131 = vmatpush.msra.mxu1 %v65_v25  ;;  %151 = vmatpush.msra.mxu2 %v66_v26  ;;  %v4503_v37 = vld [vmem:[%s17280_s8 + $0x18] sm:$0xff]  ;;  %v252_v43 = vld [vmem:[%s17281_s3 + $0x1f0] sm:$0xff]  ;;  %v235_v46 = vld [vmem:[%s17281_s3 + $0x168] sm:$0xff] }
   0xe   :  { %171 = vmatpush.msra.mxu3 %v67_v27  ;;  %112 = vmatpush.msra.mxu0 %v60_v28  ;;  %v237_v38 = vld [vmem:[%s17281_s3 + $0x178] sm:$0xff]  ;;  %v204_v44 = vld [vmem:[%s17281_s3 + $0x70] sm:$0xff]  ;;  %v251_v47 = vld [vmem:[%s17281_s3 + $0x1e8] sm:$0xff] }
   0xf   :  { %132 = vmatpush.msra.mxu1 %v61_v29  ;;  %152 = vmatpush.msra.mxu2 %v62_v30  ;;  %v253_v39 = vld [vmem:[%s17281_s3 + $0x1f8] sm:$0xff]  ;;  %v220_v45 = vld [vmem:[%s17281_s3 + $0xf0] sm:$0xff]  ;;  %v203_v48 = vld [vmem:[%s17281_s3 + $0x68] sm:$0xff] }
  0x10   :  { %172 = vmatpush.msra.mxu3 %v63_v31  ;;  %113 = vmatpush.msra.mxu0 %v56_v32  ;;  %v205_v40 = vld [vmem:[%s17281_s3 + $0x78] sm:$0xff]  ;;  %v219_v49 = vld [vmem:[%s17281_s3 + $0xe8] sm:$0xff]  ;;  %v234_v50 = vld [vmem:[%s17281_s3 + $0x160] sm:$0xff] }
  0x11   :  { %3053 = vperm.xlu0 %10336, %v3049_v19   ;;  %133 = vmatpush.msra.mxu1 %v57_v33  ;;  %v221_v41 = vld [vmem:[%s17281_s3 + $0xf8] sm:$0xff]  ;;  %v250_v51 = vld [vmem:[%s17281_s3 + $0x1e0] sm:$0xff]  ;;  %v6393_v53 = vld [vmem:[%s17282_s11 + $0x10] sm:$0xff] }
  0x12   :  { %153 = vmatpush.msra.mxu2 %v58_v34  ;;  %173 = vmatpush.msra.mxu3 %v59_v35  ;;  %v202_v52 = vld [vmem:[%s17281_s3 + $0x60] sm:$0xff]  ;;  %v233_v55 = vld [vmem:[%s17281_s3 + $0x158] sm:$0xff]  ;;  %v232_v59 = vld [vmem:[%s17281_s3 + $0x150] sm:$0xff] }
  0x13   :  { %8351 = vmatmul.msk.f32.vlgmr.msra.gmra.mxu0 %vm94_vm0, %v55_v36  ;;  %8352 = vmatmul.msk.f32.vlgmr.msra.gmra.mxu1 %vm94_vm0, %v55_v36  ;;  %v218_v54 = vld [vmem:[%s17281_s3 + $0xe0] sm:$0xff]  ;;  %v249_v56 = vld [vmem:[%s17281_s3 + $0x1d8] sm:$0xff]  ;;  %v248_v60 = vld [vmem:[%s17281_s3 + $0x1d0] sm:$0xff] }
  0x14   :  { %8353 = vmatmul.msk.f32.vlgmr.msra.gmra.mxu2 %vm94_vm0, %v55_v36  ;;  %8354 = vmatmul.msk.f32.vlgmr.msra.gmra.mxu3 %vm94_vm0, %v55_v36  ;;  %v201_v57 = vld [vmem:[%s17281_s3 + $0x58] sm:$0xff]  ;;  %v200_v61 = vld [vmem:[%s17281_s3 + $0x50] sm:$0xff]  ;;  %v231_v63 = vld [vmem:[%s17281_s3 + $0x148] sm:$0xff] }
  0x15   :  { %294 = vmatpush.msrb.mxu2 %v237_v38  ;;  %314 = vmatpush.msrb.mxu3 %v253_v39  ;;  %v217_v58 = vld [vmem:[%s17281_s3 + $0xd8] sm:$0xff]  ;;  %v216_v62 = vld [vmem:[%s17281_s3 + $0xd0] sm:$0xff]  ;;  %v247_v1 = vld [vmem:[%s17281_s3 + $0x1c8] sm:$0xff] }
  0x16   :  { %254 = vmatpush.msrb.mxu0 %v205_v40  ;;  %274 = vmatpush.msrb.mxu1 %v221_v41  ;;  %v199_v2 = vld [vmem:[%s17281_s3 + $0x48] sm:$0xff]  ;;  %v230_v4 = vld [vmem:[%s17281_s3 + $0x140] sm:$0xff]  ;;  %v229_v9 = vld [vmem:[%s17281_s3 + $0x138] sm:$0xff] }
  0x17   :  { %295 = vmatpush.msrb.mxu2 %v236_v42  ;;  %315 = vmatpush.msrb.mxu3 %v252_v43  ;;  %v215_v3 = vld [vmem:[%s17281_s3 + $0xc8] sm:$0xff]  ;;  %v246_v5 = vld [vmem:[%s17281_s3 + $0x1c0] sm:$0xff]  ;;  %v245_v10 = vld [vmem:[%s17281_s3 + $0x1b8] sm:$0xff] }
  0x18   :  { %255 = vmatpush.msrb.mxu0 %v204_v44  ;;  %275 = vmatpush.msrb.mxu1 %v220_v45  ;;  %v6396_v6 = vld [vmem:[%s17282_s11 + $0x28] sm:$0xff]  ;;  %v198_v7 = vld [vmem:[%s17281_s3 + $0x40] sm:$0xff]  ;;  %v197_v11 = vld [vmem:[%s17281_s3 + $0x38] sm:$0xff] }
  0x19   :  { %4521 = vperm.xlu0 %10336, %v4503_v37   ;;  %296 = vmatpush.msrb.mxu2 %v235_v46  ;;  %v214_v8 = vld [vmem:[%s17281_s3 + $0xc0] sm:$0xff]  ;;  %v213_v12 = vld [vmem:[%s17281_s3 + $0xb8] sm:$0xff]  ;;  %v228_v13 = vld [vmem:[%s17281_s3 + $0x130] sm:$0xff] }
  0x1a   :  { %316 = vmatpush.msrb.mxu3 %v251_v47  ;;  %256 = vmatpush.msrb.mxu0 %v203_v48  ;;  %v244_v14 = vld [vmem:[%s17281_s3 + $0x1b0] sm:$0xff]  ;;  %v227_v17 = vld [vmem:[%s17281_s3 + $0x128] sm:$0xff]  ;;  %v226_v21 = vld [vmem:[%s17281_s3 + $0x120] sm:$0xff] }
  0x1b   :  { %276 = vmatpush.msrb.mxu1 %v219_v49  ;;  %297 = vmatpush.msrb.mxu2 %v234_v50  ;;  %v196_v15 = vld [vmem:[%s17281_s3 + $0x30] sm:$0xff]  ;;  %v243_v18 = vld [vmem:[%s17281_s3 + $0x1a8] sm:$0xff]  ;;  %v242_v23 = vld [vmem:[%s17281_s3 + $0x1a0] sm:$0xff] }
  0x1c   :  { %317 = vmatpush.msrb.mxu3 %v250_v51  ;;  %257 = vmatpush.msrb.mxu0 %v202_v52  ;;  %v212_v16 = vld [vmem:[%s17281_s3 + $0xb0] sm:$0xff]  ;;  %v195_v19 = vld [vmem:[%s17281_s3 + $0x28] sm:$0xff]  ;;  %v194_v24 = vld [vmem:[%s17281_s3 + $0x20] sm:$0xff] }
  0x1d   :  { %277 = vmatpush.msrb.mxu1 %v218_v54  ;;  %298 = vmatpush.msrb.mxu2 %v233_v55  ;;  %v211_v20 = vld [vmem:[%s17281_s3 + $0xa8] sm:$0xff]  ;;  %v210_v25 = vld [vmem:[%s17281_s3 + $0xa0] sm:$0xff]  ;;  %v225_v26 = vld [vmem:[%s17281_s3 + $0x118] sm:$0xff] }
  0x1e   :  { %318 = vmatpush.msrb.mxu3 %v249_v56  ;;  %258 = vmatpush.msrb.mxu0 %v201_v57  ;;  %v7595_v22 = vld [vmem:[#allocation2] sm:$0x1]  ;;  %v241_v27 = vld [vmem:[%s17281_s3 + $0x198] sm:$0xff]  ;;  %v224_v29 = vld [vmem:[%s17281_s3 + $0x110] sm:$0xff] }
  0x1f   :  { %278 = vmatpush.msrb.mxu1 %v217_v58  ;;  %299 = vmatpush.msrb.mxu2 %v232_v59  ;;  %v209_v28 = vld [vmem:[%s17281_s3 + $0x98] sm:$0xff]  ;;  %v240_v30 = vld [vmem:[%s17281_s3 + $0x190] sm:$0xff]  ;;  %v223_v33 = vld [vmem:[%s17281_s3 + $0x108] sm:$0xff] }
  0x20   :  { %319 = vmatpush.msrb.mxu3 %v248_v60  ;;  %259 = vmatpush.msrb.mxu0 %v200_v61  ;;  %v192_v31 = vld [vmem:[%s17281_s3 + $0x10] sm:$0xff]  ;;  %v239_v34 = vld [vmem:[%s17281_s3 + $0x188] sm:$0xff]  ;;  %v222_v37 = vld [vmem:[%s17281_s3 + $0x100] sm:$0xff] }
  0x21   :  { %6411 = vperm.xlu0 %10336, %v6393_v53   ;;  %279 = vmatpush.msrb.mxu1 %v216_v62  ;;  %v208_v32 = vld [vmem:[%s17281_s3 + $0x90] sm:$0xff]  ;;  %v191_v35 = vld [vmem:[%s17281_s3 + $0x8] sm:$0xff]  ;;  %v238_v38 = vld [vmem:[%s17281_s3 + $0x180] sm:$0xff] }
  0x22   :  { %300 = vmatpush.msrb.mxu2 %v231_v63  ;;  %320 = vmatpush.msrb.mxu3 %v247_v1  ;;  %v207_v36 = vld [vmem:[%s17281_s3 + $0x88] sm:$0xff]  ;;  %v8402_v39 = vld [vmem:[%s17281_s3 + $0x378] sm:$0xff]  ;;  %v190_v41 = vld [vmem:[%s17281_s3] sm:$0xff] }
  0x23   :  { %260 = vmatpush.msrb.mxu0 %v199_v2  ;;  %280 = vmatpush.msrb.mxu1 %v215_v3  ;;  %v8418_v40 = vld [vmem:[%s17281_s3 + $0x3f8] sm:$0xff]  ;;  %v206_v42 = vld [vmem:[%s17281_s3 + $0x80] sm:$0xff]  ;;  %v8401_v45 = vld [vmem:[%s17281_s3 + $0x370] sm:$0xff] }
  0x24   :  { %301 = vmatpush.msrb.mxu2 %v230_v4  ;;  %321 = vmatpush.msrb.mxu3 %v246_v5  ;;  %v8370_v43 = vld [vmem:[%s17281_s3 + $0x278] sm:$0xff]  ;;  %v8417_v46 = vld [vmem:[%s17281_s3 + $0x3f0] sm:$0xff]  ;;  %v8400_v49 = vld [vmem:[%s17281_s3 + $0x368] sm:$0xff] }
  0x25   :  { %261 = vmatpush.msrb.mxu0 %v198_v7  ;;  %281 = vmatpush.msrb.mxu1 %v214_v8  ;;  %v8386_v44 = vld [vmem:[%s17281_s3 + $0x2f8] sm:$0xff]  ;;  %v8369_v47 = vld [vmem:[%s17281_s3 + $0x270] sm:$0xff]  ;;  %v8416_v50 = vld [vmem:[%s17281_s3 + $0x3e8] sm:$0xff] }
  0x26   :  { %302 = vmatpush.msrb.mxu2 %v229_v9  ;;  %322 = vmatpush.msrb.mxu3 %v245_v10  ;;  %v8385_v48 = vld [vmem:[%s17281_s3 + $0x2f0] sm:$0xff]  ;;  %v8368_v51 = vld [vmem:[%s17281_s3 + $0x268] sm:$0xff]  ;;  %v8399_v53 = vld [vmem:[%s17281_s3 + $0x360] sm:$0xff] }
  0x27   :  { %262 = vmatpush.msrb.mxu0 %v197_v11  ;;  %282 = vmatpush.msrb.mxu1 %v213_v12  ;;  %v8384_v52 = vld [vmem:[%s17281_s3 + $0x2e8] sm:$0xff]  ;;  %v8415_v54 = vld [vmem:[%s17281_s3 + $0x3e0] sm:$0xff]  ;;  %v8398_v57 = vld [vmem:[%s17281_s3 + $0x358] sm:$0xff] }
  0x28   :  { %303 = vmatpush.msrb.mxu2 %v228_v13  ;;  %323 = vmatpush.msrb.mxu3 %v244_v14  ;;  %v8367_v55 = vld [vmem:[%s17281_s3 + $0x260] sm:$0xff]  ;;  %v8414_v58 = vld [vmem:[%s17281_s3 + $0x3d8] sm:$0xff]  ;;  %v8397_v61 = vld [vmem:[%s17281_s3 + $0x350] sm:$0xff] }
  0x29   :  { %6426 = vperm.xlu0 %10336, %v6396_v6   ;;  %263 = vmatpush.msrb.mxu0 %v196_v15  ;;  %v8383_v56 = vld [vmem:[%s17281_s3 + $0x2e0] sm:$0xff]  ;;  %v8366_v59 = vld [vmem:[%s17281_s3 + $0x258] sm:$0xff]  ;;  %v8413_v62 = vld [vmem:[%s17281_s3 + $0x3d0] sm:$0xff] }
  0x2a   :  { %283 = vmatpush.msrb.mxu1 %v212_v16  ;;  %304 = vmatpush.msrb.mxu2 %v227_v17  ;;  %v8382_v60 = vld [vmem:[%s17281_s3 + $0x2d8] sm:$0xff]  ;;  %v8365_v63 = vld [vmem:[%s17281_s3 + $0x250] sm:$0xff]  ;;  %v8396_v2 = vld [vmem:[%s17281_s3 + $0x348] sm:$0xff] }
  0x2b   :  { %324 = vmatpush.msrb.mxu3 %v243_v18  ;;  %264 = vmatpush.msrb.mxu0 %v195_v19  ;;  %v8381_v1 = vld [vmem:[%s17281_s3 + $0x2d0] sm:$0xff]  ;;  %v8412_v3 = vld [vmem:[%s17281_s3 + $0x3c8] sm:$0xff]  ;;  %v8395_v6 = vld [vmem:[%s17281_s3 + $0x340] sm:$0xff] }
  0x2c   :  { %284 = vmatpush.msrb.mxu1 %v211_v20  ;;  %305 = vmatpush.msrb.mxu2 %v226_v21  ;;  %v8364_v4 = vld [vmem:[%s17281_s3 + $0x248] sm:$0xff]  ;;  %v8411_v7 = vld [vmem:[%s17281_s3 + $0x3c0] sm:$0xff]  ;;  %v8394_v10 = vld [vmem:[%s17281_s3 + $0x338] sm:$0xff] }
  0x2d   :  { %325 = vmatpush.msrb.mxu3 %v242_v23  ;;  %10338 = vset.pattern.permute.xlu2 %v10403_v0  ;;  %v193_v0 = vld [vmem:[%s17281_s3 + $0x18] sm:$0xff]  ;;  %v8380_v5 = vld [vmem:[%s17281_s3 + $0x2c8] sm:$0xff]  ;;  %v8363_v8 = vld [vmem:[%s17281_s3 + $0x240] sm:$0xff] }
  0x2e   :  { %265 = vmatpush.msrb.mxu0 %v194_v24  ;;  %285 = vmatpush.msrb.mxu1 %v210_v25  ;;  %v8379_v9 = vld [vmem:[%s17281_s3 + $0x2c0] sm:$0xff]  ;;  %v8410_v11 = vld [vmem:[%s17281_s3 + $0x3b8] sm:$0xff]  ;;  %v8393_v14 = vld [vmem:[%s17281_s3 + $0x330] sm:$0xff] }
  0x2f   :  { %306 = vmatpush.msrb.mxu2 %v225_v26  ;;  %326 = vmatpush.msrb.mxu3 %v241_v27  ;;  %v8362_v12 = vld [vmem:[%s17281_s3 + $0x238] sm:$0xff]  ;;  %v8409_v15 = vld [vmem:[%s17281_s3 + $0x3b0] sm:$0xff]  ;;  %v8392_v18 = vld [vmem:[%s17281_s3 + $0x328] sm:$0xff] }
  0x30   :  { %266 = vmatpush.msrb.mxu0 %v193_v0  ;;  %286 = vmatpush.msrb.mxu1 %v209_v28  ;;  %v8378_v13 = vld [vmem:[%s17281_s3 + $0x2b8] sm:$0xff]  ;;  %v8361_v16 = vld [vmem:[%s17281_s3 + $0x230] sm:$0xff]  ;;  %v8408_v19 = vld [vmem:[%s17281_s3 + $0x3a8] sm:$0xff] }
  0x31   :  { %7598 = vperm.xlu0 %10336, %v7595_v22   ;;  %307 = vmatpush.msrb.mxu2 %v224_v29  ;;  %v8377_v17 = vld [vmem:[%s17281_s3 + $0x2b0] sm:$0xff]  ;;  %v8360_v20 = vld [vmem:[%s17281_s3 + $0x228] sm:$0xff]  ;;  %v8391_v22 = vld [vmem:[%s17281_s3 + $0x320] sm:$0xff] }
  0x32   :  { %327 = vmatpush.msrb.mxu3 %v240_v30  ;;  %267 = vmatpush.msrb.mxu0 %v192_v31  ;;  %v8376_v21 = vld [vmem:[%s17281_s3 + $0x2a8] sm:$0xff]  ;;  %v8407_v23 = vld [vmem:[%s17281_s3 + $0x3a0] sm:$0xff]  ;;  %v8390_v26 = vld [vmem:[%s17281_s3 + $0x318] sm:$0xff] }
  0x33   :  { %287 = vmatpush.msrb.mxu1 %v208_v32  ;;  %308 = vmatpush.msrb.mxu2 %v223_v33  ;;  %v8359_v24 = vld [vmem:[%s17281_s3 + $0x220] sm:$0xff]  ;;  %v8406_v27 = vld [vmem:[%s17281_s3 + $0x398] sm:$0xff]  ;;  %v8389_v29 = vld [vmem:[%s17281_s3 + $0x310] sm:$0xff] }
  0x34   :  { %328 = vmatpush.msrb.mxu3 %v239_v34  ;;  %268 = vmatpush.msrb.mxu0 %v191_v35  ;;  %v8375_v25 = vld [vmem:[%s17281_s3 + $0x2a0] sm:$0xff]  ;;  %v8358_v0 = vld [vmem:[%s17281_s3 + $0x218] sm:$0xff]  ;;  %v8405_v30 = vld [vmem:[%s17281_s3 + $0x390] sm:$0xff] }
  0x35   :  { %288 = vmatpush.msrb.mxu1 %v207_v36  ;;  %309 = vmatpush.msrb.mxu2 %v222_v37  ;;  %v8374_v28 = vld [vmem:[%s17281_s3 + $0x298] sm:$0xff]  ;;  %v8357_v31 = vld [vmem:[%s17281_s3 + $0x210] sm:$0xff]  ;;  %v8388_v33 = vld [vmem:[%s17281_s3 + $0x308] sm:$0xff] }
  0x36   :  { %329 = vmatpush.msrb.mxu3 %v238_v38  ;;  %269 = vmatpush.msrb.mxu0 %v190_v41  ;;  %v8373_v32 = vld [vmem:[%s17281_s3 + $0x290] sm:$0xff]  ;;  %v8404_v34 = vld [vmem:[%s17281_s3 + $0x388] sm:$0xff]  ;;  %v8387_v37 = vld [vmem:[%s17281_s3 + $0x300] sm:$0xff] }
  0x37   :  { %441 = vmatpush.msra.mxu2 %v8402_v39  ;;  %289 = vmatpush.msrb.mxu1 %v206_v42  ;;  %v8356_v35 = vld [vmem:[%s17281_s3 + $0x208] sm:$0xff]  ;;  %v8403_v38 = vld [vmem:[%s17281_s3 + $0x380] sm:$0xff] }
  0x38   :  { %461 = vmatpush.msra.mxu3 %v8418_v40  ;;  %401 = vmatpush.msra.mxu0 %v8370_v43  ;;  %v8372_v36 = vld [vmem:[%s17281_s3 + $0x288] sm:$0xff]  ;;  %v8355_v39 = vld [vmem:[%s17281_s3 + $0x200] sm:$0xff] }
  0x39   :  { %421 = vmatpush.msra.mxu1 %v8386_v44  ;;  %442 = vmatpush.msra.mxu2 %v8401_v45  ;;  %v8371_v40 = vld [vmem:[%s17281_s3 + $0x280] sm:$0xff] }
  0x3a   :  { %462 = vmatpush.msra.mxu3 %v8417_v46  ;;  %402 = vmatpush.msra.mxu0 %v8369_v47 }
  0x3b   :  { %422 = vmatpush.msra.mxu1 %v8385_v48  ;;  %443 = vmatpush.msra.mxu2 %v8400_v49 }
  0x3c   :  { %463 = vmatpush.msra.mxu3 %v8416_v50  ;;  %403 = vmatpush.msra.mxu0 %v8368_v51 }
  0x3d   :  { %423 = vmatpush.msra.mxu1 %v8384_v52  ;;  %444 = vmatpush.msra.mxu2 %v8399_v53 }
  0x3e   :  { %464 = vmatpush.msra.mxu3 %v8415_v54  ;;  %404 = vmatpush.msra.mxu0 %v8367_v55 }
  0x3f   :  { %424 = vmatpush.msra.mxu1 %v8383_v56  ;;  %445 = vmatpush.msra.mxu2 %v8398_v57  ;;  %v8440_v56 = vld [vmem:[%s17281_s3 + $0x478] sm:$0xff] }
  0x40   :  { %465 = vmatpush.msra.mxu3 %v8414_v58  ;;  %405 = vmatpush.msra.mxu0 %v8366_v59  ;;  %v8456_v58 = vld [vmem:[%s17281_s3 + $0x4f8] sm:$0xff] }
  0x41   :  { %425 = vmatpush.msra.mxu1 %v8382_v60  ;;  %446 = vmatpush.msra.mxu2 %v8397_v61  ;;  %v8439_v60 = vld [vmem:[%s17281_s3 + $0x470] sm:$0xff] }
  0x42   :  { %466 = vmatpush.msra.mxu3 %v8413_v62  ;;  %406 = vmatpush.msra.mxu0 %v8365_v63  ;;  %v8455_v61 = vld [vmem:[%s17281_s3 + $0x4f0] sm:$0xff]  ;;  %v8438_v62 = vld [vmem:[%s17281_s3 + $0x468] sm:$0xff] }
  0x43   :  { %426 = vmatpush.msra.mxu1 %v8381_v1  ;;  %447 = vmatpush.msra.mxu2 %v8396_v2  ;;  %v8454_v63 = vld [vmem:[%s17281_s3 + $0x4e8] sm:$0xff]  ;;  %v8437_v1 = vld [vmem:[%s17281_s3 + $0x460] sm:$0xff] }
  0x44   :  { %467 = vmatpush.msra.mxu3 %v8412_v3  ;;  %407 = vmatpush.msra.mxu0 %v8364_v4  ;;  %v8453_v2 = vld [vmem:[%s17281_s3 + $0x4e0] sm:$0xff]  ;;  %v8436_v3 = vld [vmem:[%s17281_s3 + $0x458] sm:$0xff] }
  0x45   :  { %427 = vmatpush.msra.mxu1 %v8380_v5  ;;  %448 = vmatpush.msra.mxu2 %v8395_v6  ;;  %v8452_v4 = vld [vmem:[%s17281_s3 + $0x4d8] sm:$0xff]  ;;  %v8435_v5 = vld [vmem:[%s17281_s3 + $0x450] sm:$0xff] }
  0x46   :  { %468 = vmatpush.msra.mxu3 %v8411_v7  ;;  %408 = vmatpush.msra.mxu0 %v8363_v8  ;;  %v8451_v6 = vld [vmem:[%s17281_s3 + $0x4d0] sm:$0xff]  ;;  %v8434_v7 = vld [vmem:[%s17281_s3 + $0x448] sm:$0xff] }
  0x47   :  { %428 = vmatpush.msra.mxu1 %v8379_v9  ;;  %449 = vmatpush.msra.mxu2 %v8394_v10  ;;  %v8450_v8 = vld [vmem:[%s17281_s3 + $0x4c8] sm:$0xff]  ;;  %v8433_v9 = vld [vmem:[%s17281_s3 + $0x440] sm:$0xff] }
  0x48   :  { %469 = vmatpush.msra.mxu3 %v8410_v11  ;;  %409 = vmatpush.msra.mxu0 %v8362_v12  ;;  %v8449_v10 = vld [vmem:[%s17281_s3 + $0x4c0] sm:$0xff]  ;;  %v8432_v11 = vld [vmem:[%s17281_s3 + $0x438] sm:$0xff] }
  0x49   :  { %429 = vmatpush.msra.mxu1 %v8378_v13  ;;  %450 = vmatpush.msra.mxu2 %v8393_v14  ;;  %v8448_v12 = vld [vmem:[%s17281_s3 + $0x4b8] sm:$0xff]  ;;  %v8431_v13 = vld [vmem:[%s17281_s3 + $0x430] sm:$0xff] }
  0x4a   :  { %470 = vmatpush.msra.mxu3 %v8409_v15  ;;  %410 = vmatpush.msra.mxu0 %v8361_v16  ;;  %v8447_v14 = vld [vmem:[%s17281_s3 + $0x4b0] sm:$0xff]  ;;  %v8430_v15 = vld [vmem:[%s17281_s3 + $0x428] sm:$0xff] }
  0x4b   :  { %430 = vmatpush.msra.mxu1 %v8377_v17  ;;  %451 = vmatpush.msra.mxu2 %v8392_v18  ;;  %v8446_v16 = vld [vmem:[%s17281_s3 + $0x4a8] sm:$0xff]  ;;  %v8429_v17 = vld [vmem:[%s17281_s3 + $0x420] sm:$0xff] }
  0x4c   :  { %471 = vmatpush.msra.mxu3 %v8408_v19  ;;  %411 = vmatpush.msra.mxu0 %v8360_v20  ;;  %v8445_v18 = vld [vmem:[%s17281_s3 + $0x4a0] sm:$0xff]  ;;  %v8428_v19 = vld [vmem:[%s17281_s3 + $0x418] sm:$0xff] }
  0x4d   :  { %431 = vmatpush.msra.mxu1 %v8376_v21  ;;  %452 = vmatpush.msra.mxu2 %v8391_v22  ;;  %v8444_v20 = vld [vmem:[%s17281_s3 + $0x498] sm:$0xff]  ;;  %v8427_v21 = vld [vmem:[%s17281_s3 + $0x410] sm:$0xff] }
  0x4e   :  { %472 = vmatpush.msra.mxu3 %v8407_v23  ;;  %412 = vmatpush.msra.mxu0 %v8359_v24  ;;  %v8443_v22 = vld [vmem:[%s17281_s3 + $0x490] sm:$0xff]  ;;  %v8426_v23 = vld [vmem:[%s17281_s3 + $0x408] sm:$0xff] }
  0x4f   :  { %432 = vmatpush.msra.mxu1 %v8375_v25  ;;  %453 = vmatpush.msra.mxu2 %v8390_v26  ;;  %v8442_v24 = vld [vmem:[%s17281_s3 + $0x488] sm:$0xff]  ;;  %v8425_v25 = vld [vmem:[%s17281_s3 + $0x400] sm:$0xff] }
  0x50   :  { %473 = vmatpush.msra.mxu3 %v8406_v27  ;;  %413 = vmatpush.msra.mxu0 %v8358_v0  ;;  %v8441_v26 = vld [vmem:[%s17281_s3 + $0x480] sm:$0xff]  ;;  %v8508_v27 = vld [vmem:[%s17281_s3 + $0x678] sm:$0xff]  ;;  %v8507_v0 = vld [vmem:[%s17281_s3 + $0x670] sm:$0xff] }
  0x51   :  { %433 = vmatpush.msra.mxu1 %v8374_v28  ;;  %454 = vmatpush.msra.mxu2 %v8389_v29  ;;  %v8506_v28 = vld [vmem:[%s17281_s3 + $0x668] sm:$0xff]  ;;  %v8505_v29 = vld [vmem:[%s17281_s3 + $0x660] sm:$0xff] }
  0x52   :  { %474 = vmatpush.msra.mxu3 %v8405_v30  ;;  %414 = vmatpush.msra.mxu0 %v8357_v31  ;;  %v8504_v30 = vld [vmem:[%s17281_s3 + $0x658] sm:$0xff]  ;;  %v8503_v31 = vld [vmem:[%s17281_s3 + $0x650] sm:$0xff] }
  0x53   :  { %434 = vmatpush.msra.mxu1 %v8373_v32  ;;  %455 = vmatpush.msra.mxu2 %v8388_v33  ;;  %v8502_v32 = vld [vmem:[%s17281_s3 + $0x648] sm:$0xff]  ;;  %v8501_v33 = vld [vmem:[%s17281_s3 + $0x640] sm:$0xff] }
  0x54   :  { %475 = vmatpush.msra.mxu3 %v8404_v34  ;;  %415 = vmatpush.msra.mxu0 %v8356_v35  ;;  %v8500_v34 = vld [vmem:[%s17281_s3 + $0x638] sm:$0xff]  ;;  %v8499_v35 = vld [vmem:[%s17281_s3 + $0x630] sm:$0xff] }
  0x55   :  { %435 = vmatpush.msra.mxu1 %v8372_v36  ;;  %456 = vmatpush.msra.mxu2 %v8387_v37  ;;  %v8498_v36 = vld [vmem:[%s17281_s3 + $0x628] sm:$0xff]  ;;  %v8497_v37 = vld [vmem:[%s17281_s3 + $0x620] sm:$0xff] }
  0x56   :  { %476 = vmatpush.msra.mxu3 %v8403_v38  ;;  %416 = vmatpush.msra.mxu0 %v8355_v39  ;;  %v8496_v38 = vld [vmem:[%s17281_s3 + $0x618] sm:$0xff]  ;;  %v8495_v39 = vld [vmem:[%s17281_s3 + $0x610] sm:$0xff] }
  0x57   :  { %436 = vmatpush.msra.mxu1 %v8371_v40  ;;  %v8494_v40 = vld [vmem:[%s17281_s3 + $0x608] sm:$0xff] }
  0x7b   :  { %v92_v41 = vpop.permute.xlu0 %91 }
  0x90   :  { %v115_v42 = vpop.f32.mrf.mxu0  ;;  %v135_v43 = vpop.f32.mrf.mxu1 }
  0x91   :  { %v116_v44 = vadd.f32 %v115_v42, %v92_v41  ;;  %v136_v45 = vadd.f32 %v135_v43, %v92_v41 }
  0x93   :  { %vm178_vm1 = vcmp.ge.f32.partialorder %v116_v44, 0.0  ;;  %v182_v46 = vmul.f32 0.2, %v116_v44  ;;  %vm179_vm2 = vcmp.ge.f32.partialorder %v136_v45, 0.0  ;;  %v183_v47 = vmul.f32 0.2, %v136_v45 }
  0x95   :  { %v10997_v48 = vsel %vm178_vm1, %v116_v44, %v182_v46  ;;  %v10999_v49 = vsel %vm179_vm2, %v136_v45, %v183_v47 }
  0x96   :  { %270 = vmatmul.f32.vlgmr.msrb.gmra.mxu0 %v10997_v48  ;;  %290 = vmatmul.f32.vlgmr.msrb.gmra.mxu1 %v10999_v49 }
  0x97   :  { %v155_v50 = vpop.f32.mrf.mxu2  ;;  %v175_v52 = vpop.f32.mrf.mxu3 }
  0x98   :  { %v156_v51 = vadd.f32 %v155_v50, %v92_v41  ;;  %v176_v53 = vadd.f32 %v175_v52, %v92_v41  ;;  %v8493_v41 = vld [vmem:[%s17281_s3 + $0x600] sm:$0xff] }
  0x9a   :  { %vm180_vm3 = vcmp.ge.f32.partialorder %v156_v51, 0.0  ;;  %v184_v54 = vmul.f32 0.2, %v156_v51  ;;  %vm181_vm4 = vcmp.ge.f32.partialorder %v176_v53, 0.0  ;;  %v185_v55 = vmul.f32 0.2, %v176_v53 }
  0x9c   :  { %v11006_v57 = vsel %vm180_vm3, %v156_v51, %v184_v54  ;;  %v11011_v59 = vsel %vm181_vm4, %v176_v53, %v185_v55  ;;  %v8488_v51 = vld [vmem:[%s17281_s3 + $0x5f8] sm:$0xff]  ;;  %v334_v54 = vld [vmem:[%s17283_s4] sm:$0xff]  ;;  %v8487_v55 = vld [vmem:[%s17281_s3 + $0x5f0] sm:$0xff] }
  0x9d   :  { %310 = vmatmul.f32.vlgmr.msrb.gmra.mxu2 %v11006_v57  ;;  %330 = vmatmul.f32.vlgmr.msrb.gmra.mxu3 %v11011_v59 }
  0x9e   :  { %608 = vmatpush.msrb.mxu2 %v8440_v56  ;;  %628 = vmatpush.msrb.mxu3 %v8456_v58  ;;  %v8486_v58 = vld [vmem:[%s17281_s3 + $0x5e8] sm:$0xff] }
  0x9f   :  { %417 = vmatmul.f32.vlgmr.msra.gmra.mxu0 %v10997_v48  ;;  %437 = vmatmul.f32.vlgmr.msra.gmra.mxu1 %v10999_v49 }
  0xa0   :  { %609 = vmatpush.msrb.mxu2 %v8439_v60  ;;  %629 = vmatpush.msrb.mxu3 %v8455_v61 }
  0xa2   :  { %610 = vmatpush.msrb.mxu2 %v8438_v62  ;;  %630 = vmatpush.msrb.mxu3 %v8454_v63  ;;  %v8485_v62 = vld [vmem:[%s17281_s3 + $0x5e0] sm:$0xff] }
  0xa4   :  { %611 = vmatpush.msrb.mxu2 %v8437_v1  ;;  %631 = vmatpush.msrb.mxu3 %v8453_v2  ;;  %v8472_v2 = vld [vmem:[%s17281_s3 + $0x578] sm:$0xff] }
  0xa5   :  { %457 = vmatmul.f32.vlgmr.msra.gmra.mxu2 %v11006_v57  ;;  %477 = vmatmul.f32.vlgmr.msra.gmra.mxu3 %v11011_v59 }
  0xa6   :  { %612 = vmatpush.msrb.mxu2 %v8436_v3  ;;  %632 = vmatpush.msrb.mxu3 %v8452_v4  ;;  %v8484_v3 = vld [vmem:[%s17281_s3 + $0x5d8] sm:$0xff]  ;;  %v8419_v4 = vld [vmem:[%s17283_s4 + $0x10] sm:$0xff] }
  0xa8   :  { %613 = vmatpush.msrb.mxu2 %v8435_v5  ;;  %633 = vmatpush.msrb.mxu3 %v8451_v6  ;;  %v335_v5 = vld [vmem:[%s17283_s4 + $0x8] sm:$0xff]  ;;  %v8471_v6 = vld [vmem:[%s17281_s3 + $0x570] sm:$0xff] }
  0xaa   :  { %614 = vmatpush.msrb.mxu2 %v8434_v7  ;;  %634 = vmatpush.msrb.mxu3 %v8450_v8  ;;  %v8483_v7 = vld [vmem:[%s17281_s3 + $0x5d0] sm:$0xff]  ;;  %v8470_v8 = vld [vmem:[%s17281_s3 + $0x568] sm:$0xff] }
  0xac   :  { %615 = vmatpush.msrb.mxu2 %v8433_v9  ;;  %635 = vmatpush.msrb.mxu3 %v8449_v10  ;;  %v8482_v9 = vld [vmem:[%s17281_s3 + $0x5c8] sm:$0xff]  ;;  %v8469_v10 = vld [vmem:[%s17281_s3 + $0x560] sm:$0xff] }
  0xae   :  { %616 = vmatpush.msrb.mxu2 %v8432_v11  ;;  %636 = vmatpush.msrb.mxu3 %v8448_v12  ;;  %v8481_v11 = vld [vmem:[%s17281_s3 + $0x5c0] sm:$0xff]  ;;  %v8468_v12 = vld [vmem:[%s17281_s3 + $0x558] sm:$0xff] }
  0xb0   :  { %617 = vmatpush.msrb.mxu2 %v8431_v13  ;;  %637 = vmatpush.msrb.mxu3 %v8447_v14  ;;  %v8480_v13 = vld [vmem:[%s17281_s3 + $0x5b8] sm:$0xff] }
  0xb1   :  { %v8420_v14 = vld [vmem:[%s17283_s4 + $0x18] sm:$0xff] }
  0xb2   :  { %618 = vmatpush.msrb.mxu2 %v8430_v15  ;;  %638 = vmatpush.msrb.mxu3 %v8446_v16  ;;  %v8467_v15 = vld [vmem:[%s17281_s3 + $0x550] sm:$0xff] }
  0xb3   :  { %v8479_v16 = vld [vmem:[%s17281_s3 + $0x5b0] sm:$0xff] }
  0xb4   :  { %619 = vmatpush.msrb.mxu2 %v8429_v17  ;;  %639 = vmatpush.msrb.mxu3 %v8445_v18  ;;  %v8466_v17 = vld [vmem:[%s17281_s3 + $0x548] sm:$0xff] }
  0xb5   :  { %v8478_v18 = vld [vmem:[%s17281_s3 + $0x5a8] sm:$0xff] }
  0xb6   :  { %620 = vmatpush.msrb.mxu2 %v8428_v19  ;;  %640 = vmatpush.msrb.mxu3 %v8444_v20  ;;  %v8465_v19 = vld [vmem:[%s17281_s3 + $0x540] sm:$0xff] }
  0xb7   :  { %v8477_v20 = vld [vmem:[%s17281_s3 + $0x5a0] sm:$0xff] }
  0xb8   :  { %621 = vmatpush.msrb.mxu2 %v8427_v21  ;;  %641 = vmatpush.msrb.mxu3 %v8443_v22  ;;  %v8464_v21 = vld [vmem:[%s17281_s3 + $0x538] sm:$0xff] }
  0xb9   :  { %v8476_v22 = vld [vmem:[%s17281_s3 + $0x598] sm:$0xff] }
  0xba   :  { %622 = vmatpush.msrb.mxu2 %v8426_v23  ;;  %642 = vmatpush.msrb.mxu3 %v8442_v24  ;;  %v8463_v23 = vld [vmem:[%s17281_s3 + $0x530] sm:$0xff] }
  0xbb   :  { %v8475_v24 = vld [vmem:[%s17281_s3 + $0x590] sm:$0xff] }
  0xbc   :  { %623 = vmatpush.msrb.mxu2 %v8425_v25  ;;  %643 = vmatpush.msrb.mxu3 %v8441_v26  ;;  %v8462_v25 = vld [vmem:[%s17281_s3 + $0x528] sm:$0xff] }
  0xbd   :  { %624 = vmatmul.f32.vlgmr.msrb.gmra.mxu2 %v10997_v48  ;;  %644 = vmatmul.f32.vlgmr.msrb.gmra.mxu3 %v10999_v49  ;;  %v8474_v26 = vld [vmem:[%s17281_s3 + $0x588] sm:$0xff] }
  0xbe   :  { %787 = vmatpush.msra.mxu3 %v8508_v27  ;;  %v8461_v27 = vld [vmem:[%s17281_s3 + $0x520] sm:$0xff] }
  0xc0   :  { %788 = vmatpush.msra.mxu3 %v8507_v0  ;;  %v8473_v0 = vld [vmem:[%s17281_s3 + $0x580] sm:$0xff] }
  0xc2   :  { %789 = vmatpush.msra.mxu3 %v8506_v28  ;;  %v8540_v28 = vld [vmem:[%s17281_s3 + $0x778] sm:$0xff] }
  0xc4   :  { %790 = vmatpush.msra.mxu3 %v8505_v29  ;;  %v8460_v29 = vld [vmem:[%s17281_s3 + $0x518] sm:$0xff] }
  0xc6   :  { %791 = vmatpush.msra.mxu3 %v8504_v30  ;;  %v8539_v30 = vld [vmem:[%s17281_s3 + $0x770] sm:$0xff] }
  0xc8   :  { %792 = vmatpush.msra.mxu3 %v8503_v31  ;;  %v8459_v31 = vld [vmem:[%s17281_s3 + $0x510] sm:$0xff] }
  0xca   :  { %793 = vmatpush.msra.mxu3 %v8502_v32  ;;  %v8538_v32 = vld [vmem:[%s17281_s3 + $0x768] sm:$0xff] }
  0xcc   :  { %794 = vmatpush.msra.mxu3 %v8501_v33  ;;  %v8458_v33 = vld [vmem:[%s17281_s3 + $0x508] sm:$0xff] }
  0xce   :  { %795 = vmatpush.msra.mxu3 %v8500_v34  ;;  %v8537_v34 = vld [vmem:[%s17281_s3 + $0x760] sm:$0xff] }
  0xd0   :  { %796 = vmatpush.msra.mxu3 %v8499_v35  ;;  %v8457_v35 = vld [vmem:[%s17281_s3 + $0x500] sm:$0xff] }
  0xd2   :  { %797 = vmatpush.msra.mxu3 %v8498_v36  ;;  %v8524_v36 = vld [vmem:[%s17281_s3 + $0x6f8] sm:$0xff] }
  0xd4   :  { %798 = vmatpush.msra.mxu3 %v8497_v37  ;;  %v8536_v37 = vld [vmem:[%s17281_s3 + $0x758] sm:$0xff] }
  0xd6   :  { %799 = vmatpush.msra.mxu3 %v8496_v38  ;;  %v8523_v38 = vld [vmem:[%s17281_s3 + $0x6f0] sm:$0xff] }
  0xd8   :  { %800 = vmatpush.msra.mxu3 %v8495_v39  ;;  %v8535_v39 = vld [vmem:[%s17281_s3 + $0x750] sm:$0xff] }
  0xda   :  { %801 = vmatpush.msra.mxu3 %v8494_v40  ;;  %v8522_v40 = vld [vmem:[%s17281_s3 + $0x6e8] sm:$0xff] }
  0xdc   :  { %802 = vmatpush.msra.mxu3 %v8493_v41  ;;  %v8534_v41 = vld [vmem:[%s17281_s3 + $0x748] sm:$0xff] }
  0xdd   :  { %803 = vmatmul.f32.vlgmr.msra.gmra.mxu3 %v10997_v48 }
 0x113   :  { %v271_v42 = vpop.f32.mrf.mxu0  ;;  %v291_v43 = vpop.f32.mrf.mxu1 }
 0x114   :  { %v292_v44 = vadd.f32 %v291_v43, %v271_v42  ;;  %v8521_v42 = vld [vmem:[%s17281_s3 + $0x6e0] sm:$0xff] }
 0x115   :  { %v8533_v43 = vld [vmem:[%s17281_s3 + $0x740] sm:$0xff] }
 0x11c   :  { %v418_v52 = vpop.f32.mrf.mxu0  ;;  %v438_v53 = vpop.f32.mrf.mxu1 }
 0x11d   :  { %v439_v56 = vadd.f32 %v438_v53, %v418_v52  ;;  %v8517_v52 = vld [vmem:[%s17281_s3 + $0x6c0] sm:$0xff] }
 0x11e   :  { %v8529_v53 = vld [vmem:[%s17281_s3 + $0x720] sm:$0xff] }
 0x120   :  { %v311_v45 = vpop.f32.mrf.mxu2  ;;  %v331_v47 = vpop.f32.mrf.mxu3 }
 0x121   :  { %v312_v46 = vadd.f32 %v311_v45, %v292_v44  ;;  %v8520_v44 = vld [vmem:[%s17281_s3 + $0x6d8] sm:$0xff] }
 0x122   :  { %v8532_v45 = vld [vmem:[%s17281_s3 + $0x738] sm:$0xff] }
 0x123   :  { %v332_v50 = vadd.f32 %v331_v47, %v312_v46  ;;  %v8519_v46 = vld [vmem:[%s17281_s3 + $0x6d0] sm:$0xff] }
 0x124   :  { %v8531_v47 = vld [vmem:[%s17281_s3 + $0x730] sm:$0xff] }
 0x125   :  { %535 = vmatpush.msrb.mxu1 %v332_v50  ;;  %v8518_v50 = vld [vmem:[%s17281_s3 + $0x6c8] sm:$0xff] }
 0x126   :  { %8423 = vmatmul.msk.f32.vlgmr.msrb.gmra.mxu1 %vm484_vm5, %v334_v54  ;;  %v8516_v54 = vld [vmem:[%s17281_s3 + $0x6b8] sm:$0xff] }
 0x127   :  { %668 = vmatpush.msra.mxu1 %v8488_v51  ;;  %v8530_v51 = vld [vmem:[%s17281_s3 + $0x728] sm:$0xff] }
 0x128   :  { %v458_v60 = vpop.f32.mrf.mxu2  ;;  %v478_v63 = vpop.f32.mrf.mxu3 }
 0x129   :  { %669 = vmatpush.msra.mxu1 %v8487_v55  ;;  %v459_v61 = vadd.f32 %v458_v60, %v439_v56  ;;  %v8528_v55 = vld [vmem:[%s17281_s3 + $0x718] sm:$0xff]  ;;  %v8515_v56 = vld [vmem:[%s17281_s3 + $0x6b0] sm:$0xff]  ;;  %v8514_v60 = vld [vmem:[%s17281_s3 + $0x6a8] sm:$0xff] }
 0x12b   :  { %670 = vmatpush.msra.mxu1 %v8486_v58  ;;  %v479_v1 = vadd.f32 %v478_v63, %v459_v61  ;;  %v8527_v58 = vld [vmem:[%s17281_s3 + $0x710] sm:$0xff]  ;;  %v8526_v61 = vld [vmem:[%s17281_s3 + $0x708] sm:$0xff]  ;;  %v8525_v63 = vld [vmem:[%s17281_s3 + $0x700] sm:$0xff] }
 0x12d   :  { %671 = vmatpush.msra.mxu1 %v8485_v62  ;;  %506 = vmatpush.msrb.mxu0 %v479_v1  ;;  %v8513_v62 = vld [vmem:[%s17281_s3 + $0x6a0] sm:$0xff]  ;;  %v8592_v1 = vld [vmem:[%s17281_s3 + $0x8f8] sm:$0xff] }
 0x12e   :  { %8421 = vmatmul.msk.f32.vlgmr.msrb.gmra.mxu0 %vm484_vm5, %v8419_v4  ;;  %8424 = vmatmul.msk.f32.gmra.mxu1 %vm484_vm5, %v335_v5  ;;  %v8511_v4 = vld [vmem:[%s17281_s3 + $0x690] sm:$0xff]  ;;  %v8590_v5 = vld [vmem:[%s17281_s3 + $0x8e8] sm:$0xff] }
 0x12f   :  { %648 = vmatpush.msra.mxu0 %v8472_v2  ;;  %672 = vmatpush.msra.mxu1 %v8484_v3  ;;  %v8512_v2 = vld [vmem:[%s17281_s3 + $0x698] sm:$0xff]  ;;  %v8591_v3 = vld [vmem:[%s17281_s3 + $0x8f0] sm:$0xff] }
 0x131   :  { %649 = vmatpush.msra.mxu0 %v8471_v6  ;;  %673 = vmatpush.msra.mxu1 %v8483_v7  ;;  %v8510_v6 = vld [vmem:[%s17281_s3 + $0x688] sm:$0xff]  ;;  %v8589_v7 = vld [vmem:[%s17281_s3 + $0x8e0] sm:$0xff] }
 0x133   :  { %650 = vmatpush.msra.mxu0 %v8470_v8  ;;  %674 = vmatpush.msra.mxu1 %v8482_v9  ;;  %v8509_v8 = vld [vmem:[%s17281_s3 + $0x680] sm:$0xff]  ;;  %v8576_v9 = vld [vmem:[%s17281_s3 + $0x878] sm:$0xff] }
 0x135   :  { %651 = vmatpush.msra.mxu0 %v8469_v10  ;;  %675 = vmatpush.msra.mxu1 %v8481_v11  ;;  %v8588_v10 = vld [vmem:[%s17281_s3 + $0x8d8] sm:$0xff]  ;;  %v8575_v11 = vld [vmem:[%s17281_s3 + $0x870] sm:$0xff] }
 0x136   :  { %8422 = vmatmul.msk.f32.gmra.mxu0 %vm484_vm5, %v8420_v14  ;;  %v8586_v14 = vld [vmem:[%s17281_s3 + $0x8c8] sm:$0xff] }
 0x137   :  { %652 = vmatpush.msra.mxu0 %v8468_v12  ;;  %676 = vmatpush.msra.mxu1 %v8480_v13  ;;  %v8587_v12 = vld [vmem:[%s17281_s3 + $0x8d0] sm:$0xff]  ;;  %v8574_v13 = vld [vmem:[%s17281_s3 + $0x868] sm:$0xff] }
 0x139   :  { %653 = vmatpush.msra.mxu0 %v8467_v15  ;;  %677 = vmatpush.msra.mxu1 %v8479_v16  ;;  %v8573_v15 = vld [vmem:[%s17281_s3 + $0x860] sm:$0xff] }
 0x13a   :  { %v8585_v16 = vld [vmem:[%s17281_s3 + $0x8c0] sm:$0xff] }
 0x13b   :  { %654 = vmatpush.msra.mxu0 %v8466_v17  ;;  %678 = vmatpush.msra.mxu1 %v8478_v18  ;;  %v8572_v17 = vld [vmem:[%s17281_s3 + $0x858] sm:$0xff] }
 0x13c   :  { %v8584_v18 = vld [vmem:[%s17281_s3 + $0x8b8] sm:$0xff] }
 0x13d   :  { %655 = vmatpush.msra.mxu0 %v8465_v19  ;;  %679 = vmatpush.msra.mxu1 %v8477_v20  ;;  %v8571_v19 = vld [vmem:[%s17281_s3 + $0x850] sm:$0xff] }
 0x13e   :  { %v8583_v20 = vld [vmem:[%s17281_s3 + $0x8b0] sm:$0xff] }
 0x13f   :  { %656 = vmatpush.msra.mxu0 %v8464_v21  ;;  %680 = vmatpush.msra.mxu1 %v8476_v22  ;;  %v8570_v21 = vld [vmem:[%s17281_s3 + $0x848] sm:$0xff] }
 0x140   :  { %v8582_v22 = vld [vmem:[%s17281_s3 + $0x8a8] sm:$0xff] }
 0x141   :  { %657 = vmatpush.msra.mxu0 %v8463_v23  ;;  %681 = vmatpush.msra.mxu1 %v8475_v24  ;;  %v8569_v23 = vld [vmem:[%s17281_s3 + $0x840] sm:$0xff] }
 0x142   :  { %v8581_v24 = vld [vmem:[%s17281_s3 + $0x8a0] sm:$0xff] }
 0x143   :  { %658 = vmatpush.msra.mxu0 %v8462_v25  ;;  %682 = vmatpush.msra.mxu1 %v8474_v26  ;;  %v8568_v25 = vld [vmem:[%s17281_s3 + $0x838] sm:$0xff] }
 0x144   :  { %v8580_v26 = vld [vmem:[%s17281_s3 + $0x898] sm:$0xff] }
 0x145   :  { %659 = vmatpush.msra.mxu0 %v8461_v27  ;;  %683 = vmatpush.msra.mxu1 %v8473_v0  ;;  %v8567_v27 = vld [vmem:[%s17281_s3 + $0x830] sm:$0xff] }
 0x146   :  { %684 = vmatmul.f32.vlgmr.msra.gmra.mxu1 %v11011_v59  ;;  %v8579_v0 = vld [vmem:[%s17281_s3 + $0x890] sm:$0xff] }
 0x147   :  { %827 = vmatpush.msrb.mxu1 %v8540_v28  ;;  %660 = vmatpush.msra.mxu0 %v8460_v29  ;;  %v8566_v28 = vld [vmem:[%s17281_s3 + $0x828] sm:$0xff] }
 0x148   :  { %v8578_v29 = vld [vmem:[%s17281_s3 + $0x888] sm:$0xff] }
 0x149   :  { %828 = vmatpush.msrb.mxu1 %v8539_v30  ;;  %661 = vmatpush.msra.mxu0 %v8459_v31  ;;  %v8565_v30 = vld [vmem:[%s17281_s3 + $0x820] sm:$0xff] }
 0x14a   :  { %v8577_v31 = vld [vmem:[%s17281_s3 + $0x880] sm:$0xff] }
 0x14b   :  { %829 = vmatpush.msrb.mxu1 %v8538_v32  ;;  %662 = vmatpush.msra.mxu0 %v8458_v33  ;;  %v8644_v32 = vld [vmem:[%s17281_s3 + $0xa78] sm:$0xff] }
 0x14c   :  { %v8564_v33 = vld [vmem:[%s17281_s3 + $0x818] sm:$0xff] }
 0x14d   :  { %830 = vmatpush.msrb.mxu1 %v8537_v34  ;;  %663 = vmatpush.msra.mxu0 %v8457_v35  ;;  %v8643_v34 = vld [vmem:[%s17281_s3 + $0xa70] sm:$0xff] }
 0x14e   :  { %664 = vmatmul.f32.vlgmr.msra.gmra.mxu0 %v11006_v57  ;;  %v8563_v35 = vld [vmem:[%s17281_s3 + $0x810] sm:$0xff] }
 0x14f   :  { %807 = vmatpush.msrb.mxu0 %v8524_v36  ;;  %831 = vmatpush.msrb.mxu1 %v8536_v37  ;;  %v8642_v36 = vld [vmem:[%s17281_s3 + $0xa68] sm:$0xff] }
 0x150   :  { %v8562_v37 = vld [vmem:[%s17281_s3 + $0x808] sm:$0xff] }
 0x151   :  { %808 = vmatpush.msrb.mxu0 %v8523_v38  ;;  %832 = vmatpush.msrb.mxu1 %v8535_v39  ;;  %v8641_v38 = vld [vmem:[%s17281_s3 + $0xa60] sm:$0xff] }
 0x152   :  { %v8561_v39 = vld [vmem:[%s17281_s3 + $0x800] sm:$0xff] }
 0x153   :  { %809 = vmatpush.msrb.mxu0 %v8522_v40  ;;  %833 = vmatpush.msrb.mxu1 %v8534_v41  ;;  %v8640_v40 = vld [vmem:[%s17281_s3 + $0xa58] sm:$0xff]  ;;  %v8639_v41 = vld [vmem:[%s17281_s3 + $0xa50] sm:$0xff] }
 0x155   :  { %810 = vmatpush.msrb.mxu0 %v8521_v42  ;;  %834 = vmatpush.msrb.mxu1 %v8533_v43  ;;  %v8638_v42 = vld [vmem:[%s17281_s3 + $0xa48] sm:$0xff]  ;;  %v8637_v43 = vld [vmem:[%s17281_s3 + $0xa40] sm:$0xff] }
 0x157   :  { %811 = vmatpush.msrb.mxu0 %v8520_v44  ;;  %835 = vmatpush.msrb.mxu1 %v8532_v45  ;;  %v8636_v44 = vld [vmem:[%s17281_s3 + $0xa38] sm:$0xff]  ;;  %v8635_v45 = vld [vmem:[%s17281_s3 + $0xa30] sm:$0xff] }
 0x159   :  { %812 = vmatpush.msrb.mxu0 %v8519_v46  ;;  %836 = vmatpush.msrb.mxu1 %v8531_v47  ;;  %v8634_v46 = vld [vmem:[%s17281_s3 + $0xa28] sm:$0xff]  ;;  %v8633_v47 = vld [vmem:[%s17281_s3 + $0xa20] sm:$0xff] }
 0x15b   :  { %813 = vmatpush.msrb.mxu0 %v8518_v50  ;;  %837 = vmatpush.msrb.mxu1 %v8530_v51  ;;  %v8632_v50 = vld [vmem:[%s17281_s3 + $0xa18] sm:$0xff]  ;;  %v8631_v51 = vld [vmem:[%s17281_s3 + $0xa10] sm:$0xff] }
 0x15d   :  { %814 = vmatpush.msrb.mxu0 %v8517_v52  ;;  %838 = vmatpush.msrb.mxu1 %v8529_v53  ;;  %v8630_v52 = vld [vmem:[%s17281_s3 + $0xa08] sm:$0xff]  ;;  %v8629_v53 = vld [vmem:[%s17281_s3 + $0xa00] sm:$0xff] }
 0x15f   :  { %815 = vmatpush.msrb.mxu0 %v8516_v54  ;;  %839 = vmatpush.msrb.mxu1 %v8528_v55 }
 0x161   :  { %816 = vmatpush.msrb.mxu0 %v8515_v56  ;;  %840 = vmatpush.msrb.mxu1 %v8527_v58 }
 0x163   :  { %817 = vmatpush.msrb.mxu0 %v8514_v60  ;;  %841 = vmatpush.msrb.mxu1 %v8526_v61  ;;  %v625_v60 = vpop.f32.mrf.mxu2  ;;  %v645_v61 = vpop.f32.mrf.mxu3 }
 0x165   :  { %818 = vmatpush.msrb.mxu0 %v8513_v62  ;;  %842 = vmatpush.msrb.mxu1 %v8525_v63  ;;  %v646_v62 = vadd.f32 %v645_v61, %v625_v60  ;;  %v8645_v60 = vld [vmem:[%s17281_s3 + $0xa80] sm:$0xff]  ;;  %v8712_v61 = vld [vmem:[%s17281_s3 + $0xc78] sm:$0xff] }
 0x166   :  { %843 = vmatmul.f32.vlgmr.msrb.gmra.mxu1 %v11006_v57 }
 0x167   :  { %986 = vmatpush.msra.mxu1 %v8592_v1  ;;  %819 = vmatpush.msrb.mxu0 %v8512_v2 }
 0x169   :  { %987 = vmatpush.msra.mxu1 %v8591_v3  ;;  %820 = vmatpush.msrb.mxu0 %v8511_v4  ;;  %v8489_v4 = vld [vmem:[%s17283_s4 + $0x20] sm:$0xff] }
 0x16b   :  { %988 = vmatpush.msra.mxu1 %v8590_v5  ;;  %821 = vmatpush.msrb.mxu0 %v8510_v6  ;;  %v8556_v5 = vld [vmem:[%s17281_s3 + $0x7f8] sm:$0xff]  ;;  %v8555_v6 = vld [vmem:[%s17281_s3 + $0x7f0] sm:$0xff] }
 0x16d   :  { %989 = vmatpush.msra.mxu1 %v8589_v7  ;;  %822 = vmatpush.msrb.mxu0 %v8509_v8  ;;  %v8554_v7 = vld [vmem:[%s17281_s3 + $0x7e8] sm:$0xff]  ;;  %v8553_v8 = vld [vmem:[%s17281_s3 + $0x7e0] sm:$0xff] }
 0x16e   :  { %823 = vmatmul.f32.vlgmr.msrb.gmra.mxu0 %v10999_v49 }
 0x16f   :  { %966 = vmatpush.msra.mxu0 %v8576_v9  ;;  %990 = vmatpush.msra.mxu1 %v8588_v10  ;;  %v8490_v9 = vld [vmem:[%s17283_s4 + $0x28] sm:$0xff]  ;;  %v8552_v10 = vld [vmem:[%s17281_s3 + $0x7d8] sm:$0xff] }
 0x171   :  { %967 = vmatpush.msra.mxu0 %v8575_v11  ;;  %991 = vmatpush.msra.mxu1 %v8587_v12  ;;  %v8551_v11 = vld [vmem:[%s17281_s3 + $0x7d0] sm:$0xff]  ;;  %v8550_v12 = vld [vmem:[%s17281_s3 + $0x7c8] sm:$0xff] }
 0x173   :  { %968 = vmatpush.msra.mxu0 %v8574_v13  ;;  %992 = vmatpush.msra.mxu1 %v8586_v14  ;;  %v8549_v13 = vld [vmem:[%s17281_s3 + $0x7c0] sm:$0xff]  ;;  %v8548_v14 = vld [vmem:[%s17281_s3 + $0x7b8] sm:$0xff] }
 0x175   :  { %969 = vmatpush.msra.mxu0 %v8573_v15  ;;  %993 = vmatpush.msra.mxu1 %v8585_v16  ;;  %v8547_v15 = vld [vmem:[%s17281_s3 + $0x7b0] sm:$0xff]  ;;  %v8546_v16 = vld [vmem:[%s17281_s3 + $0x7a8] sm:$0xff] }
 0x177   :  { %970 = vmatpush.msra.mxu0 %v8572_v17  ;;  %994 = vmatpush.msra.mxu1 %v8584_v18  ;;  %v8545_v17 = vld [vmem:[%s17281_s3 + $0x7a0] sm:$0xff]  ;;  %v8544_v18 = vld [vmem:[%s17281_s3 + $0x798] sm:$0xff] }
 0x179   :  { %971 = vmatpush.msra.mxu0 %v8571_v19  ;;  %995 = vmatpush.msra.mxu1 %v8583_v20  ;;  %v8543_v19 = vld [vmem:[%s17281_s3 + $0x790] sm:$0xff]  ;;  %v8542_v20 = vld [vmem:[%s17281_s3 + $0x788] sm:$0xff] }
 0x17b   :  { %972 = vmatpush.msra.mxu0 %v8570_v21  ;;  %996 = vmatpush.msra.mxu1 %v8582_v22  ;;  %v8541_v21 = vld [vmem:[%s17281_s3 + $0x780] sm:$0xff]  ;;  %v8608_v22 = vld [vmem:[%s17281_s3 + $0x978] sm:$0xff] }
 0x17d   :  { %973 = vmatpush.msra.mxu0 %v8569_v23  ;;  %997 = vmatpush.msra.mxu1 %v8581_v24  ;;  %v8607_v23 = vld [vmem:[%s17281_s3 + $0x970] sm:$0xff]  ;;  %v8606_v24 = vld [vmem:[%s17281_s3 + $0x968] sm:$0xff] }
 0x17f   :  { %974 = vmatpush.msra.mxu0 %v8568_v25  ;;  %998 = vmatpush.msra.mxu1 %v8580_v26  ;;  %v8605_v25 = vld [vmem:[%s17281_s3 + $0x960] sm:$0xff]  ;;  %v8604_v26 = vld [vmem:[%s17281_s3 + $0x958] sm:$0xff] }
 0x181   :  { %975 = vmatpush.msra.mxu0 %v8567_v27  ;;  %999 = vmatpush.msra.mxu1 %v8579_v0  ;;  %v8603_v27 = vld [vmem:[%s17281_s3 + $0x950] sm:$0xff]  ;;  %v8602_v0 = vld [vmem:[%s17281_s3 + $0x948] sm:$0xff] }
 0x183   :  { %976 = vmatpush.msra.mxu0 %v8566_v28  ;;  %1000 = vmatpush.msra.mxu1 %v8578_v29  ;;  %v8601_v28 = vld [vmem:[%s17281_s3 + $0x940] sm:$0xff]  ;;  %v8600_v29 = vld [vmem:[%s17281_s3 + $0x938] sm:$0xff] }
 0x185   :  { %977 = vmatpush.msra.mxu0 %v8565_v30  ;;  %1001 = vmatpush.msra.mxu1 %v8577_v31  ;;  %v8599_v30 = vld [vmem:[%s17281_s3 + $0x930] sm:$0xff]  ;;  %v8598_v31 = vld [vmem:[%s17281_s3 + $0x928] sm:$0xff] }
 0x186   :  { %1002 = vmatmul.f32.vlgmr.msra.gmra.mxu1 %v10999_v49 }
 0x187   :  { %1145 = vmatpush.msrb.mxu1 %v8644_v32  ;;  %978 = vmatpush.msra.mxu0 %v8564_v33  ;;  %v8597_v32 = vld [vmem:[%s17281_s3 + $0x920] sm:$0xff]  ;;  %v8596_v33 = vld [vmem:[%s17281_s3 + $0x918] sm:$0xff] }
 0x189   :  { %1146 = vmatpush.msrb.mxu1 %v8643_v34  ;;  %979 = vmatpush.msra.mxu0 %v8563_v35  ;;  %v8595_v34 = vld [vmem:[%s17281_s3 + $0x910] sm:$0xff]  ;;  %v8594_v35 = vld [vmem:[%s17281_s3 + $0x908] sm:$0xff] }
 0x18b   :  { %1147 = vmatpush.msrb.mxu1 %v8642_v36  ;;  %980 = vmatpush.msra.mxu0 %v8562_v37  ;;  %v8593_v36 = vld [vmem:[%s17281_s3 + $0x900] sm:$0xff]  ;;  %v8660_v37 = vld [vmem:[%s17281_s3 + $0xaf8] sm:$0xff] }
 0x18d   :  { %1148 = vmatpush.msrb.mxu1 %v8641_v38  ;;  %981 = vmatpush.msra.mxu0 %v8561_v39  ;;  %v8659_v38 = vld [vmem:[%s17281_s3 + $0xaf0] sm:$0xff]  ;;  %v8658_v39 = vld [vmem:[%s17281_s3 + $0xae8] sm:$0xff] }
 0x18e   :  { %982 = vmatmul.f32.vlgmr.msra.gmra.mxu0 %v10997_v48 }
 0x18f   :  { %1149 = vmatpush.msrb.mxu1 %v8640_v40  ;;  %v8657_v40 = vld [vmem:[%s17281_s3 + $0xae0] sm:$0xff] }
 0x191   :  { %1150 = vmatpush.msrb.mxu1 %v8639_v41  ;;  %v8656_v41 = vld [vmem:[%s17281_s3 + $0xad8] sm:$0xff] }
 0x193   :  { %1151 = vmatpush.msrb.mxu1 %v8638_v42  ;;  %v8655_v42 = vld [vmem:[%s17281_s3 + $0xad0] sm:$0xff] }
 0x195   :  { %1152 = vmatpush.msrb.mxu1 %v8637_v43  ;;  %v8654_v43 = vld [vmem:[%s17281_s3 + $0xac8] sm:$0xff] }
 0x197   :  { %1153 = vmatpush.msrb.mxu1 %v8636_v44  ;;  %v8653_v44 = vld [vmem:[%s17281_s3 + $0xac0] sm:$0xff] }
 0x199   :  { %1154 = vmatpush.msrb.mxu1 %v8635_v45  ;;  %v8652_v45 = vld [vmem:[%s17281_s3 + $0xab8] sm:$0xff] }
 0x19b   :  { %1155 = vmatpush.msrb.mxu1 %v8634_v46  ;;  %v8651_v46 = vld [vmem:[%s17281_s3 + $0xab0] sm:$0xff] }
 0x19d   :  { %1156 = vmatpush.msrb.mxu1 %v8633_v47  ;;  %v8650_v47 = vld [vmem:[%s17281_s3 + $0xaa8] sm:$0xff] }
 0x19f   :  { %1157 = vmatpush.msrb.mxu1 %v8632_v50  ;;  %v8649_v50 = vld [vmem:[%s17281_s3 + $0xaa0] sm:$0xff] }
 0x1a1   :  { %1158 = vmatpush.msrb.mxu1 %v8631_v51  ;;  %v8648_v51 = vld [vmem:[%s17281_s3 + $0xa98] sm:$0xff] }
 0x1a3   :  { %1159 = vmatpush.msrb.mxu1 %v8630_v52  ;;  %v11521_v55 = vpop.f32.mrf.mxu1  ;;  %v8647_v52 = vld [vmem:[%s17281_s3 + $0xa90] sm:$0xff] }
 0x1a5   :  { %1160 = vmatpush.msrb.mxu1 %v8629_v53  ;;  %v8646_v53 = vld [vmem:[%s17281_s3 + $0xa88] sm:$0xff] }
 0x1a6   :  { %1161 = vmatmul.f32.vlgmr.msrb.gmra.mxu1 %v10997_v48 }
 0x1ab   :  { %v11519_v54 = vpop.f32.mrf.mxu0  ;;  %v11525_v58 = vpop.f32.mrf.mxu1 }
 0x1b3   :  { %v11523_v56 = vpop.f32.mrf.mxu0 }
 0x1c3   :  { %v685_v2 = vpop.f32.mrf.mxu1 }
 0x1cb   :  { %v665_v63 = vpop.f32.mrf.mxu0 }
 0x1cc   :  { %v666_v1 = vadd.f32 %v665_v63, %v646_v62  ;;  %v8711_v62 = vld [vmem:[%s17281_s3 + $0xc70] sm:$0xff]  ;;  %v8710_v63 = vld [vmem:[%s17281_s3 + $0xc68] sm:$0xff] }
 0x1ce   :  { %v686_v3 = vadd.f32 %v685_v2, %v666_v1  ;;  %v8709_v1 = vld [vmem:[%s17281_s3 + $0xc60] sm:$0xff]  ;;  %v8708_v2 = vld [vmem:[%s17281_s3 + $0xc58] sm:$0xff] }
 0x1d0   :  { %712 = vmatpush.msra.mxu2 %v686_v3  ;;  %v8707_v3 = vld [vmem:[%s17281_s3 + $0xc50] sm:$0xff] }
 0x1d1   :  { %8491 = vmatmul.msk.f32.vlgmr.msra.gmra.mxu2 %vm484_vm5, %v8489_v4  ;;  %v8706_v4 = vld [vmem:[%s17281_s3 + $0xc48] sm:$0xff] }
 0x1d2   :  { %847 = vmatpush.msrb.mxu2 %v8556_v5  ;;  %v8705_v5 = vld [vmem:[%s17281_s3 + $0xc40] sm:$0xff] }
 0x1d4   :  { %848 = vmatpush.msrb.mxu2 %v8555_v6  ;;  %v8704_v6 = vld [vmem:[%s17281_s3 + $0xc38] sm:$0xff] }
 0x1d6   :  { %849 = vmatpush.msrb.mxu2 %v8554_v7  ;;  %v8703_v7 = vld [vmem:[%s17281_s3 + $0xc30] sm:$0xff] }
 0x1d8   :  { %850 = vmatpush.msrb.mxu2 %v8553_v8  ;;  %v8702_v8 = vld [vmem:[%s17281_s3 + $0xc28] sm:$0xff] }
 0x1d9   :  { %8492 = vmatmul.msk.f32.gmra.mxu2 %vm484_vm5, %v8490_v9  ;;  %v8701_v9 = vld [vmem:[%s17281_s3 + $0xc20] sm:$0xff] }
 0x1da   :  { %851 = vmatpush.msrb.mxu2 %v8552_v10  ;;  %v8700_v10 = vld [vmem:[%s17281_s3 + $0xc18] sm:$0xff] }
 0x1dc   :  { %852 = vmatpush.msrb.mxu2 %v8551_v11  ;;  %v8699_v11 = vld [vmem:[%s17281_s3 + $0xc10] sm:$0xff] }
 0x1de   :  { %853 = vmatpush.msrb.mxu2 %v8550_v12  ;;  %v8698_v12 = vld [vmem:[%s17281_s3 + $0xc08] sm:$0xff] }
 0x1e0   :  { %854 = vmatpush.msrb.mxu2 %v8549_v13  ;;  %v8697_v13 = vld [vmem:[%s17281_s3 + $0xc00] sm:$0xff] }
 0x1e2   :  { %855 = vmatpush.msrb.mxu2 %v8548_v14 }
 0x1e4   :  { %856 = vmatpush.msrb.mxu2 %v8547_v15 }
 0x1e6   :  { %857 = vmatpush.msrb.mxu2 %v8546_v16 }
 0x1e8   :  { %858 = vmatpush.msrb.mxu2 %v8545_v17  ;;  %v804_v17 = vpop.f32.mrf.mxu3 }
 0x1ea   :  { %859 = vmatpush.msrb.mxu2 %v8544_v18 }
 0x1eb   :  { %v824_v15 = vpop.f32.mrf.mxu0 }
 0x1ec   :  { %860 = vmatpush.msrb.mxu2 %v8543_v19  ;;  %v825_v18 = vadd.f32 %v824_v15, %v804_v17  ;;  %v844_v19 = vpop.f32.mrf.mxu1  ;;  %v8715_v15 = vld [vmem:[%s17281_s3 + $0xc90] sm:$0xff]  ;;  %v8714_v17 = vld [vmem:[%s17281_s3 + $0xc88] sm:$0xff] }
 0x1ee   :  { %861 = vmatpush.msrb.mxu2 %v8542_v20  ;;  %v845_v20 = vadd.f32 %v844_v19, %v825_v18  ;;  %v8713_v18 = vld [vmem:[%s17281_s3 + $0xc80] sm:$0xff]  ;;  %v8780_v19 = vld [vmem:[%s17281_s3 + $0xe78] sm:$0xff] }
 0x1f0   :  { %862 = vmatpush.msrb.mxu2 %v8541_v21 }
 0x1f1   :  { %863 = vmatmul.f32.vlgmr.msrb.gmra.mxu2 %v11011_v59 }
 0x1f2   :  { %1006 = vmatpush.msra.mxu2 %v8608_v22 }
 0x1f4   :  { %1007 = vmatpush.msra.mxu2 %v8607_v23  ;;  %v8557_v23 = vld [vmem:[%s17283_s4 + $0x30] sm:$0xff] }
 0x1f6   :  { %1008 = vmatpush.msra.mxu2 %v8606_v24  ;;  %v8624_v24 = vld [vmem:[%s17281_s3 + $0x9f8] sm:$0xff] }
 0x1f8   :  { %1009 = vmatpush.msra.mxu2 %v8605_v25  ;;  %v8623_v25 = vld [vmem:[%s17281_s3 + $0x9f0] sm:$0xff] }
 0x1fa   :  { %1010 = vmatpush.msra.mxu2 %v8604_v26  ;;  %v8622_v26 = vld [vmem:[%s17281_s3 + $0x9e8] sm:$0xff] }
 0x1fc   :  { %1011 = vmatpush.msra.mxu2 %v8603_v27  ;;  %v8621_v27 = vld [vmem:[%s17281_s3 + $0x9e0] sm:$0xff] }
 0x1fe   :  { %1012 = vmatpush.msra.mxu2 %v8602_v0  ;;  %v8558_v0 = vld [vmem:[%s17283_s4 + $0x38] sm:$0xff] }
 0x200   :  { %1013 = vmatpush.msra.mxu2 %v8601_v28  ;;  %v8620_v28 = vld [vmem:[%s17281_s3 + $0x9d8] sm:$0xff] }
 0x202   :  { %1014 = vmatpush.msra.mxu2 %v8600_v29  ;;  %v8619_v29 = vld [vmem:[%s17281_s3 + $0x9d0] sm:$0xff] }
 0x204   :  { %1015 = vmatpush.msra.mxu2 %v8599_v30  ;;  %v8618_v30 = vld [vmem:[%s17281_s3 + $0x9c8] sm:$0xff] }
 0x206   :  { %1016 = vmatpush.msra.mxu2 %v8598_v31  ;;  %v8617_v31 = vld [vmem:[%s17281_s3 + $0x9c0] sm:$0xff] }
 0x208   :  { %1017 = vmatpush.msra.mxu2 %v8597_v32  ;;  %v8616_v32 = vld [vmem:[%s17281_s3 + $0x9b8] sm:$0xff] }
 0x20a   :  { %1018 = vmatpush.msra.mxu2 %v8596_v33  ;;  %v8615_v33 = vld [vmem:[%s17281_s3 + $0x9b0] sm:$0xff] }
 0x20c   :  { %1019 = vmatpush.msra.mxu2 %v8595_v34  ;;  %v8614_v34 = vld [vmem:[%s17281_s3 + $0x9a8] sm:$0xff] }
 0x20e   :  { %1020 = vmatpush.msra.mxu2 %v8594_v35  ;;  %v8613_v35 = vld [vmem:[%s17281_s3 + $0x9a0] sm:$0xff] }
 0x210   :  { %1021 = vmatpush.msra.mxu2 %v8593_v36  ;;  %v8612_v36 = vld [vmem:[%s17281_s3 + $0x998] sm:$0xff] }
 0x211   :  { %1022 = vmatmul.f32.vlgmr.msra.gmra.mxu2 %v11006_v57 }
 0x212   :  { %1165 = vmatpush.msrb.mxu2 %v8660_v37  ;;  %v8611_v37 = vld [vmem:[%s17281_s3 + $0x990] sm:$0xff] }
 0x214   :  { %1166 = vmatpush.msrb.mxu2 %v8659_v38  ;;  %v8610_v38 = vld [vmem:[%s17281_s3 + $0x988] sm:$0xff] }
 0x216   :  { %1167 = vmatpush.msrb.mxu2 %v8658_v39  ;;  %v8609_v39 = vld [vmem:[%s17281_s3 + $0x980] sm:$0xff] }
 0x218   :  { %1168 = vmatpush.msrb.mxu2 %v8657_v40  ;;  %v8676_v40 = vld [vmem:[%s17281_s3 + $0xb78] sm:$0xff] }
 0x21a   :  { %1169 = vmatpush.msrb.mxu2 %v8656_v41  ;;  %v8675_v41 = vld [vmem:[%s17281_s3 + $0xb70] sm:$0xff] }
 0x21c   :  { %1170 = vmatpush.msrb.mxu2 %v8655_v42  ;;  %v8674_v42 = vld [vmem:[%s17281_s3 + $0xb68] sm:$0xff] }
 0x21e   :  { %1171 = vmatpush.msrb.mxu2 %v8654_v43  ;;  %v8673_v43 = vld [vmem:[%s17281_s3 + $0xb60] sm:$0xff] }
 0x220   :  { %1172 = vmatpush.msrb.mxu2 %v8653_v44  ;;  %v8672_v44 = vld [vmem:[%s17281_s3 + $0xb58] sm:$0xff] }
 0x222   :  { %1173 = vmatpush.msrb.mxu2 %v8652_v45  ;;  %v8671_v45 = vld [vmem:[%s17281_s3 + $0xb50] sm:$0xff] }
 0x224   :  { %1174 = vmatpush.msrb.mxu2 %v8651_v46  ;;  %v8670_v46 = vld [vmem:[%s17281_s3 + $0xb48] sm:$0xff] }
 0x226   :  { %1175 = vmatpush.msrb.mxu2 %v8650_v47  ;;  %v8669_v47 = vld [vmem:[%s17281_s3 + $0xb40] sm:$0xff] }
 0x228   :  { %1176 = vmatpush.msrb.mxu2 %v8649_v50  ;;  %v8668_v50 = vld [vmem:[%s17281_s3 + $0xb38] sm:$0xff] }
 0x22a   :  { %1177 = vmatpush.msrb.mxu2 %v8648_v51  ;;  %v8667_v51 = vld [vmem:[%s17281_s3 + $0xb30] sm:$0xff] }
 0x22c   :  { %1178 = vmatpush.msrb.mxu2 %v8647_v52  ;;  %v8666_v52 = vld [vmem:[%s17281_s3 + $0xb28] sm:$0xff] }
 0x22e   :  { %1179 = vmatpush.msrb.mxu2 %v8646_v53  ;;  %v8665_v53 = vld [vmem:[%s17281_s3 + $0xb20] sm:$0xff] }
 0x230   :  { %1180 = vmatpush.msrb.mxu2 %v8645_v60  ;;  %v8664_v60 = vld [vmem:[%s17281_s3 + $0xb18] sm:$0xff] }
 0x231   :  { %1181 = vmatmul.f32.vlgmr.msrb.gmra.mxu2 %v10999_v49 }
 0x232   :  { %1324 = vmatpush.msra.mxu2 %v8712_v61  ;;  %v8663_v61 = vld [vmem:[%s17281_s3 + $0xb10] sm:$0xff] }
 0x234   :  { %1325 = vmatpush.msra.mxu2 %v8711_v62  ;;  %v8662_v62 = vld [vmem:[%s17281_s3 + $0xb08] sm:$0xff] }
 0x236   :  { %1326 = vmatpush.msra.mxu2 %v8710_v63  ;;  %v8661_v63 = vld [vmem:[%s17281_s3 + $0xb00] sm:$0xff] }
 0x238   :  { %1327 = vmatpush.msra.mxu2 %v8709_v1  ;;  %v8728_v1 = vld [vmem:[%s17281_s3 + $0xcf8] sm:$0xff] }
 0x23a   :  { %1328 = vmatpush.msra.mxu2 %v8708_v2  ;;  %v8727_v2 = vld [vmem:[%s17281_s3 + $0xcf0] sm:$0xff] }
 0x23c   :  { %1329 = vmatpush.msra.mxu2 %v8707_v3  ;;  %v8726_v3 = vld [vmem:[%s17281_s3 + $0xce8] sm:$0xff] }
 0x23e   :  { %1330 = vmatpush.msra.mxu2 %v8706_v4  ;;  %v8725_v4 = vld [vmem:[%s17281_s3 + $0xce0] sm:$0xff] }
 0x240   :  { %1331 = vmatpush.msra.mxu2 %v8705_v5  ;;  %v8724_v5 = vld [vmem:[%s17281_s3 + $0xcd8] sm:$0xff] }
 0x242   :  { %1332 = vmatpush.msra.mxu2 %v8704_v6  ;;  %v8723_v6 = vld [vmem:[%s17281_s3 + $0xcd0] sm:$0xff] }
 0x244   :  { %1333 = vmatpush.msra.mxu2 %v8703_v7  ;;  %v8722_v7 = vld [vmem:[%s17281_s3 + $0xcc8] sm:$0xff] }
 0x246   :  { %1334 = vmatpush.msra.mxu2 %v8702_v8  ;;  %v8721_v8 = vld [vmem:[%s17281_s3 + $0xcc0] sm:$0xff] }
 0x248   :  { %1335 = vmatpush.msra.mxu2 %v8701_v9  ;;  %v8720_v9 = vld [vmem:[%s17281_s3 + $0xcb8] sm:$0xff] }
 0x24a   :  { %1336 = vmatpush.msra.mxu2 %v8700_v10  ;;  %v8719_v10 = vld [vmem:[%s17281_s3 + $0xcb0] sm:$0xff] }
 0x24c   :  { %1337 = vmatpush.msra.mxu2 %v8699_v11  ;;  %v8718_v11 = vld [vmem:[%s17281_s3 + $0xca8] sm:$0xff] }
 0x24e   :  { %1338 = vmatpush.msra.mxu2 %v8698_v12  ;;  %v8717_v12 = vld [vmem:[%s17281_s3 + $0xca0] sm:$0xff] }
 0x250   :  { %1339 = vmatpush.msra.mxu2 %v8697_v13  ;;  %v8716_v13 = vld [vmem:[%s17281_s3 + $0xc98] sm:$0xff] }
 0x251   :  { %1340 = vmatmul.f32.vlgmr.msra.gmra.mxu2 %v10997_v48 }
 0x254   :  { %v11731_v14 = vpop.f32.mrf.mxu2 }
 0x25c   :  { %v11733_v16 = vpop.f32.mrf.mxu2 }
 0x274   :  { %v864_v21 = vpop.f32.mrf.mxu2 }
 0x275   :  { %v865_v22 = vadd.f32 %v864_v21, %v845_v20  ;;  %v8779_v20 = vld [vmem:[%s17281_s3 + $0xe70] sm:$0xff]  ;;  %v8778_v21 = vld [vmem:[%s17281_s3 + $0xe68] sm:$0xff] }
 0x277   :  { %891 = vmatpush.msrb.mxu3 %v865_v22  ;;  %v8777_v22 = vld [vmem:[%s17281_s3 + $0xe60] sm:$0xff] }
 0x278   :  { %8559 = vmatmul.msk.f32.vlgmr.msrb.gmra.mxu3 %vm484_vm5, %v8557_v23  ;;  %v8776_v23 = vld [vmem:[%s17281_s3 + $0xe58] sm:$0xff] }
 0x279   :  { %1026 = vmatpush.msra.mxu3 %v8624_v24  ;;  %v8775_v24 = vld [vmem:[%s17281_s3 + $0xe50] sm:$0xff] }
 0x27b   :  { %1027 = vmatpush.msra.mxu3 %v8623_v25  ;;  %v8774_v25 = vld [vmem:[%s17281_s3 + $0xe48] sm:$0xff] }
 0x27d   :  { %1028 = vmatpush.msra.mxu3 %v8622_v26  ;;  %v8773_v26 = vld [vmem:[%s17281_s3 + $0xe40] sm:$0xff] }
 0x27f   :  { %1029 = vmatpush.msra.mxu3 %v8621_v27  ;;  %v8772_v27 = vld [vmem:[%s17281_s3 + $0xe38] sm:$0xff] }
 0x280   :  { %8560 = vmatmul.msk.f32.gmra.mxu3 %vm484_vm5, %v8558_v0  ;;  %v8771_v0 = vld [vmem:[%s17281_s3 + $0xe30] sm:$0xff] }
 0x281   :  { %1030 = vmatpush.msra.mxu3 %v8620_v28  ;;  %v8770_v28 = vld [vmem:[%s17281_s3 + $0xe28] sm:$0xff] }
 0x283   :  { %1031 = vmatpush.msra.mxu3 %v8619_v29  ;;  %v8769_v29 = vld [vmem:[%s17281_s3 + $0xe20] sm:$0xff] }
 0x285   :  { %1032 = vmatpush.msra.mxu3 %v8618_v30  ;;  %v8768_v30 = vld [vmem:[%s17281_s3 + $0xe18] sm:$0xff] }
 0x287   :  { %1033 = vmatpush.msra.mxu3 %v8617_v31  ;;  %v8767_v31 = vld [vmem:[%s17281_s3 + $0xe10] sm:$0xff] }
 0x289   :  { %1034 = vmatpush.msra.mxu3 %v8616_v32  ;;  %v8766_v32 = vld [vmem:[%s17281_s3 + $0xe08] sm:$0xff] }
 0x28b   :  { %1035 = vmatpush.msra.mxu3 %v8615_v33  ;;  %v8765_v33 = vld [vmem:[%s17281_s3 + $0xe00] sm:$0xff] }
 0x28d   :  { %1036 = vmatpush.msra.mxu3 %v8614_v34 }
 0x28f   :  { %1037 = vmatpush.msra.mxu3 %v8613_v35 }
 0x291   :  { %1038 = vmatpush.msra.mxu3 %v8612_v36  ;;  %v983_v36 = vpop.f32.mrf.mxu0 }
 0x293   :  { %1039 = vmatpush.msra.mxu3 %v8611_v37  ;;  %v1003_v37 = vpop.f32.mrf.mxu1 }
 0x295   :  { %1040 = vmatpush.msra.mxu3 %v8610_v38  ;;  %v1023_v38 = vpop.f32.mrf.mxu2 }
 0x297   :  { %1041 = vmatpush.msra.mxu3 %v8609_v39  ;;  %v1004_v39 = vadd.f32 %v1003_v37, %v983_v36  ;;  %v8785_v36 = vld [vmem:[%s17281_s3 + $0xea0] sm:$0xff]  ;;  %v8784_v37 = vld [vmem:[%s17281_s3 + $0xe98] sm:$0xff] }
 0x298   :  { %1042 = vmatmul.f32.vlgmr.msra.gmra.mxu3 %v11011_v59 }
 0x299   :  { %1185 = vmatpush.msrb.mxu3 %v8676_v40  ;;  %v1024_v40 = vadd.f32 %v1023_v38, %v1004_v39  ;;  %v8783_v38 = vld [vmem:[%s17281_s3 + $0xe90] sm:$0xff]  ;;  %v8782_v39 = vld [vmem:[%s17281_s3 + $0xe88] sm:$0xff] }
 0x29b   :  { %1186 = vmatpush.msrb.mxu3 %v8675_v41 }
 0x29d   :  { %1187 = vmatpush.msrb.mxu3 %v8674_v42 }
 0x29f   :  { %1188 = vmatpush.msrb.mxu3 %v8673_v43  ;;  %v8625_v43 = vld [vmem:[%s17283_s4 + $0x40] sm:$0xff] }
 0x2a1   :  { %1189 = vmatpush.msrb.mxu3 %v8672_v44  ;;  %v8692_v44 = vld [vmem:[%s17281_s3 + $0xbf8] sm:$0xff] }
 0x2a3   :  { %1190 = vmatpush.msrb.mxu3 %v8671_v45  ;;  %v8691_v45 = vld [vmem:[%s17281_s3 + $0xbf0] sm:$0xff] }
 0x2a5   :  { %1191 = vmatpush.msrb.mxu3 %v8670_v46  ;;  %v8690_v46 = vld [vmem:[%s17281_s3 + $0xbe8] sm:$0xff] }
 0x2a7   :  { %1192 = vmatpush.msrb.mxu3 %v8669_v47  ;;  %v8689_v47 = vld [vmem:[%s17281_s3 + $0xbe0] sm:$0xff] }
 0x2a9   :  { %1193 = vmatpush.msrb.mxu3 %v8668_v50  ;;  %v8626_v50 = vld [vmem:[%s17283_s4 + $0x48] sm:$0xff] }
 0x2ab   :  { %1194 = vmatpush.msrb.mxu3 %v8667_v51  ;;  %v8688_v51 = vld [vmem:[%s17281_s3 + $0xbd8] sm:$0xff] }
 0x2ad   :  { %1195 = vmatpush.msrb.mxu3 %v8666_v52  ;;  %v8687_v52 = vld [vmem:[%s17281_s3 + $0xbd0] sm:$0xff] }
 0x2af   :  { %1196 = vmatpush.msrb.mxu3 %v8665_v53  ;;  %v8686_v53 = vld [vmem:[%s17281_s3 + $0xbc8] sm:$0xff] }
 0x2b1   :  { %1197 = vmatpush.msrb.mxu3 %v8664_v60  ;;  %v8685_v60 = vld [vmem:[%s17281_s3 + $0xbc0] sm:$0xff] }
 0x2b3   :  { %1198 = vmatpush.msrb.mxu3 %v8663_v61  ;;  %v8684_v61 = vld [vmem:[%s17281_s3 + $0xbb8] sm:$0xff] }
 0x2b5   :  { %1199 = vmatpush.msrb.mxu3 %v8662_v62  ;;  %v8683_v62 = vld [vmem:[%s17281_s3 + $0xbb0] sm:$0xff] }
 0x2b7   :  { %1200 = vmatpush.msrb.mxu3 %v8661_v63  ;;  %v8682_v63 = vld [vmem:[%s17281_s3 + $0xba8] sm:$0xff] }
 0x2b8   :  { %1201 = vmatmul.f32.vlgmr.msrb.gmra.mxu3 %v11006_v57 }
 0x2b9   :  { %1344 = vmatpush.msra.mxu3 %v8728_v1  ;;  %v8681_v1 = vld [vmem:[%s17281_s3 + $0xba0] sm:$0xff] }
 0x2bb   :  { %1345 = vmatpush.msra.mxu3 %v8727_v2  ;;  %v8680_v2 = vld [vmem:[%s17281_s3 + $0xb98] sm:$0xff] }
 0x2bd   :  { %1346 = vmatpush.msra.mxu3 %v8726_v3  ;;  %v8679_v3 = vld [vmem:[%s17281_s3 + $0xb90] sm:$0xff] }
 0x2bf   :  { %1347 = vmatpush.msra.mxu3 %v8725_v4  ;;  %v8678_v4 = vld [vmem:[%s17281_s3 + $0xb88] sm:$0xff] }
 0x2c1   :  { %1348 = vmatpush.msra.mxu3 %v8724_v5  ;;  %v8677_v5 = vld [vmem:[%s17281_s3 + $0xb80] sm:$0xff] }
 0x2c3   :  { %1349 = vmatpush.msra.mxu3 %v8723_v6  ;;  %v8744_v6 = vld [vmem:[%s17281_s3 + $0xd78] sm:$0xff] }
 0x2c5   :  { %1350 = vmatpush.msra.mxu3 %v8722_v7  ;;  %v8743_v7 = vld [vmem:[%s17281_s3 + $0xd70] sm:$0xff] }
 0x2c7   :  { %1351 = vmatpush.msra.mxu3 %v8721_v8  ;;  %v8742_v8 = vld [vmem:[%s17281_s3 + $0xd68] sm:$0xff] }
 0x2c9   :  { %1352 = vmatpush.msra.mxu3 %v8720_v9  ;;  %v8741_v9 = vld [vmem:[%s17281_s3 + $0xd60] sm:$0xff] }
 0x2cb   :  { %1353 = vmatpush.msra.mxu3 %v8719_v10  ;;  %v8740_v10 = vld [vmem:[%s17281_s3 + $0xd58] sm:$0xff] }
 0x2cd   :  { %1354 = vmatpush.msra.mxu3 %v8718_v11  ;;  %v8739_v11 = vld [vmem:[%s17281_s3 + $0xd50] sm:$0xff] }
 0x2cf   :  { %1355 = vmatpush.msra.mxu3 %v8717_v12  ;;  %v8738_v12 = vld [vmem:[%s17281_s3 + $0xd48] sm:$0xff] }
 0x2d1   :  { %1356 = vmatpush.msra.mxu3 %v8716_v13  ;;  %v8737_v13 = vld [vmem:[%s17281_s3 + $0xd40] sm:$0xff] }
 0x2d3   :  { %1357 = vmatpush.msra.mxu3 %v8715_v15  ;;  %v8736_v15 = vld [vmem:[%s17281_s3 + $0xd38] sm:$0xff] }
 0x2d5   :  { %1358 = vmatpush.msra.mxu3 %v8714_v17  ;;  %v8735_v17 = vld [vmem:[%s17281_s3 + $0xd30] sm:$0xff] }
 0x2d7   :  { %1359 = vmatpush.msra.mxu3 %v8713_v18  ;;  %v8734_v18 = vld [vmem:[%s17281_s3 + $0xd28] sm:$0xff] }
 0x2d8   :  { %1360 = vmatmul.f32.vlgmr.msra.gmra.mxu3 %v10999_v49 }
 0x2d9   :  { %1503 = vmatpush.msrb.mxu3 %v8780_v19  ;;  %v8733_v19 = vld [vmem:[%s17281_s3 + $0xd20] sm:$0xff] }
 0x2db   :  { %1504 = vmatpush.msrb.mxu3 %v8779_v20  ;;  %v8732_v20 = vld [vmem:[%s17281_s3 + $0xd18] sm:$0xff] }
 0x2dd   :  { %1505 = vmatpush.msrb.mxu3 %v8778_v21  ;;  %v8731_v21 = vld [vmem:[%s17281_s3 + $0xd10] sm:$0xff] }
 0x2df   :  { %1506 = vmatpush.msrb.mxu3 %v8777_v22  ;;  %v8730_v22 = vld [vmem:[%s17281_s3 + $0xd08] sm:$0xff] }
 0x2e1   :  { %1507 = vmatpush.msrb.mxu3 %v8776_v23  ;;  %v8729_v23 = vld [vmem:[%s17281_s3 + $0xd00] sm:$0xff] }
 0x2e3   :  { %1508 = vmatpush.msrb.mxu3 %v8775_v24  ;;  %v8796_v24 = vld [vmem:[%s17281_s3 + $0xef8] sm:$0xff] }
 0x2e5   :  { %1509 = vmatpush.msrb.mxu3 %v8774_v25  ;;  %v8795_v25 = vld [vmem:[%s17281_s3 + $0xef0] sm:$0xff] }
 0x2e7   :  { %1510 = vmatpush.msrb.mxu3 %v8773_v26  ;;  %v8794_v26 = vld [vmem:[%s17281_s3 + $0xee8] sm:$0xff] }
 0x2e9   :  { %1511 = vmatpush.msrb.mxu3 %v8772_v27  ;;  %v8793_v27 = vld [vmem:[%s17281_s3 + $0xee0] sm:$0xff] }
 0x2eb   :  { %1512 = vmatpush.msrb.mxu3 %v8771_v0  ;;  %v8792_v0 = vld [vmem:[%s17281_s3 + $0xed8] sm:$0xff] }
 0x2ed   :  { %1513 = vmatpush.msrb.mxu3 %v8770_v28  ;;  %v8791_v28 = vld [vmem:[%s17281_s3 + $0xed0] sm:$0xff] }
 0x2ef   :  { %1514 = vmatpush.msrb.mxu3 %v8769_v29  ;;  %v8790_v29 = vld [vmem:[%s17281_s3 + $0xec8] sm:$0xff] }
 0x2f1   :  { %1515 = vmatpush.msrb.mxu3 %v8768_v30  ;;  %v8789_v30 = vld [vmem:[%s17281_s3 + $0xec0] sm:$0xff] }
 0x2f3   :  { %1516 = vmatpush.msrb.mxu3 %v8767_v31  ;;  %v8788_v31 = vld [vmem:[%s17281_s3 + $0xeb8] sm:$0xff] }
 0x2f5   :  { %1517 = vmatpush.msrb.mxu3 %v8766_v32  ;;  %v8787_v32 = vld [vmem:[%s17281_s3 + $0xeb0] sm:$0xff] }
 0x2f7   :  { %1518 = vmatpush.msrb.mxu3 %v8765_v33  ;;  %v8786_v33 = vld [vmem:[%s17281_s3 + $0xea8] sm:$0xff] }
 0x2f8   :  { %1519 = vmatmul.f32.vlgmr.msrb.gmra.mxu3 %v10997_v48 }
 0x2fb   :  { %v11939_v34 = vpop.f32.mrf.mxu3 }
 0x303   :  { %v11941_v35 = vpop.f32.mrf.mxu3 }
 0x31b   :  { %v1043_v41 = vpop.f32.mrf.mxu3 }
 0x31c   :  { %v1044_v42 = vadd.f32 %v1043_v41, %v1024_v40  ;;  %v8781_v40 = vld [vmem:[%s17281_s3 + $0xe80] sm:$0xff]  ;;  %v8848_v41 = vld [vmem:[%s17281_s3 + $0x1078] sm:$0xff] }
 0x31e   :  { %1070 = vmatpush.msrb.mxu0 %v1044_v42  ;;  %v8847_v42 = vld [vmem:[%s17281_s3 + $0x1070] sm:$0xff] }
 0x31f   :  { %8627 = vmatmul.msk.f32.vlgmr.msrb.gmra.mxu0 %vm484_vm5, %v8625_v43  ;;  %v8846_v43 = vld [vmem:[%s17281_s3 + $0x1068] sm:$0xff] }
 0x320   :  { %1205 = vmatpush.msra.mxu0 %v8692_v44  ;;  %v8845_v44 = vld [vmem:[%s17281_s3 + $0x1060] sm:$0xff] }
 0x322   :  { %1206 = vmatpush.msra.mxu0 %v8691_v45  ;;  %v8844_v45 = vld [vmem:[%s17281_s3 + $0x1058] sm:$0xff] }
 0x324   :  { %1207 = vmatpush.msra.mxu0 %v8690_v46  ;;  %v8843_v46 = vld [vmem:[%s17281_s3 + $0x1050] sm:$0xff] }
 0x326   :  { %1208 = vmatpush.msra.mxu0 %v8689_v47  ;;  %v8842_v47 = vld [vmem:[%s17281_s3 + $0x1048] sm:$0xff] }
 0x327   :  { %8628 = vmatmul.msk.f32.gmra.mxu0 %vm484_vm5, %v8626_v50  ;;  %v8841_v50 = vld [vmem:[%s17281_s3 + $0x1040] sm:$0xff] }
 0x328   :  { %1209 = vmatpush.msra.mxu0 %v8688_v51  ;;  %v8840_v51 = vld [vmem:[%s17281_s3 + $0x1038] sm:$0xff] }
 0x32a   :  { %1210 = vmatpush.msra.mxu0 %v8687_v52  ;;  %v8839_v52 = vld [vmem:[%s17281_s3 + $0x1030] sm:$0xff] }
 0x32c   :  { %1211 = vmatpush.msra.mxu0 %v8686_v53  ;;  %v8838_v53 = vld [vmem:[%s17281_s3 + $0x1028] sm:$0xff] }
 0x32e   :  { %1212 = vmatpush.msra.mxu0 %v8685_v60  ;;  %v8837_v60 = vld [vmem:[%s17281_s3 + $0x1020] sm:$0xff] }
 0x330   :  { %1213 = vmatpush.msra.mxu0 %v8684_v61  ;;  %v8836_v61 = vld [vmem:[%s17281_s3 + $0x1018] sm:$0xff] }
 0x332   :  { %1214 = vmatpush.msra.mxu0 %v8683_v62  ;;  %v8835_v62 = vld [vmem:[%s17281_s3 + $0x1010] sm:$0xff] }
 0x334   :  { %1215 = vmatpush.msra.mxu0 %v8682_v63  ;;  %v8834_v63 = vld [vmem:[%s17281_s3 + $0x1008] sm:$0xff] }
 0x336   :  { %1216 = vmatpush.msra.mxu0 %v8681_v1  ;;  %v8833_v1 = vld [vmem:[%s17281_s3 + $0x1000] sm:$0xff] }
 0x338   :  { %1217 = vmatpush.msra.mxu0 %v8680_v2 }
 0x33a   :  { %1218 = vmatpush.msra.mxu0 %v8679_v3 }
 0x33c   :  { %1219 = vmatpush.msra.mxu0 %v8678_v4  ;;  %v1182_v4 = vpop.f32.mrf.mxu2 }
 0x33e   :  { %1220 = vmatpush.msra.mxu0 %v8677_v5  ;;  %v1162_v5 = vpop.f32.mrf.mxu1 }
 0x33f   :  { %1221 = vmatmul.f32.vlgmr.msra.gmra.mxu0 %v11011_v59 }
 0x340   :  { %1364 = vmatpush.msrb.mxu0 %v8744_v6  ;;  %v1202_v6 = vpop.f32.mrf.mxu3 }
 0x342   :  { %1365 = vmatpush.msrb.mxu0 %v8743_v7  ;;  %v1183_v7 = vadd.f32 %v1182_v4, %v1162_v5  ;;  %v8855_v4 = vld [vmem:[%s17281_s3 + $0x10b0] sm:$0xff]  ;;  %v8854_v5 = vld [vmem:[%s17281_s3 + $0x10a8] sm:$0xff] }
 0x344   :  { %1366 = vmatpush.msrb.mxu0 %v8742_v8  ;;  %v1203_v8 = vadd.f32 %v1202_v6, %v1183_v7  ;;  %v8853_v6 = vld [vmem:[%s17281_s3 + $0x10a0] sm:$0xff]  ;;  %v8852_v7 = vld [vmem:[%s17281_s3 + $0x1098] sm:$0xff] }
 0x346   :  { %1367 = vmatpush.msrb.mxu0 %v8741_v9 }
 0x348   :  { %1368 = vmatpush.msrb.mxu0 %v8740_v10 }
 0x34a   :  { %1369 = vmatpush.msrb.mxu0 %v8739_v11  ;;  %v8693_v11 = vld [vmem:[%s17283_s4 + $0x50] sm:$0xff] }
 0x34c   :  { %1370 = vmatpush.msrb.mxu0 %v8738_v12  ;;  %v8760_v12 = vld [vmem:[%s17281_s3 + $0xdf8] sm:$0xff] }
 0x34e   :  { %1371 = vmatpush.msrb.mxu0 %v8737_v13  ;;  %v8759_v13 = vld [vmem:[%s17281_s3 + $0xdf0] sm:$0xff] }
 0x350   :  { %1372 = vmatpush.msrb.mxu0 %v8736_v15  ;;  %v8758_v15 = vld [vmem:[%s17281_s3 + $0xde8] sm:$0xff] }
 0x352   :  { %1373 = vmatpush.msrb.mxu0 %v8735_v17  ;;  %v8757_v17 = vld [vmem:[%s17281_s3 + $0xde0] sm:$0xff] }
 0x354   :  { %1374 = vmatpush.msrb.mxu0 %v8734_v18  ;;  %v8694_v18 = vld [vmem:[%s17283_s4 + $0x58] sm:$0xff] }
 0x356   :  { %1375 = vmatpush.msrb.mxu0 %v8733_v19  ;;  %v8756_v19 = vld [vmem:[%s17281_s3 + $0xdd8] sm:$0xff] }
 0x358   :  { %1376 = vmatpush.msrb.mxu0 %v8732_v20  ;;  %v8755_v20 = vld [vmem:[%s17281_s3 + $0xdd0] sm:$0xff] }
 0x35a   :  { %1377 = vmatpush.msrb.mxu0 %v8731_v21  ;;  %v8754_v21 = vld [vmem:[%s17281_s3 + $0xdc8] sm:$0xff] }
 0x35c   :  { %1378 = vmatpush.msrb.mxu0 %v8730_v22  ;;  %v8753_v22 = vld [vmem:[%s17281_s3 + $0xdc0] sm:$0xff] }
 0x35e   :  { %1379 = vmatpush.msrb.mxu0 %v8729_v23  ;;  %v8752_v23 = vld [vmem:[%s17281_s3 + $0xdb8] sm:$0xff] }
 0x35f   :  { %1380 = vmatmul.f32.vlgmr.msrb.gmra.mxu0 %v11006_v57 }
 0x360   :  { %1523 = vmatpush.msra.mxu0 %v8796_v24  ;;  %v8751_v24 = vld [vmem:[%s17281_s3 + $0xdb0] sm:$0xff] }
 0x362   :  { %1524 = vmatpush.msra.mxu0 %v8795_v25  ;;  %v8750_v25 = vld [vmem:[%s17281_s3 + $0xda8] sm:$0xff] }
 0x364   :  { %1525 = vmatpush.msra.mxu0 %v8794_v26  ;;  %v8749_v26 = vld [vmem:[%s17281_s3 + $0xda0] sm:$0xff] }
 0x366   :  { %1526 = vmatpush.msra.mxu0 %v8793_v27  ;;  %v8748_v27 = vld [vmem:[%s17281_s3 + $0xd98] sm:$0xff] }
 0x368   :  { %1527 = vmatpush.msra.mxu0 %v8792_v0  ;;  %v8747_v0 = vld [vmem:[%s17281_s3 + $0xd90] sm:$0xff] }
 0x36a   :  { %1528 = vmatpush.msra.mxu0 %v8791_v28  ;;  %v8746_v28 = vld [vmem:[%s17281_s3 + $0xd88] sm:$0xff] }
 0x36c   :  { %1529 = vmatpush.msra.mxu0 %v8790_v29  ;;  %v8745_v29 = vld [vmem:[%s17281_s3 + $0xd80] sm:$0xff] }
 0x36e   :  { %1530 = vmatpush.msra.mxu0 %v8789_v30  ;;  %v8812_v30 = vld [vmem:[%s17281_s3 + $0xf78] sm:$0xff] }
 0x370   :  { %1531 = vmatpush.msra.mxu0 %v8788_v31  ;;  %v8811_v31 = vld [vmem:[%s17281_s3 + $0xf70] sm:$0xff] }
 0x372   :  { %1532 = vmatpush.msra.mxu0 %v8787_v32  ;;  %v8810_v32 = vld [vmem:[%s17281_s3 + $0xf68] sm:$0xff] }
 0x374   :  { %1533 = vmatpush.msra.mxu0 %v8786_v33  ;;  %v8809_v33 = vld [vmem:[%s17281_s3 + $0xf60] sm:$0xff] }
 0x376   :  { %1534 = vmatpush.msra.mxu0 %v8785_v36  ;;  %v8808_v36 = vld [vmem:[%s17281_s3 + $0xf58] sm:$0xff] }
 0x378   :  { %1535 = vmatpush.msra.mxu0 %v8784_v37  ;;  %v8807_v37 = vld [vmem:[%s17281_s3 + $0xf50] sm:$0xff] }
 0x37a   :  { %1536 = vmatpush.msra.mxu0 %v8783_v38  ;;  %v8806_v38 = vld [vmem:[%s17281_s3 + $0xf48] sm:$0xff] }
 0x37c   :  { %1537 = vmatpush.msra.mxu0 %v8782_v39  ;;  %v8805_v39 = vld [vmem:[%s17281_s3 + $0xf40] sm:$0xff] }
 0x37e   :  { %1538 = vmatpush.msra.mxu0 %v8781_v40  ;;  %v8804_v40 = vld [vmem:[%s17281_s3 + $0xf38] sm:$0xff] }
 0x37f   :  { %1539 = vmatmul.f32.vlgmr.msra.gmra.mxu0 %v10999_v49 }
 0x380   :  { %1682 = vmatpush.msrb.mxu0 %v8848_v41  ;;  %v8803_v41 = vld [vmem:[%s17281_s3 + $0xf30] sm:$0xff] }
 0x382   :  { %1683 = vmatpush.msrb.mxu0 %v8847_v42  ;;  %v8802_v42 = vld [vmem:[%s17281_s3 + $0xf28] sm:$0xff] }
 0x384   :  { %1684 = vmatpush.msrb.mxu0 %v8846_v43  ;;  %v8801_v43 = vld [vmem:[%s17281_s3 + $0xf20] sm:$0xff] }
 0x386   :  { %1685 = vmatpush.msrb.mxu0 %v8845_v44  ;;  %v8800_v44 = vld [vmem:[%s17281_s3 + $0xf18] sm:$0xff] }
 0x388   :  { %1686 = vmatpush.msrb.mxu0 %v8844_v45  ;;  %v8799_v45 = vld [vmem:[%s17281_s3 + $0xf10] sm:$0xff] }
 0x38a   :  { %1687 = vmatpush.msrb.mxu0 %v8843_v46  ;;  %v8798_v46 = vld [vmem:[%s17281_s3 + $0xf08] sm:$0xff] }
 0x38c   :  { %1688 = vmatpush.msrb.mxu0 %v8842_v47  ;;  %v8797_v47 = vld [vmem:[%s17281_s3 + $0xf00] sm:$0xff] }
 0x38e   :  { %1689 = vmatpush.msrb.mxu0 %v8841_v50  ;;  %v8864_v50 = vld [vmem:[%s17281_s3 + $0x10f8] sm:$0xff] }
 0x390   :  { %1690 = vmatpush.msrb.mxu0 %v8840_v51  ;;  %v8863_v51 = vld [vmem:[%s17281_s3 + $0x10f0] sm:$0xff] }
 0x392   :  { %1691 = vmatpush.msrb.mxu0 %v8839_v52  ;;  %v8862_v52 = vld [vmem:[%s17281_s3 + $0x10e8] sm:$0xff] }
 0x394   :  { %1692 = vmatpush.msrb.mxu0 %v8838_v53  ;;  %v8861_v53 = vld [vmem:[%s17281_s3 + $0x10e0] sm:$0xff] }
 0x396   :  { %1693 = vmatpush.msrb.mxu0 %v8837_v60  ;;  %v8860_v60 = vld [vmem:[%s17281_s3 + $0x10d8] sm:$0xff] }
 0x398   :  { %1694 = vmatpush.msrb.mxu0 %v8836_v61  ;;  %v8859_v61 = vld [vmem:[%s17281_s3 + $0x10d0] sm:$0xff] }
 0x39a   :  { %1695 = vmatpush.msrb.mxu0 %v8835_v62  ;;  %v8858_v62 = vld [vmem:[%s17281_s3 + $0x10c8] sm:$0xff] }
 0x39c   :  { %1696 = vmatpush.msrb.mxu0 %v8834_v63  ;;  %v12147_v2 = vpop.f32.mrf.mxu0  ;;  %v8857_v63 = vld [vmem:[%s17281_s3 + $0x10c0] sm:$0xff] }
 0x39e   :  { %1697 = vmatpush.msrb.mxu0 %v8833_v1  ;;  %v8856_v1 = vld [vmem:[%s17281_s3 + $0x10b8] sm:$0xff] }
 0x39f   :  { %1698 = vmatmul.f32.vlgmr.msrb.gmra.mxu0 %v10997_v48 }
 0x3a4   :  { %v12149_v3 = vpop.f32.mrf.mxu0 }
 0x3bc   :  { %v1222_v9 = vpop.f32.mrf.mxu0 }
 0x3bd   :  { %v1223_v10 = vadd.f32 %v1222_v9, %v1203_v8  ;;  %v8851_v8 = vld [vmem:[%s17281_s3 + $0x1090] sm:$0xff]  ;;  %v8850_v9 = vld [vmem:[%s17281_s3 + $0x1088] sm:$0xff] }
 0x3bf   :  { %1249 = vmatpush.msra.mxu1 %v1223_v10  ;;  %v8849_v10 = vld [vmem:[%s17281_s3 + $0x1080] sm:$0xff] }
 0x3c0   :  { %8695 = vmatmul.msk.f32.vlgmr.msra.gmra.mxu1 %vm484_vm5, %v8693_v11  ;;  %v8916_v11 = vld [vmem:[%s17281_s3 + $0x1278] sm:$0xff] }
 0x3c1   :  { %1384 = vmatpush.msrb.mxu1 %v8760_v12  ;;  %v8915_v12 = vld [vmem:[%s17281_s3 + $0x1270] sm:$0xff] }
 0x3c3   :  { %1385 = vmatpush.msrb.mxu1 %v8759_v13  ;;  %v8914_v13 = vld [vmem:[%s17281_s3 + $0x1268] sm:$0xff] }
 0x3c5   :  { %1386 = vmatpush.msrb.mxu1 %v8758_v15  ;;  %v8913_v15 = vld [vmem:[%s17281_s3 + $0x1260] sm:$0xff] }
 0x3c7   :  { %1387 = vmatpush.msrb.mxu1 %v8757_v17  ;;  %v8912_v17 = vld [vmem:[%s17281_s3 + $0x1258] sm:$0xff] }
 0x3c8   :  { %8696 = vmatmul.msk.f32.gmra.mxu1 %vm484_vm5, %v8694_v18  ;;  %v8911_v18 = vld [vmem:[%s17281_s3 + $0x1250] sm:$0xff] }
 0x3c9   :  { %1388 = vmatpush.msrb.mxu1 %v8756_v19  ;;  %v8910_v19 = vld [vmem:[%s17281_s3 + $0x1248] sm:$0xff] }
 0x3cb   :  { %1389 = vmatpush.msrb.mxu1 %v8755_v20  ;;  %v8909_v20 = vld [vmem:[%s17281_s3 + $0x1240] sm:$0xff] }
 0x3cd   :  { %1390 = vmatpush.msrb.mxu1 %v8754_v21  ;;  %v8908_v21 = vld [vmem:[%s17281_s3 + $0x1238] sm:$0xff] }
 0x3cf   :  { %1391 = vmatpush.msrb.mxu1 %v8753_v22  ;;  %v8907_v22 = vld [vmem:[%s17281_s3 + $0x1230] sm:$0xff] }
 0x3d1   :  { %1392 = vmatpush.msrb.mxu1 %v8752_v23  ;;  %v8906_v23 = vld [vmem:[%s17281_s3 + $0x1228] sm:$0xff] }
 0x3d3   :  { %1393 = vmatpush.msrb.mxu1 %v8751_v24  ;;  %v8905_v24 = vld [vmem:[%s17281_s3 + $0x1220] sm:$0xff] }
 0x3d5   :  { %1394 = vmatpush.msrb.mxu1 %v8750_v25  ;;  %v8904_v25 = vld [vmem:[%s17281_s3 + $0x1218] sm:$0xff] }
 0x3d7   :  { %1395 = vmatpush.msrb.mxu1 %v8749_v26  ;;  %v8903_v26 = vld [vmem:[%s17281_s3 + $0x1210] sm:$0xff] }
 0x3d9   :  { %1396 = vmatpush.msrb.mxu1 %v8748_v27  ;;  %v8902_v27 = vld [vmem:[%s17281_s3 + $0x1208] sm:$0xff] }
 0x3db   :  { %1397 = vmatpush.msrb.mxu1 %v8747_v0  ;;  %v8901_v0 = vld [vmem:[%s17281_s3 + $0x1200] sm:$0xff] }
 0x3dd   :  { %1398 = vmatpush.msrb.mxu1 %v8746_v28 }
 0x3df   :  { %1399 = vmatpush.msrb.mxu1 %v8745_v29 }
 0x3e0   :  { %1400 = vmatmul.f32.vlgmr.msrb.gmra.mxu1 %v11011_v59 }
 0x3e1   :  { %1543 = vmatpush.msra.mxu1 %v8812_v30  ;;  %v1361_v30 = vpop.f32.mrf.mxu3 }
 0x3e3   :  { %1544 = vmatpush.msra.mxu1 %v8811_v31  ;;  %v1341_v31 = vpop.f32.mrf.mxu2 }
 0x3e5   :  { %1545 = vmatpush.msra.mxu1 %v8810_v32  ;;  %v1381_v32 = vpop.f32.mrf.mxu0 }
 0x3e7   :  { %1546 = vmatpush.msra.mxu1 %v8809_v33  ;;  %v1362_v33 = vadd.f32 %v1361_v30, %v1341_v31  ;;  %v8925_v30 = vld [vmem:[%s17281_s3 + $0x12c0] sm:$0xff]  ;;  %v8924_v31 = vld [vmem:[%s17281_s3 + $0x12b8] sm:$0xff] }
 0x3e9   :  { %1547 = vmatpush.msra.mxu1 %v8808_v36  ;;  %v1382_v36 = vadd.f32 %v1381_v32, %v1362_v33  ;;  %v8923_v32 = vld [vmem:[%s17281_s3 + $0x12b0] sm:$0xff]  ;;  %v8922_v33 = vld [vmem:[%s17281_s3 + $0x12a8] sm:$0xff] }
 0x3eb   :  { %1548 = vmatpush.msra.mxu1 %v8807_v37 }
 0x3ed   :  { %1549 = vmatpush.msra.mxu1 %v8806_v38 }
 0x3ef   :  { %1550 = vmatpush.msra.mxu1 %v8805_v39  ;;  %v8761_v39 = vld [vmem:[%s17283_s4 + $0x60] sm:$0xff] }
 0x3f1   :  { %1551 = vmatpush.msra.mxu1 %v8804_v40  ;;  %v8828_v40 = vld [vmem:[%s17281_s3 + $0xff8] sm:$0xff] }
 0x3f3   :  { %1552 = vmatpush.msra.mxu1 %v8803_v41  ;;  %v8827_v41 = vld [vmem:[%s17281_s3 + $0xff0] sm:$0xff] }
 0x3f5   :  { %1553 = vmatpush.msra.mxu1 %v8802_v42  ;;  %v8826_v42 = vld [vmem:[%s17281_s3 + $0xfe8] sm:$0xff] }
 0x3f7   :  { %1554 = vmatpush.msra.mxu1 %v8801_v43  ;;  %v8825_v43 = vld [vmem:[%s17281_s3 + $0xfe0] sm:$0xff] }
 0x3f9   :  { %1555 = vmatpush.msra.mxu1 %v8800_v44  ;;  %v8762_v44 = vld [vmem:[%s17283_s4 + $0x68] sm:$0xff] }
 0x3fb   :  { %1556 = vmatpush.msra.mxu1 %v8799_v45  ;;  %v8824_v45 = vld [vmem:[%s17281_s3 + $0xfd8] sm:$0xff] }
 0x3fd   :  { %1557 = vmatpush.msra.mxu1 %v8798_v46  ;;  %v8823_v46 = vld [vmem:[%s17281_s3 + $0xfd0] sm:$0xff] }
 0x3ff   :  { %1558 = vmatpush.msra.mxu1 %v8797_v47  ;;  %v8822_v47 = vld [vmem:[%s17281_s3 + $0xfc8] sm:$0xff] }
 0x400   :  { %1559 = vmatmul.f32.vlgmr.msra.gmra.mxu1 %v11006_v57 }
 0x401   :  { %1702 = vmatpush.msrb.mxu1 %v8864_v50  ;;  %v8821_v50 = vld [vmem:[%s17281_s3 + $0xfc0] sm:$0xff] }
 0x403   :  { %1703 = vmatpush.msrb.mxu1 %v8863_v51  ;;  %v8820_v51 = vld [vmem:[%s17281_s3 + $0xfb8] sm:$0xff] }
 0x405   :  { %1704 = vmatpush.msrb.mxu1 %v8862_v52  ;;  %v8819_v52 = vld [vmem:[%s17281_s3 + $0xfb0] sm:$0xff] }
 0x407   :  { %1705 = vmatpush.msrb.mxu1 %v8861_v53  ;;  %v8818_v53 = vld [vmem:[%s17281_s3 + $0xfa8] sm:$0xff] }
 0x409   :  { %1706 = vmatpush.msrb.mxu1 %v8860_v60  ;;  %v8817_v60 = vld [vmem:[%s17281_s3 + $0xfa0] sm:$0xff] }
 0x40b   :  { %1707 = vmatpush.msrb.mxu1 %v8859_v61  ;;  %v8816_v61 = vld [vmem:[%s17281_s3 + $0xf98] sm:$0xff] }
 0x40d   :  { %1708 = vmatpush.msrb.mxu1 %v8858_v62  ;;  %v8815_v62 = vld [vmem:[%s17281_s3 + $0xf90] sm:$0xff] }
 0x40f   :  { %1709 = vmatpush.msrb.mxu1 %v8857_v63  ;;  %v8814_v63 = vld [vmem:[%s17281_s3 + $0xf88] sm:$0xff] }
 0x411   :  { %1710 = vmatpush.msrb.mxu1 %v8856_v1  ;;  %v8813_v1 = vld [vmem:[%s17281_s3 + $0xf80] sm:$0xff] }
 0x413   :  { %1711 = vmatpush.msrb.mxu1 %v8855_v4  ;;  %v8880_v4 = vld [vmem:[%s17281_s3 + $0x1178] sm:$0xff] }
 0x415   :  { %1712 = vmatpush.msrb.mxu1 %v8854_v5  ;;  %v8879_v5 = vld [vmem:[%s17281_s3 + $0x1170] sm:$0xff] }
 0x417   :  { %1713 = vmatpush.msrb.mxu1 %v8853_v6  ;;  %v8878_v6 = vld [vmem:[%s17281_s3 + $0x1168] sm:$0xff] }
 0x419   :  { %1714 = vmatpush.msrb.mxu1 %v8852_v7  ;;  %v8877_v7 = vld [vmem:[%s17281_s3 + $0x1160] sm:$0xff] }
 0x41b   :  { %1715 = vmatpush.msrb.mxu1 %v8851_v8  ;;  %v8876_v8 = vld [vmem:[%s17281_s3 + $0x1158] sm:$0xff] }
 0x41d   :  { %1716 = vmatpush.msrb.mxu1 %v8850_v9  ;;  %v8875_v9 = vld [vmem:[%s17281_s3 + $0x1150] sm:$0xff] }
 0x41f   :  { %1717 = vmatpush.msrb.mxu1 %v8849_v10  ;;  %v8874_v10 = vld [vmem:[%s17281_s3 + $0x1148] sm:$0xff] }
 0x420   :  { %1718 = vmatmul.f32.vlgmr.msrb.gmra.mxu1 %v10999_v49 }
 0x421   :  { %1861 = vmatpush.msra.mxu1 %v8916_v11  ;;  %v8873_v11 = vld [vmem:[%s17281_s3 + $0x1140] sm:$0xff] }
 0x423   :  { %1862 = vmatpush.msra.mxu1 %v8915_v12  ;;  %v8872_v12 = vld [vmem:[%s17281_s3 + $0x1138] sm:$0xff] }
 0x425   :  { %1863 = vmatpush.msra.mxu1 %v8914_v13  ;;  %v8871_v13 = vld [vmem:[%s17281_s3 + $0x1130] sm:$0xff] }
 0x427   :  { %1864 = vmatpush.msra.mxu1 %v8913_v15  ;;  %v8870_v15 = vld [vmem:[%s17281_s3 + $0x1128] sm:$0xff] }
 0x429   :  { %1865 = vmatpush.msra.mxu1 %v8912_v17  ;;  %v8869_v17 = vld [vmem:[%s17281_s3 + $0x1120] sm:$0xff] }
 0x42b   :  { %1866 = vmatpush.msra.mxu1 %v8911_v18  ;;  %v8868_v18 = vld [vmem:[%s17281_s3 + $0x1118] sm:$0xff] }
 0x42d   :  { %1867 = vmatpush.msra.mxu1 %v8910_v19  ;;  %v8867_v19 = vld [vmem:[%s17281_s3 + $0x1110] sm:$0xff] }
 0x42f   :  { %1868 = vmatpush.msra.mxu1 %v8909_v20  ;;  %v8866_v20 = vld [vmem:[%s17281_s3 + $0x1108] sm:$0xff] }
 0x431   :  { %1869 = vmatpush.msra.mxu1 %v8908_v21  ;;  %v8865_v21 = vld [vmem:[%s17281_s3 + $0x1100] sm:$0xff] }
 0x433   :  { %1870 = vmatpush.msra.mxu1 %v8907_v22  ;;  %v8932_v22 = vld [vmem:[%s17281_s3 + $0x12f8] sm:$0xff] }
 0x435   :  { %1871 = vmatpush.msra.mxu1 %v8906_v23  ;;  %v8931_v23 = vld [vmem:[%s17281_s3 + $0x12f0] sm:$0xff] }
 0x437   :  { %1872 = vmatpush.msra.mxu1 %v8905_v24  ;;  %v8930_v24 = vld [vmem:[%s17281_s3 + $0x12e8] sm:$0xff] }
 0x439   :  { %1873 = vmatpush.msra.mxu1 %v8904_v25  ;;  %v8929_v25 = vld [vmem:[%s17281_s3 + $0x12e0] sm:$0xff] }
 0x43b   :  { %1874 = vmatpush.msra.mxu1 %v8903_v26  ;;  %v8928_v26 = vld [vmem:[%s17281_s3 + $0x12d8] sm:$0xff] }
 0x43d   :  { %1875 = vmatpush.msra.mxu1 %v8902_v27  ;;  %v12355_v28 = vpop.f32.mrf.mxu1  ;;  %v8927_v27 = vld [vmem:[%s17281_s3 + $0x12d0] sm:$0xff] }
 0x43f   :  { %1876 = vmatpush.msra.mxu1 %v8901_v0  ;;  %v8926_v0 = vld [vmem:[%s17281_s3 + $0x12c8] sm:$0xff] }
 0x440   :  { %1877 = vmatmul.f32.vlgmr.msra.gmra.mxu1 %v10997_v48 }
 0x445   :  { %v12357_v29 = vpop.f32.mrf.mxu1 }
 0x45d   :  { %v1401_v37 = vpop.f32.mrf.mxu1 }
 0x45e   :  { %v1402_v38 = vadd.f32 %v1401_v37, %v1382_v36  ;;  %v8921_v36 = vld [vmem:[%s17281_s3 + $0x12a0] sm:$0xff]  ;;  %v8920_v37 = vld [vmem:[%s17281_s3 + $0x1298] sm:$0xff] }
 0x460   :  { %1428 = vmatpush.msrb.mxu2 %v1402_v38  ;;  %v8919_v38 = vld [vmem:[%s17281_s3 + $0x1290] sm:$0xff] }
 0x461   :  { %8763 = vmatmul.msk.f32.vlgmr.msrb.gmra.mxu2 %vm484_vm5, %v8761_v39  ;;  %v8918_v39 = vld [vmem:[%s17281_s3 + $0x1288] sm:$0xff] }
 0x462   :  { %1563 = vmatpush.msra.mxu2 %v8828_v40  ;;  %v8917_v40 = vld [vmem:[%s17281_s3 + $0x1280] sm:$0xff] }
 0x464   :  { %1564 = vmatpush.msra.mxu2 %v8827_v41  ;;  %v8984_v41 = vld [vmem:[%s17281_s3 + $0x1478] sm:$0xff] }
 0x466   :  { %1565 = vmatpush.msra.mxu2 %v8826_v42  ;;  %v8983_v42 = vld [vmem:[%s17281_s3 + $0x1470] sm:$0xff] }
 0x468   :  { %1566 = vmatpush.msra.mxu2 %v8825_v43  ;;  %v8982_v43 = vld [vmem:[%s17281_s3 + $0x1468] sm:$0xff] }
 0x469   :  { %8764 = vmatmul.msk.f32.gmra.mxu2 %vm484_vm5, %v8762_v44  ;;  %v8981_v44 = vld [vmem:[%s17281_s3 + $0x1460] sm:$0xff] }
 0x46a   :  { %1567 = vmatpush.msra.mxu2 %v8824_v45  ;;  %v8980_v45 = vld [vmem:[%s17281_s3 + $0x1458] sm:$0xff] }
 0x46c   :  { %1568 = vmatpush.msra.mxu2 %v8823_v46  ;;  %v8979_v46 = vld [vmem:[%s17281_s3 + $0x1450] sm:$0xff] }
 0x46e   :  { %1569 = vmatpush.msra.mxu2 %v8822_v47  ;;  %v8978_v47 = vld [vmem:[%s17281_s3 + $0x1448] sm:$0xff] }
 0x470   :  { %1570 = vmatpush.msra.mxu2 %v8821_v50  ;;  %v8977_v50 = vld [vmem:[%s17281_s3 + $0x1440] sm:$0xff] }
 0x472   :  { %1571 = vmatpush.msra.mxu2 %v8820_v51  ;;  %v8976_v51 = vld [vmem:[%s17281_s3 + $0x1438] sm:$0xff] }
 0x474   :  { %1572 = vmatpush.msra.mxu2 %v8819_v52  ;;  %v8975_v52 = vld [vmem:[%s17281_s3 + $0x1430] sm:$0xff] }
 0x476   :  { %1573 = vmatpush.msra.mxu2 %v8818_v53  ;;  %v8974_v53 = vld [vmem:[%s17281_s3 + $0x1428] sm:$0xff] }
 0x478   :  { %1574 = vmatpush.msra.mxu2 %v8817_v60  ;;  %v8973_v60 = vld [vmem:[%s17281_s3 + $0x1420] sm:$0xff] }
 0x47a   :  { %1575 = vmatpush.msra.mxu2 %v8816_v61  ;;  %v8972_v61 = vld [vmem:[%s17281_s3 + $0x1418] sm:$0xff] }
 0x47c   :  { %1576 = vmatpush.msra.mxu2 %v8815_v62  ;;  %v8971_v62 = vld [vmem:[%s17281_s3 + $0x1410] sm:$0xff] }
 0x47e   :  { %1577 = vmatpush.msra.mxu2 %v8814_v63  ;;  %v8970_v63 = vld [vmem:[%s17281_s3 + $0x1408] sm:$0xff] }
 0x480   :  { %1578 = vmatpush.msra.mxu2 %v8813_v1  ;;  %v8969_v1 = vld [vmem:[%s17281_s3 + $0x1400] sm:$0xff] }
 0x481   :  { %1579 = vmatmul.f32.vlgmr.msra.gmra.mxu2 %v11011_v59 }
 0x482   :  { %1722 = vmatpush.msrb.mxu2 %v8880_v4 }
 0x484   :  { %1723 = vmatpush.msrb.mxu2 %v8879_v5 }
 0x486   :  { %1724 = vmatpush.msrb.mxu2 %v8878_v6  ;;  %v1540_v6 = vpop.f32.mrf.mxu0 }
 0x488   :  { %1725 = vmatpush.msrb.mxu2 %v8877_v7  ;;  %v1520_v7 = vpop.f32.mrf.mxu3 }
 0x48a   :  { %1726 = vmatpush.msrb.mxu2 %v8876_v8  ;;  %v1560_v8 = vpop.f32.mrf.mxu1 }
 0x48c   :  { %1727 = vmatpush.msrb.mxu2 %v8875_v9  ;;  %v1541_v9 = vadd.f32 %v1540_v6, %v1520_v7  ;;  %v8995_v6 = vld [vmem:[%s17281_s3 + $0x14d0] sm:$0xff]  ;;  %v8994_v7 = vld [vmem:[%s17281_s3 + $0x14c8] sm:$0xff] }
 0x48e   :  { %1728 = vmatpush.msrb.mxu2 %v8874_v10  ;;  %v1561_v10 = vadd.f32 %v1560_v8, %v1541_v9  ;;  %v8993_v8 = vld [vmem:[%s17281_s3 + $0x14c0] sm:$0xff]  ;;  %v8992_v9 = vld [vmem:[%s17281_s3 + $0x14b8] sm:$0xff] }
 0x490   :  { %1729 = vmatpush.msrb.mxu2 %v8873_v11 }
 0x492   :  { %1730 = vmatpush.msrb.mxu2 %v8872_v12 }
 0x494   :  { %1731 = vmatpush.msrb.mxu2 %v8871_v13  ;;  %v8829_v13 = vld [vmem:[%s17283_s4 + $0x70] sm:$0xff] }
 0x496   :  { %1732 = vmatpush.msrb.mxu2 %v8870_v15  ;;  %v8896_v15 = vld [vmem:[%s17281_s3 + $0x11f8] sm:$0xff] }
 0x498   :  { %1733 = vmatpush.msrb.mxu2 %v8869_v17  ;;  %v8895_v17 = vld [vmem:[%s17281_s3 + $0x11f0] sm:$0xff] }
 0x49a   :  { %1734 = vmatpush.msrb.mxu2 %v8868_v18  ;;  %v8894_v18 = vld [vmem:[%s17281_s3 + $0x11e8] sm:$0xff] }
 0x49c   :  { %1735 = vmatpush.msrb.mxu2 %v8867_v19  ;;  %v8893_v19 = vld [vmem:[%s17281_s3 + $0x11e0] sm:$0xff] }
 0x49e   :  { %1736 = vmatpush.msrb.mxu2 %v8866_v20  ;;  %v8830_v20 = vld [vmem:[%s17283_s4 + $0x78] sm:$0xff] }
 0x4a0   :  { %1737 = vmatpush.msrb.mxu2 %v8865_v21  ;;  %v8892_v21 = vld [vmem:[%s17281_s3 + $0x11d8] sm:$0xff] }
 0x4a1   :  { %1738 = vmatmul.f32.vlgmr.msrb.gmra.mxu2 %v11006_v57 }
 0x4a2   :  { %1881 = vmatpush.msra.mxu2 %v8932_v22  ;;  %v8891_v22 = vld [vmem:[%s17281_s3 + $0x11d0] sm:$0xff] }
 0x4a4   :  { %1882 = vmatpush.msra.mxu2 %v8931_v23  ;;  %v8890_v23 = vld [vmem:[%s17281_s3 + $0x11c8] sm:$0xff] }
 0x4a6   :  { %1883 = vmatpush.msra.mxu2 %v8930_v24  ;;  %v8889_v24 = vld [vmem:[%s17281_s3 + $0x11c0] sm:$0xff] }
 0x4a8   :  { %1884 = vmatpush.msra.mxu2 %v8929_v25  ;;  %v8888_v25 = vld [vmem:[%s17281_s3 + $0x11b8] sm:$0xff] }
 0x4aa   :  { %1885 = vmatpush.msra.mxu2 %v8928_v26  ;;  %v8887_v26 = vld [vmem:[%s17281_s3 + $0x11b0] sm:$0xff] }
 0x4ac   :  { %1886 = vmatpush.msra.mxu2 %v8927_v27  ;;  %v8886_v27 = vld [vmem:[%s17281_s3 + $0x11a8] sm:$0xff] }
 0x4ae   :  { %1887 = vmatpush.msra.mxu2 %v8926_v0  ;;  %v8885_v0 = vld [vmem:[%s17281_s3 + $0x11a0] sm:$0xff] }
 0x4b0   :  { %1888 = vmatpush.msra.mxu2 %v8925_v30  ;;  %v8884_v30 = vld [vmem:[%s17281_s3 + $0x1198] sm:$0xff] }
 0x4b2   :  { %1889 = vmatpush.msra.mxu2 %v8924_v31  ;;  %v8883_v31 = vld [vmem:[%s17281_s3 + $0x1190] sm:$0xff] }
 0x4b4   :  { %1890 = vmatpush.msra.mxu2 %v8923_v32  ;;  %v8882_v32 = vld [vmem:[%s17281_s3 + $0x1188] sm:$0xff] }
 0x4b6   :  { %1891 = vmatpush.msra.mxu2 %v8922_v33  ;;  %v8881_v33 = vld [vmem:[%s17281_s3 + $0x1180] sm:$0xff] }
 0x4b8   :  { %1892 = vmatpush.msra.mxu2 %v8921_v36  ;;  %v8948_v36 = vld [vmem:[%s17281_s3 + $0x1378] sm:$0xff] }
 0x4ba   :  { %1893 = vmatpush.msra.mxu2 %v8920_v37  ;;  %v8947_v37 = vld [vmem:[%s17281_s3 + $0x1370] sm:$0xff] }
 0x4bc   :  { %1894 = vmatpush.msra.mxu2 %v8919_v38  ;;  %v8946_v38 = vld [vmem:[%s17281_s3 + $0x1368] sm:$0xff] }
 0x4be   :  { %1895 = vmatpush.msra.mxu2 %v8918_v39  ;;  %v8945_v39 = vld [vmem:[%s17281_s3 + $0x1360] sm:$0xff] }
 0x4c0   :  { %1896 = vmatpush.msra.mxu2 %v8917_v40  ;;  %v8944_v40 = vld [vmem:[%s17281_s3 + $0x1358] sm:$0xff] }
 0x4c1   :  { %1897 = vmatmul.f32.vlgmr.msra.gmra.mxu2 %v10999_v49 }
 0x4c2   :  { %2040 = vmatpush.msrb.mxu2 %v8984_v41  ;;  %v8943_v41 = vld [vmem:[%s17281_s3 + $0x1350] sm:$0xff] }
 0x4c4   :  { %2041 = vmatpush.msrb.mxu2 %v8983_v42  ;;  %v8942_v42 = vld [vmem:[%s17281_s3 + $0x1348] sm:$0xff] }
 0x4c6   :  { %2042 = vmatpush.msrb.mxu2 %v8982_v43  ;;  %v8941_v43 = vld [vmem:[%s17281_s3 + $0x1340] sm:$0xff] }
 0x4c8   :  { %2043 = vmatpush.msrb.mxu2 %v8981_v44  ;;  %v8940_v44 = vld [vmem:[%s17281_s3 + $0x1338] sm:$0xff] }
 0x4ca   :  { %2044 = vmatpush.msrb.mxu2 %v8980_v45  ;;  %v8939_v45 = vld [vmem:[%s17281_s3 + $0x1330] sm:$0xff] }
 0x4cc   :  { %2045 = vmatpush.msrb.mxu2 %v8979_v46  ;;  %v8938_v46 = vld [vmem:[%s17281_s3 + $0x1328] sm:$0xff] }
 0x4ce   :  { %2046 = vmatpush.msrb.mxu2 %v8978_v47  ;;  %v8937_v47 = vld [vmem:[%s17281_s3 + $0x1320] sm:$0xff] }
 0x4d0   :  { %2047 = vmatpush.msrb.mxu2 %v8977_v50  ;;  %v8936_v50 = vld [vmem:[%s17281_s3 + $0x1318] sm:$0xff] }
 0x4d2   :  { %2048 = vmatpush.msrb.mxu2 %v8976_v51  ;;  %v8935_v51 = vld [vmem:[%s17281_s3 + $0x1310] sm:$0xff] }
 0x4d4   :  { %2049 = vmatpush.msrb.mxu2 %v8975_v52  ;;  %v8934_v52 = vld [vmem:[%s17281_s3 + $0x1308] sm:$0xff] }
 0x4d6   :  { %2050 = vmatpush.msrb.mxu2 %v8974_v53  ;;  %v8933_v53 = vld [vmem:[%s17281_s3 + $0x1300] sm:$0xff] }
 0x4d8   :  { %2051 = vmatpush.msrb.mxu2 %v8973_v60  ;;  %v9000_v60 = vld [vmem:[%s17281_s3 + $0x14f8] sm:$0xff] }
 0x4da   :  { %2052 = vmatpush.msrb.mxu2 %v8972_v61  ;;  %v8999_v61 = vld [vmem:[%s17281_s3 + $0x14f0] sm:$0xff] }
 0x4dc   :  { %2053 = vmatpush.msrb.mxu2 %v8971_v62  ;;  %v8998_v62 = vld [vmem:[%s17281_s3 + $0x14e8] sm:$0xff] }
 0x4de   :  { %2054 = vmatpush.msrb.mxu2 %v8970_v63  ;;  %v8997_v63 = vld [vmem:[%s17281_s3 + $0x14e0] sm:$0xff] }
 0x4e0   :  { %2055 = vmatpush.msrb.mxu2 %v8969_v1  ;;  %v8996_v1 = vld [vmem:[%s17281_s3 + $0x14d8] sm:$0xff] }
 0x4e1   :  { %2056 = vmatmul.f32.vlgmr.msrb.gmra.mxu2 %v10997_v48 }
 0x4e4   :  { %v12563_v4 = vpop.f32.mrf.mxu2 }
 0x4ec   :  { %v12565_v5 = vpop.f32.mrf.mxu2 }
 0x504   :  { %v1580_v11 = vpop.f32.mrf.mxu2 }
 0x505   :  { %v1581_v12 = vadd.f32 %v1580_v11, %v1561_v10  ;;  %v8991_v10 = vld [vmem:[%s17281_s3 + $0x14b0] sm:$0xff]  ;;  %v8990_v11 = vld [vmem:[%s17281_s3 + $0x14a8] sm:$0xff] }
 0x507   :  { %1607 = vmatpush.msra.mxu3 %v1581_v12  ;;  %v8989_v12 = vld [vmem:[%s17281_s3 + $0x14a0] sm:$0xff] }
 0x508   :  { %8831 = vmatmul.msk.f32.vlgmr.msra.gmra.mxu3 %vm484_vm5, %v8829_v13  ;;  %v8988_v13 = vld [vmem:[%s17281_s3 + $0x1498] sm:$0xff] }
 0x509   :  { %1742 = vmatpush.msrb.mxu3 %v8896_v15  ;;  %v8987_v15 = vld [vmem:[%s17281_s3 + $0x1490] sm:$0xff] }
 0x50b   :  { %1743 = vmatpush.msrb.mxu3 %v8895_v17  ;;  %v8986_v17 = vld [vmem:[%s17281_s3 + $0x1488] sm:$0xff] }
 0x50d   :  { %1744 = vmatpush.msrb.mxu3 %v8894_v18  ;;  %v8985_v18 = vld [vmem:[%s17281_s3 + $0x1480] sm:$0xff] }
 0x50f   :  { %1745 = vmatpush.msrb.mxu3 %v8893_v19  ;;  %v9052_v19 = vld [vmem:[%s17281_s3 + $0x1678] sm:$0xff] }
 0x510   :  { %8832 = vmatmul.msk.f32.gmra.mxu3 %vm484_vm5, %v8830_v20  ;;  %v9051_v20 = vld [vmem:[%s17281_s3 + $0x1670] sm:$0xff] }
 0x511   :  { %1746 = vmatpush.msrb.mxu3 %v8892_v21  ;;  %v9050_v21 = vld [vmem:[%s17281_s3 + $0x1668] sm:$0xff] }
 0x513   :  { %1747 = vmatpush.msrb.mxu3 %v8891_v22  ;;  %v9049_v22 = vld [vmem:[%s17281_s3 + $0x1660] sm:$0xff] }
 0x515   :  { %1748 = vmatpush.msrb.mxu3 %v8890_v23  ;;  %v9048_v23 = vld [vmem:[%s17281_s3 + $0x1658] sm:$0xff] }
 0x517   :  { %1749 = vmatpush.msrb.mxu3 %v8889_v24  ;;  %v9047_v24 = vld [vmem:[%s17281_s3 + $0x1650] sm:$0xff] }
 0x519   :  { %1750 = vmatpush.msrb.mxu3 %v8888_v25  ;;  %v9046_v25 = vld [vmem:[%s17281_s3 + $0x1648] sm:$0xff] }
 0x51b   :  { %1751 = vmatpush.msrb.mxu3 %v8887_v26  ;;  %v9045_v26 = vld [vmem:[%s17281_s3 + $0x1640] sm:$0xff] }
 0x51d   :  { %1752 = vmatpush.msrb.mxu3 %v8886_v27  ;;  %v9044_v27 = vld [vmem:[%s17281_s3 + $0x1638] sm:$0xff] }
 0x51f   :  { %1753 = vmatpush.msrb.mxu3 %v8885_v0  ;;  %v9043_v0 = vld [vmem:[%s17281_s3 + $0x1630] sm:$0xff] }
 0x521   :  { %1754 = vmatpush.msrb.mxu3 %v8884_v30  ;;  %v9042_v30 = vld [vmem:[%s17281_s3 + $0x1628] sm:$0xff] }
 0x523   :  { %1755 = vmatpush.msrb.mxu3 %v8883_v31  ;;  %v9041_v31 = vld [vmem:[%s17281_s3 + $0x1620] sm:$0xff] }
 0x525   :  { %1756 = vmatpush.msrb.mxu3 %v8882_v32  ;;  %v9040_v32 = vld [vmem:[%s17281_s3 + $0x1618] sm:$0xff] }
 0x527   :  { %1757 = vmatpush.msrb.mxu3 %v8881_v33  ;;  %v9039_v33 = vld [vmem:[%s17281_s3 + $0x1610] sm:$0xff] }
 0x528   :  { %1758 = vmatmul.f32.vlgmr.msrb.gmra.mxu3 %v11011_v59 }
 0x529   :  { %1901 = vmatpush.msra.mxu3 %v8948_v36  ;;  %v9038_v36 = vld [vmem:[%s17281_s3 + $0x1608] sm:$0xff] }
 0x52b   :  { %1902 = vmatpush.msra.mxu3 %v8947_v37  ;;  %v9037_v37 = vld [vmem:[%s17281_s3 + $0x1600] sm:$0xff] }
 0x52d   :  { %1903 = vmatpush.msra.mxu3 %v8946_v38 }
 0x52f   :  { %1904 = vmatpush.msra.mxu3 %v8945_v39 }
 0x531   :  { %1905 = vmatpush.msra.mxu3 %v8944_v40  ;;  %v1719_v40 = vpop.f32.mrf.mxu1 }
 0x533   :  { %1906 = vmatpush.msra.mxu3 %v8943_v41  ;;  %v1699_v41 = vpop.f32.mrf.mxu0 }
 0x535   :  { %1907 = vmatpush.msra.mxu3 %v8942_v42  ;;  %v1739_v42 = vpop.f32.mrf.mxu2 }
 0x537   :  { %1908 = vmatpush.msra.mxu3 %v8941_v43  ;;  %v1720_v43 = vadd.f32 %v1719_v40, %v1699_v41  ;;  %v9065_v40 = vld [vmem:[%s17281_s3 + $0x16e0] sm:$0xff]  ;;  %v9064_v41 = vld [vmem:[%s17281_s3 + $0x16d8] sm:$0xff] }
 0x539   :  { %1909 = vmatpush.msra.mxu3 %v8940_v44  ;;  %v1740_v44 = vadd.f32 %v1739_v42, %v1720_v43  ;;  %v9063_v42 = vld [vmem:[%s17281_s3 + $0x16d0] sm:$0xff]  ;;  %v9062_v43 = vld [vmem:[%s17281_s3 + $0x16c8] sm:$0xff] }
 0x53b   :  { %1910 = vmatpush.msra.mxu3 %v8939_v45 }
 0x53d   :  { %1911 = vmatpush.msra.mxu3 %v8938_v46 }
 0x53f   :  { %1912 = vmatpush.msra.mxu3 %v8937_v47  ;;  %v8897_v47 = vld [vmem:[%s17283_s4 + $0x80] sm:$0xff] }
 0x541   :  { %1913 = vmatpush.msra.mxu3 %v8936_v50  ;;  %v8964_v50 = vld [vmem:[%s17281_s3 + $0x13f8] sm:$0xff] }
 0x543   :  { %1914 = vmatpush.msra.mxu3 %v8935_v51  ;;  %v8963_v51 = vld [vmem:[%s17281_s3 + $0x13f0] sm:$0xff] }
 0x545   :  { %1915 = vmatpush.msra.mxu3 %v8934_v52  ;;  %v8962_v52 = vld [vmem:[%s17281_s3 + $0x13e8] sm:$0xff] }
 0x547   :  { %1916 = vmatpush.msra.mxu3 %v8933_v53  ;;  %v8961_v53 = vld [vmem:[%s17281_s3 + $0x13e0] sm:$0xff] }
 0x548   :  { %1917 = vmatmul.f32.vlgmr.msra.gmra.mxu3 %v11006_v57 }
 0x549   :  { %2060 = vmatpush.msrb.mxu3 %v9000_v60  ;;  %v8898_v60 = vld [vmem:[%s17283_s4 + $0x88] sm:$0xff] }
 0x54b   :  { %2061 = vmatpush.msrb.mxu3 %v8999_v61  ;;  %v8960_v61 = vld [vmem:[%s17281_s3 + $0x13d8] sm:$0xff] }
 0x54d   :  { %2062 = vmatpush.msrb.mxu3 %v8998_v62  ;;  %v8959_v62 = vld [vmem:[%s17281_s3 + $0x13d0] sm:$0xff] }
 0x54f   :  { %2063 = vmatpush.msrb.mxu3 %v8997_v63  ;;  %v8958_v63 = vld [vmem:[%s17281_s3 + $0x13c8] sm:$0xff] }
 0x551   :  { %2064 = vmatpush.msrb.mxu3 %v8996_v1  ;;  %v8957_v1 = vld [vmem:[%s17281_s3 + $0x13c0] sm:$0xff] }
 0x553   :  { %2065 = vmatpush.msrb.mxu3 %v8995_v6  ;;  %v8956_v6 = vld [vmem:[%s17281_s3 + $0x13b8] sm:$0xff] }
 0x555   :  { %2066 = vmatpush.msrb.mxu3 %v8994_v7  ;;  %v8955_v7 = vld [vmem:[%s17281_s3 + $0x13b0] sm:$0xff] }
 0x557   :  { %2067 = vmatpush.msrb.mxu3 %v8993_v8  ;;  %v8954_v8 = vld [vmem:[%s17281_s3 + $0x13a8] sm:$0xff] }
 0x559   :  { %2068 = vmatpush.msrb.mxu3 %v8992_v9  ;;  %v8953_v9 = vld [vmem:[%s17281_s3 + $0x13a0] sm:$0xff] }
 0x55b   :  { %2069 = vmatpush.msrb.mxu3 %v8991_v10  ;;  %v8952_v10 = vld [vmem:[%s17281_s3 + $0x1398] sm:$0xff] }
 0x55d   :  { %2070 = vmatpush.msrb.mxu3 %v8990_v11  ;;  %v8951_v11 = vld [vmem:[%s17281_s3 + $0x1390] sm:$0xff] }
 0x55f   :  { %2071 = vmatpush.msrb.mxu3 %v8989_v12  ;;  %v8950_v12 = vld [vmem:[%s17281_s3 + $0x1388] sm:$0xff] }
 0x561   :  { %2072 = vmatpush.msrb.mxu3 %v8988_v13  ;;  %v8949_v13 = vld [vmem:[%s17281_s3 + $0x1380] sm:$0xff] }
 0x563   :  { %2073 = vmatpush.msrb.mxu3 %v8987_v15  ;;  %v9016_v15 = vld [vmem:[%s17281_s3 + $0x1578] sm:$0xff] }
 0x565   :  { %2074 = vmatpush.msrb.mxu3 %v8986_v17  ;;  %v9015_v17 = vld [vmem:[%s17281_s3 + $0x1570] sm:$0xff] }
 0x567   :  { %2075 = vmatpush.msrb.mxu3 %v8985_v18  ;;  %v9014_v18 = vld [vmem:[%s17281_s3 + $0x1568] sm:$0xff] }
 0x568   :  { %2076 = vmatmul.f32.vlgmr.msrb.gmra.mxu3 %v10999_v49 }
 0x569   :  { %2219 = vmatpush.msra.mxu3 %v9052_v19  ;;  %v9013_v19 = vld [vmem:[%s17281_s3 + $0x1560] sm:$0xff] }
 0x56b   :  { %2220 = vmatpush.msra.mxu3 %v9051_v20  ;;  %v9012_v20 = vld [vmem:[%s17281_s3 + $0x1558] sm:$0xff] }
 0x56d   :  { %2221 = vmatpush.msra.mxu3 %v9050_v21  ;;  %v9011_v21 = vld [vmem:[%s17281_s3 + $0x1550] sm:$0xff] }
 0x56f   :  { %2222 = vmatpush.msra.mxu3 %v9049_v22  ;;  %v9010_v22 = vld [vmem:[%s17281_s3 + $0x1548] sm:$0xff] }
 0x571   :  { %2223 = vmatpush.msra.mxu3 %v9048_v23  ;;  %v9009_v23 = vld [vmem:[%s17281_s3 + $0x1540] sm:$0xff] }
 0x573   :  { %2224 = vmatpush.msra.mxu3 %v9047_v24  ;;  %v9008_v24 = vld [vmem:[%s17281_s3 + $0x1538] sm:$0xff] }
 0x575   :  { %2225 = vmatpush.msra.mxu3 %v9046_v25  ;;  %v9007_v25 = vld [vmem:[%s17281_s3 + $0x1530] sm:$0xff] }
 0x577   :  { %2226 = vmatpush.msra.mxu3 %v9045_v26  ;;  %v9006_v26 = vld [vmem:[%s17281_s3 + $0x1528] sm:$0xff] }
 0x579   :  { %2227 = vmatpush.msra.mxu3 %v9044_v27  ;;  %v9005_v27 = vld [vmem:[%s17281_s3 + $0x1520] sm:$0xff] }
 0x57b   :  { %2228 = vmatpush.msra.mxu3 %v9043_v0  ;;  %v9004_v0 = vld [vmem:[%s17281_s3 + $0x1518] sm:$0xff] }
 0x57d   :  { %2229 = vmatpush.msra.mxu3 %v9042_v30  ;;  %v9003_v30 = vld [vmem:[%s17281_s3 + $0x1510] sm:$0xff] }
 0x57f   :  { %2230 = vmatpush.msra.mxu3 %v9041_v31  ;;  %v9002_v31 = vld [vmem:[%s17281_s3 + $0x1508] sm:$0xff] }
 0x581   :  { %2231 = vmatpush.msra.mxu3 %v9040_v32  ;;  %v9001_v32 = vld [vmem:[%s17281_s3 + $0x1500] sm:$0xff] }
 0x583   :  { %2232 = vmatpush.msra.mxu3 %v9039_v33  ;;  %v9068_v33 = vld [vmem:[%s17281_s3 + $0x16f8] sm:$0xff] }
 0x585   :  { %2233 = vmatpush.msra.mxu3 %v9038_v36  ;;  %v9067_v36 = vld [vmem:[%s17281_s3 + $0x16f0] sm:$0xff] }
 0x587   :  { %2234 = vmatpush.msra.mxu3 %v9037_v37  ;;  %v9066_v37 = vld [vmem:[%s17281_s3 + $0x16e8] sm:$0xff] }
 0x588   :  { %2235 = vmatmul.f32.vlgmr.msra.gmra.mxu3 %v10997_v48 }
 0x58b   :  { %v12771_v38 = vpop.f32.mrf.mxu3 }
 0x593   :  { %v12773_v39 = vpop.f32.mrf.mxu3 }
 0x5ab   :  { %v1759_v45 = vpop.f32.mrf.mxu3 }
 0x5ac   :  { %v1760_v46 = vadd.f32 %v1759_v45, %v1740_v44  ;;  %v9061_v44 = vld [vmem:[%s17281_s3 + $0x16c0] sm:$0xff]  ;;  %v9060_v45 = vld [vmem:[%s17281_s3 + $0x16b8] sm:$0xff] }
 0x5ae   :  { %1786 = vmatpush.msra.mxu0 %v1760_v46  ;;  %v9059_v46 = vld [vmem:[%s17281_s3 + $0x16b0] sm:$0xff] }
 0x5af   :  { %8899 = vmatmul.msk.f32.vlgmr.msra.gmra.mxu0 %vm484_vm5, %v8897_v47  ;;  %v9058_v47 = vld [vmem:[%s17281_s3 + $0x16a8] sm:$0xff] }
 0x5b0   :  { %1921 = vmatpush.msrb.mxu0 %v8964_v50  ;;  %v9057_v50 = vld [vmem:[%s17281_s3 + $0x16a0] sm:$0xff] }
 0x5b2   :  { %1922 = vmatpush.msrb.mxu0 %v8963_v51  ;;  %v9056_v51 = vld [vmem:[%s17281_s3 + $0x1698] sm:$0xff] }
 0x5b4   :  { %1923 = vmatpush.msrb.mxu0 %v8962_v52  ;;  %v9055_v52 = vld [vmem:[%s17281_s3 + $0x1690] sm:$0xff] }
 0x5b6   :  { %1924 = vmatpush.msrb.mxu0 %v8961_v53  ;;  %v9054_v53 = vld [vmem:[%s17281_s3 + $0x1688] sm:$0xff] }
 0x5b7   :  { %8900 = vmatmul.msk.f32.gmra.mxu0 %vm484_vm5, %v8898_v60  ;;  %v9053_v60 = vld [vmem:[%s17281_s3 + $0x1680] sm:$0xff] }
 0x5b8   :  { %1925 = vmatpush.msrb.mxu0 %v8960_v61  ;;  %v9120_v61 = vld [vmem:[%s17281_s3 + $0x1878] sm:$0xff] }
 0x5ba   :  { %1926 = vmatpush.msrb.mxu0 %v8959_v62  ;;  %v9119_v62 = vld [vmem:[%s17281_s3 + $0x1870] sm:$0xff] }
 0x5bc   :  { %1927 = vmatpush.msrb.mxu0 %v8958_v63  ;;  %v9118_v63 = vld [vmem:[%s17281_s3 + $0x1868] sm:$0xff] }
 0x5be   :  { %1928 = vmatpush.msrb.mxu0 %v8957_v1  ;;  %v9117_v1 = vld [vmem:[%s17281_s3 + $0x1860] sm:$0xff] }
 0x5c0   :  { %1929 = vmatpush.msrb.mxu0 %v8956_v6  ;;  %v9116_v6 = vld [vmem:[%s17281_s3 + $0x1858] sm:$0xff] }
 0x5c2   :  { %1930 = vmatpush.msrb.mxu0 %v8955_v7  ;;  %v9115_v7 = vld [vmem:[%s17281_s3 + $0x1850] sm:$0xff] }
 0x5c4   :  { %1931 = vmatpush.msrb.mxu0 %v8954_v8  ;;  %v9114_v8 = vld [vmem:[%s17281_s3 + $0x1848] sm:$0xff] }
 0x5c6   :  { %1932 = vmatpush.msrb.mxu0 %v8953_v9  ;;  %v9113_v9 = vld [vmem:[%s17281_s3 + $0x1840] sm:$0xff] }
 0x5c8   :  { %1933 = vmatpush.msrb.mxu0 %v8952_v10  ;;  %v9112_v10 = vld [vmem:[%s17281_s3 + $0x1838] sm:$0xff] }
 0x5ca   :  { %1934 = vmatpush.msrb.mxu0 %v8951_v11  ;;  %v9111_v11 = vld [vmem:[%s17281_s3 + $0x1830] sm:$0xff] }
 0x5cc   :  { %1935 = vmatpush.msrb.mxu0 %v8950_v12  ;;  %v9110_v12 = vld [vmem:[%s17281_s3 + $0x1828] sm:$0xff] }
 0x5ce   :  { %1936 = vmatpush.msrb.mxu0 %v8949_v13  ;;  %v9109_v13 = vld [vmem:[%s17281_s3 + $0x1820] sm:$0xff] }
 0x5cf   :  { %1937 = vmatmul.f32.vlgmr.msrb.gmra.mxu0 %v11011_v59 }
 0x5d0   :  { %2080 = vmatpush.msra.mxu0 %v9016_v15  ;;  %v9108_v15 = vld [vmem:[%s17281_s3 + $0x1818] sm:$0xff] }
 0x5d2   :  { %2081 = vmatpush.msra.mxu0 %v9015_v17  ;;  %v9107_v17 = vld [vmem:[%s17281_s3 + $0x1810] sm:$0xff] }
 0x5d4   :  { %2082 = vmatpush.msra.mxu0 %v9014_v18  ;;  %v9106_v18 = vld [vmem:[%s17281_s3 + $0x1808] sm:$0xff] }
 0x5d6   :  { %2083 = vmatpush.msra.mxu0 %v9013_v19  ;;  %v9105_v19 = vld [vmem:[%s17281_s3 + $0x1800] sm:$0xff] }
 0x5d8   :  { %2084 = vmatpush.msra.mxu0 %v9012_v20 }
 0x5da   :  { %2085 = vmatpush.msra.mxu0 %v9011_v21 }
 0x5dc   :  { %2086 = vmatpush.msra.mxu0 %v9010_v22  ;;  %v1898_v22 = vpop.f32.mrf.mxu2 }
 0x5de   :  { %2087 = vmatpush.msra.mxu0 %v9009_v23  ;;  %v1878_v23 = vpop.f32.mrf.mxu1 }
 0x5e0   :  { %2088 = vmatpush.msra.mxu0 %v9008_v24  ;;  %v1918_v24 = vpop.f32.mrf.mxu3 }
 0x5e2   :  { %2089 = vmatpush.msra.mxu0 %v9007_v25  ;;  %v1899_v25 = vadd.f32 %v1898_v22, %v1878_v23  ;;  %v9135_v22 = vld [vmem:[%s17281_s3 + $0x18f0] sm:$0xff]  ;;  %v9134_v23 = vld [vmem:[%s17281_s3 + $0x18e8] sm:$0xff] }
 0x5e4   :  { %2090 = vmatpush.msra.mxu0 %v9006_v26  ;;  %v1919_v26 = vadd.f32 %v1918_v24, %v1899_v25  ;;  %v9133_v24 = vld [vmem:[%s17281_s3 + $0x18e0] sm:$0xff]  ;;  %v9132_v25 = vld [vmem:[%s17281_s3 + $0x18d8] sm:$0xff] }
 0x5e6   :  { %2091 = vmatpush.msra.mxu0 %v9005_v27 }
 0x5e8   :  { %2092 = vmatpush.msra.mxu0 %v9004_v0 }
 0x5ea   :  { %2093 = vmatpush.msra.mxu0 %v9003_v30  ;;  %v8965_v30 = vld [vmem:[%s17283_s4 + $0x90] sm:$0xff] }
 0x5ec   :  { %2094 = vmatpush.msra.mxu0 %v9002_v31  ;;  %v9032_v31 = vld [vmem:[%s17281_s3 + $0x15f8] sm:$0xff] }
 0x5ee   :  { %2095 = vmatpush.msra.mxu0 %v9001_v32  ;;  %v9031_v32 = vld [vmem:[%s17281_s3 + $0x15f0] sm:$0xff] }
 0x5ef   :  { %2096 = vmatmul.f32.vlgmr.msra.gmra.mxu0 %v11006_v57 }
 0x5f0   :  { %2239 = vmatpush.msrb.mxu0 %v9068_v33  ;;  %v9030_v33 = vld [vmem:[%s17281_s3 + $0x15e8] sm:$0xff] }
 0x5f2   :  { %2240 = vmatpush.msrb.mxu0 %v9067_v36  ;;  %v9029_v36 = vld [vmem:[%s17281_s3 + $0x15e0] sm:$0xff] }
 0x5f4   :  { %2241 = vmatpush.msrb.mxu0 %v9066_v37  ;;  %v8966_v37 = vld [vmem:[%s17283_s4 + $0x98] sm:$0xff] }
 0x5f6   :  { %2242 = vmatpush.msrb.mxu0 %v9065_v40  ;;  %v9028_v40 = vld [vmem:[%s17281_s3 + $0x15d8] sm:$0xff] }
 0x5f8   :  { %2243 = vmatpush.msrb.mxu0 %v9064_v41  ;;  %v9027_v41 = vld [vmem:[%s17281_s3 + $0x15d0] sm:$0xff] }
 0x5fa   :  { %2244 = vmatpush.msrb.mxu0 %v9063_v42  ;;  %v9026_v42 = vld [vmem:[%s17281_s3 + $0x15c8] sm:$0xff] }
 0x5fc   :  { %2245 = vmatpush.msrb.mxu0 %v9062_v43  ;;  %v9025_v43 = vld [vmem:[%s17281_s3 + $0x15c0] sm:$0xff] }
 0x5fe   :  { %2246 = vmatpush.msrb.mxu0 %v9061_v44  ;;  %v9024_v44 = vld [vmem:[%s17281_s3 + $0x15b8] sm:$0xff] }
 0x600   :  { %2247 = vmatpush.msrb.mxu0 %v9060_v45  ;;  %v9023_v45 = vld [vmem:[%s17281_s3 + $0x15b0] sm:$0xff] }
 0x602   :  { %2248 = vmatpush.msrb.mxu0 %v9059_v46  ;;  %v9022_v46 = vld [vmem:[%s17281_s3 + $0x15a8] sm:$0xff] }
 0x604   :  { %2249 = vmatpush.msrb.mxu0 %v9058_v47  ;;  %v9021_v47 = vld [vmem:[%s17281_s3 + $0x15a0] sm:$0xff] }
 0x606   :  { %2250 = vmatpush.msrb.mxu0 %v9057_v50  ;;  %v9020_v50 = vld [vmem:[%s17281_s3 + $0x1598] sm:$0xff] }
 0x608   :  { %2251 = vmatpush.msrb.mxu0 %v9056_v51  ;;  %v9019_v51 = vld [vmem:[%s17281_s3 + $0x1590] sm:$0xff] }
 0x60a   :  { %2252 = vmatpush.msrb.mxu0 %v9055_v52  ;;  %v9018_v52 = vld [vmem:[%s17281_s3 + $0x1588] sm:$0xff] }
 0x60c   :  { %2253 = vmatpush.msrb.mxu0 %v9054_v53  ;;  %v9017_v53 = vld [vmem:[%s17281_s3 + $0x1580] sm:$0xff] }
 0x60e   :  { %2254 = vmatpush.msrb.mxu0 %v9053_v60  ;;  %v9084_v60 = vld [vmem:[%s17281_s3 + $0x1778] sm:$0xff] }
 0x60f   :  { %2255 = vmatmul.f32.vlgmr.msrb.gmra.mxu0 %v10999_v49 }
 0x610   :  { %2398 = vmatpush.msra.mxu0 %v9120_v61  ;;  %v9083_v61 = vld [vmem:[%s17281_s3 + $0x1770] sm:$0xff] }
 0x612   :  { %2399 = vmatpush.msra.mxu0 %v9119_v62  ;;  %v9082_v62 = vld [vmem:[%s17281_s3 + $0x1768] sm:$0xff] }
 0x614   :  { %2400 = vmatpush.msra.mxu0 %v9118_v63  ;;  %v9081_v63 = vld [vmem:[%s17281_s3 + $0x1760] sm:$0xff] }
 0x616   :  { %2401 = vmatpush.msra.mxu0 %v9117_v1  ;;  %v9080_v1 = vld [vmem:[%s17281_s3 + $0x1758] sm:$0xff] }
 0x618   :  { %2402 = vmatpush.msra.mxu0 %v9116_v6  ;;  %v9079_v6 = vld [vmem:[%s17281_s3 + $0x1750] sm:$0xff] }
 0x61a   :  { %2403 = vmatpush.msra.mxu0 %v9115_v7  ;;  %v9078_v7 = vld [vmem:[%s17281_s3 + $0x1748] sm:$0xff] }
 0x61c   :  { %2404 = vmatpush.msra.mxu0 %v9114_v8  ;;  %v9077_v8 = vld [vmem:[%s17281_s3 + $0x1740] sm:$0xff] }
 0x61e   :  { %2405 = vmatpush.msra.mxu0 %v9113_v9  ;;  %v9076_v9 = vld [vmem:[%s17281_s3 + $0x1738] sm:$0xff] }
 0x620   :  { %2406 = vmatpush.msra.mxu0 %v9112_v10  ;;  %v9075_v10 = vld [vmem:[%s17281_s3 + $0x1730] sm:$0xff] }
 0x622   :  { %2407 = vmatpush.msra.mxu0 %v9111_v11  ;;  %v9074_v11 = vld [vmem:[%s17281_s3 + $0x1728] sm:$0xff] }
 0x624   :  { %2408 = vmatpush.msra.mxu0 %v9110_v12  ;;  %v9073_v12 = vld [vmem:[%s17281_s3 + $0x1720] sm:$0xff] }
 0x626   :  { %2409 = vmatpush.msra.mxu0 %v9109_v13  ;;  %v9072_v13 = vld [vmem:[%s17281_s3 + $0x1718] sm:$0xff] }
 0x628   :  { %2410 = vmatpush.msra.mxu0 %v9108_v15  ;;  %v9071_v15 = vld [vmem:[%s17281_s3 + $0x1710] sm:$0xff] }
 0x62a   :  { %2411 = vmatpush.msra.mxu0 %v9107_v17  ;;  %v9070_v17 = vld [vmem:[%s17281_s3 + $0x1708] sm:$0xff] }
 0x62c   :  { %2412 = vmatpush.msra.mxu0 %v9106_v18  ;;  %v12979_v20 = vpop.f32.mrf.mxu0  ;;  %v9069_v18 = vld [vmem:[%s17281_s3 + $0x1700] sm:$0xff] }
 0x62e   :  { %2413 = vmatpush.msra.mxu0 %v9105_v19  ;;  %v9136_v19 = vld [vmem:[%s17281_s3 + $0x18f8] sm:$0xff] }
 0x62f   :  { %2414 = vmatmul.f32.vlgmr.msra.gmra.mxu0 %v10997_v48 }
 0x634   :  { %v12981_v21 = vpop.f32.mrf.mxu0 }
 0x64c   :  { %v1938_v27 = vpop.f32.mrf.mxu0 }
 0x64d   :  { %v1939_v0 = vadd.f32 %v1938_v27, %v1919_v26  ;;  %v9131_v26 = vld [vmem:[%s17281_s3 + $0x18d0] sm:$0xff]  ;;  %v9130_v27 = vld [vmem:[%s17281_s3 + $0x18c8] sm:$0xff] }
 0x64f   :  { %1965 = vmatpush.msrb.mxu1 %v1939_v0  ;;  %v9129_v0 = vld [vmem:[%s17281_s3 + $0x18c0] sm:$0xff] }
 0x650   :  { %8967 = vmatmul.msk.f32.vlgmr.msrb.gmra.mxu1 %vm484_vm5, %v8965_v30  ;;  %v9128_v30 = vld [vmem:[%s17281_s3 + $0x18b8] sm:$0xff] }
 0x651   :  { %2100 = vmatpush.msra.mxu1 %v9032_v31  ;;  %v9127_v31 = vld [vmem:[%s17281_s3 + $0x18b0] sm:$0xff] }
 0x653   :  { %2101 = vmatpush.msra.mxu1 %v9031_v32  ;;  %v9126_v32 = vld [vmem:[%s17281_s3 + $0x18a8] sm:$0xff] }
 0x655   :  { %2102 = vmatpush.msra.mxu1 %v9030_v33  ;;  %v9125_v33 = vld [vmem:[%s17281_s3 + $0x18a0] sm:$0xff] }
 0x657   :  { %2103 = vmatpush.msra.mxu1 %v9029_v36  ;;  %v9124_v36 = vld [vmem:[%s17281_s3 + $0x1898] sm:$0xff] }
 0x658   :  { %8968 = vmatmul.msk.f32.gmra.mxu1 %vm484_vm5, %v8966_v37  ;;  %v9123_v37 = vld [vmem:[%s17281_s3 + $0x1890] sm:$0xff] }
 0x659   :  { %2104 = vmatpush.msra.mxu1 %v9028_v40  ;;  %v9122_v40 = vld [vmem:[%s17281_s3 + $0x1888] sm:$0xff] }
 0x65b   :  { %2105 = vmatpush.msra.mxu1 %v9027_v41  ;;  %v9121_v41 = vld [vmem:[%s17281_s3 + $0x1880] sm:$0xff] }
 0x65d   :  { %2106 = vmatpush.msra.mxu1 %v9026_v42  ;;  %v9188_v42 = vld [vmem:[%s17281_s3 + $0x1a78] sm:$0xff] }
 0x65f   :  { %2107 = vmatpush.msra.mxu1 %v9025_v43  ;;  %v9187_v43 = vld [vmem:[%s17281_s3 + $0x1a70] sm:$0xff] }
 0x661   :  { %2108 = vmatpush.msra.mxu1 %v9024_v44  ;;  %v9186_v44 = vld [vmem:[%s17281_s3 + $0x1a68] sm:$0xff] }
 0x663   :  { %2109 = vmatpush.msra.mxu1 %v9023_v45  ;;  %v9185_v45 = vld [vmem:[%s17281_s3 + $0x1a60] sm:$0xff] }
 0x665   :  { %2110 = vmatpush.msra.mxu1 %v9022_v46  ;;  %v9184_v46 = vld [vmem:[%s17281_s3 + $0x1a58] sm:$0xff] }
 0x667   :  { %2111 = vmatpush.msra.mxu1 %v9021_v47  ;;  %v9183_v47 = vld [vmem:[%s17281_s3 + $0x1a50] sm:$0xff] }
 0x669   :  { %2112 = vmatpush.msra.mxu1 %v9020_v50  ;;  %v9182_v50 = vld [vmem:[%s17281_s3 + $0x1a48] sm:$0xff] }
 0x66b   :  { %2113 = vmatpush.msra.mxu1 %v9019_v51  ;;  %v9181_v51 = vld [vmem:[%s17281_s3 + $0x1a40] sm:$0xff] }
 0x66d   :  { %2114 = vmatpush.msra.mxu1 %v9018_v52  ;;  %v9180_v52 = vld [vmem:[%s17281_s3 + $0x1a38] sm:$0xff] }
 0x66f   :  { %2115 = vmatpush.msra.mxu1 %v9017_v53  ;;  %v9179_v53 = vld [vmem:[%s17281_s3 + $0x1a30] sm:$0xff] }
 0x670   :  { %2116 = vmatmul.f32.vlgmr.msra.gmra.mxu1 %v11011_v59 }
 0x671   :  { %2259 = vmatpush.msrb.mxu1 %v9084_v60  ;;  %v9178_v60 = vld [vmem:[%s17281_s3 + $0x1a28] sm:$0xff] }
 0x673   :  { %2260 = vmatpush.msrb.mxu1 %v9083_v61  ;;  %v9177_v61 = vld [vmem:[%s17281_s3 + $0x1a20] sm:$0xff] }
 0x675   :  { %2261 = vmatpush.msrb.mxu1 %v9082_v62  ;;  %v9176_v62 = vld [vmem:[%s17281_s3 + $0x1a18] sm:$0xff] }
 0x677   :  { %2262 = vmatpush.msrb.mxu1 %v9081_v63  ;;  %v9175_v63 = vld [vmem:[%s17281_s3 + $0x1a10] sm:$0xff] }
 0x679   :  { %2263 = vmatpush.msrb.mxu1 %v9080_v1  ;;  %v9174_v1 = vld [vmem:[%s17281_s3 + $0x1a08] sm:$0xff] }
 0x67b   :  { %2264 = vmatpush.msrb.mxu1 %v9079_v6  ;;  %v9173_v6 = vld [vmem:[%s17281_s3 + $0x1a00] sm:$0xff] }
 0x67d   :  { %2265 = vmatpush.msrb.mxu1 %v9078_v7 }
 0x67f   :  { %2266 = vmatpush.msrb.mxu1 %v9077_v8 }
 0x681   :  { %2267 = vmatpush.msrb.mxu1 %v9076_v9  ;;  %v2077_v9 = vpop.f32.mrf.mxu3 }
 0x683   :  { %2268 = vmatpush.msrb.mxu1 %v9075_v10  ;;  %v2057_v10 = vpop.f32.mrf.mxu2 }
 0x685   :  { %2269 = vmatpush.msrb.mxu1 %v9074_v11  ;;  %v2097_v11 = vpop.f32.mrf.mxu0 }
 0x687   :  { %2270 = vmatpush.msrb.mxu1 %v9073_v12  ;;  %v2078_v12 = vadd.f32 %v2077_v9, %v2057_v10  ;;  %v9137_v9 = vld [vmem:[%s17281_s3 + $0x1900] sm:$0xff]  ;;  %v9204_v10 = vld [vmem:[%s17281_s3 + $0x1af8] sm:$0xff] }
 0x689   :  { %2271 = vmatpush.msrb.mxu1 %v9072_v13  ;;  %v2098_v13 = vadd.f32 %v2097_v11, %v2078_v12  ;;  %v9203_v11 = vld [vmem:[%s17281_s3 + $0x1af0] sm:$0xff]  ;;  %v9202_v12 = vld [vmem:[%s17281_s3 + $0x1ae8] sm:$0xff] }
 0x68b   :  { %2272 = vmatpush.msrb.mxu1 %v9071_v15 }
 0x68d   :  { %2273 = vmatpush.msrb.mxu1 %v9070_v17 }
 0x68f   :  { %2274 = vmatpush.msrb.mxu1 %v9069_v18  ;;  %v9033_v18 = vld [vmem:[%s17283_s4 + $0xa0] sm:$0xff] }
 0x690   :  { %2275 = vmatmul.f32.vlgmr.msrb.gmra.mxu1 %v11006_v57 }
 0x691   :  { %2418 = vmatpush.msra.mxu1 %v9136_v19  ;;  %v9100_v19 = vld [vmem:[%s17281_s3 + $0x17f8] sm:$0xff] }
 0x693   :  { %2419 = vmatpush.msra.mxu1 %v9135_v22  ;;  %v9099_v22 = vld [vmem:[%s17281_s3 + $0x17f0] sm:$0xff] }
 0x695   :  { %2420 = vmatpush.msra.mxu1 %v9134_v23  ;;  %v9098_v23 = vld [vmem:[%s17281_s3 + $0x17e8] sm:$0xff] }
 0x697   :  { %2421 = vmatpush.msra.mxu1 %v9133_v24  ;;  %v9097_v24 = vld [vmem:[%s17281_s3 + $0x17e0] sm:$0xff] }
 0x699   :  { %2422 = vmatpush.msra.mxu1 %v9132_v25  ;;  %v9034_v25 = vld [vmem:[%s17283_s4 + $0xa8] sm:$0xff] }
 0x69b   :  { %2423 = vmatpush.msra.mxu1 %v9131_v26  ;;  %v9096_v26 = vld [vmem:[%s17281_s3 + $0x17d8] sm:$0xff] }
 0x69d   :  { %2424 = vmatpush.msra.mxu1 %v9130_v27  ;;  %v9095_v27 = vld [vmem:[%s17281_s3 + $0x17d0] sm:$0xff] }
 0x69f   :  { %2425 = vmatpush.msra.mxu1 %v9129_v0  ;;  %v9094_v0 = vld [vmem:[%s17281_s3 + $0x17c8] sm:$0xff] }
 0x6a1   :  { %2426 = vmatpush.msra.mxu1 %v9128_v30  ;;  %v9093_v30 = vld [vmem:[%s17281_s3 + $0x17c0] sm:$0xff] }
 0x6a3   :  { %2427 = vmatpush.msra.mxu1 %v9127_v31  ;;  %v9092_v31 = vld [vmem:[%s17281_s3 + $0x17b8] sm:$0xff] }
 0x6a5   :  { %2428 = vmatpush.msra.mxu1 %v9126_v32  ;;  %v9091_v32 = vld [vmem:[%s17281_s3 + $0x17b0] sm:$0xff] }
 0x6a7   :  { %2429 = vmatpush.msra.mxu1 %v9125_v33  ;;  %v9090_v33 = vld [vmem:[%s17281_s3 + $0x17a8] sm:$0xff] }
 0x6a9   :  { %2430 = vmatpush.msra.mxu1 %v9124_v36  ;;  %v9089_v36 = vld [vmem:[%s17281_s3 + $0x17a0] sm:$0xff] }
 0x6ab   :  { %2431 = vmatpush.msra.mxu1 %v9123_v37  ;;  %v9088_v37 = vld [vmem:[%s17281_s3 + $0x1798] sm:$0xff] }
 0x6ad   :  { %2432 = vmatpush.msra.mxu1 %v9122_v40  ;;  %v9087_v40 = vld [vmem:[%s17281_s3 + $0x1790] sm:$0xff] }
 0x6af   :  { %2433 = vmatpush.msra.mxu1 %v9121_v41  ;;  %v9086_v41 = vld [vmem:[%s17281_s3 + $0x1788] sm:$0xff] }
 0x6b0   :  { %2434 = vmatmul.f32.vlgmr.msra.gmra.mxu1 %v10999_v49 }
 0x6b1   :  { %2577 = vmatpush.msrb.mxu1 %v9188_v42  ;;  %v9085_v42 = vld [vmem:[%s17281_s3 + $0x1780] sm:$0xff] }
 0x6b3   :  { %2578 = vmatpush.msrb.mxu1 %v9187_v43  ;;  %v9152_v43 = vld [vmem:[%s17281_s3 + $0x1978] sm:$0xff] }
 0x6b5   :  { %2579 = vmatpush.msrb.mxu1 %v9186_v44  ;;  %v9151_v44 = vld [vmem:[%s17281_s3 + $0x1970] sm:$0xff] }
 0x6b7   :  { %2580 = vmatpush.msrb.mxu1 %v9185_v45  ;;  %v9150_v45 = vld [vmem:[%s17281_s3 + $0x1968] sm:$0xff] }
 0x6b9   :  { %2581 = vmatpush.msrb.mxu1 %v9184_v46  ;;  %v9149_v46 = vld [vmem:[%s17281_s3 + $0x1960] sm:$0xff] }
 0x6bb   :  { %2582 = vmatpush.msrb.mxu1 %v9183_v47  ;;  %v9148_v47 = vld [vmem:[%s17281_s3 + $0x1958] sm:$0xff] }
 0x6bd   :  { %2583 = vmatpush.msrb.mxu1 %v9182_v50  ;;  %v9147_v50 = vld [vmem:[%s17281_s3 + $0x1950] sm:$0xff] }
 0x6bf   :  { %2584 = vmatpush.msrb.mxu1 %v9181_v51  ;;  %v9146_v51 = vld [vmem:[%s17281_s3 + $0x1948] sm:$0xff] }
 0x6c1   :  { %2585 = vmatpush.msrb.mxu1 %v9180_v52  ;;  %v9145_v52 = vld [vmem:[%s17281_s3 + $0x1940] sm:$0xff] }
 0x6c3   :  { %2586 = vmatpush.msrb.mxu1 %v9179_v53  ;;  %v9144_v53 = vld [vmem:[%s17281_s3 + $0x1938] sm:$0xff] }
 0x6c5   :  { %2587 = vmatpush.msrb.mxu1 %v9178_v60  ;;  %v9143_v60 = vld [vmem:[%s17281_s3 + $0x1930] sm:$0xff] }
 0x6c7   :  { %2588 = vmatpush.msrb.mxu1 %v9177_v61  ;;  %v9142_v61 = vld [vmem:[%s17281_s3 + $0x1928] sm:$0xff] }
 0x6c9   :  { %2589 = vmatpush.msrb.mxu1 %v9176_v62  ;;  %v9141_v62 = vld [vmem:[%s17281_s3 + $0x1920] sm:$0xff] }
 0x6cb   :  { %2590 = vmatpush.msrb.mxu1 %v9175_v63  ;;  %v9140_v63 = vld [vmem:[%s17281_s3 + $0x1918] sm:$0xff] }
 0x6cd   :  { %2591 = vmatpush.msrb.mxu1 %v9174_v1  ;;  %v13187_v7 = vpop.f32.mrf.mxu1  ;;  %v9139_v1 = vld [vmem:[%s17281_s3 + $0x1910] sm:$0xff] }
 0x6cf   :  { %2592 = vmatpush.msrb.mxu1 %v9173_v6  ;;  %v9138_v6 = vld [vmem:[%s17281_s3 + $0x1908] sm:$0xff] }
 0x6d0   :  { %2593 = vmatmul.f32.vlgmr.msrb.gmra.mxu1 %v10997_v48 }
 0x6d5   :  { %v13189_v8 = vpop.f32.mrf.mxu1 }
 0x6ed   :  { %v2117_v15 = vpop.f32.mrf.mxu1 }
 0x6ee   :  { %v2118_v17 = vadd.f32 %v2117_v15, %v2098_v13  ;;  %v9201_v13 = vld [vmem:[%s17281_s3 + $0x1ae0] sm:$0xff]  ;;  %v9200_v15 = vld [vmem:[%s17281_s3 + $0x1ad8] sm:$0xff] }
 0x6f0   :  { %2144 = vmatpush.msra.mxu2 %v2118_v17  ;;  %v9199_v17 = vld [vmem:[%s17281_s3 + $0x1ad0] sm:$0xff] }
 0x6f1   :  { %9035 = vmatmul.msk.f32.vlgmr.msra.gmra.mxu2 %vm484_vm5, %v9033_v18  ;;  %v9198_v18 = vld [vmem:[%s17281_s3 + $0x1ac8] sm:$0xff] }
 0x6f2   :  { %2279 = vmatpush.msrb.mxu2 %v9100_v19  ;;  %v9197_v19 = vld [vmem:[%s17281_s3 + $0x1ac0] sm:$0xff] }
 0x6f4   :  { %2280 = vmatpush.msrb.mxu2 %v9099_v22  ;;  %v9196_v22 = vld [vmem:[%s17281_s3 + $0x1ab8] sm:$0xff] }
 0x6f6   :  { %2281 = vmatpush.msrb.mxu2 %v9098_v23  ;;  %v9195_v23 = vld [vmem:[%s17281_s3 + $0x1ab0] sm:$0xff] }
 0x6f8   :  { %2282 = vmatpush.msrb.mxu2 %v9097_v24  ;;  %v9194_v24 = vld [vmem:[%s17281_s3 + $0x1aa8] sm:$0xff] }
 0x6f9   :  { %9036 = vmatmul.msk.f32.gmra.mxu2 %vm484_vm5, %v9034_v25  ;;  %v9193_v25 = vld [vmem:[%s17281_s3 + $0x1aa0] sm:$0xff] }
 0x6fa   :  { %2283 = vmatpush.msrb.mxu2 %v9096_v26  ;;  %v9192_v26 = vld [vmem:[%s17281_s3 + $0x1a98] sm:$0xff] }
 0x6fc   :  { %2284 = vmatpush.msrb.mxu2 %v9095_v27  ;;  %v9191_v27 = vld [vmem:[%s17281_s3 + $0x1a90] sm:$0xff] }
 0x6fe   :  { %2285 = vmatpush.msrb.mxu2 %v9094_v0  ;;  %v9190_v0 = vld [vmem:[%s17281_s3 + $0x1a88] sm:$0xff] }
 0x700   :  { %2286 = vmatpush.msrb.mxu2 %v9093_v30  ;;  %v9189_v30 = vld [vmem:[%s17281_s3 + $0x1a80] sm:$0xff] }
 0x702   :  { %2287 = vmatpush.msrb.mxu2 %v9092_v31  ;;  %v9256_v31 = vld [vmem:[%s17281_s3 + $0x1c78] sm:$0xff] }
 0x704   :  { %2288 = vmatpush.msrb.mxu2 %v9091_v32  ;;  %v9255_v32 = vld [vmem:[%s17281_s3 + $0x1c70] sm:$0xff] }
 0x706   :  { %2289 = vmatpush.msrb.mxu2 %v9090_v33  ;;  %v9254_v33 = vld [vmem:[%s17281_s3 + $0x1c68] sm:$0xff] }
 0x708   :  { %2290 = vmatpush.msrb.mxu2 %v9089_v36  ;;  %v9253_v36 = vld [vmem:[%s17281_s3 + $0x1c60] sm:$0xff] }
 0x70a   :  { %2291 = vmatpush.msrb.mxu2 %v9088_v37  ;;  %v9252_v37 = vld [vmem:[%s17281_s3 + $0x1c58] sm:$0xff] }
 0x70c   :  { %2292 = vmatpush.msrb.mxu2 %v9087_v40  ;;  %v9251_v40 = vld [vmem:[%s17281_s3 + $0x1c50] sm:$0xff] }
 0x70e   :  { %2293 = vmatpush.msrb.mxu2 %v9086_v41  ;;  %v9250_v41 = vld [vmem:[%s17281_s3 + $0x1c48] sm:$0xff] }
 0x710   :  { %2294 = vmatpush.msrb.mxu2 %v9085_v42  ;;  %v9249_v42 = vld [vmem:[%s17281_s3 + $0x1c40] sm:$0xff] }
 0x711   :  { %2295 = vmatmul.f32.vlgmr.msrb.gmra.mxu2 %v11011_v59 }
 0x712   :  { %2438 = vmatpush.msra.mxu2 %v9152_v43  ;;  %v9248_v43 = vld [vmem:[%s17281_s3 + $0x1c38] sm:$0xff] }
 0x714   :  { %2439 = vmatpush.msra.mxu2 %v9151_v44  ;;  %v9247_v44 = vld [vmem:[%s17281_s3 + $0x1c30] sm:$0xff] }
 0x716   :  { %2440 = vmatpush.msra.mxu2 %v9150_v45  ;;  %v9246_v45 = vld [vmem:[%s17281_s3 + $0x1c28] sm:$0xff] }
 0x718   :  { %2441 = vmatpush.msra.mxu2 %v9149_v46  ;;  %v9245_v46 = vld [vmem:[%s17281_s3 + $0x1c20] sm:$0xff] }
 0x71a   :  { %2442 = vmatpush.msra.mxu2 %v9148_v47  ;;  %v9244_v47 = vld [vmem:[%s17281_s3 + $0x1c18] sm:$0xff] }
 0x71c   :  { %2443 = vmatpush.msra.mxu2 %v9147_v50  ;;  %v9243_v50 = vld [vmem:[%s17281_s3 + $0x1c10] sm:$0xff] }
 0x71e   :  { %2444 = vmatpush.msra.mxu2 %v9146_v51  ;;  %v9242_v51 = vld [vmem:[%s17281_s3 + $0x1c08] sm:$0xff] }
 0x720   :  { %2445 = vmatpush.msra.mxu2 %v9145_v52  ;;  %v9241_v52 = vld [vmem:[%s17281_s3 + $0x1c00] sm:$0xff] }
 0x722   :  { %2446 = vmatpush.msra.mxu2 %v9144_v53 }
 0x724   :  { %2447 = vmatpush.msra.mxu2 %v9143_v60 }
 0x726   :  { %2448 = vmatpush.msra.mxu2 %v9142_v61  ;;  %v2256_v61 = vpop.f32.mrf.mxu0 }
 0x728   :  { %2449 = vmatpush.msra.mxu2 %v9141_v62  ;;  %v2236_v62 = vpop.f32.mrf.mxu3 }
 0x72a   :  { %2450 = vmatpush.msra.mxu2 %v9140_v63  ;;  %v2276_v63 = vpop.f32.mrf.mxu1 }
 0x72c   :  { %2451 = vmatpush.msra.mxu2 %v9139_v1  ;;  %v2257_v1 = vadd.f32 %v2256_v61, %v2236_v62  ;;  %v9207_v61 = vld [vmem:[%s17281_s3 + $0x1b10] sm:$0xff]  ;;  %v9206_v62 = vld [vmem:[%s17281_s3 + $0x1b08] sm:$0xff] }
 0x72e   :  { %2452 = vmatpush.msra.mxu2 %v9138_v6  ;;  %v2277_v6 = vadd.f32 %v2276_v63, %v2257_v1  ;;  %v9205_v63 = vld [vmem:[%s17281_s3 + $0x1b00] sm:$0xff]  ;;  %v9272_v1 = vld [vmem:[%s17281_s3 + $0x1cf8] sm:$0xff] }
 0x730   :  { %2453 = vmatpush.msra.mxu2 %v9137_v9 }
 0x731   :  { %2454 = vmatmul.f32.vlgmr.msra.gmra.mxu2 %v11006_v57 }
 0x732   :  { %2597 = vmatpush.msrb.mxu2 %v9204_v10 }
 0x734   :  { %2598 = vmatpush.msrb.mxu2 %v9203_v11  ;;  %v9101_v11 = vld [vmem:[%s17283_s4 + $0xb0] sm:$0xff] }
 0x736   :  { %2599 = vmatpush.msrb.mxu2 %v9202_v12  ;;  %v9168_v12 = vld [vmem:[%s17281_s3 + $0x19f8] sm:$0xff] }
 0x738   :  { %2600 = vmatpush.msrb.mxu2 %v9201_v13  ;;  %v9167_v13 = vld [vmem:[%s17281_s3 + $0x19f0] sm:$0xff] }
 0x73a   :  { %2601 = vmatpush.msrb.mxu2 %v9200_v15  ;;  %v9166_v15 = vld [vmem:[%s17281_s3 + $0x19e8] sm:$0xff] }
 0x73c   :  { %2602 = vmatpush.msrb.mxu2 %v9199_v17  ;;  %v9165_v17 = vld [vmem:[%s17281_s3 + $0x19e0] sm:$0xff] }
 0x73e   :  { %2603 = vmatpush.msrb.mxu2 %v9198_v18  ;;  %v9102_v18 = vld [vmem:[%s17283_s4 + $0xb8] sm:$0xff] }
 0x740   :  { %2604 = vmatpush.msrb.mxu2 %v9197_v19  ;;  %v9164_v19 = vld [vmem:[%s17281_s3 + $0x19d8] sm:$0xff] }
 0x742   :  { %2605 = vmatpush.msrb.mxu2 %v9196_v22  ;;  %v9163_v22 = vld [vmem:[%s17281_s3 + $0x19d0] sm:$0xff] }
 0x744   :  { %2606 = vmatpush.msrb.mxu2 %v9195_v23  ;;  %v9162_v23 = vld [vmem:[%s17281_s3 + $0x19c8] sm:$0xff] }
 0x746   :  { %2607 = vmatpush.msrb.mxu2 %v9194_v24  ;;  %v9161_v24 = vld [vmem:[%s17281_s3 + $0x19c0] sm:$0xff] }
 0x748   :  { %2608 = vmatpush.msrb.mxu2 %v9193_v25  ;;  %v9160_v25 = vld [vmem:[%s17281_s3 + $0x19b8] sm:$0xff] }
 0x74a   :  { %2609 = vmatpush.msrb.mxu2 %v9192_v26  ;;  %v9159_v26 = vld [vmem:[%s17281_s3 + $0x19b0] sm:$0xff] }
 0x74c   :  { %2610 = vmatpush.msrb.mxu2 %v9191_v27  ;;  %v9158_v27 = vld [vmem:[%s17281_s3 + $0x19a8] sm:$0xff] }
 0x74e   :  { %2611 = vmatpush.msrb.mxu2 %v9190_v0  ;;  %v9157_v0 = vld [vmem:[%s17281_s3 + $0x19a0] sm:$0xff] }
 0x750   :  { %2612 = vmatpush.msrb.mxu2 %v9189_v30  ;;  %v9156_v30 = vld [vmem:[%s17281_s3 + $0x1998] sm:$0xff] }
 0x751   :  { %2613 = vmatmul.f32.vlgmr.msrb.gmra.mxu2 %v10999_v49 }
 0x752   :  { %2756 = vmatpush.msra.mxu2 %v9256_v31  ;;  %v9155_v31 = vld [vmem:[%s17281_s3 + $0x1990] sm:$0xff] }
 0x754   :  { %2757 = vmatpush.msra.mxu2 %v9255_v32  ;;  %v9154_v32 = vld [vmem:[%s17281_s3 + $0x1988] sm:$0xff] }
 0x756   :  { %2758 = vmatpush.msra.mxu2 %v9254_v33  ;;  %v9153_v33 = vld [vmem:[%s17281_s3 + $0x1980] sm:$0xff] }
 0x758   :  { %2759 = vmatpush.msra.mxu2 %v9253_v36  ;;  %v9220_v36 = vld [vmem:[%s17281_s3 + $0x1b78] sm:$0xff] }
 0x75a   :  { %2760 = vmatpush.msra.mxu2 %v9252_v37  ;;  %v9219_v37 = vld [vmem:[%s17281_s3 + $0x1b70] sm:$0xff] }
 0x75c   :  { %2761 = vmatpush.msra.mxu2 %v9251_v40  ;;  %v9218_v40 = vld [vmem:[%s17281_s3 + $0x1b68] sm:$0xff] }
 0x75e   :  { %2762 = vmatpush.msra.mxu2 %v9250_v41  ;;  %v9217_v41 = vld [vmem:[%s17281_s3 + $0x1b60] sm:$0xff] }
 0x760   :  { %2763 = vmatpush.msra.mxu2 %v9249_v42  ;;  %v9216_v42 = vld [vmem:[%s17281_s3 + $0x1b58] sm:$0xff] }
 0x762   :  { %2764 = vmatpush.msra.mxu2 %v9248_v43  ;;  %v9215_v43 = vld [vmem:[%s17281_s3 + $0x1b50] sm:$0xff] }
 0x764   :  { %2765 = vmatpush.msra.mxu2 %v9247_v44  ;;  %v9214_v44 = vld [vmem:[%s17281_s3 + $0x1b48] sm:$0xff] }
 0x766   :  { %2766 = vmatpush.msra.mxu2 %v9246_v45  ;;  %v9213_v45 = vld [vmem:[%s17281_s3 + $0x1b40] sm:$0xff] }
 0x768   :  { %2767 = vmatpush.msra.mxu2 %v9245_v46  ;;  %v9212_v46 = vld [vmem:[%s17281_s3 + $0x1b38] sm:$0xff] }
 0x76a   :  { %2768 = vmatpush.msra.mxu2 %v9244_v47  ;;  %v9211_v47 = vld [vmem:[%s17281_s3 + $0x1b30] sm:$0xff] }
 0x76c   :  { %2769 = vmatpush.msra.mxu2 %v9243_v50  ;;  %v9210_v50 = vld [vmem:[%s17281_s3 + $0x1b28] sm:$0xff] }
 0x76e   :  { %2770 = vmatpush.msra.mxu2 %v9242_v51  ;;  %v9209_v51 = vld [vmem:[%s17281_s3 + $0x1b20] sm:$0xff] }
 0x770   :  { %2771 = vmatpush.msra.mxu2 %v9241_v52  ;;  %v9208_v52 = vld [vmem:[%s17281_s3 + $0x1b18] sm:$0xff] }
 0x771   :  { %2772 = vmatmul.f32.vlgmr.msra.gmra.mxu2 %v10997_v48 }
 0x774   :  { %v13395_v53 = vpop.f32.mrf.mxu2 }
 0x77c   :  { %v13397_v60 = vpop.f32.mrf.mxu2 }
 0x794   :  { %v2296_v9 = vpop.f32.mrf.mxu2 }
 0x795   :  { %v2297_v10 = vadd.f32 %v2296_v9, %v2277_v6  ;;  %v9271_v6 = vld [vmem:[%s17281_s3 + $0x1cf0] sm:$0xff]  ;;  %v9270_v9 = vld [vmem:[%s17281_s3 + $0x1ce8] sm:$0xff] }
 0x797   :  { %2323 = vmatpush.msrb.mxu3 %v2297_v10  ;;  %v9269_v10 = vld [vmem:[%s17281_s3 + $0x1ce0] sm:$0xff] }
 0x798   :  { %9103 = vmatmul.msk.f32.vlgmr.msrb.gmra.mxu3 %vm484_vm5, %v9101_v11  ;;  %v9268_v11 = vld [vmem:[%s17281_s3 + $0x1cd8] sm:$0xff] }
 0x799   :  { %2458 = vmatpush.msra.mxu3 %v9168_v12  ;;  %v9267_v12 = vld [vmem:[%s17281_s3 + $0x1cd0] sm:$0xff] }
 0x79b   :  { %2459 = vmatpush.msra.mxu3 %v9167_v13  ;;  %v9266_v13 = vld [vmem:[%s17281_s3 + $0x1cc8] sm:$0xff] }
 0x79d   :  { %2460 = vmatpush.msra.mxu3 %v9166_v15  ;;  %v9265_v15 = vld [vmem:[%s17281_s3 + $0x1cc0] sm:$0xff] }
 0x79f   :  { %2461 = vmatpush.msra.mxu3 %v9165_v17  ;;  %v9264_v17 = vld [vmem:[%s17281_s3 + $0x1cb8] sm:$0xff] }
 0x7a0   :  { %9104 = vmatmul.msk.f32.gmra.mxu3 %vm484_vm5, %v9102_v18  ;;  %v9263_v18 = vld [vmem:[%s17281_s3 + $0x1cb0] sm:$0xff] }
 0x7a1   :  { %2462 = vmatpush.msra.mxu3 %v9164_v19  ;;  %v9262_v19 = vld [vmem:[%s17281_s3 + $0x1ca8] sm:$0xff] }
 0x7a3   :  { %2463 = vmatpush.msra.mxu3 %v9163_v22  ;;  %v9261_v22 = vld [vmem:[%s17281_s3 + $0x1ca0] sm:$0xff] }
 0x7a5   :  { %2464 = vmatpush.msra.mxu3 %v9162_v23  ;;  %v9260_v23 = vld [vmem:[%s17281_s3 + $0x1c98] sm:$0xff] }
 0x7a7   :  { %2465 = vmatpush.msra.mxu3 %v9161_v24  ;;  %v9259_v24 = vld [vmem:[%s17281_s3 + $0x1c90] sm:$0xff] }
 0x7a9   :  { %2466 = vmatpush.msra.mxu3 %v9160_v25  ;;  %v9258_v25 = vld [vmem:[%s17281_s3 + $0x1c88] sm:$0xff] }
 0x7ab   :  { %2467 = vmatpush.msra.mxu3 %v9159_v26  ;;  %v9257_v26 = vld [vmem:[%s17281_s3 + $0x1c80] sm:$0xff] }
 0x7ad   :  { %2468 = vmatpush.msra.mxu3 %v9158_v27  ;;  %v9324_v27 = vld [vmem:[%s17281_s3 + $0x1e78] sm:$0xff] }
 0x7af   :  { %2469 = vmatpush.msra.mxu3 %v9157_v0  ;;  %v9323_v0 = vld [vmem:[%s17281_s3 + $0x1e70] sm:$0xff] }
 0x7b1   :  { %2470 = vmatpush.msra.mxu3 %v9156_v30  ;;  %v9322_v30 = vld [vmem:[%s17281_s3 + $0x1e68] sm:$0xff] }
 0x7b3   :  { %2471 = vmatpush.msra.mxu3 %v9155_v31  ;;  %v9321_v31 = vld [vmem:[%s17281_s3 + $0x1e60] sm:$0xff] }
 0x7b5   :  { %2472 = vmatpush.msra.mxu3 %v9154_v32  ;;  %v9320_v32 = vld [vmem:[%s17281_s3 + $0x1e58] sm:$0xff] }
 0x7b7   :  { %2473 = vmatpush.msra.mxu3 %v9153_v33  ;;  %v9319_v33 = vld [vmem:[%s17281_s3 + $0x1e50] sm:$0xff] }
 0x7b8   :  { %2474 = vmatmul.f32.vlgmr.msra.gmra.mxu3 %v11011_v59 }
 0x7b9   :  { %2617 = vmatpush.msrb.mxu3 %v9220_v36  ;;  %v9318_v36 = vld [vmem:[%s17281_s3 + $0x1e48] sm:$0xff] }
 0x7bb   :  { %2618 = vmatpush.msrb.mxu3 %v9219_v37  ;;  %v9317_v37 = vld [vmem:[%s17281_s3 + $0x1e40] sm:$0xff] }
 0x7bd   :  { %2619 = vmatpush.msrb.mxu3 %v9218_v40  ;;  %v9316_v40 = vld [vmem:[%s17281_s3 + $0x1e38] sm:$0xff] }
 0x7bf   :  { %2620 = vmatpush.msrb.mxu3 %v9217_v41  ;;  %v9315_v41 = vld [vmem:[%s17281_s3 + $0x1e30] sm:$0xff] }
 0x7c1   :  { %2621 = vmatpush.msrb.mxu3 %v9216_v42  ;;  %v9314_v42 = vld [vmem:[%s17281_s3 + $0x1e28] sm:$0xff] }
 0x7c3   :  { %2622 = vmatpush.msrb.mxu3 %v9215_v43  ;;  %v9313_v43 = vld [vmem:[%s17281_s3 + $0x1e20] sm:$0xff] }
 0x7c5   :  { %2623 = vmatpush.msrb.mxu3 %v9214_v44  ;;  %v9312_v44 = vld [vmem:[%s17281_s3 + $0x1e18] sm:$0xff] }
 0x7c7   :  { %2624 = vmatpush.msrb.mxu3 %v9213_v45  ;;  %v9311_v45 = vld [vmem:[%s17281_s3 + $0x1e10] sm:$0xff] }
 0x7c9   :  { %2625 = vmatpush.msrb.mxu3 %v9212_v46  ;;  %v9310_v46 = vld [vmem:[%s17281_s3 + $0x1e08] sm:$0xff] }
 0x7cb   :  { %2626 = vmatpush.msrb.mxu3 %v9211_v47  ;;  %v9309_v47 = vld [vmem:[%s17281_s3 + $0x1e00] sm:$0xff] }
 0x7cd   :  { %2627 = vmatpush.msrb.mxu3 %v9210_v50 }
 0x7cf   :  { %2628 = vmatpush.msrb.mxu3 %v9209_v51 }
 0x7d1   :  { %2629 = vmatpush.msrb.mxu3 %v9208_v52  ;;  %v2435_v52 = vpop.f32.mrf.mxu1 }
 0x7d3   :  { %2630 = vmatpush.msrb.mxu3 %v9207_v61  ;;  %v2415_v61 = vpop.f32.mrf.mxu0 }
 0x7d5   :  { %2631 = vmatpush.msrb.mxu3 %v9206_v62  ;;  %v2455_v62 = vpop.f32.mrf.mxu2 }
 0x7d7   :  { %2632 = vmatpush.msrb.mxu3 %v9205_v63  ;;  %v2436_v63 = vadd.f32 %v2435_v52, %v2415_v61  ;;  %v9276_v52 = vld [vmem:[%s17281_s3 + $0x1d18] sm:$0xff]  ;;  %v9275_v61 = vld [vmem:[%s17281_s3 + $0x1d10] sm:$0xff] }
 0x7d8   :  { %2633 = vmatmul.f32.vlgmr.msrb.gmra.mxu3 %v11006_v57 }
 0x7d9   :  { %2776 = vmatpush.msra.mxu3 %v9272_v1  ;;  %v2456_v1 = vadd.f32 %v2455_v62, %v2436_v63  ;;  %v9274_v62 = vld [vmem:[%s17281_s3 + $0x1d08] sm:$0xff]  ;;  %v9273_v63 = vld [vmem:[%s17281_s3 + $0x1d00] sm:$0xff] }
 0x7db   :  { %2777 = vmatpush.msra.mxu3 %v9271_v6 }
 0x7dd   :  { %2778 = vmatpush.msra.mxu3 %v9270_v9 }
 0x7df   :  { %2779 = vmatpush.msra.mxu3 %v9269_v10  ;;  %v9169_v10 = vld [vmem:[%s17283_s4 + $0xc0] sm:$0xff] }
 0x7e1   :  { %2780 = vmatpush.msra.mxu3 %v9268_v11  ;;  %v9236_v11 = vld [vmem:[%s17281_s3 + $0x1bf8] sm:$0xff] }
 0x7e3   :  { %2781 = vmatpush.msra.mxu3 %v9267_v12  ;;  %v9234_v12 = vld [vmem:[%s17281_s3 + $0x1be8] sm:$0xff] }
 0x7e5   :  { %2782 = vmatpush.msra.mxu3 %v9266_v13  ;;  %v9233_v13 = vld [vmem:[%s17281_s3 + $0x1be0] sm:$0xff] }
 0x7e7   :  { %2783 = vmatpush.msra.mxu3 %v9265_v15  ;;  %v9170_v15 = vld [vmem:[%s17283_s4 + $0xc8] sm:$0xff] }
 0x7e9   :  { %2784 = vmatpush.msra.mxu3 %v9264_v17  ;;  %v9232_v17 = vld [vmem:[%s17281_s3 + $0x1bd8] sm:$0xff] }
 0x7eb   :  { %2785 = vmatpush.msra.mxu3 %v9263_v18  ;;  %v9231_v18 = vld [vmem:[%s17281_s3 + $0x1bd0] sm:$0xff] }
 0x7ed   :  { %2786 = vmatpush.msra.mxu3 %v9262_v19  ;;  %v9230_v19 = vld [vmem:[%s17281_s3 + $0x1bc8] sm:$0xff] }
 0x7ef   :  { %2787 = vmatpush.msra.mxu3 %v9261_v22  ;;  %v9229_v22 = vld [vmem:[%s17281_s3 + $0x1bc0] sm:$0xff] }
 0x7f1   :  { %2788 = vmatpush.msra.mxu3 %v9260_v23  ;;  %v9228_v23 = vld [vmem:[%s17281_s3 + $0x1bb8] sm:$0xff] }
 0x7f3   :  { %2789 = vmatpush.msra.mxu3 %v9259_v24  ;;  %v9227_v24 = vld [vmem:[%s17281_s3 + $0x1bb0] sm:$0xff] }
 0x7f5   :  { %2790 = vmatpush.msra.mxu3 %v9258_v25  ;;  %v9226_v25 = vld [vmem:[%s17281_s3 + $0x1ba8] sm:$0xff] }
 0x7f7   :  { %2791 = vmatpush.msra.mxu3 %v9257_v26  ;;  %v9225_v26 = vld [vmem:[%s17281_s3 + $0x1ba0] sm:$0xff] }
 0x7f8   :  { %2792 = vmatmul.f32.vlgmr.msra.gmra.mxu3 %v10999_v49 }
 0x7f9   :  { %2935 = vmatpush.msrb.mxu3 %v9324_v27  ;;  %v9224_v27 = vld [vmem:[%s17281_s3 + $0x1b98] sm:$0xff] }
 0x7fb   :  { %2936 = vmatpush.msrb.mxu3 %v9323_v0  ;;  %v9223_v0 = vld [vmem:[%s17281_s3 + $0x1b90] sm:$0xff] }
 0x7fd   :  { %2937 = vmatpush.msrb.mxu3 %v9322_v30  ;;  %v9222_v30 = vld [vmem:[%s17281_s3 + $0x1b88] sm:$0xff] }
 0x7ff   :  { %2938 = vmatpush.msrb.mxu3 %v9321_v31  ;;  %v9221_v31 = vld [vmem:[%s17281_s3 + $0x1b80] sm:$0xff] }
 0x801   :  { %2939 = vmatpush.msrb.mxu3 %v9320_v32  ;;  %v9288_v32 = vld [vmem:[%s17281_s3 + $0x1d78] sm:$0xff] }
 0x803   :  { %2940 = vmatpush.msrb.mxu3 %v9319_v33  ;;  %v9287_v33 = vld [vmem:[%s17281_s3 + $0x1d70] sm:$0xff] }
 0x805   :  { %2941 = vmatpush.msrb.mxu3 %v9318_v36  ;;  %v9286_v36 = vld [vmem:[%s17281_s3 + $0x1d68] sm:$0xff] }
 0x807   :  { %2942 = vmatpush.msrb.mxu3 %v9317_v37  ;;  %v9285_v37 = vld [vmem:[%s17281_s3 + $0x1d60] sm:$0xff] }
 0x809   :  { %2943 = vmatpush.msrb.mxu3 %v9316_v40  ;;  %v9284_v40 = vld [vmem:[%s17281_s3 + $0x1d58] sm:$0xff] }
 0x80b   :  { %2944 = vmatpush.msrb.mxu3 %v9315_v41  ;;  %v9283_v41 = vld [vmem:[%s17281_s3 + $0x1d50] sm:$0xff] }
 0x80d   :  { %2945 = vmatpush.msrb.mxu3 %v9314_v42  ;;  %v9282_v42 = vld [vmem:[%s17281_s3 + $0x1d48] sm:$0xff] }
 0x80f   :  { %2946 = vmatpush.msrb.mxu3 %v9313_v43  ;;  %v9281_v43 = vld [vmem:[%s17281_s3 + $0x1d40] sm:$0xff] }
 0x811   :  { %2947 = vmatpush.msrb.mxu3 %v9312_v44  ;;  %v9280_v44 = vld [vmem:[%s17281_s3 + $0x1d38] sm:$0xff] }
 0x813   :  { %2948 = vmatpush.msrb.mxu3 %v9311_v45  ;;  %v9279_v45 = vld [vmem:[%s17281_s3 + $0x1d30] sm:$0xff] }
 0x815   :  { %2949 = vmatpush.msrb.mxu3 %v9310_v46  ;;  %v9278_v46 = vld [vmem:[%s17281_s3 + $0x1d28] sm:$0xff] }
 0x817   :  { %2950 = vmatpush.msrb.mxu3 %v9309_v47  ;;  %v9277_v47 = vld [vmem:[%s17281_s3 + $0x1d20] sm:$0xff] }
 0x818   :  { %2951 = vmatmul.f32.vlgmr.msrb.gmra.mxu3 %v10997_v48  ;;  %v9235_v48 = vld [vmem:[%s17281_s3 + $0x1bf0] sm:$0xff] }
 0x81b   :  { %v13603_v50 = vpop.f32.mrf.mxu3 }
 0x823   :  { %v13605_v51 = vpop.f32.mrf.mxu3 }
 0x83b   :  { %v2475_v6 = vpop.f32.mrf.mxu3 }
 0x83c   :  { %v2476_v9 = vadd.f32 %v2475_v6, %v2456_v1  ;;  %v9340_v1 = vld [vmem:[%s17281_s3 + $0x1ef8] sm:$0xff]  ;;  %v9339_v6 = vld [vmem:[%s17281_s3 + $0x1ef0] sm:$0xff] }
 0x83e   :  { %2502 = vmatpush.msrb.mxu0 %v2476_v9  ;;  %v9338_v9 = vld [vmem:[%s17281_s3 + $0x1ee8] sm:$0xff] }
 0x83f   :  { %9171 = vmatmul.msk.f32.vlgmr.msrb.gmra.mxu0 %vm484_vm5, %v9169_v10  ;;  %v9337_v10 = vld [vmem:[%s17281_s3 + $0x1ee0] sm:$0xff] }
 0x840   :  { %2637 = vmatpush.msra.mxu0 %v9236_v11  ;;  %v9336_v11 = vld [vmem:[%s17281_s3 + $0x1ed8] sm:$0xff] }
 0x842   :  { %2638 = vmatpush.msra.mxu0 %v9235_v48  ;;  %v9335_v48 = vld [vmem:[%s17281_s3 + $0x1ed0] sm:$0xff] }
 0x844   :  { %2639 = vmatpush.msra.mxu0 %v9234_v12  ;;  %v9334_v12 = vld [vmem:[%s17281_s3 + $0x1ec8] sm:$0xff] }
 0x846   :  { %2640 = vmatpush.msra.mxu0 %v9233_v13  ;;  %v9333_v13 = vld [vmem:[%s17281_s3 + $0x1ec0] sm:$0xff] }
 0x847   :  { %9172 = vmatmul.msk.f32.gmra.mxu0 %vm484_vm5, %v9170_v15  ;;  %v9332_v15 = vld [vmem:[%s17281_s3 + $0x1eb8] sm:$0xff] }
 0x848   :  { %2641 = vmatpush.msra.mxu0 %v9232_v17  ;;  %v9331_v17 = vld [vmem:[%s17281_s3 + $0x1eb0] sm:$0xff] }
 0x84a   :  { %2642 = vmatpush.msra.mxu0 %v9231_v18  ;;  %v9330_v18 = vld [vmem:[%s17281_s3 + $0x1ea8] sm:$0xff] }
 0x84c   :  { %2643 = vmatpush.msra.mxu0 %v9230_v19  ;;  %v9329_v19 = vld [vmem:[%s17281_s3 + $0x1ea0] sm:$0xff] }
 0x84e   :  { %2644 = vmatpush.msra.mxu0 %v9229_v22  ;;  %v9328_v22 = vld [vmem:[%s17281_s3 + $0x1e98] sm:$0xff] }
 0x850   :  { %2645 = vmatpush.msra.mxu0 %v9228_v23  ;;  %v9327_v23 = vld [vmem:[%s17281_s3 + $0x1e90] sm:$0xff] }
 0x852   :  { %2646 = vmatpush.msra.mxu0 %v9227_v24  ;;  %v9326_v24 = vld [vmem:[%s17281_s3 + $0x1e88] sm:$0xff] }
 0x854   :  { %2647 = vmatpush.msra.mxu0 %v9226_v25  ;;  %v9325_v25 = vld [vmem:[%s17281_s3 + $0x1e80] sm:$0xff] }
 0x856   :  { %2648 = vmatpush.msra.mxu0 %v9225_v26 }
 0x858   :  { %2649 = vmatpush.msra.mxu0 %v9224_v27 }
 0x85a   :  { %2650 = vmatpush.msra.mxu0 %v9223_v0  ;;  %v2614_v0 = vpop.f32.mrf.mxu2 }
 0x85c   :  { %2651 = vmatpush.msra.mxu0 %v9222_v30  ;;  %v2594_v30 = vpop.f32.mrf.mxu1 }
 0x85e   :  { %2652 = vmatpush.msra.mxu0 %v9221_v31  ;;  %v2634_v31 = vpop.f32.mrf.mxu3 }
 0x85f   :  { %2653 = vmatmul.f32.vlgmr.msra.gmra.mxu0 %v11011_v59 }
 0x860   :  { %2796 = vmatpush.msrb.mxu0 %v9288_v32  ;;  %v2615_v32 = vadd.f32 %v2614_v0, %v2594_v30  ;;  %v9345_v0 = vld [vmem:[%s17281_s3 + $0x1f20] sm:$0xff]  ;;  %v9344_v30 = vld [vmem:[%s17281_s3 + $0x1f18] sm:$0xff] }
 0x862   :  { %2797 = vmatpush.msrb.mxu0 %v9287_v33  ;;  %v2635_v33 = vadd.f32 %v2634_v31, %v2615_v32  ;;  %v9343_v31 = vld [vmem:[%s17281_s3 + $0x1f10] sm:$0xff]  ;;  %v9342_v32 = vld [vmem:[%s17281_s3 + $0x1f08] sm:$0xff] }
 0x864   :  { %2798 = vmatpush.msrb.mxu0 %v9286_v36 }
 0x866   :  { %2799 = vmatpush.msrb.mxu0 %v9285_v37 }
 0x868   :  { %2800 = vmatpush.msrb.mxu0 %v9284_v40  ;;  %v9237_v40 = vld [vmem:[%s17283_s4 + $0xd0] sm:$0xff] }
 0x86a   :  { %2801 = vmatpush.msrb.mxu0 %v9283_v41  ;;  %v9304_v41 = vld [vmem:[%s17281_s3 + $0x1df8] sm:$0xff] }
 0x86c   :  { %2802 = vmatpush.msrb.mxu0 %v9282_v42  ;;  %v9302_v42 = vld [vmem:[%s17281_s3 + $0x1de8] sm:$0xff] }
 0x86e   :  { %2803 = vmatpush.msrb.mxu0 %v9281_v43  ;;  %v9301_v43 = vld [vmem:[%s17281_s3 + $0x1de0] sm:$0xff] }
 0x870   :  { %2804 = vmatpush.msrb.mxu0 %v9280_v44  ;;  %v9238_v44 = vld [vmem:[%s17283_s4 + $0xd8] sm:$0xff] }
 0x872   :  { %2805 = vmatpush.msrb.mxu0 %v9279_v45  ;;  %v9300_v45 = vld [vmem:[%s17281_s3 + $0x1dd8] sm:$0xff] }
 0x874   :  { %2806 = vmatpush.msrb.mxu0 %v9278_v46  ;;  %v9299_v46 = vld [vmem:[%s17281_s3 + $0x1dd0] sm:$0xff] }
 0x876   :  { %2807 = vmatpush.msrb.mxu0 %v9277_v47  ;;  %v9298_v47 = vld [vmem:[%s17281_s3 + $0x1dc8] sm:$0xff] }
 0x878   :  { %2808 = vmatpush.msrb.mxu0 %v9276_v52  ;;  %v9297_v52 = vld [vmem:[%s17281_s3 + $0x1dc0] sm:$0xff] }
 0x87a   :  { %2809 = vmatpush.msrb.mxu0 %v9275_v61  ;;  %v9296_v61 = vld [vmem:[%s17281_s3 + $0x1db8] sm:$0xff] }
 0x87c   :  { %2810 = vmatpush.msrb.mxu0 %v9274_v62  ;;  %v9295_v62 = vld [vmem:[%s17281_s3 + $0x1db0] sm:$0xff] }
 0x87e   :  { %2811 = vmatpush.msrb.mxu0 %v9273_v63  ;;  %v9294_v63 = vld [vmem:[%s17281_s3 + $0x1da8] sm:$0xff] }
 0x87f   :  { %2812 = vmatmul.f32.vlgmr.msrb.gmra.mxu0 %v11006_v57 }
 0x880   :  { %2955 = vmatpush.msra.mxu0 %v9340_v1  ;;  %v9293_v1 = vld [vmem:[%s17281_s3 + $0x1da0] sm:$0xff] }
 0x882   :  { %2956 = vmatpush.msra.mxu0 %v9339_v6  ;;  %v9292_v6 = vld [vmem:[%s17281_s3 + $0x1d98] sm:$0xff] }
 0x884   :  { %2957 = vmatpush.msra.mxu0 %v9338_v9  ;;  %v9291_v9 = vld [vmem:[%s17281_s3 + $0x1d90] sm:$0xff] }
 0x886   :  { %2958 = vmatpush.msra.mxu0 %v9337_v10  ;;  %v9290_v10 = vld [vmem:[%s17281_s3 + $0x1d88] sm:$0xff] }
 0x888   :  { %2959 = vmatpush.msra.mxu0 %v9336_v11  ;;  %v9289_v11 = vld [vmem:[%s17281_s3 + $0x1d80] sm:$0xff] }
 0x88a   :  { %2960 = vmatpush.msra.mxu0 %v9335_v48  ;;  %v9356_v48 = vld [vmem:[%s17281_s3 + $0x1f78] sm:$0xff] }
 0x88c   :  { %2961 = vmatpush.msra.mxu0 %v9334_v12  ;;  %v9355_v12 = vld [vmem:[%s17281_s3 + $0x1f70] sm:$0xff] }
 0x88e   :  { %2962 = vmatpush.msra.mxu0 %v9333_v13  ;;  %v9354_v13 = vld [vmem:[%s17281_s3 + $0x1f68] sm:$0xff] }
 0x890   :  { %2963 = vmatpush.msra.mxu0 %v9332_v15  ;;  %v9353_v15 = vld [vmem:[%s17281_s3 + $0x1f60] sm:$0xff] }
 0x892   :  { %2964 = vmatpush.msra.mxu0 %v9331_v17  ;;  %v9352_v17 = vld [vmem:[%s17281_s3 + $0x1f58] sm:$0xff] }
 0x894   :  { %2965 = vmatpush.msra.mxu0 %v9330_v18  ;;  %v9351_v18 = vld [vmem:[%s17281_s3 + $0x1f50] sm:$0xff] }
 0x896   :  { %2966 = vmatpush.msra.mxu0 %v9329_v19  ;;  %v9350_v19 = vld [vmem:[%s17281_s3 + $0x1f48] sm:$0xff] }
 0x898   :  { %2967 = vmatpush.msra.mxu0 %v9328_v22  ;;  %v9349_v22 = vld [vmem:[%s17281_s3 + $0x1f40] sm:$0xff] }
 0x89a   :  { %2968 = vmatpush.msra.mxu0 %v9327_v23  ;;  %v9348_v23 = vld [vmem:[%s17281_s3 + $0x1f38] sm:$0xff] }
 0x89c   :  { %2969 = vmatpush.msra.mxu0 %v9326_v24  ;;  %v9347_v24 = vld [vmem:[%s17281_s3 + $0x1f30] sm:$0xff] }
 0x89e   :  { %2970 = vmatpush.msra.mxu0 %v9325_v25  ;;  %v9346_v25 = vld [vmem:[%s17281_s3 + $0x1f28] sm:$0xff] }
 0x89f   :  { %2971 = vmatmul.f32.vlgmr.msra.gmra.mxu0 %v10999_v49  ;;  %v9303_v49 = vld [vmem:[%s17281_s3 + $0x1df0] sm:$0xff] }
 0x8bc   :  { %v13762_v26 = vpop.f32.mrf.mxu0 }
 0x8c4   :  { %v13764_v27 = vpop.f32.mrf.mxu0 }
 0x8dc   :  { %v2654_v36 = vpop.f32.mrf.mxu0 }
 0x8dd   :  { %v2655_v37 = vadd.f32 %v2654_v36, %v2635_v33  ;;  %v9341_v33 = vld [vmem:[%s17281_s3 + $0x1f00] sm:$0xff] }
 0x8df   :  { %2681 = vmatpush.msra.mxu1 %v2655_v37 }
 0x8e0   :  { %9239 = vmatmul.msk.f32.vlgmr.msra.gmra.mxu1 %vm484_vm5, %v9237_v40  ;;  %v2793_v40 = vpop.f32.mrf.mxu3 }
 0x8e1   :  { %2816 = vmatpush.msrb.mxu1 %v9304_v41  ;;  %v2773_v41 = vpop.f32.mrf.mxu2 }
 0x8e3   :  { %2817 = vmatpush.msrb.mxu1 %v9303_v49 }
 0x8e5   :  { %2818 = vmatpush.msrb.mxu1 %v9302_v42  ;;  %v2794_v42 = vadd.f32 %v2793_v40, %v2773_v41 }
 0x8e7   :  { %2819 = vmatpush.msrb.mxu1 %v9301_v43 }
 0x8e8   :  { %9240 = vmatmul.msk.f32.gmra.mxu1 %vm484_vm5, %v9238_v44 }
 0x8e9   :  { %2820 = vmatpush.msrb.mxu1 %v9300_v45 }
 0x8eb   :  { %2821 = vmatpush.msrb.mxu1 %v9299_v46  ;;  %v9305_v46 = vld [vmem:[%s17283_s4 + $0xe0] sm:$0xff] }
 0x8ed   :  { %2822 = vmatpush.msrb.mxu1 %v9298_v47  ;;  %v9372_v47 = vld [vmem:[%s17281_s3 + $0x1ff8] sm:$0xff] }
 0x8ef   :  { %2823 = vmatpush.msrb.mxu1 %v9297_v52  ;;  %v9370_v52 = vld [vmem:[%s17281_s3 + $0x1fe8] sm:$0xff] }
 0x8f1   :  { %2824 = vmatpush.msrb.mxu1 %v9296_v61  ;;  %v9369_v61 = vld [vmem:[%s17281_s3 + $0x1fe0] sm:$0xff] }
 0x8f3   :  { %2825 = vmatpush.msrb.mxu1 %v9295_v62  ;;  %v9306_v62 = vld [vmem:[%s17283_s4 + $0xe8] sm:$0xff] }
 0x8f5   :  { %2826 = vmatpush.msrb.mxu1 %v9294_v63  ;;  %v9368_v63 = vld [vmem:[%s17281_s3 + $0x1fd8] sm:$0xff] }
 0x8f7   :  { %2827 = vmatpush.msrb.mxu1 %v9293_v1  ;;  %v9367_v1 = vld [vmem:[%s17281_s3 + $0x1fd0] sm:$0xff] }
 0x8f9   :  { %2828 = vmatpush.msrb.mxu1 %v9292_v6  ;;  %v9366_v6 = vld [vmem:[%s17281_s3 + $0x1fc8] sm:$0xff] }
 0x8fb   :  { %2829 = vmatpush.msrb.mxu1 %v9291_v9  ;;  %v9365_v9 = vld [vmem:[%s17281_s3 + $0x1fc0] sm:$0xff] }
 0x8fc   :  { %v2813_v49 = vpop.f32.mrf.mxu0 }
 0x8fd   :  { %2830 = vmatpush.msrb.mxu1 %v9290_v10  ;;  %v2814_v43 = vadd.f32 %v2813_v49, %v2794_v42  ;;  %v9364_v10 = vld [vmem:[%s17281_s3 + $0x1fb8] sm:$0xff] }
 0x8ff   :  { %2831 = vmatpush.msrb.mxu1 %v9289_v11  ;;  %v9363_v11 = vld [vmem:[%s17281_s3 + $0x1fb0] sm:$0xff] }
 0x900   :  { %2832 = vmatmul.f32.vlgmr.msrb.gmra.mxu1 %v11011_v59 }
 0x901   :  { %2975 = vmatpush.msra.mxu1 %v9356_v48  ;;  %v9362_v48 = vld [vmem:[%s17281_s3 + $0x1fa8] sm:$0xff] }
 0x903   :  { %2976 = vmatpush.msra.mxu1 %v9355_v12  ;;  %v9361_v12 = vld [vmem:[%s17281_s3 + $0x1fa0] sm:$0xff] }
 0x905   :  { %2977 = vmatpush.msra.mxu1 %v9354_v13  ;;  %v9360_v13 = vld [vmem:[%s17281_s3 + $0x1f98] sm:$0xff] }
 0x907   :  { %2978 = vmatpush.msra.mxu1 %v9353_v15  ;;  %v9359_v15 = vld [vmem:[%s17281_s3 + $0x1f90] sm:$0xff] }
 0x909   :  { %2979 = vmatpush.msra.mxu1 %v9352_v17  ;;  %v9358_v17 = vld [vmem:[%s17281_s3 + $0x1f88] sm:$0xff] }
 0x90b   :  { %2980 = vmatpush.msra.mxu1 %v9351_v18  ;;  %v9357_v18 = vld [vmem:[%s17281_s3 + $0x1f80] sm:$0xff] }
 0x90d   :  { %2981 = vmatpush.msra.mxu1 %v9350_v19  ;;  %v3050_v19 = vld [vmem:[%s17278_s5 + $0x8] sm:$0xff] }
 0x90e   :  { %3058 = vperm.xlu1 %10337, %v3050_v19   ;;  %v3074_v19 = vld [vmem:[%s17284_s6 + $0x28] sm:$0xff] }
 0x90f   :  { %2982 = vmatpush.msra.mxu1 %v9349_v22  ;;  %v4500_v22 = vld [vmem:[%s17280_s8] sm:$0xff] }
 0x911   :  { %2983 = vmatpush.msra.mxu1 %v9348_v23  ;;  %v6391_v23 = vld [vmem:[%s17282_s11] sm:$0xff] }
 0x913   :  { %2984 = vmatpush.msra.mxu1 %v9347_v24  ;;  %v3084_v24 = vld [vmem:[%s17284_s6 + $0x78] sm:$0xff] }
 0x914   :  { %3085 = vmatpush.msrb.mxu0 %v3084_v24  ;;  %v9381_v24 = vld [vmem:[%s17284_s6 + $0xa0] sm:$0xff] }
 0x915   :  { %2985 = vmatpush.msra.mxu1 %v9346_v25 }
 0x916   :  { %4506 = vperm.xlu1 %10337, %v4500_v22   ;;  %v9382_v22 = vld [vmem:[%s17284_s6 + $0xa8] sm:$0xff] }
 0x917   :  { %2986 = vmatpush.msra.mxu1 %v9345_v0  ;;  %v6394_v0 = vld [vmem:[%s17282_s11 + $0x18] sm:$0xff] }
 0x919   :  { %2987 = vmatpush.msra.mxu1 %v9344_v30 }
 0x91b   :  { %2988 = vmatpush.msra.mxu1 %v9343_v31 }
 0x91c   :  { %v2972_v31 = vpop.f32.mrf.mxu0 }
 0x91d   :  { %2989 = vmatpush.msra.mxu1 %v9342_v32  ;;  %v6397_v32 = vld [vmem:[%s17282_s11 + $0x30] sm:$0xff] }
 0x91e   :  { %6401 = vperm.xlu1 %10337, %v6391_v23   ;;  %v3073_v23 = vld [vmem:[%s17284_s6 + $0x20] sm:$0xff] }
 0x91f   :  { %2990 = vmatpush.msra.mxu1 %v9341_v33  ;;  %v2952_v33 = vpop.f32.mrf.mxu3 }
 0x920   :  { %2991 = vmatmul.f32.vlgmr.msra.gmra.mxu1 %v11006_v57  ;;  %v9371_v57 = vld [vmem:[%s17281_s3 + $0x1ff0] sm:$0xff]  ;;  %v2973_v41 = vadd.f32 %v2972_v31, %v2952_v33  ;;  %v3070_v33 = vld [vmem:[%s17284_s6 + $0x8] sm:$0xff] }
 0x921   :  { %v3071_v31 = vld [vmem:[%s17284_s6 + $0x10] sm:$0xff] }
 0x926   :  { %6416 = vperm.xlu1 %10337, %v6394_v0   ;;  %v9380_v0 = vld [vmem:[%s17284_s6 + $0x98] sm:$0xff] }
 0x92e   :  { %6431 = vperm.xlu1 %10337, %v6397_v32   ;;  %v9379_v32 = vld [vmem:[%s17284_s6 + $0x90] sm:$0xff] }
 0x95d   :  { %v13872_v36 = vpop.f32.mrf.mxu1 }
 0x965   :  { %v13874_v37 = vpop.f32.mrf.mxu1 }
 0x97d   :  { %v2833_v44 = vpop.f32.mrf.mxu1 }
 0x97e   :  { %v2834_v45 = vadd.f32 %v2833_v44, %v2814_v43  ;;  %v9373_v44 = vld [vmem:[%s17283_s4 + $0xf0] sm:$0xff] }
 0x980   :  { %2860 = vmatpush.msrb.mxu2 %v2834_v45  ;;  %v9374_v45 = vld [vmem:[%s17283_s4 + $0xf8] sm:$0xff] }
 0x981   :  { %9307 = vmatmul.msk.f32.vlgmr.msrb.gmra.mxu2 %vm484_vm5, %v9305_v46  ;;  %v3083_v46 = vld [vmem:[%s17284_s6 + $0x70] sm:$0xff] }
 0x982   :  { %2995 = vmatpush.msra.mxu2 %v9372_v47  ;;  %v9391_v47 = vld [vmem:[%s17284_s6 + $0xf0] sm:$0xff]  ;;  %3086 = vmatpush.msrb.mxu0 %v3083_v46 }
 0x984   :  { %2996 = vmatpush.msra.mxu2 %v9371_v57  ;;  %v3082_v57 = vld [vmem:[%s17284_s6 + $0x68] sm:$0xff] }
 0x985   :  { %3087 = vmatpush.msrb.mxu0 %v3082_v57 }
 0x986   :  { %2997 = vmatpush.msra.mxu2 %v9370_v52  ;;  %v9390_v52 = vld [vmem:[%s17284_s6 + $0xe8] sm:$0xff] }
 0x988   :  { %2998 = vmatpush.msra.mxu2 %v9369_v61  ;;  %v3081_v61 = vld [vmem:[%s17284_s6 + $0x60] sm:$0xff] }
 0x989   :  { %9308 = vmatmul.msk.f32.gmra.mxu2 %vm484_vm5, %v9306_v62  ;;  %v9389_v62 = vld [vmem:[%s17284_s6 + $0xe0] sm:$0xff]  ;;  %3088 = vmatpush.msrb.mxu0 %v3081_v61 }
 0x98a   :  { %2999 = vmatpush.msra.mxu2 %v9368_v63  ;;  %v3080_v63 = vld [vmem:[%s17284_s6 + $0x58] sm:$0xff] }
 0x98b   :  { %3089 = vmatpush.msrb.mxu0 %v3080_v63 }
 0x98c   :  { %3000 = vmatpush.msra.mxu2 %v9367_v1  ;;  %v9388_v1 = vld [vmem:[%s17284_s6 + $0xd8] sm:$0xff] }
 0x98e   :  { %3001 = vmatpush.msra.mxu2 %v9366_v6  ;;  %v3079_v6 = vld [vmem:[%s17284_s6 + $0x50] sm:$0xff] }
 0x98f   :  { %3090 = vmatpush.msrb.mxu0 %v3079_v6 }
 0x990   :  { %3002 = vmatpush.msra.mxu2 %v9365_v9  ;;  %v9387_v9 = vld [vmem:[%s17284_s6 + $0xd0] sm:$0xff] }
 0x992   :  { %3003 = vmatpush.msra.mxu2 %v9364_v10  ;;  %v3078_v10 = vld [vmem:[%s17284_s6 + $0x48] sm:$0xff] }
 0x993   :  { %3091 = vmatpush.msrb.mxu0 %v3078_v10  ;;  %v9393_v10 = vld [vmem:[%s17285_s7 + $0x20] sm:$0xff] }
 0x994   :  { %3004 = vmatpush.msra.mxu2 %v9363_v11  ;;  %v9386_v11 = vld [vmem:[%s17284_s6 + $0xc8] sm:$0xff] }
 0x996   :  { %3005 = vmatpush.msra.mxu2 %v9362_v48  ;;  %v3077_v48 = vld [vmem:[%s17284_s6 + $0x40] sm:$0xff] }
 0x997   :  { %3092 = vmatpush.msrb.mxu0 %v3077_v48  ;;  %v9420_v48 = vld [vmem:[%s17284_s6 + $0x178] sm:$0xff] }
 0x998   :  { %3006 = vmatpush.msra.mxu2 %v9361_v12  ;;  %v9385_v12 = vld [vmem:[%s17284_s6 + $0xc0] sm:$0xff] }
 0x99a   :  { %3007 = vmatpush.msra.mxu2 %v9360_v13  ;;  %v3076_v13 = vld [vmem:[%s17284_s6 + $0x38] sm:$0xff] }
 0x99b   :  { %3093 = vmatpush.msrb.mxu0 %v3076_v13  ;;  %v9419_v13 = vld [vmem:[%s17284_s6 + $0x170] sm:$0xff] }
 0x99c   :  { %3008 = vmatpush.msra.mxu2 %v9359_v15  ;;  %v9384_v15 = vld [vmem:[%s17284_s6 + $0xb8] sm:$0xff] }
 0x99d   :  { %v2992_v40 = vpop.f32.mrf.mxu1 }
 0x99e   :  { %3009 = vmatpush.msra.mxu2 %v9358_v17  ;;  %v2993_v49 = vadd.f32 %v2992_v40, %v2973_v41  ;;  %v3075_v17 = vld [vmem:[%s17284_s6 + $0x30] sm:$0xff]  ;;  %v9378_v40 = vld [vmem:[%s17284_s6 + $0x88] sm:$0xff]  ;;  %v538_v41 = vadd.f32 %v11521_v55, %v11519_v54  ;;  %v541_v54 = vadd.f32 %v11525_v58, %v11523_v56 }
 0x99f   :  { %3094 = vmatpush.msrb.mxu0 %v3075_v17  ;;  %v9418_v17 = vld [vmem:[%s17284_s6 + $0x168] sm:$0xff] }
 0x9a0   :  { %3010 = vmatpush.msra.mxu2 %v9357_v18  ;;  %v9383_v18 = vld [vmem:[%s17284_s6 + $0xb0] sm:$0xff]  ;;  %v721_v46 = vadd.f32 %v11733_v16, %v541_v54 }
 0x9a1   :  { %3011 = vmatmul.f32.vlgmr.msra.gmra.mxu2 %v11011_v59  ;;  %v9392_v59 = vld [vmem:[%s17284_s6 + $0xf8] sm:$0xff]  ;;  %3095 = vmatpush.msrb.mxu0 %v3074_v19  ;;  %v9417_v19 = vld [vmem:[%s17284_s6 + $0x160] sm:$0xff]  ;;  %v9411_v54 = vld [vmem:[%s17284_s6 + $0x130] sm:$0xff] }
 0x9a2   :  { %3129 = vmatpush.msrb.mxu1 %v9392_v59  ;;  %v3072_v59 = vld [vmem:[%s17284_s6 + $0x18] sm:$0xff]  ;;  %v900_v57 = vadd.f32 %v11941_v35, %v721_v46  ;;  %v9410_v46 = vld [vmem:[%s17284_s6 + $0x128] sm:$0xff] }
 0x9a3   :  { %3096 = vmatpush.msrb.mxu0 %v3073_v23  ;;  %v9394_v23 = vld [vmem:[%s17285_s7 + $0x28] sm:$0xff] }
 0x9a4   :  { %3130 = vmatpush.msrb.mxu1 %v9391_v47 }
 0x9a5   :  { %3097 = vmatpush.msrb.mxu0 %v3072_v59  ;;  %v9416_v59 = vld [vmem:[%s17284_s6 + $0x158] sm:$0xff] }
 0x9a6   :  { %3131 = vmatpush.msrb.mxu1 %v9390_v52 }
 0x9a7   :  { %3098 = vmatpush.msrb.mxu0 %v3071_v31  ;;  %v9415_v31 = vld [vmem:[%s17284_s6 + $0x150] sm:$0xff] }
 0x9a8   :  { %3132 = vmatpush.msrb.mxu1 %v9389_v62  ;;  %v3054_v62 = vpop.permute.xlu0 %3053 }
 0x9a9   :  { %3099 = vmatpush.msrb.mxu0 %v3070_v33  ;;  %v9414_v33 = vld [vmem:[%s17284_s6 + $0x148] sm:$0xff] }
 0x9aa   :  { %3133 = vmatpush.msrb.mxu1 %v9388_v1 }
 0x9ac   :  { %3134 = vmatpush.msrb.mxu1 %v9387_v9 }
 0x9ae   :  { %3135 = vmatpush.msrb.mxu1 %v9386_v11  ;;  %v3108_v11 = vld [vmem:[%s17285_s7] sm:$0xff] }
 0x9b0   :  { %3136 = vmatpush.msrb.mxu1 %v9385_v12  ;;  %v9444_v12 = vld [vmem:[%s17284_s6 + $0x1f8] sm:$0xff] }
 0x9b2   :  { %3137 = vmatpush.msrb.mxu1 %v9384_v15  ;;  %v9443_v15 = vld [vmem:[%s17284_s6 + $0x1f0] sm:$0xff] }
 0x9b4   :  { %3138 = vmatpush.msrb.mxu1 %v9383_v18  ;;  %v9442_v18 = vld [vmem:[%s17284_s6 + $0x1e8] sm:$0xff] }
 0x9b6   :  { %3139 = vmatpush.msrb.mxu1 %v9382_v22  ;;  %v9441_v22 = vld [vmem:[%s17284_s6 + $0x1e0] sm:$0xff] }
 0x9b8   :  { %3140 = vmatpush.msrb.mxu1 %v9381_v24  ;;  %v3109_v24 = vld [vmem:[%s17285_s7 + $0x8] sm:$0xff] }
 0x9ba   :  { %3141 = vmatpush.msrb.mxu1 %v9380_v0  ;;  %v9440_v0 = vld [vmem:[%s17284_s6 + $0x1d8] sm:$0xff] }
 0x9bc   :  { %3142 = vmatpush.msrb.mxu1 %v9379_v32  ;;  %v9439_v32 = vld [vmem:[%s17284_s6 + $0x1d0] sm:$0xff] }
 0x9be   :  { %3143 = vmatpush.msrb.mxu1 %v9378_v40  ;;  %v9438_v40 = vld [vmem:[%s17284_s6 + $0x1c8] sm:$0xff] }
 0xa04   :  { %v13948_v25 = vpop.f32.mrf.mxu2 }
 0xa0c   :  { %v13953_v30 = vpop.f32.mrf.mxu2 }
 0xa24   :  { %v3012_v42 = vpop.f32.mrf.mxu2 }
 0xa25   :  { %v3013_v43 = vadd.f32 %v3012_v42, %v2993_v49  ;;  %v3069_v49 = vld [vmem:[%s17284_s6] sm:$0xff] }
 0xa26   :  { %v9377_v42 = vld [vmem:[%s17284_s6 + $0x80] sm:$0xff]  ;;  %3100 = vmatpush.msrb.mxu0 %v3069_v49 }
 0xa27   :  { %3039 = vmatpush.msra.mxu3 %v3013_v43  ;;  %v720_v43 = vadd.f32 %v11731_v14, %v538_v41  ;;  %3144 = vmatpush.msrb.mxu1 %v9377_v42  ;;  %v1079_v14 = vadd.f32 %v12149_v3, %v900_v57  ;;  %v9413_v41 = vld [vmem:[%s17284_s6 + $0x140] sm:$0xff]  ;;  %v9395_v42 = vld [vmem:[%s17285_s7 + $0x30] sm:$0xff] }
 0xa28   :  { %9375 = vmatmul.msk.f32.vlgmr.msra.gmra.mxu3 %vm484_vm5, %v9373_v44  ;;  %v9437_v49 = vld [vmem:[%s17284_s6 + $0x1c0] sm:$0xff] }
 0xa29   :  { %v899_v44 = vadd.f32 %v11939_v34, %v720_v43  ;;  %v1258_v34 = vadd.f32 %v12357_v29, %v1079_v14  ;;  %v3110_v43 = vld [vmem:[%s17285_s7 + $0x10] sm:$0xff]  ;;  %v9409_v57 = vld [vmem:[%s17284_s6 + $0x120] sm:$0xff]  ;;  %v9396_v14 = vld [vmem:[%s17285_s7 + $0x38] sm:$0xff] }
 0xa2b   :  { %v1437_v56 = vadd.f32 %v12565_v5, %v1258_v34  ;;  %v9408_v34 = vld [vmem:[%s17284_s6 + $0x118] sm:$0xff] }
 0xa2d   :  { %v1616_v16 = vadd.f32 %v12773_v39, %v1437_v56  ;;  %v9407_v56 = vld [vmem:[%s17284_s6 + $0x110] sm:$0xff] }
 0xa2f   :  { %v1795_v35 = vadd.f32 %v12981_v21, %v1616_v16  ;;  %v9406_v16 = vld [vmem:[%s17284_s6 + $0x108] sm:$0xff] }
 0xa30   :  { %9376 = vmatmul.msk.f32.gmra.mxu3 %vm484_vm5, %v9374_v45  ;;  %v1078_v45 = vadd.f32 %v12147_v2, %v899_v44  ;;  %v9412_v44 = vld [vmem:[%s17284_s6 + $0x138] sm:$0xff] }
 0xa31   :  { %v1974_v3 = vadd.f32 %v13189_v8, %v1795_v35  ;;  %v9405_v35 = vld [vmem:[%s17284_s6 + $0x100] sm:$0xff] }
 0xa32   :  { %v1257_v55 = vadd.f32 %v12355_v28, %v1078_v45  ;;  %v9436_v45 = vld [vmem:[%s17284_s6 + $0x1b8] sm:$0xff] }
 0xa33   :  { %v2153_v29 = vadd.f32 %v13397_v60, %v1974_v3  ;;  %v9468_v3 = vld [vmem:[%s17284_s6 + $0x278] sm:$0xff] }
 0xa34   :  { %v1436_v47 = vadd.f32 %v12563_v4, %v1257_v55  ;;  %v9435_v55 = vld [vmem:[%s17284_s6 + $0x1b0] sm:$0xff] }
 0xa35   :  { %v2332_v5 = vadd.f32 %v13605_v51, %v2153_v29  ;;  %v3059_v51 = vpop.permute.xlu1 %3058  ;;  %v9466_v29 = vld [vmem:[%s17284_s6 + $0x268] sm:$0xff] }
 0xa36   :  { %v1615_v52 = vadd.f32 %v12771_v38, %v1436_v47  ;;  %v9434_v47 = vld [vmem:[%s17284_s6 + $0x1a8] sm:$0xff] }
 0xa37   :  { %v2511_v39 = vadd.f32 %v13764_v27, %v2332_v5  ;;  %v9463_v5 = vld [vmem:[%s17284_s6 + $0x250] sm:$0xff] }
 0xa38   :  { %v1794_v61 = vadd.f32 %v12979_v20, %v1615_v52  ;;  %v9433_v52 = vld [vmem:[%s17284_s6 + $0x1a0] sm:$0xff] }
 0xa39   :  { %v2690_v21 = vadd.f32 %v13874_v37, %v2511_v39  ;;  %v9460_v39 = vld [vmem:[%s17284_s6 + $0x238] sm:$0xff] }
 0xa3a   :  { %v1973_v2 = vadd.f32 %v13187_v7, %v1794_v61  ;;  %v3111_v61 = vld [vmem:[%s17285_s7 + $0x18] sm:$0xff] }
 0xa3b   :  { %v2869_v8 = vadd.f32 %v13953_v30, %v2690_v21  ;;  %v9458_v21 = vld [vmem:[%s17284_s6 + $0x228] sm:$0xff] }
 0xa3c   :  { %v2152_v58 = vadd.f32 %v13395_v53, %v1973_v2  ;;  %v9432_v2 = vld [vmem:[%s17284_s6 + $0x198] sm:$0xff] }
 0xa3e   :  { %v2331_v28 = vadd.f32 %v13603_v50, %v2152_v58  ;;  %v9431_v58 = vld [vmem:[%s17284_s6 + $0x190] sm:$0xff] }
 0xa40   :  { %v2510_v4 = vadd.f32 %v13762_v26, %v2331_v28  ;;  %v9430_v28 = vld [vmem:[%s17284_s6 + $0x188] sm:$0xff] }
 0xa42   :  { %v2689_v38 = vadd.f32 %v13872_v36, %v2510_v4  ;;  %v9429_v4 = vld [vmem:[%s17284_s6 + $0x180] sm:$0xff] }
 0xa44   :  { %v2868_v20 = vadd.f32 %v13948_v25, %v2689_v38  ;;  %v9467_v38 = vld [vmem:[%s17284_s6 + $0x270] sm:$0xff] }
 0xaab   :  { %v3041_v7 = vpop.f32.mrf.mxu3 }
 0xaac   :  { %v3047_v53 = vadd.f32 %v3041_v7, %v2868_v20  ;;  %v9465_v20 = vld [vmem:[%s17284_s6 + $0x260] sm:$0xff]  ;;  %v9464_v7 = vld [vmem:[%s17284_s6 + $0x258] sm:$0xff] }
 0xaae   :  { %v3061_v50 = vadd.f32 %v3054_v62, %v3047_v53  ;;  %v9462_v53 = vld [vmem:[%s17284_s6 + $0x248] sm:$0xff]  ;;  %v9461_v62 = vld [vmem:[%s17284_s6 + $0x240] sm:$0xff] }
 0xab0   :  { %vm3063_vm6 = vcmp.ge.f32.partialorder %v3061_v50, 0.0  ;;  %v3065_v26 = vmul.f32 0.2, %v3061_v50 }
 0xab2   :  { %v14086_v63 = vsel %vm3063_vm6, %v3061_v50, %v3065_v26  ;;  %v9459_v50 = vld [vmem:[%s17284_s6 + $0x230] sm:$0xff]  ;;  %v9457_v26 = vld [vmem:[%s17284_s6 + $0x220] sm:$0xff] }
 0xab3   :  { %v3044_v36 = vpop.f32.mrf.mxu3  ;;  %3101 = vmatmul.f32.vlgmr.msrb.gmra.mxu0 %v14086_v63  ;;  %3145 = vmatmul.f32.vlgmr.msrb.gmra.mxu1 %v14086_v63 }
 0xab4   :  { %v3048_v60 = vadd.f32 %v3044_v36, %v2869_v8  ;;  %v9456_v8 = vld [vmem:[%s17284_s6 + $0x218] sm:$0xff]  ;;  %v9455_v36 = vld [vmem:[%s17284_s6 + $0x210] sm:$0xff] }
 0xab6   :  { %v3062_v25 = vadd.f32 %v3059_v51, %v3048_v60  ;;  %v9454_v60 = vld [vmem:[%s17284_s6 + $0x208] sm:$0xff]  ;;  %v9453_v51 = vld [vmem:[%s17284_s6 + $0x200] sm:$0xff] }
 0xab8   :  { %vm3064_vm7 = vcmp.ge.f32.partialorder %v3062_v25, 0.0  ;;  %v3066_v1 = vmul.f32 0.2, %v3062_v25 }
 0xaba   :  { %v14090_v27 = vsel %vm3064_vm7, %v3062_v25, %v3066_v1 }
 0xabb   :  { %3104 = vmatmul.f32.gmra.mxu0 %v14090_v27  ;;  %3148 = vmatmul.f32.gmra.mxu1 %v14090_v27 }
 0xb30   :  { %v3102_v37 = vpop.f32.mrf.mxu0  ;;  %v3146_v30 = vpop.f32.mrf.mxu1 }
 0xb38   :  { %v3105_v6 = vpop.f32.mrf.mxu0  ;;  %v3149_v9 = vpop.f32.mrf.mxu1 }
 0xb39   :  { %3184 = vmatpush.msrb.mxu2 %v3149_v9  ;;  %3225 = vmatpush.msrb.mxu3 %v3105_v6 }
 0xb3b   :  { %3185 = vmatpush.msrb.mxu2 %v3146_v30  ;;  %3226 = vmatpush.msrb.mxu3 %v3102_v37 }
 0xb3c   :  { %9397 = vmatmul.msk.f32.vlgmr.msrb.gmra.mxu2 %vm3157_vm8, %v9393_v10  ;;  %9401 = vmatmul.msk.f32.vlgmr.msrb.gmra.mxu3 %vm3157_vm8, %v3108_v11 }
 0xb3d   :  { %3257 = vmatpush.msra.mxu2 %v9420_v48  ;;  %3347 = vmatpush.msra.mxu3 %v9444_v12 }
 0xb3f   :  { %3258 = vmatpush.msra.mxu2 %v9419_v13  ;;  %3348 = vmatpush.msra.mxu3 %v9443_v15 }
 0xb41   :  { %3259 = vmatpush.msra.mxu2 %v9418_v17  ;;  %3349 = vmatpush.msra.mxu3 %v9442_v18  ;;  %v9445_v17 = vld [vmem:[%s17285_s7 + $0x60] sm:$0xff] }
 0xb42   :  { %v9421_v18 = vld [vmem:[%s17285_s7 + $0x40] sm:$0xff] }
 0xb43   :  { %3260 = vmatpush.msra.mxu2 %v9417_v19  ;;  %3350 = vmatpush.msra.mxu3 %v9441_v22  ;;  %v9492_v19 = vld [vmem:[%s17284_s6 + $0x2f8] sm:$0xff]  ;;  %v9491_v22 = vld [vmem:[%s17284_s6 + $0x2f0] sm:$0xff] }
 0xb44   :  { %9398 = vmatmul.msk.f32.gmra.mxu2 %vm3157_vm8, %v9394_v23  ;;  %9402 = vmatmul.msk.f32.gmra.mxu3 %vm3157_vm8, %v3109_v24  ;;  %v9490_v23 = vld [vmem:[%s17284_s6 + $0x2e8] sm:$0xff]  ;;  %v9489_v24 = vld [vmem:[%s17284_s6 + $0x2e0] sm:$0xff] }
 0xb45   :  { %3261 = vmatpush.msra.mxu2 %v9416_v59  ;;  %3351 = vmatpush.msra.mxu3 %v9440_v0  ;;  %v9446_v59 = vld [vmem:[%s17285_s7 + $0x68] sm:$0xff] }
 0xb46   :  { %v9422_v0 = vld [vmem:[%s17285_s7 + $0x48] sm:$0xff] }
 0xb47   :  { %3262 = vmatpush.msra.mxu2 %v9415_v31  ;;  %3352 = vmatpush.msra.mxu3 %v9439_v32  ;;  %v9488_v31 = vld [vmem:[%s17284_s6 + $0x2d8] sm:$0xff]  ;;  %v9487_v32 = vld [vmem:[%s17284_s6 + $0x2d0] sm:$0xff] }
 0xb49   :  { %3263 = vmatpush.msra.mxu2 %v9414_v33  ;;  %3353 = vmatpush.msra.mxu3 %v9438_v40  ;;  %v9486_v33 = vld [vmem:[%s17284_s6 + $0x2c8] sm:$0xff]  ;;  %v9485_v40 = vld [vmem:[%s17284_s6 + $0x2c0] sm:$0xff] }
 0xb4b   :  { %3264 = vmatpush.msra.mxu2 %v9413_v41  ;;  %3354 = vmatpush.msra.mxu3 %v9437_v49  ;;  %v9447_v41 = vld [vmem:[%s17285_s7 + $0x70] sm:$0xff] }
 0xb4c   :  { %9399 = vmatmul.msk.f32.gmra.mxu2 %vm3157_vm8, %v9395_v42  ;;  %9403 = vmatmul.msk.f32.gmra.mxu3 %vm3157_vm8, %v3110_v43  ;;  %v9423_v49 = vld [vmem:[%s17285_s7 + $0x50] sm:$0xff]  ;;  %v9484_v42 = vld [vmem:[%s17284_s6 + $0x2b8] sm:$0xff] }
 0xb4d   :  { %3265 = vmatpush.msra.mxu2 %v9412_v44  ;;  %3355 = vmatpush.msra.mxu3 %v9436_v45  ;;  %v9483_v43 = vld [vmem:[%s17284_s6 + $0x2b0] sm:$0xff]  ;;  %v9482_v45 = vld [vmem:[%s17284_s6 + $0x2a8] sm:$0xff] }
 0xb4f   :  { %3266 = vmatpush.msra.mxu2 %v9411_v54  ;;  %3356 = vmatpush.msra.mxu3 %v9435_v55  ;;  %v9481_v54 = vld [vmem:[%s17284_s6 + $0x2a0] sm:$0xff]  ;;  %v9448_v55 = vld [vmem:[%s17285_s7 + $0x78] sm:$0xff] }
 0xb51   :  { %3267 = vmatpush.msra.mxu2 %v9410_v46  ;;  %3357 = vmatpush.msra.mxu3 %v9434_v47  ;;  %v9424_v46 = vld [vmem:[%s17285_s7 + $0x58] sm:$0xff] }
 0xb52   :  { %v9480_v47 = vld [vmem:[%s17284_s6 + $0x298] sm:$0xff] }
 0xb53   :  { %3268 = vmatpush.msra.mxu2 %v9409_v57  ;;  %3358 = vmatpush.msra.mxu3 %v9433_v52  ;;  %v9479_v57 = vld [vmem:[%s17284_s6 + $0x290] sm:$0xff] }
 0xb54   :  { %9400 = vmatmul.msk.f32.gmra.mxu2 %vm3157_vm8, %v9396_v14  ;;  %9404 = vmatmul.msk.f32.gmra.mxu3 %vm3157_vm8, %v3111_v61  ;;  %v9478_v14 = vld [vmem:[%s17284_s6 + $0x288] sm:$0xff]  ;;  %v9469_v61 = vld [vmem:[%s17285_s7 + $0x80] sm:$0xff] }
 0xb55   :  { %3269 = vmatpush.msra.mxu2 %v9408_v34  ;;  %3359 = vmatpush.msra.mxu3 %v9432_v2  ;;  %v9477_v34 = vld [vmem:[%s17284_s6 + $0x280] sm:$0xff]  ;;  %v9516_v2 = vld [vmem:[%s17284_s6 + $0x378] sm:$0xff] }
 0xb57   :  { %3270 = vmatpush.msra.mxu2 %v9407_v56  ;;  %3360 = vmatpush.msra.mxu3 %v9431_v58  ;;  %v9540_v56 = vld [vmem:[%s17284_s6 + $0x3f8] sm:$0xff]  ;;  %v9515_v58 = vld [vmem:[%s17284_s6 + $0x370] sm:$0xff] }
 0xb59   :  { %3271 = vmatpush.msra.mxu2 %v9406_v16  ;;  %3361 = vmatpush.msra.mxu3 %v9430_v28  ;;  %v9539_v16 = vld [vmem:[%s17284_s6 + $0x3f0] sm:$0xff]  ;;  %v9514_v28 = vld [vmem:[%s17284_s6 + $0x368] sm:$0xff] }
 0xb5b   :  { %3272 = vmatpush.msra.mxu2 %v9405_v35  ;;  %3362 = vmatpush.msra.mxu3 %v9429_v4  ;;  %v9538_v35 = vld [vmem:[%s17284_s6 + $0x3e8] sm:$0xff]  ;;  %v9513_v4 = vld [vmem:[%s17284_s6 + $0x360] sm:$0xff] }
 0xb5c   :  { %3363 = vmatmul.f32.vlgmr.msra.gmra.mxu3 %v14086_v63  ;;  %3273 = vmatmul.f32.vlgmr.msra.gmra.mxu2 %v14086_v63 }
 0xb5d   :  { %3437 = vmatpush.msrb.mxu2 %v9468_v3  ;;  %v9537_v3 = vld [vmem:[%s17284_s6 + $0x3e0] sm:$0xff] }
 0xb5f   :  { %3438 = vmatpush.msrb.mxu2 %v9467_v38  ;;  %v9470_v38 = vld [vmem:[%s17285_s7 + $0x88] sm:$0xff] }
 0xb61   :  { %3439 = vmatpush.msrb.mxu2 %v9466_v29  ;;  %v9512_v29 = vld [vmem:[%s17284_s6 + $0x358] sm:$0xff] }
 0xb63   :  { %3440 = vmatpush.msrb.mxu2 %v9465_v20  ;;  %v9536_v20 = vld [vmem:[%s17284_s6 + $0x3d8] sm:$0xff] }
 0xb64   :  { %3366 = vmatmul.f32.gmra.mxu3 %v14090_v27  ;;  %3276 = vmatmul.f32.gmra.mxu2 %v14090_v27 }
 0xb65   :  { %3441 = vmatpush.msrb.mxu2 %v9464_v7  ;;  %v9511_v7 = vld [vmem:[%s17284_s6 + $0x350] sm:$0xff] }
 0xb67   :  { %3442 = vmatpush.msrb.mxu2 %v9463_v5  ;;  %v9535_v5 = vld [vmem:[%s17284_s6 + $0x3d0] sm:$0xff] }
 0xb69   :  { %3443 = vmatpush.msrb.mxu2 %v9462_v53  ;;  %v9510_v53 = vld [vmem:[%s17284_s6 + $0x348] sm:$0xff] }
 0xb6b   :  { %3444 = vmatpush.msrb.mxu2 %v9461_v62  ;;  %v9534_v62 = vld [vmem:[%s17284_s6 + $0x3c8] sm:$0xff] }
 0xb6d   :  { %3445 = vmatpush.msrb.mxu2 %v9460_v39  ;;  %v9509_v39 = vld [vmem:[%s17284_s6 + $0x340] sm:$0xff] }
 0xb6f   :  { %3446 = vmatpush.msrb.mxu2 %v9459_v50  ;;  %v9533_v50 = vld [vmem:[%s17284_s6 + $0x3c0] sm:$0xff] }
 0xb71   :  { %3447 = vmatpush.msrb.mxu2 %v9458_v21  ;;  %v9471_v21 = vld [vmem:[%s17285_s7 + $0x90] sm:$0xff] }
 0xb73   :  { %3448 = vmatpush.msrb.mxu2 %v9457_v26  ;;  %v9508_v26 = vld [vmem:[%s17284_s6 + $0x338] sm:$0xff] }
 0xb75   :  { %3449 = vmatpush.msrb.mxu2 %v9456_v8  ;;  %v9532_v8 = vld [vmem:[%s17284_s6 + $0x3b8] sm:$0xff] }
 0xb77   :  { %3450 = vmatpush.msrb.mxu2 %v9455_v36  ;;  %v9507_v36 = vld [vmem:[%s17284_s6 + $0x330] sm:$0xff] }
 0xb79   :  { %3451 = vmatpush.msrb.mxu2 %v9454_v60  ;;  %v9531_v60 = vld [vmem:[%s17284_s6 + $0x3b0] sm:$0xff] }
 0xb7b   :  { %3452 = vmatpush.msrb.mxu2 %v9453_v51  ;;  %v9506_v51 = vld [vmem:[%s17284_s6 + $0x328] sm:$0xff] }
 0xb7c   :  { %3453 = vmatmul.f32.vlgmr.msrb.gmra.mxu2 %v14086_v63 }
 0xb84   :  { %3456 = vmatmul.f32.gmra.mxu2 %v14090_v27 }
 0xbbf   :  { %v14276_v25 = vpop.f32.mrf.mxu2  ;;  %v14278_v1 = vpop.f32.mrf.mxu3 }
 0xbc7   :  { %v14280_v37 = vpop.f32.mrf.mxu2  ;;  %v14282_v30 = vpop.f32.mrf.mxu3 }
 0xbcf   :  { %v14284_v6 = vpop.f32.mrf.mxu2  ;;  %v14286_v9 = vpop.f32.mrf.mxu3 }
 0xbd7   :  { %v14288_v10 = vpop.f32.mrf.mxu2  ;;  %v14290_v11 = vpop.f32.mrf.mxu3 }
 0xbdf   :  { %v3364_v48 = vpop.f32.mrf.mxu3  ;;  %v3274_v12 = vpop.f32.mrf.mxu2 }
 0xbe7   :  { %v3367_v13 = vpop.f32.mrf.mxu3  ;;  %v3277_v15 = vpop.f32.mrf.mxu2 }
 0xbe8   :  { %3401 = vmatpush.msra.mxu1 %v3367_v13  ;;  %3311 = vmatpush.msra.mxu0 %v3277_v15  ;;  %v9529_v13 = vld [vmem:[%s17284_s6 + $0x3a0] sm:$0xff]  ;;  %v9472_v15 = vld [vmem:[%s17285_s7 + $0x98] sm:$0xff] }
 0xbea   :  { %3402 = vmatpush.msra.mxu1 %v3364_v48  ;;  %3312 = vmatpush.msra.mxu0 %v3274_v12  ;;  %v9530_v48 = vld [vmem:[%s17284_s6 + $0x3a8] sm:$0xff]  ;;  %v9505_v12 = vld [vmem:[%s17284_s6 + $0x320] sm:$0xff] }
 0xbeb   :  { %9449 = vmatmul.msk.f32.vlgmr.msra.gmra.mxu1 %vm3157_vm8, %v9445_v17  ;;  %9425 = vmatmul.msk.f32.vlgmr.msra.gmra.mxu0 %vm3157_vm8, %v9421_v18  ;;  %v9504_v17 = vld [vmem:[%s17284_s6 + $0x318] sm:$0xff] }
 0xbec   :  { %3527 = vmatpush.msrb.mxu0 %v9492_v19  ;;  %v9528_v18 = vld [vmem:[%s17284_s6 + $0x398] sm:$0xff]  ;;  %v9503_v19 = vld [vmem:[%s17284_s6 + $0x310] sm:$0xff] }
 0xbee   :  { %3528 = vmatpush.msrb.mxu0 %v9491_v22  ;;  %v9527_v22 = vld [vmem:[%s17284_s6 + $0x390] sm:$0xff] }
 0xbf0   :  { %3529 = vmatpush.msrb.mxu0 %v9490_v23  ;;  %v9502_v23 = vld [vmem:[%s17284_s6 + $0x308] sm:$0xff] }
 0xbf2   :  { %3530 = vmatpush.msrb.mxu0 %v9489_v24  ;;  %v9526_v24 = vld [vmem:[%s17284_s6 + $0x388] sm:$0xff] }
 0xbf3   :  { %9450 = vmatmul.msk.f32.gmra.mxu1 %vm3157_vm8, %v9446_v59  ;;  %9426 = vmatmul.msk.f32.gmra.mxu0 %vm3157_vm8, %v9422_v0  ;;  %v9501_v59 = vld [vmem:[%s17284_s6 + $0x300] sm:$0xff] }
 0xbf4   :  { %3531 = vmatpush.msrb.mxu0 %v9488_v31  ;;  %v9525_v0 = vld [vmem:[%s17284_s6 + $0x380] sm:$0xff]  ;;  %v9588_v31 = vld [vmem:[%s17284_s6 + $0x4f8] sm:$0xff] }
 0xbf6   :  { %3532 = vmatpush.msrb.mxu0 %v9487_v32  ;;  %v9587_v32 = vld [vmem:[%s17284_s6 + $0x4f0] sm:$0xff] }
 0xbf8   :  { %3533 = vmatpush.msrb.mxu0 %v9486_v33  ;;  %v9586_v33 = vld [vmem:[%s17284_s6 + $0x4e8] sm:$0xff] }
 0xbfa   :  { %3534 = vmatpush.msrb.mxu0 %v9485_v40  ;;  %v9585_v40 = vld [vmem:[%s17284_s6 + $0x4e0] sm:$0xff] }
 0xbfb   :  { %9451 = vmatmul.msk.f32.gmra.mxu1 %vm3157_vm8, %v9447_v41  ;;  %9427 = vmatmul.msk.f32.gmra.mxu0 %vm3157_vm8, %v9423_v49  ;;  %v9584_v41 = vld [vmem:[%s17284_s6 + $0x4d8] sm:$0xff]  ;;  %v9583_v49 = vld [vmem:[%s17284_s6 + $0x4d0] sm:$0xff] }
 0xbfc   :  { %3535 = vmatpush.msrb.mxu0 %v9484_v42  ;;  %v9582_v42 = vld [vmem:[%s17284_s6 + $0x4c8] sm:$0xff] }
 0xbfe   :  { %3536 = vmatpush.msrb.mxu0 %v9483_v43  ;;  %v9581_v43 = vld [vmem:[%s17284_s6 + $0x4c0] sm:$0xff] }
 0xbff   :  { %v3454_v44 = vpop.f32.mrf.mxu2 }
 0xc00   :  { %3537 = vmatpush.msrb.mxu0 %v9482_v45  ;;  %v9579_v45 = vld [vmem:[%s17284_s6 + $0x4b0] sm:$0xff] }
 0xc02   :  { %3538 = vmatpush.msrb.mxu0 %v9481_v54  ;;  %v9578_v54 = vld [vmem:[%s17284_s6 + $0x4a8] sm:$0xff] }
 0xc03   :  { %9452 = vmatmul.msk.f32.gmra.mxu1 %vm3157_vm8, %v9448_v55  ;;  %9428 = vmatmul.msk.f32.gmra.mxu0 %vm3157_vm8, %v9424_v46  ;;  %v9577_v55 = vld [vmem:[%s17284_s6 + $0x4a0] sm:$0xff]  ;;  %v9576_v46 = vld [vmem:[%s17284_s6 + $0x498] sm:$0xff] }
 0xc04   :  { %3539 = vmatpush.msrb.mxu0 %v9480_v47  ;;  %v9575_v47 = vld [vmem:[%s17284_s6 + $0x490] sm:$0xff] }
 0xc06   :  { %3540 = vmatpush.msrb.mxu0 %v9479_v57  ;;  %v9574_v57 = vld [vmem:[%s17284_s6 + $0x488] sm:$0xff] }
 0xc07   :  { %v3457_v52 = vpop.f32.mrf.mxu2 }
 0xc08   :  { %3491 = vmatpush.msrb.mxu3 %v3457_v52  ;;  %3541 = vmatpush.msrb.mxu0 %v9478_v14  ;;  %v9573_v52 = vld [vmem:[%s17284_s6 + $0x480] sm:$0xff] }
 0xc0a   :  { %3492 = vmatpush.msrb.mxu3 %v3454_v44  ;;  %3542 = vmatpush.msrb.mxu0 %v9477_v34  ;;  %v9580_v44 = vld [vmem:[%s17284_s6 + $0x4b8] sm:$0xff] }
 0xc0b   :  { %9473 = vmatmul.msk.f32.vlgmr.msrb.gmra.mxu3 %vm3157_vm8, %v9469_v61  ;;  %3543 = vmatmul.f32.vlgmr.msrb.gmra.mxu0 %v14086_v63 }
 0xc0c   :  { %3617 = vmatpush.msra.mxu3 %v9516_v2  ;;  %3707 = vmatpush.msra.mxu0 %v9540_v56 }
 0xc0e   :  { %3618 = vmatpush.msra.mxu3 %v9515_v58  ;;  %3708 = vmatpush.msra.mxu0 %v9539_v16 }
 0xc10   :  { %3619 = vmatpush.msra.mxu3 %v9514_v28  ;;  %3709 = vmatpush.msra.mxu0 %v9538_v35  ;;  %v9493_v28 = vld [vmem:[%s17285_s7 + $0xa0] sm:$0xff] }
 0xc12   :  { %3620 = vmatpush.msra.mxu3 %v9513_v4  ;;  %3710 = vmatpush.msra.mxu0 %v9537_v3  ;;  %v9494_v4 = vld [vmem:[%s17285_s7 + $0xa8] sm:$0xff] }
 0xc13   :  { %9474 = vmatmul.msk.f32.gmra.mxu3 %vm3157_vm8, %v9470_v38  ;;  %3546 = vmatmul.f32.gmra.mxu0 %v14090_v27  ;;  %v9495_v38 = vld [vmem:[%s17285_s7 + $0xb0] sm:$0xff] }
 0xc14   :  { %3621 = vmatpush.msra.mxu3 %v9512_v29  ;;  %3711 = vmatpush.msra.mxu0 %v9536_v20 }
 0xc16   :  { %3622 = vmatpush.msra.mxu3 %v9511_v7  ;;  %3712 = vmatpush.msra.mxu0 %v9535_v5  ;;  %v9496_v7 = vld [vmem:[%s17285_s7 + $0xb8] sm:$0xff] }
 0xc18   :  { %3623 = vmatpush.msra.mxu3 %v9510_v53  ;;  %3713 = vmatpush.msra.mxu0 %v9534_v62  ;;  %v9612_v62 = vld [vmem:[%s17284_s6 + $0x578] sm:$0xff] }
 0xc1a   :  { %3624 = vmatpush.msra.mxu3 %v9509_v39  ;;  %3714 = vmatpush.msra.mxu0 %v9533_v50  ;;  %v9541_v39 = vld [vmem:[%s17285_s7 + $0xe0] sm:$0xff]  ;;  %v9611_v50 = vld [vmem:[%s17284_s6 + $0x570] sm:$0xff] }
 0xc1b   :  { %9475 = vmatmul.msk.f32.gmra.mxu3 %vm3157_vm8, %v9471_v21 }
 0xc1c   :  { %3625 = vmatpush.msra.mxu3 %v9508_v26  ;;  %3715 = vmatpush.msra.mxu0 %v9532_v8  ;;  %v9610_v26 = vld [vmem:[%s17284_s6 + $0x568] sm:$0xff]  ;;  %v9517_v8 = vld [vmem:[%s17285_s7 + $0xc0] sm:$0xff] }
 0xc1e   :  { %3626 = vmatpush.msra.mxu3 %v9507_v36  ;;  %3716 = vmatpush.msra.mxu0 %v9531_v60  ;;  %v9564_v36 = vld [vmem:[%s17284_s6 + $0x478] sm:$0xff]  ;;  %v9609_v60 = vld [vmem:[%s17284_s6 + $0x560] sm:$0xff] }
 0xc20   :  { %3627 = vmatpush.msra.mxu3 %v9506_v51  ;;  %3717 = vmatpush.msra.mxu0 %v9530_v48  ;;  %v9563_v51 = vld [vmem:[%s17284_s6 + $0x470] sm:$0xff]  ;;  %v9608_v48 = vld [vmem:[%s17284_s6 + $0x558] sm:$0xff] }
 0xc22   :  { %3628 = vmatpush.msra.mxu3 %v9505_v12  ;;  %3718 = vmatpush.msra.mxu0 %v9529_v13  ;;  %v9542_v12 = vld [vmem:[%s17285_s7 + $0xe8] sm:$0xff] }
 0xc23   :  { %9476 = vmatmul.msk.f32.gmra.mxu3 %vm3157_vm8, %v9472_v15  ;;  %v9562_v13 = vld [vmem:[%s17284_s6 + $0x468] sm:$0xff]  ;;  %v9607_v15 = vld [vmem:[%s17284_s6 + $0x550] sm:$0xff] }
 0xc24   :  { %3629 = vmatpush.msra.mxu3 %v9504_v17  ;;  %3719 = vmatpush.msra.mxu0 %v9528_v18  ;;  %v9561_v17 = vld [vmem:[%s17284_s6 + $0x460] sm:$0xff]  ;;  %v9606_v18 = vld [vmem:[%s17284_s6 + $0x548] sm:$0xff] }
 0xc26   :  { %3630 = vmatpush.msra.mxu3 %v9503_v19  ;;  %3720 = vmatpush.msra.mxu0 %v9527_v22  ;;  %v9518_v19 = vld [vmem:[%s17285_s7 + $0xc8] sm:$0xff]  ;;  %v9560_v22 = vld [vmem:[%s17284_s6 + $0x458] sm:$0xff] }
 0xc28   :  { %3631 = vmatpush.msra.mxu3 %v9502_v23  ;;  %3721 = vmatpush.msra.mxu0 %v9526_v24  ;;  %v9605_v23 = vld [vmem:[%s17284_s6 + $0x540] sm:$0xff]  ;;  %v9559_v24 = vld [vmem:[%s17284_s6 + $0x450] sm:$0xff] }
 0xc2a   :  { %3632 = vmatpush.msra.mxu3 %v9501_v59  ;;  %3722 = vmatpush.msra.mxu0 %v9525_v0  ;;  %v9604_v59 = vld [vmem:[%s17284_s6 + $0x538] sm:$0xff]  ;;  %v9543_v0 = vld [vmem:[%s17285_s7 + $0xf0] sm:$0xff] }
 0xc2b   :  { %3633 = vmatmul.f32.vlgmr.msra.gmra.mxu3 %v14086_v63  ;;  %3723 = vmatmul.f32.vlgmr.msra.gmra.mxu0 %v14086_v63 }
 0xc2c   :  { %3887 = vmatpush.msrb.mxu0 %v9588_v31  ;;  %v9558_v31 = vld [vmem:[%s17284_s6 + $0x448] sm:$0xff] }
 0xc2e   :  { %3888 = vmatpush.msrb.mxu0 %v9587_v32  ;;  %v9603_v32 = vld [vmem:[%s17284_s6 + $0x530] sm:$0xff] }
 0xc30   :  { %3889 = vmatpush.msrb.mxu0 %v9586_v33  ;;  %v9557_v33 = vld [vmem:[%s17284_s6 + $0x440] sm:$0xff] }
 0xc32   :  { %3890 = vmatpush.msrb.mxu0 %v9585_v40  ;;  %v9602_v40 = vld [vmem:[%s17284_s6 + $0x528] sm:$0xff] }
 0xc33   :  { %3636 = vmatmul.f32.gmra.mxu3 %v14090_v27  ;;  %3726 = vmatmul.f32.gmra.mxu0 %v14090_v27 }
 0xc34   :  { %3891 = vmatpush.msrb.mxu0 %v9584_v41  ;;  %v9519_v41 = vld [vmem:[%s17285_s7 + $0xd0] sm:$0xff] }
 0xc36   :  { %3892 = vmatpush.msrb.mxu0 %v9583_v49  ;;  %v9556_v49 = vld [vmem:[%s17284_s6 + $0x438] sm:$0xff] }
 0xc38   :  { %3893 = vmatpush.msrb.mxu0 %v9582_v42  ;;  %v9601_v42 = vld [vmem:[%s17284_s6 + $0x520] sm:$0xff] }
 0xc3a   :  { %3894 = vmatpush.msrb.mxu0 %v9581_v43  ;;  %v9555_v43 = vld [vmem:[%s17284_s6 + $0x430] sm:$0xff] }
 0xc3c   :  { %3895 = vmatpush.msrb.mxu0 %v9580_v44  ;;  %v9600_v44 = vld [vmem:[%s17284_s6 + $0x518] sm:$0xff] }
 0xc3e   :  { %3896 = vmatpush.msrb.mxu0 %v9579_v45  ;;  %v9544_v45 = vld [vmem:[%s17285_s7 + $0xf8] sm:$0xff] }
 0xc40   :  { %3897 = vmatpush.msrb.mxu0 %v9578_v54  ;;  %v9554_v54 = vld [vmem:[%s17284_s6 + $0x428] sm:$0xff] }
 0xc42   :  { %3898 = vmatpush.msrb.mxu0 %v9577_v55  ;;  %v9599_v55 = vld [vmem:[%s17284_s6 + $0x510] sm:$0xff] }
 0xc44   :  { %3899 = vmatpush.msrb.mxu0 %v9576_v46  ;;  %v9553_v46 = vld [vmem:[%s17284_s6 + $0x420] sm:$0xff] }
 0xc46   :  { %3900 = vmatpush.msrb.mxu0 %v9575_v47 }
 0xc48   :  { %3901 = vmatpush.msrb.mxu0 %v9574_v57  ;;  %v9598_v57 = vld [vmem:[%s17284_s6 + $0x508] sm:$0xff] }
 0xc4a   :  { %3902 = vmatpush.msrb.mxu0 %v9573_v52  ;;  %v9520_v52 = vld [vmem:[%s17285_s7 + $0xd8] sm:$0xff] }
 0xc4b   :  { %3903 = vmatmul.f32.vlgmr.msrb.gmra.mxu0 %v14086_v63 }
 0xc53   :  { %3906 = vmatmul.f32.gmra.mxu0 %v14090_v27 }
 0xc68   :  { %v14540_v14 = vpop.f32.mrf.mxu0 }
 0xc70   :  { %v14542_v61 = vpop.f32.mrf.mxu0 }
 0xc78   :  { %v14544_v34 = vpop.f32.mrf.mxu0 }
 0xc80   :  { %v14546_v2 = vpop.f32.mrf.mxu0 }
 0xc88   :  { %v3544_v56 = vpop.f32.mrf.mxu0 }
 0xc8e   :  { %v14548_v58 = vpop.f32.mrf.mxu3 }
 0xc90   :  { %v3547_v16 = vpop.f32.mrf.mxu0 }
 0xc91   :  { %3581 = vmatpush.msrb.mxu1 %v3547_v16  ;;  %v9597_v16 = vld [vmem:[%s17284_s6 + $0x500] sm:$0xff] }
 0xc93   :  { %3582 = vmatpush.msrb.mxu1 %v3544_v56  ;;  %v9552_v56 = vld [vmem:[%s17284_s6 + $0x418] sm:$0xff] }
 0xc94   :  { %9497 = vmatmul.msk.f32.vlgmr.msrb.gmra.mxu1 %vm3157_vm8, %v9493_v28  ;;  %v9660_v28 = vld [vmem:[%s17284_s6 + $0x678] sm:$0xff] }
 0xc96   :  { %v14553_v35 = vpop.f32.mrf.mxu3 }
 0xc9c   :  { %9498 = vmatmul.msk.f32.gmra.mxu1 %vm3157_vm8, %v9494_v4  ;;  %v9551_v4 = vld [vmem:[%s17284_s6 + $0x410] sm:$0xff] }
 0xc9e   :  { %v14559_v3 = vpop.f32.mrf.mxu3 }
 0xca4   :  { %9499 = vmatmul.msk.f32.gmra.mxu1 %vm3157_vm8, %v9495_v38  ;;  %v9659_v38 = vld [vmem:[%s17284_s6 + $0x670] sm:$0xff] }
 0xca6   :  { %v14565_v29 = vpop.f32.mrf.mxu3 }
 0xca8   :  { %v3724_v20 = vpop.f32.mrf.mxu0 }
 0xcac   :  { %9500 = vmatmul.msk.f32.gmra.mxu1 %vm3157_vm8, %v9496_v7  ;;  %v9658_v7 = vld [vmem:[%s17284_s6 + $0x668] sm:$0xff] }
 0xcae   :  { %v3634_v5 = vpop.f32.mrf.mxu3 }
 0xcb0   :  { %v3727_v53 = vpop.f32.mrf.mxu0 }
 0xcb1   :  { %3761 = vmatpush.msra.mxu1 %v3727_v53  ;;  %v9657_v53 = vld [vmem:[%s17284_s6 + $0x660] sm:$0xff] }
 0xcb3   :  { %3762 = vmatpush.msra.mxu1 %v3724_v20  ;;  %v9550_v20 = vld [vmem:[%s17284_s6 + $0x408] sm:$0xff] }
 0xcb4   :  { %9545 = vmatmul.msk.f32.vlgmr.msra.gmra.mxu1 %vm3157_vm8, %v9541_v39  ;;  %v9656_v39 = vld [vmem:[%s17284_s6 + $0x658] sm:$0xff] }
 0xcb5   :  { %3977 = vmatpush.msrb.mxu1 %v9612_v62 }
 0xcb6   :  { %v3637_v21 = vpop.f32.mrf.mxu3 }
 0xcb7   :  { %3671 = vmatpush.msra.mxu2 %v3637_v21  ;;  %3978 = vmatpush.msrb.mxu1 %v9611_v50  ;;  %v9636_v50 = vld [vmem:[%s17284_s6 + $0x5f8] sm:$0xff]  ;;  %v9655_v21 = vld [vmem:[%s17284_s6 + $0x650] sm:$0xff] }
 0xcb9   :  { %3672 = vmatpush.msra.mxu2 %v3634_v5  ;;  %3979 = vmatpush.msrb.mxu1 %v9610_v26  ;;  %v9549_v5 = vld [vmem:[%s17284_s6 + $0x400] sm:$0xff]  ;;  %v9635_v26 = vld [vmem:[%s17284_s6 + $0x5f0] sm:$0xff] }
 0xcba   :  { %9521 = vmatmul.msk.f32.vlgmr.msra.gmra.mxu2 %vm3157_vm8, %v9517_v8  ;;  %v9654_v8 = vld [vmem:[%s17284_s6 + $0x648] sm:$0xff] }
 0xcbb   :  { %3797 = vmatpush.msrb.mxu2 %v9564_v36  ;;  %3980 = vmatpush.msrb.mxu1 %v9609_v60  ;;  %v9634_v36 = vld [vmem:[%s17284_s6 + $0x5e8] sm:$0xff]  ;;  %v9653_v60 = vld [vmem:[%s17284_s6 + $0x640] sm:$0xff] }
 0xcbc   :  { %9546 = vmatmul.msk.f32.gmra.mxu1 %vm3157_vm8, %v9542_v12  ;;  %v9632_v12 = vld [vmem:[%s17284_s6 + $0x5d8] sm:$0xff] }
 0xcbd   :  { %3798 = vmatpush.msrb.mxu2 %v9563_v51  ;;  %3981 = vmatpush.msrb.mxu1 %v9608_v48  ;;  %v9633_v51 = vld [vmem:[%s17284_s6 + $0x5e0] sm:$0xff]  ;;  %v9652_v48 = vld [vmem:[%s17284_s6 + $0x638] sm:$0xff] }
 0xcbf   :  { %3799 = vmatpush.msrb.mxu2 %v9562_v13  ;;  %3982 = vmatpush.msrb.mxu1 %v9607_v15  ;;  %v9651_v13 = vld [vmem:[%s17284_s6 + $0x630] sm:$0xff] }
 0xcc0   :  { %v9631_v15 = vld [vmem:[%s17284_s6 + $0x5d0] sm:$0xff] }
 0xcc1   :  { %3800 = vmatpush.msrb.mxu2 %v9561_v17  ;;  %3983 = vmatpush.msrb.mxu1 %v9606_v18  ;;  %v9650_v17 = vld [vmem:[%s17284_s6 + $0x628] sm:$0xff] }
 0xcc2   :  { %9522 = vmatmul.msk.f32.gmra.mxu2 %vm3157_vm8, %v9518_v19  ;;  %v9630_v18 = vld [vmem:[%s17284_s6 + $0x5c8] sm:$0xff]  ;;  %v9649_v19 = vld [vmem:[%s17284_s6 + $0x620] sm:$0xff] }
 0xcc3   :  { %3801 = vmatpush.msrb.mxu2 %v9560_v22  ;;  %3984 = vmatpush.msrb.mxu1 %v9605_v23  ;;  %v9589_v22 = vld [vmem:[%s17285_s7 + $0x120] sm:$0xff] }
 0xcc4   :  { %9547 = vmatmul.msk.f32.gmra.mxu1 %vm3157_vm8, %v9543_v0  ;;  %v9629_v23 = vld [vmem:[%s17284_s6 + $0x5c0] sm:$0xff]  ;;  %v9647_v0 = vld [vmem:[%s17284_s6 + $0x610] sm:$0xff] }
 0xcc5   :  { %3802 = vmatpush.msrb.mxu2 %v9559_v24  ;;  %3985 = vmatpush.msrb.mxu1 %v9604_v59  ;;  %v9648_v24 = vld [vmem:[%s17284_s6 + $0x618] sm:$0xff] }
 0xcc6   :  { %v9628_v59 = vld [vmem:[%s17284_s6 + $0x5b8] sm:$0xff] }
 0xcc7   :  { %3803 = vmatpush.msrb.mxu2 %v9558_v31  ;;  %3986 = vmatpush.msrb.mxu1 %v9603_v32  ;;  %v9627_v31 = vld [vmem:[%s17284_s6 + $0x5b0] sm:$0xff]  ;;  %v14780_v32 = vpop.f32.mrf.mxu1 }
 0xcc8   :  { %v3904_v47 = vpop.f32.mrf.mxu0 }
 0xcc9   :  { %3804 = vmatpush.msrb.mxu2 %v9557_v33  ;;  %3987 = vmatpush.msrb.mxu1 %v9602_v40  ;;  %v9646_v33 = vld [vmem:[%s17284_s6 + $0x608] sm:$0xff] }
 0xcca   :  { %9523 = vmatmul.msk.f32.gmra.mxu2 %vm3157_vm8, %v9519_v41  ;;  %v9626_v40 = vld [vmem:[%s17284_s6 + $0x5a8] sm:$0xff]  ;;  %v9645_v41 = vld [vmem:[%s17284_s6 + $0x600] sm:$0xff] }
 0xccb   :  { %3805 = vmatpush.msrb.mxu2 %v9556_v49  ;;  %3988 = vmatpush.msrb.mxu1 %v9601_v42  ;;  %v9590_v49 = vld [vmem:[%s17285_s7 + $0x128] sm:$0xff]  ;;  %v9625_v42 = vld [vmem:[%s17284_s6 + $0x5a0] sm:$0xff] }
 0xccc   :  { %9548 = vmatmul.msk.f32.gmra.mxu1 %vm3157_vm8, %v9544_v45  ;;  %v9707_v45 = vld [vmem:[%s17284_s6 + $0x770] sm:$0xff] }
 0xccd   :  { %3806 = vmatpush.msrb.mxu2 %v9555_v43  ;;  %3989 = vmatpush.msrb.mxu1 %v9600_v44  ;;  %v9708_v43 = vld [vmem:[%s17284_s6 + $0x778] sm:$0xff] }
 0xcce   :  { %v9624_v44 = vld [vmem:[%s17284_s6 + $0x598] sm:$0xff] }
 0xccf   :  { %3807 = vmatpush.msrb.mxu2 %v9554_v54  ;;  %3990 = vmatpush.msrb.mxu1 %v9599_v55  ;;  %v9623_v54 = vld [vmem:[%s17284_s6 + $0x590] sm:$0xff]  ;;  %v9706_v55 = vld [vmem:[%s17284_s6 + $0x768] sm:$0xff] }
 0xcd0   :  { %v3907_v62 = vpop.f32.mrf.mxu0 }
 0xcd1   :  { %3808 = vmatpush.msrb.mxu2 %v9553_v46  ;;  %3991 = vmatpush.msrb.mxu1 %v9598_v57  ;;  %v9622_v46 = vld [vmem:[%s17284_s6 + $0x588] sm:$0xff]  ;;  %v9705_v57 = vld [vmem:[%s17284_s6 + $0x760] sm:$0xff] }
 0xcd2   :  { %9524 = vmatmul.msk.f32.gmra.mxu2 %vm3157_vm8, %v9520_v52  ;;  %v9591_v52 = vld [vmem:[%s17285_s7 + $0x130] sm:$0xff] }
 0xcd3   :  { %3809 = vmatpush.msrb.mxu2 %v9552_v56  ;;  %3992 = vmatpush.msrb.mxu1 %v9597_v16  ;;  %v9621_v56 = vld [vmem:[%s17284_s6 + $0x580] sm:$0xff]  ;;  %v9704_v16 = vld [vmem:[%s17284_s6 + $0x758] sm:$0xff] }
 0xcd4   :  { %3993 = vmatmul.f32.vlgmr.msrb.gmra.mxu1 %v14086_v63 }
 0xcd5   :  { %4157 = vmatpush.msra.mxu1 %v9660_v28  ;;  %3810 = vmatpush.msrb.mxu2 %v9551_v4  ;;  %v9703_v28 = vld [vmem:[%s17284_s6 + $0x750] sm:$0xff]  ;;  %v9702_v4 = vld [vmem:[%s17284_s6 + $0x748] sm:$0xff] }
 0xcd7   :  { %4158 = vmatpush.msra.mxu1 %v9659_v38  ;;  %3811 = vmatpush.msrb.mxu2 %v9550_v20  ;;  %v9701_v38 = vld [vmem:[%s17284_s6 + $0x740] sm:$0xff]  ;;  %v9592_v20 = vld [vmem:[%s17285_s7 + $0x138] sm:$0xff] }
 0xcd9   :  { %4159 = vmatpush.msra.mxu1 %v9658_v7  ;;  %3812 = vmatpush.msrb.mxu2 %v9549_v5  ;;  %v9700_v5 = vld [vmem:[%s17284_s6 + $0x738] sm:$0xff] }
 0xcda   :  { %3813 = vmatmul.f32.vlgmr.msrb.gmra.mxu2 %v14086_v63 }
 0xcdb   :  { %3941 = vmatpush.msra.mxu2 %v3907_v62  ;;  %4160 = vmatpush.msra.mxu1 %v9657_v53  ;;  %v9699_v53 = vld [vmem:[%s17284_s6 + $0x730] sm:$0xff]  ;;  %v9698_v62 = vld [vmem:[%s17284_s6 + $0x728] sm:$0xff] }
 0xcdc   :  { %3996 = vmatmul.f32.gmra.mxu1 %v14090_v27 }
 0xcdd   :  { %3942 = vmatpush.msra.mxu2 %v3904_v47  ;;  %4161 = vmatpush.msra.mxu1 %v9656_v39  ;;  %v14817_v47 = vpop.f32.mrf.mxu1  ;;  %v9697_v39 = vld [vmem:[%s17284_s6 + $0x720] sm:$0xff] }
 0xcdf   :  { %4067 = vmatpush.msrb.mxu2 %v9636_v50  ;;  %4162 = vmatpush.msra.mxu1 %v9655_v21  ;;  %v9696_v50 = vld [vmem:[%s17284_s6 + $0x718] sm:$0xff] }
 0xce1   :  { %4068 = vmatpush.msrb.mxu2 %v9635_v26  ;;  %4163 = vmatpush.msra.mxu1 %v9654_v8  ;;  %v9695_v26 = vld [vmem:[%s17284_s6 + $0x710] sm:$0xff]  ;;  %v9694_v8 = vld [vmem:[%s17284_s6 + $0x708] sm:$0xff] }
 0xce2   :  { %3816 = vmatmul.f32.gmra.mxu2 %v14090_v27 }
 0xce3   :  { %4069 = vmatpush.msrb.mxu2 %v9634_v36  ;;  %4164 = vmatpush.msra.mxu1 %v9653_v60  ;;  %v9693_v36 = vld [vmem:[%s17284_s6 + $0x700] sm:$0xff] }
 0xce5   :  { %4070 = vmatpush.msrb.mxu2 %v9633_v51  ;;  %4165 = vmatpush.msra.mxu1 %v9652_v48  ;;  %v14845_v7 = vpop.f32.mrf.mxu1 }
 0xce7   :  { %4071 = vmatpush.msrb.mxu2 %v9632_v12  ;;  %4166 = vmatpush.msra.mxu1 %v9651_v13 }
 0xce9   :  { %4072 = vmatpush.msrb.mxu2 %v9631_v15  ;;  %4167 = vmatpush.msra.mxu1 %v9650_v17 }
 0xcea   :  { %9593 = vmatmul.msk.f32.vlgmr.msra.gmra.mxu2 %vm3157_vm8, %v9589_v22 }
 0xceb   :  { %4073 = vmatpush.msrb.mxu2 %v9630_v18  ;;  %4168 = vmatpush.msra.mxu1 %v9649_v19 }
 0xced   :  { %4074 = vmatpush.msrb.mxu2 %v9629_v23  ;;  %4169 = vmatpush.msra.mxu1 %v9648_v24  ;;  %v14864_v21 = vpop.f32.mrf.mxu1 }
 0xcef   :  { %4075 = vmatpush.msrb.mxu2 %v9628_v59  ;;  %4170 = vmatpush.msra.mxu1 %v9647_v0 }
 0xcf1   :  { %4076 = vmatpush.msrb.mxu2 %v9627_v31  ;;  %4171 = vmatpush.msra.mxu1 %v9646_v33  ;;  %v9565_v33 = vld [vmem:[%s17285_s7 + $0x100] sm:$0xff] }
 0xcf2   :  { %9594 = vmatmul.msk.f32.gmra.mxu2 %vm3157_vm8, %v9590_v49  ;;  %v9566_v49 = vld [vmem:[%s17285_s7 + $0x108] sm:$0xff] }
 0xcf3   :  { %4077 = vmatpush.msrb.mxu2 %v9626_v40  ;;  %4172 = vmatpush.msra.mxu1 %v9645_v41 }
 0xcf4   :  { %4173 = vmatmul.f32.vlgmr.msra.gmra.mxu1 %v14086_v63 }
 0xcf5   :  { %4078 = vmatpush.msrb.mxu2 %v9625_v42  ;;  %4337 = vmatpush.msrb.mxu1 %v9708_v43 }
 0xcf7   :  { %4079 = vmatpush.msrb.mxu2 %v9624_v44  ;;  %4338 = vmatpush.msrb.mxu1 %v9707_v45  ;;  %v9567_v44 = vld [vmem:[%s17285_s7 + $0x110] sm:$0xff] }
 0xcf9   :  { %4080 = vmatpush.msrb.mxu2 %v9623_v54  ;;  %4339 = vmatpush.msrb.mxu1 %v9706_v55  ;;  %v9568_v55 = vld [vmem:[%s17285_s7 + $0x118] sm:$0xff] }
 0xcfa   :  { %9595 = vmatmul.msk.f32.gmra.mxu2 %vm3157_vm8, %v9591_v52  ;;  %v9732_v52 = vld [vmem:[%s17284_s6 + $0x7f8] sm:$0xff] }
 0xcfb   :  { %4081 = vmatpush.msrb.mxu2 %v9622_v46  ;;  %4340 = vmatpush.msrb.mxu1 %v9705_v57  ;;  %v9613_v57 = vld [vmem:[%s17285_s7 + $0x140] sm:$0xff] }
 0xcfc   :  { %4176 = vmatmul.f32.gmra.mxu1 %v14090_v27 }
 0xcfd   :  { %4082 = vmatpush.msrb.mxu2 %v9621_v56  ;;  %4341 = vmatpush.msrb.mxu1 %v9704_v16  ;;  %v9731_v56 = vld [vmem:[%s17284_s6 + $0x7f0] sm:$0xff] }
 0xcff   :  { %4342 = vmatpush.msrb.mxu1 %v9703_v28  ;;  %v9730_v28 = vld [vmem:[%s17284_s6 + $0x7e8] sm:$0xff] }
 0xd01   :  { %4343 = vmatpush.msrb.mxu1 %v9702_v4  ;;  %v9614_v4 = vld [vmem:[%s17285_s7 + $0x148] sm:$0xff] }
 0xd02   :  { %9596 = vmatmul.msk.f32.gmra.mxu2 %vm3157_vm8, %v9592_v20  ;;  %v9728_v20 = vld [vmem:[%s17284_s6 + $0x7d8] sm:$0xff] }
 0xd03   :  { %4344 = vmatpush.msrb.mxu1 %v9701_v38  ;;  %v9729_v38 = vld [vmem:[%s17284_s6 + $0x7e0] sm:$0xff] }
 0xd05   :  { %4345 = vmatpush.msrb.mxu1 %v9700_v5  ;;  %v9727_v5 = vld [vmem:[%s17284_s6 + $0x7d0] sm:$0xff] }
 0xd07   :  { %4346 = vmatpush.msrb.mxu1 %v9699_v53 }
 0xd09   :  { %4347 = vmatpush.msrb.mxu1 %v9698_v62  ;;  %v9637_v62 = vld [vmem:[%s17285_s7 + $0x160] sm:$0xff] }
 0xd0a   :  { %4083 = vmatmul.f32.vlgmr.msrb.gmra.mxu2 %v14086_v63 }
 0xd0b   :  { %4348 = vmatpush.msrb.mxu1 %v9697_v39  ;;  %v9726_v39 = vld [vmem:[%s17284_s6 + $0x7c8] sm:$0xff] }
 0xd0d   :  { %4349 = vmatpush.msrb.mxu1 %v9696_v50  ;;  %v9615_v50 = vld [vmem:[%s17285_s7 + $0x150] sm:$0xff] }
 0xd0f   :  { %4350 = vmatpush.msrb.mxu1 %v9695_v26  ;;  %v9684_v26 = vld [vmem:[%s17284_s6 + $0x6f8] sm:$0xff] }
 0xd11   :  { %4351 = vmatpush.msrb.mxu1 %v9694_v8  ;;  %v14877_v60 = vpop.f32.mrf.mxu1  ;;  %v9683_v8 = vld [vmem:[%s17284_s6 + $0x6f0] sm:$0xff] }
 0xd12   :  { %4086 = vmatmul.f32.gmra.mxu2 %v14090_v27 }
 0xd13   :  { %4352 = vmatpush.msrb.mxu1 %v9693_v36  ;;  %v9725_v36 = vld [vmem:[%s17284_s6 + $0x7c0] sm:$0xff] }
 0xd14   :  { %4353 = vmatmul.f32.vlgmr.msrb.gmra.mxu1 %v14086_v63 }
 0xd19   :  { %v14880_v51 = vpop.f32.mrf.mxu1 }
 0xd1c   :  { %4356 = vmatmul.f32.gmra.mxu1 %v14090_v27 }
 0xd21   :  { %v14882_v48 = vpop.f32.mrf.mxu1 }
 0xd29   :  { %v14884_v12 = vpop.f32.mrf.mxu1 }
 0xd31   :  { %v14886_v13 = vpop.f32.mrf.mxu1 }
 0xd39   :  { %v14890_v17 = vpop.f32.mrf.mxu1 }
 0xd3d   :  { %v14888_v15 = vpop.f32.mrf.mxu2 }
 0xd41   :  { %v14894_v19 = vpop.f32.mrf.mxu1 }
 0xd45   :  { %v14892_v18 = vpop.f32.mrf.mxu2 }
 0xd49   :  { %v14898_v23 = vpop.f32.mrf.mxu1 }
 0xd4d   :  { %v14896_v22 = vpop.f32.mrf.mxu2 }
 0xd51   :  { %v3994_v0 = vpop.f32.mrf.mxu1 }
 0xd55   :  { %v14900_v24 = vpop.f32.mrf.mxu2 }
 0xd59   :  { %v3997_v40 = vpop.f32.mrf.mxu1 }
 0xd5d   :  { %v3814_v59 = vpop.f32.mrf.mxu2 }
 0xd65   :  { %v3817_v31 = vpop.f32.mrf.mxu2 }
 0xd66   :  { %3851 = vmatpush.msrb.mxu3 %v3817_v31  ;;  %v9723_v31 = vld [vmem:[%s17284_s6 + $0x7b0] sm:$0xff] }
 0xd68   :  { %3852 = vmatpush.msrb.mxu3 %v3814_v59  ;;  %v9682_v59 = vld [vmem:[%s17284_s6 + $0x6e8] sm:$0xff] }
 0xd69   :  { %9569 = vmatmul.msk.f32.vlgmr.msrb.gmra.mxu3 %vm3157_vm8, %v9565_v33  ;;  %v9681_v33 = vld [vmem:[%s17284_s6 + $0x6e0] sm:$0xff] }
 0xd6a   :  { %4031 = vmatpush.msra.mxu3 %v3997_v40  ;;  %v9638_v40 = vld [vmem:[%s17285_s7 + $0x168] sm:$0xff] }
 0xd6c   :  { %4032 = vmatpush.msra.mxu3 %v3994_v0  ;;  %v9724_v0 = vld [vmem:[%s17284_s6 + $0x7b8] sm:$0xff] }
 0xd6d   :  { %v14906_v41 = vpop.f32.mrf.mxu2 }
 0xd71   :  { %v4174_v42 = vpop.f32.mrf.mxu1  ;;  %9570 = vmatmul.msk.f32.gmra.mxu3 %vm3157_vm8, %v9566_v49  ;;  %v9722_v49 = vld [vmem:[%s17284_s6 + $0x7a8] sm:$0xff] }
 0xd75   :  { %v14912_v43 = vpop.f32.mrf.mxu2 }
 0xd79   :  { %v4177_v45 = vpop.f32.mrf.mxu1  ;;  %9571 = vmatmul.msk.f32.gmra.mxu3 %vm3157_vm8, %v9567_v44  ;;  %v9680_v44 = vld [vmem:[%s17284_s6 + $0x6d8] sm:$0xff] }
 0xd7a   :  { %4211 = vmatpush.msrb.mxu3 %v4177_v45  ;;  %v9721_v45 = vld [vmem:[%s17284_s6 + $0x7a0] sm:$0xff] }
 0xd7c   :  { %4212 = vmatpush.msrb.mxu3 %v4174_v42  ;;  %v9616_v42 = vld [vmem:[%s17285_s7 + $0x158] sm:$0xff] }
 0xd7d   :  { %v14918_v54 = vpop.f32.mrf.mxu2 }
 0xd81   :  { %9572 = vmatmul.msk.f32.gmra.mxu3 %vm3157_vm8, %v9568_v55  ;;  %v9679_v55 = vld [vmem:[%s17284_s6 + $0x6d0] sm:$0xff] }
 0xd85   :  { %v14924_v46 = vpop.f32.mrf.mxu2 }
 0xd89   :  { %9617 = vmatmul.msk.f32.vlgmr.msra.gmra.mxu3 %vm3157_vm8, %v9613_v57  ;;  %v9720_v57 = vld [vmem:[%s17284_s6 + $0x798] sm:$0xff] }
 0xd8a   :  { %4427 = vmatpush.msra.mxu3 %v9732_v52  ;;  %v9678_v52 = vld [vmem:[%s17284_s6 + $0x6c8] sm:$0xff] }
 0xd8c   :  { %4428 = vmatpush.msra.mxu3 %v9731_v56  ;;  %v9719_v56 = vld [vmem:[%s17284_s6 + $0x790] sm:$0xff] }
 0xd8d   :  { %v4084_v16 = vpop.f32.mrf.mxu2 }
 0xd8e   :  { %4429 = vmatpush.msra.mxu3 %v9730_v28  ;;  %v9639_v28 = vld [vmem:[%s17285_s7 + $0x170] sm:$0xff] }
 0xd90   :  { %4430 = vmatpush.msra.mxu3 %v9729_v38  ;;  %v9661_v38 = vld [vmem:[%s17285_s7 + $0x180] sm:$0xff] }
 0xd91   :  { %9618 = vmatmul.msk.f32.gmra.mxu3 %vm3157_vm8, %v9614_v4  ;;  %v9718_v4 = vld [vmem:[%s17284_s6 + $0x788] sm:$0xff] }
 0xd92   :  { %4431 = vmatpush.msra.mxu3 %v9728_v20  ;;  %v9676_v20 = vld [vmem:[%s17284_s6 + $0x6b8] sm:$0xff] }
 0xd94   :  { %4432 = vmatpush.msra.mxu3 %v9727_v5  ;;  %v9717_v5 = vld [vmem:[%s17284_s6 + $0x780] sm:$0xff] }
 0xd95   :  { %v4087_v53 = vpop.f32.mrf.mxu2 }
 0xd96   :  { %4121 = vmatpush.msra.mxu0 %v4087_v53  ;;  %4433 = vmatpush.msra.mxu3 %v9726_v39  ;;  %v9675_v53 = vld [vmem:[%s17284_s6 + $0x6b0] sm:$0xff]  ;;  %v9673_v39 = vld [vmem:[%s17284_s6 + $0x6a0] sm:$0xff] }
 0xd98   :  { %4122 = vmatpush.msra.mxu0 %v4084_v16  ;;  %4434 = vmatpush.msra.mxu3 %v9725_v36  ;;  %v9677_v16 = vld [vmem:[%s17284_s6 + $0x6c0] sm:$0xff]  ;;  %v9672_v36 = vld [vmem:[%s17284_s6 + $0x698] sm:$0xff] }
 0xd99   :  { %9641 = vmatmul.msk.f32.vlgmr.msra.gmra.mxu0 %vm3157_vm8, %v9637_v62  ;;  %9619 = vmatmul.msk.f32.gmra.mxu3 %vm3157_vm8, %v9615_v50  ;;  %v9674_v62 = vld [vmem:[%s17284_s6 + $0x6a8] sm:$0xff]  ;;  %v4354_v50 = vpop.f32.mrf.mxu1 }
 0xd9a   :  { %4247 = vmatpush.msrb.mxu0 %v9684_v26  ;;  %4435 = vmatpush.msra.mxu3 %v9724_v0  ;;  %v9640_v26 = vld [vmem:[%s17285_s7 + $0x178] sm:$0xff]  ;;  %v9670_v0 = vld [vmem:[%s17284_s6 + $0x688] sm:$0xff] }
 0xd9c   :  { %4248 = vmatpush.msrb.mxu0 %v9683_v8  ;;  %4436 = vmatpush.msra.mxu3 %v9723_v31  ;;  %v9662_v8 = vld [vmem:[%s17285_s7 + $0x188] sm:$0xff]  ;;  %v9669_v31 = vld [vmem:[%s17284_s6 + $0x680] sm:$0xff] }
 0xd9e   :  { %4249 = vmatpush.msrb.mxu0 %v9682_v59  ;;  %4437 = vmatpush.msra.mxu3 %v9722_v49  ;;  %v9671_v59 = vld [vmem:[%s17284_s6 + $0x690] sm:$0xff]  ;;  %v9664_v49 = vld [vmem:[%s17285_s7 + $0x198] sm:$0xff] }
 0xda0   :  { %4250 = vmatpush.msrb.mxu0 %v9681_v33  ;;  %4438 = vmatpush.msra.mxu3 %v9721_v45  ;;  %v9663_v33 = vld [vmem:[%s17285_s7 + $0x190] sm:$0xff] }
 0xda1   :  { %9642 = vmatmul.msk.f32.gmra.mxu0 %vm3157_vm8, %v9638_v40  ;;  %9620 = vmatmul.msk.f32.gmra.mxu3 %vm3157_vm8, %v9616_v42  ;;  %v4357_v40 = vpop.f32.mrf.mxu1 }
 0xda2   :  { %4251 = vmatpush.msrb.mxu0 %v9680_v44  ;;  %4439 = vmatpush.msra.mxu3 %v9720_v57 }
 0xda4   :  { %4252 = vmatpush.msrb.mxu0 %v9679_v55  ;;  %4440 = vmatpush.msra.mxu3 %v9719_v56 }
 0xda6   :  { %4253 = vmatpush.msrb.mxu0 %v9678_v52  ;;  %4441 = vmatpush.msra.mxu3 %v9718_v4  ;;  %v9709_v4 = vld [vmem:[%s17285_s7 + $0x1c0] sm:$0xff] }
 0xda8   :  { %4254 = vmatpush.msrb.mxu0 %v9677_v16  ;;  %4442 = vmatpush.msra.mxu3 %v9717_v5  ;;  %v9710_v5 = vld [vmem:[%s17285_s7 + $0x1c8] sm:$0xff] }
 0xda9   :  { %9643 = vmatmul.msk.f32.gmra.mxu0 %vm3157_vm8, %v9639_v28  ;;  %9665 = vmatmul.msk.f32.vlgmr.msrb.gmra.mxu3 %vm3157_vm8, %v9661_v38 }
 0xdaa   :  { %4255 = vmatpush.msrb.mxu0 %v9676_v20 }
 0xdac   :  { %4256 = vmatpush.msrb.mxu0 %v9675_v53 }
 0xdae   :  { %4257 = vmatpush.msrb.mxu0 %v9674_v62 }
 0xdb0   :  { %4258 = vmatpush.msrb.mxu0 %v9673_v39  ;;  %v9711_v39 = vld [vmem:[%s17285_s7 + $0x1d0] sm:$0xff] }
 0xdb1   :  { %9644 = vmatmul.msk.f32.gmra.mxu0 %vm3157_vm8, %v9640_v26  ;;  %9666 = vmatmul.msk.f32.gmra.mxu3 %vm3157_vm8, %v9662_v8  ;;  %v9685_v8 = vld [vmem:[%s17285_s7 + $0x1a0] sm:$0xff] }
 0xdb2   :  { %4259 = vmatpush.msrb.mxu0 %v9672_v36  ;;  %v9712_v36 = vld [vmem:[%s17285_s7 + $0x1d8] sm:$0xff] }
 0xdb4   :  { %4260 = vmatpush.msrb.mxu0 %v9671_v59 }
 0xdb6   :  { %4261 = vmatpush.msrb.mxu0 %v9670_v0  ;;  %v9686_v0 = vld [vmem:[%s17285_s7 + $0x1a8] sm:$0xff] }
 0xdb8   :  { %4262 = vmatpush.msrb.mxu0 %v9669_v31 }
 0xdb9   :  { %9667 = vmatmul.msk.f32.gmra.mxu3 %vm3157_vm8, %v9663_v33  ;;  %4263 = vmatmul.f32.vlgmr.msrb.gmra.mxu0 %v14086_v63  ;;  %v9687_v33 = vld [vmem:[%s17285_s7 + $0x1b0] sm:$0xff] }
 0xdba   :  { %4391 = vmatpush.msra.mxu0 %v4357_v40  ;;  %v4501_v40 = vld [vmem:[%s17280_s8 + $0x8] sm:$0xff] }
 0xdbb   :  { %4511 = vperm.xlu2 %10338, %v4501_v40  }
 0xdbc   :  { %4392 = vmatpush.msra.mxu0 %v4354_v50 }
 0xdc1   :  { %9668 = vmatmul.msk.f32.gmra.mxu3 %vm3157_vm8, %v9664_v49  ;;  %4266 = vmatmul.f32.gmra.mxu0 %v14090_v27 }
 0xdc9   :  { %4443 = vmatmul.f32.vlgmr.msra.gmra.mxu3 %v14086_v63  ;;  %9713 = vmatmul.msk.f32.vlgmr.msra.gmra.mxu0 %vm3157_vm8, %v9709_v4  ;;  %v9688_v4 = vld [vmem:[%s17285_s7 + $0x1b8] sm:$0xff] }
 0xdd1   :  { %4446 = vmatmul.f32.gmra.mxu3 %v14090_v27  ;;  %9714 = vmatmul.msk.f32.gmra.mxu0 %vm3157_vm8, %v9710_v5  ;;  %v4502_v5 = vld [vmem:[%s17280_s8 + $0x10] sm:$0xff] }
 0xdd2   :  { %4516 = vperm.xlu2 %10338, %v4502_v5   ;;  %v9748_v5 = vld [vmem:[%s17286_s9 + $0x38] sm:$0xff] }
 0xdd3   :  { %4611 = vmatpush.msrb.mxu3 %v9748_v5 }
 0xdd9   :  { %9715 = vmatmul.msk.f32.gmra.mxu0 %vm3157_vm8, %v9711_v39  ;;  %v6392_v39 = vld [vmem:[%s17282_s11 + $0x8] sm:$0xff] }
 0xdda   :  { %6406 = vperm.xlu2 %10338, %v6392_v39   ;;  %v4542_v39 = vld [vmem:[%s17286_s9 + $0x10] sm:$0xff] }
 0xde1   :  { %9716 = vmatmul.msk.f32.gmra.mxu0 %vm3157_vm8, %v9712_v36  ;;  %v9735_v36 = vld [vmem:[%s17285_s7 + $0x1f0] sm:$0xff] }
 0xdec   :  { %v15074_v42 = vpop.f32.mrf.mxu3 }
 0xdf4   :  { %v15076_v44 = vpop.f32.mrf.mxu3 }
 0xdfc   :  { %v15078_v45 = vpop.f32.mrf.mxu3 }
 0xe04   :  { %v15080_v55 = vpop.f32.mrf.mxu3 }
 0xe0c   :  { %v15082_v57 = vpop.f32.mrf.mxu3 }
 0xe14   :  { %v15084_v52 = vpop.f32.mrf.mxu3 }
 0xe16   :  { %v15086_v56 = vpop.f32.mrf.mxu0 }
 0xe1c   :  { %v15088_v16 = vpop.f32.mrf.mxu3 }
 0xe1e   :  { %v15090_v28 = vpop.f32.mrf.mxu0 }
 0xe24   :  { %v15092_v63 = vpop.f32.mrf.mxu3 }
 0xe26   :  { %v15094_v27 = vpop.f32.mrf.mxu0 }
 0xe2c   :  { %v15100_v38 = vpop.f32.mrf.mxu3 }
 0xe2e   :  { %v15102_v20 = vpop.f32.mrf.mxu0 }
 0xe34   :  { %v15108_v53 = vpop.f32.mrf.mxu3 }
 0xe36   :  { %v4264_v62 = vpop.f32.mrf.mxu0 }
 0xe3c   :  { %v15114_v50 = vpop.f32.mrf.mxu3 }
 0xe3e   :  { %v4267_v26 = vpop.f32.mrf.mxu0 }
 0xe3f   :  { %4301 = vmatpush.msra.mxu2 %v4267_v26  ;;  %v9734_v26 = vld [vmem:[%s17285_s7 + $0x1e8] sm:$0xff] }
 0xe41   :  { %4302 = vmatpush.msra.mxu2 %v4264_v62  ;;  %v9733_v62 = vld [vmem:[%s17285_s7 + $0x1e0] sm:$0xff] }
 0xe42   :  { %9689 = vmatmul.msk.f32.vlgmr.msra.gmra.mxu2 %vm3157_vm8, %v9685_v8  ;;  %v6395_v8 = vld [vmem:[%s17282_s11 + $0x20] sm:$0xff] }
 0xe43   :  { %6421 = vperm.xlu2 %10338, %v6395_v8  }
 0xe44   :  { %v15124_v59 = vpop.f32.mrf.mxu3 }
 0xe4a   :  { %9690 = vmatmul.msk.f32.gmra.mxu2 %vm3157_vm8, %v9686_v0  ;;  %v6398_v0 = vld [vmem:[%s17282_s11 + $0x38] sm:$0xff] }
 0xe4b   :  { %6436 = vperm.xlu2 %10338, %v6398_v0  }
 0xe4c   :  { %v4444_v31 = vpop.f32.mrf.mxu3 }
 0xe52   :  { %9691 = vmatmul.msk.f32.gmra.mxu2 %vm3157_vm8, %v9687_v33  ;;  %v3229_v33 = vadd.f32 %v14278_v1, %v14276_v25  ;;  %v9747_v25 = vld [vmem:[%s17286_s9 + $0x30] sm:$0xff]  ;;  %v3232_v1 = vadd.f32 %v14282_v30, %v14280_v37  ;;  %v4540_v37 = vld [vmem:[%s17286_s9] sm:$0xff] }
 0xe53   :  { %4612 = vmatpush.msrb.mxu3 %v9747_v25  ;;  %v9745_v30 = vld [vmem:[%s17286_s9 + $0x20] sm:$0xff] }
 0xe54   :  { %v4447_v49 = vpop.f32.mrf.mxu3  ;;  %v3326_v40 = vadd.f32 %v14540_v14, %v3229_v33  ;;  %v3327_v8 = vadd.f32 %v14542_v61, %v3232_v1  ;;  %v3235_v61 = vadd.f32 %v14286_v9, %v14284_v6  ;;  %v3238_v6 = vadd.f32 %v14290_v11, %v14288_v10 }
 0xe55   :  { %4481 = vmatpush.msrb.mxu2 %v4447_v49 }
 0xe57   :  { %4482 = vmatpush.msrb.mxu2 %v4444_v31  ;;  %v9736_v31 = vld [vmem:[%s17285_s7 + $0x1f8] sm:$0xff] }
 0xe5a   :  { %9692 = vmatmul.msk.f32.gmra.mxu2 %vm3157_vm8, %v9688_v4  ;;  %v4543_v4 = vld [vmem:[%s17286_s9 + $0x18] sm:$0xff] }
 0xe5b   :  { %4569 = vmatpush.msra.mxu1 %v4543_v4 }
 0xe5d   :  { %4570 = vmatpush.msra.mxu1 %v4542_v39 }
 0xe62   :  { %9737 = vmatmul.msk.f32.vlgmr.msrb.gmra.mxu2 %vm3157_vm8, %v9733_v62  ;;  %v3416_v62 = vadd.f32 %v14780_v32, %v3326_v40  ;;  %v9746_v32 = vld [vmem:[%s17286_s9 + $0x28] sm:$0xff]  ;;  %v3328_v40 = vadd.f32 %v14544_v34, %v3235_v61 }
 0xe63   :  { %4613 = vmatpush.msrb.mxu3 %v9746_v32  ;;  %v9777_v32 = vld [vmem:[%s17286_s9 + $0x40] sm:$0xff] }
 0xe64   :  { %v3506_v14 = vadd.f32 %v14548_v58, %v3416_v62 }
 0xe65   :  { %4614 = vmatpush.msrb.mxu3 %v9745_v30 }
 0xe6a   :  { %9738 = vmatmul.msk.f32.gmra.mxu2 %vm3157_vm8, %v9734_v26  ;;  %v4541_v26 = vld [vmem:[%s17286_s9 + $0x8] sm:$0xff] }
 0xe6b   :  { %4571 = vmatpush.msra.mxu1 %v4541_v26 }
 0xe6d   :  { %4572 = vmatpush.msra.mxu1 %v4540_v37 }
 0xe72   :  { %9739 = vmatmul.msk.f32.gmra.mxu2 %vm3157_vm8, %v9735_v36  ;;  %v3596_v36 = vadd.f32 %v14877_v60, %v3506_v14 }
 0xe74   :  { %v3686_v0 = vadd.f32 %v14888_v15, %v3596_v36  ;;  %v3418_v15 = vadd.f32 %v14845_v7, %v3328_v40 }
 0xe76   :  { %v3776_v33 = vadd.f32 %v14886_v13, %v3686_v0  ;;  %v3508_v9 = vadd.f32 %v14559_v3, %v3418_v15  ;;  %v4394_v13 = vpop.f32.mrf.mxu0 }
 0xe78   :  { %v3866_v5 = vadd.f32 %v15074_v42, %v3776_v33  ;;  %v3598_v42 = vadd.f32 %v14882_v48, %v3508_v9 }
 0xe7a   :  { %9740 = vmatmul.msk.f32.gmra.mxu2 %vm3157_vm8, %v9736_v31  ;;  %v3417_v31 = vadd.f32 %v14817_v47, %v3327_v8  ;;  %v3956_v47 = vadd.f32 %v14906_v41, %v3866_v5  ;;  %v3688_v41 = vadd.f32 %v14896_v22, %v3598_v42  ;;  %vm7636_vm8 = vcmask 1041408  }
 0xe7c   :  { %v3507_v60 = vadd.f32 %v14553_v35, %v3417_v31  ;;  %v4046_v34 = vadd.f32 %v15082_v57, %v3956_v47 }
 0xe7e   :  { %v3597_v4 = vadd.f32 %v14880_v51, %v3507_v60  ;;  %v3329_v51 = vadd.f32 %v14546_v2, %v3238_v6  ;;  %v4136_v7 = vadd.f32 %v15086_v56, %v4046_v34  ;;  %v3778_v2 = vadd.f32 %v14894_v19, %v3688_v41  ;;  %v4397_v14 = vpop.f32.mrf.mxu0  ;;  %v9801_v41 = vld [vmem:[%s17286_s9 + $0x60] sm:$0xff] }
 0xe80   :  { %v3687_v39 = vadd.f32 %v14892_v18, %v3597_v4  ;;  %v4226_v10 = vadd.f32 %v15100_v38, %v4136_v7  ;;  %v3419_v11 = vadd.f32 %v14864_v21, %v3329_v51  ;;  %v3868_v56 = vadd.f32 %v15078_v45, %v3778_v2  ;;  %v4507_v45 = vpop.permute.xlu1 %4506  ;;  %v4522_v51 = vpop.permute.xlu0 %4521  ;;  %v9803_v7 = vld [vmem:[%s17286_s9 + $0x70] sm:$0xff] }
 0xe82   :  { %v3777_v35 = vadd.f32 %v14890_v17, %v3687_v39  ;;  %v3509_v57 = vadd.f32 %v14565_v29, %v3419_v11  ;;  %v9779_v29 = vld [vmem:[%s17286_s9 + $0x50] sm:$0xff] }
 0xe84   :  { %v3867_v18 = vadd.f32 %v15076_v44, %v3777_v35  ;;  %v3599_v44 = vadd.f32 %v14884_v12, %v3509_v57 }
 0xe86   :  { %v3957_v3 = vadd.f32 %v14912_v43, %v3867_v18  ;;  %v3689_v38 = vadd.f32 %v14900_v24, %v3599_v44  ;;  %v9780_v43 = vld [vmem:[%s17286_s9 + $0x58] sm:$0xff]  ;;  %v3958_v24 = vadd.f32 %v14918_v54, %v3868_v56  ;;  %v4400_v31 = vpop.f32.mrf.mxu0  ;;  %v4586_v44 = vld [vmem:[%s17287_s10] sm:$0xff] }
 0xe87   :  { %4784 = vmatpush.msrb.mxu1 %v9780_v43  ;;  %v9804_v18 = vld [vmem:[%s17286_s9 + $0x78] sm:$0xff]  ;;  %v4588_v43 = vld [vmem:[%s17287_s10 + $0x10] sm:$0xff] }
 0xe88   :  { %v4047_v48 = vadd.f32 %v15084_v52, %v3957_v3  ;;  %v9778_v52 = vld [vmem:[%s17286_s9 + $0x48] sm:$0xff]  ;;  %v3779_v26 = vadd.f32 %v14898_v23, %v3689_v38 }
 0xe89   :  { %4785 = vmatpush.msrb.mxu1 %v9779_v29  ;;  %v4587_v38 = vld [vmem:[%s17287_s10 + $0x8] sm:$0xff] }
 0xe8a   :  { %v4137_v1 = vadd.f32 %v15090_v28, %v4047_v48  ;;  %v3869_v36 = vadd.f32 %v15080_v55, %v3779_v26  ;;  %v9785_v26 = vld [vmem:[%s17287_s10 + $0x80] sm:$0xff] }
 0xe8b   :  { %4786 = vmatpush.msrb.mxu1 %v9778_v52  ;;  %v9828_v52 = vld [vmem:[%s17286_s9 + $0x98] sm:$0xff] }
 0xe8c   :  { %v4227_v19 = vadd.f32 %v15108_v53, %v4137_v1  ;;  %v4048_v53 = vadd.f32 %v15088_v16, %v3958_v24  ;;  %v3959_v55 = vadd.f32 %v14924_v46, %v3869_v36  ;;  %v9756_v24 = vld [vmem:[%s17287_s10 + $0x58] sm:$0xff]  ;;  %v9757_v36 = vld [vmem:[%s17287_s10 + $0x60] sm:$0xff] }
 0xe8d   :  { %4787 = vmatpush.msrb.mxu1 %v9777_v32  ;;  %v9826_v32 = vld [vmem:[%s17286_s9 + $0x88] sm:$0xff] }
 0xe8e   :  { %v4138_v37 = vadd.f32 %v15094_v27, %v4048_v53  ;;  %v4049_v60 = vadd.f32 %v15092_v63, %v3959_v55  ;;  %v4403_v47 = vpop.f32.mrf.mxu0  ;;  %v9825_v53 = vld [vmem:[%s17286_s9 + $0x80] sm:$0xff]  ;;  %v9759_v55 = vld [vmem:[%s17287_s10 + $0x70] sm:$0xff] }
 0xe90   :  { %v4228_v16 = vadd.f32 %v15114_v50, %v4138_v37  ;;  %v4139_v40 = vadd.f32 %v15102_v20, %v4049_v60  ;;  %v4591_v37 = vld [vmem:[%s17287_s10 + $0x28] sm:$0xff] }
 0xe92   :  { %v4229_v46 = vadd.f32 %v15124_v59, %v4139_v40  ;;  %v9851_v40 = vld [vmem:[%s17286_s9 + $0xb0] sm:$0xff] }
 0xec5   :  { %v4304_v49 = vpop.f32.mrf.mxu2 }
 0xec6   :  { %v4316_v17 = vadd.f32 %v4304_v49, %v4226_v10 }
 0xec8   :  { %v4406_v22 = vadd.f32 %v4394_v13, %v4316_v17 }
 0xecd   :  { %v4307_v58 = vpop.f32.mrf.mxu2 }
 0xece   :  { %v4317_v28 = vadd.f32 %v4307_v58, %v4227_v19  ;;  %v4512_v58 = vpop.permute.xlu2 %4511  ;;  %v9755_v19 = vld [vmem:[%s17287_s10 + $0x50] sm:$0xff] }
 0xed0   :  { %v4407_v54 = vadd.f32 %v4397_v14, %v4317_v28  ;;  %v9827_v28 = vld [vmem:[%s17286_s9 + $0x90] sm:$0xff] }
 0xed5   :  { %v4310_v62 = vpop.f32.mrf.mxu2 }
 0xed6   :  { %v4318_v61 = vadd.f32 %v4310_v62, %v4228_v16  ;;  %v4517_v62 = vpop.permute.xlu2 %4516  ;;  %v4592_v16 = vld [vmem:[%s17287_s10 + $0x30] sm:$0xff] }
 0xed8   :  { %v4408_v4 = vadd.f32 %v4400_v31, %v4318_v61  ;;  %v4593_v61 = vld [vmem:[%s17287_s10 + $0x38] sm:$0xff] }
 0xedd   :  { %v4313_v25 = vpop.f32.mrf.mxu2 }
 0xede   :  { %v4319_v15 = vadd.f32 %v4313_v25, %v4229_v46  ;;  %v9802_v25 = vld [vmem:[%s17286_s9 + $0x68] sm:$0xff]  ;;  %v9789_v46 = vld [vmem:[%s17287_s10 + $0xa0] sm:$0xff] }
 0xee0   :  { %v4409_v20 = vadd.f32 %v4403_v47, %v4319_v15  ;;  %v9790_v15 = vld [vmem:[%s17287_s10 + $0xa8] sm:$0xff]  ;;  %v9791_v47 = vld [vmem:[%s17287_s10 + $0xb0] sm:$0xff] }
 0xee5   :  { %v4484_v21 = vpop.f32.mrf.mxu2 }
 0xee6   :  { %v4496_v12 = vadd.f32 %v4484_v21, %v4406_v22  ;;  %v9753_v22 = vld [vmem:[%s17287_s10 + $0x40] sm:$0xff]  ;;  %v9754_v21 = vld [vmem:[%s17287_s10 + $0x48] sm:$0xff] }
 0xee8   :  { %v4524_v49 = vadd.f32 %v4507_v45, %v4496_v12  ;;  %v4589_v12 = vld [vmem:[%s17287_s10 + $0x18] sm:$0xff] }
 0xeea   :  { %vm4528_vm9 = vcmp.ge.f32.partialorder %v4524_v49, 0.0  ;;  %v4532_v8 = vmul.f32 0.2, %v4524_v49 }
 0xeec   :  { %v15252_v30 = vsel %vm4528_vm9, %v4524_v49, %v4532_v8  ;;  %v4590_v49 = vld [vmem:[%s17287_s10 + $0x20] sm:$0xff] }
 0xeed   :  { %v4487_v23 = vpop.f32.mrf.mxu2  ;;  %9741 = vmatmul.msk.f32.vlgmr.msra.gmra.mxu1 %vm4544_vm10, %v15252_v30  ;;  %9749 = vmatmul.msk.f32.vlgmr.msrb.gmra.mxu3 %vm4544_vm10, %v15252_v30 }
 0xeee   :  { %v4497_v0 = vadd.f32 %v4487_v23, %v4407_v54  ;;  %4900 = vmatpush.msra.mxu1 %v9804_v18  ;;  %v9786_v54 = vld [vmem:[%s17287_s10 + $0x88] sm:$0xff]  ;;  %v9813_v18 = vld [vmem:[%s17287_s10 + $0xe0] sm:$0xff] }
 0xeef   :  { %v9758_v23 = vld [vmem:[%s17287_s10 + $0x68] sm:$0xff] }
 0xef0   :  { %v4525_v27 = vadd.f32 %v4512_v58, %v4497_v0  ;;  %4901 = vmatpush.msra.mxu1 %v9803_v7  ;;  %v9787_v0 = vld [vmem:[%s17287_s10 + $0x90] sm:$0xff]  ;;  %v9814_v7 = vld [vmem:[%s17287_s10 + $0xe8] sm:$0xff] }
 0xef2   :  { %vm4529_vm11 = vcmp.ge.f32.partialorder %v4525_v27, 0.0  ;;  %v4533_v33 = vmul.f32 0.2, %v4525_v27  ;;  %4902 = vmatpush.msra.mxu1 %v9802_v25  ;;  %v9815_v25 = vld [vmem:[%s17287_s10 + $0xf0] sm:$0xff] }
 0xef4   :  { %v15262_v5 = vsel %vm4529_vm11, %v4525_v27, %v4533_v33  ;;  %4903 = vmatpush.msra.mxu1 %v9801_v41  ;;  %v9788_v27 = vld [vmem:[%s17287_s10 + $0x98] sm:$0xff] }
 0xef5   :  { %v4490_v39 = vpop.f32.mrf.mxu2  ;;  %9742 = vmatmul.msk.f32.gmra.mxu1 %vm4544_vm10, %v15262_v5  ;;  %9750 = vmatmul.msk.f32.gmra.mxu3 %vm4544_vm10, %v15262_v5  ;;  %v9852_v33 = vld [vmem:[%s17286_s9 + $0xb8] sm:$0xff] }
 0xef6   :  { %v4498_v50 = vadd.f32 %v4490_v39, %v4408_v4  ;;  %v9850_v4 = vld [vmem:[%s17286_s9 + $0xa8] sm:$0xff]  ;;  %v9760_v39 = vld [vmem:[%s17287_s10 + $0x78] sm:$0xff] }
 0xef7   :  { %v9816_v41 = vld [vmem:[%s17287_s10 + $0xf8] sm:$0xff] }
 0xef8   :  { %v4526_v63 = vadd.f32 %v4517_v62, %v4498_v50  ;;  %v9849_v50 = vld [vmem:[%s17286_s9 + $0xa0] sm:$0xff] }
 0xef9   :  { %v9809_v62 = vld [vmem:[%s17287_s10 + $0xc0] sm:$0xff] }
 0xefa   :  { %vm4530_vm12 = vcmp.ge.f32.partialorder %v4526_v63, 0.0  ;;  %v4534_v6 = vmul.f32 0.2, %v4526_v63 }
 0xefc   :  { %v15269_v9 = vsel %vm4530_vm12, %v4526_v63, %v4534_v6  ;;  %v9810_v63 = vld [vmem:[%s17287_s10 + $0xc8] sm:$0xff]  ;;  %v9811_v6 = vld [vmem:[%s17287_s10 + $0xd0] sm:$0xff] }
 0xefd   :  { %v4493_v35 = vpop.f32.mrf.mxu2  ;;  %9743 = vmatmul.msk.f32.gmra.mxu1 %vm4544_vm10, %v15269_v9  ;;  %9751 = vmatmul.msk.f32.gmra.mxu3 %vm4544_vm10, %v15269_v9 }
 0xefe   :  { %v4499_v34 = vadd.f32 %v4493_v35, %v4409_v20  ;;  %v9792_v20 = vld [vmem:[%s17287_s10 + $0xb8] sm:$0xff] }
 0xeff   :  { %v9876_v35 = vld [vmem:[%s17286_s9 + $0xd8] sm:$0xff] }
 0xf00   :  { %v4527_v59 = vadd.f32 %v4522_v51, %v4499_v34  ;;  %v9875_v34 = vld [vmem:[%s17286_s9 + $0xd0] sm:$0xff]  ;;  %v9874_v51 = vld [vmem:[%s17286_s9 + $0xc8] sm:$0xff] }
 0xf02   :  { %vm4531_vm13 = vcmp.ge.f32.partialorder %v4527_v59, 0.0  ;;  %v4535_v13 = vmul.f32 0.2, %v4527_v59 }
 0xf04   :  { %v15275_v42 = vsel %vm4531_vm13, %v4527_v59, %v4535_v13  ;;  %v9812_v59 = vld [vmem:[%s17287_s10 + $0xd8] sm:$0xff]  ;;  %v9873_v13 = vld [vmem:[%s17286_s9 + $0xc0] sm:$0xff] }
 0xf05   :  { %9744 = vmatmul.msk.f32.gmra.mxu1 %vm4544_vm10, %v15275_v42  ;;  %9752 = vmatmul.msk.f32.gmra.mxu3 %vm4544_vm10, %v15275_v42 }
 0xf0d   :  { %9781 = vmatmul.msk.f32.vlgmr.msrb.gmra.mxu1 %vm4544_vm10, %v15252_v30 }
 0xf15   :  { %9782 = vmatmul.msk.f32.gmra.mxu1 %vm4544_vm10, %v15262_v5 }
 0xf1d   :  { %9783 = vmatmul.msk.f32.gmra.mxu1 %vm4544_vm10, %v15269_v9 }
 0xf25   :  { %9784 = vmatmul.msk.f32.gmra.mxu1 %vm4544_vm10, %v15275_v42 }
 0xf2d   :  { %9805 = vmatmul.msk.f32.vlgmr.msra.gmra.mxu1 %vm4544_vm10, %v15252_v30 }
 0xf35   :  { %9806 = vmatmul.msk.f32.gmra.mxu1 %vm4544_vm10, %v15262_v5 }
 0xf3d   :  { %9807 = vmatmul.msk.f32.gmra.mxu1 %vm4544_vm10, %v15269_v9 }
 0xf45   :  { %9808 = vmatmul.msk.f32.gmra.mxu1 %vm4544_vm10, %v15275_v42 }
 0xf6a   :  { %v4574_v10 = vpop.f32.mrf.mxu1 }
 0xf70   :  { %v4616_v11 = vpop.f32.mrf.mxu3 }
 0xf72   :  { %v4577_v3 = vpop.f32.mrf.mxu1 }
 0xf78   :  { %v4619_v17 = vpop.f32.mrf.mxu3 }
 0xf7a   :  { %v4580_v57 = vpop.f32.mrf.mxu1 }
 0xf80   :  { %v4622_v2 = vpop.f32.mrf.mxu3 }
 0xf82   :  { %v4583_v48 = vpop.f32.mrf.mxu1 }
 0xf83   :  { %4738 = vmatpush.msra.mxu2 %v4583_v48 }
 0xf85   :  { %4739 = vmatpush.msra.mxu2 %v4580_v57 }
 0xf87   :  { %4740 = vmatpush.msra.mxu2 %v4577_v3 }
 0xf88   :  { %v4625_v56 = vpop.f32.mrf.mxu3 }
 0xf89   :  { %4673 = vmatpush.msrb.mxu0 %v4625_v56  ;;  %4741 = vmatpush.msra.mxu2 %v4574_v10 }
 0xf8a   :  { %9769 = vmatmul.msk.f32.vlgmr.msra.gmra.mxu2 %vm4544_vm10, %v4586_v44  ;;  %v4789_v1 = vpop.f32.mrf.mxu1 }
 0xf8b   :  { %4674 = vmatpush.msrb.mxu0 %v4622_v2  ;;  %5016 = vmatpush.msrb.mxu2 %v9828_v52 }
 0xf8d   :  { %4675 = vmatpush.msrb.mxu0 %v4619_v17  ;;  %5017 = vmatpush.msrb.mxu2 %v9827_v28 }
 0xf8f   :  { %4676 = vmatpush.msrb.mxu0 %v4616_v11  ;;  %5018 = vmatpush.msrb.mxu2 %v9826_v32  ;;  %v9835_v32 = vld [vmem:[%s17287_s10 + $0x110] sm:$0xff] }
 0xf90   :  { %9761 = vmatmul.msk.f32.vlgmr.msrb.gmra.mxu0 %vm4544_vm10, %v9753_v22 }
 0xf91   :  { %5019 = vmatpush.msrb.mxu2 %v9825_v53 }
 0xf92   :  { %9770 = vmatmul.msk.f32.gmra.mxu2 %vm4544_vm10, %v4587_v38  ;;  %v4792_v14 = vpop.f32.mrf.mxu1 }
 0xf98   :  { %9762 = vmatmul.msk.f32.gmra.mxu0 %vm4544_vm10, %v9754_v21 }
 0xf9a   :  { %9771 = vmatmul.msk.f32.gmra.mxu2 %vm4544_vm10, %v4588_v43  ;;  %v4795_v29 = vpop.f32.mrf.mxu1 }
 0xfa0   :  { %9763 = vmatmul.msk.f32.gmra.mxu0 %vm4544_vm10, %v9755_v19 }
 0xfa2   :  { %9772 = vmatmul.msk.f32.gmra.mxu2 %vm4544_vm10, %v4589_v12  ;;  %v4798_v45 = vpop.f32.mrf.mxu1 }
 0xfa3   :  { %4846 = vmatpush.msra.mxu3 %v4798_v45 }
 0xfa5   :  { %4847 = vmatpush.msra.mxu3 %v4795_v29 }
 0xfa7   :  { %4848 = vmatpush.msra.mxu3 %v4792_v14 }
 0xfa8   :  { %9764 = vmatmul.msk.f32.gmra.mxu0 %vm4544_vm10, %v9756_v24  ;;  %v9833_v24 = vld [vmem:[%s17287_s10 + $0x100] sm:$0xff] }
 0xfa9   :  { %4849 = vmatpush.msra.mxu3 %v4789_v1 }
 0xfaa   :  { %9773 = vmatmul.msk.f32.gmra.mxu2 %vm4544_vm10, %v4590_v49  ;;  %9793 = vmatmul.msk.f32.vlgmr.msra.gmra.mxu3 %vm4544_vm10, %v9785_v26  ;;  %v4905_v8 = vpop.f32.mrf.mxu1  ;;  %v9834_v49 = vld [vmem:[%s17287_s10 + $0x108] sm:$0xff] }
 0xfab   :  { %5132 = vmatpush.msrb.mxu3 %v9852_v33 }
 0xfad   :  { %5133 = vmatpush.msrb.mxu3 %v9851_v40  ;;  %v9839_v40 = vld [vmem:[%s17287_s10 + $0x130] sm:$0xff] }
 0xfaf   :  { %5134 = vmatpush.msrb.mxu3 %v9850_v4  ;;  %v9859_v4 = vld [vmem:[%s17287_s10 + $0x150] sm:$0xff] }
 0xfb0   :  { %9765 = vmatmul.msk.f32.gmra.mxu0 %vm4544_vm10, %v9757_v36 }
 0xfb1   :  { %5135 = vmatpush.msrb.mxu3 %v9849_v50  ;;  %v9840_v50 = vld [vmem:[%s17287_s10 + $0x138] sm:$0xff] }
 0xfb2   :  { %9774 = vmatmul.msk.f32.gmra.mxu2 %vm4544_vm10, %v4591_v37  ;;  %9794 = vmatmul.msk.f32.gmra.mxu3 %vm4544_vm10, %v9786_v54  ;;  %v4908_v58 = vpop.f32.mrf.mxu1  ;;  %v9900_v37 = vld [vmem:[%s17286_s9 + $0xf8] sm:$0xff]  ;;  %v9899_v54 = vld [vmem:[%s17286_s9 + $0xf0] sm:$0xff] }
 0xfb3   :  { %5248 = vmatpush.msra.mxu3 %v9876_v35  ;;  %v9861_v35 = vld [vmem:[%s17287_s10 + $0x160] sm:$0xff] }
 0xfb5   :  { %5249 = vmatpush.msra.mxu3 %v9875_v34  ;;  %v9881_v34 = vld [vmem:[%s17287_s10 + $0x180] sm:$0xff] }
 0xfb7   :  { %5250 = vmatpush.msra.mxu3 %v9874_v51  ;;  %v9921_v51 = vld [vmem:[%s17286_s9 + $0x100] sm:$0xff] }
 0xfb8   :  { %9766 = vmatmul.msk.f32.gmra.mxu0 %vm4544_vm10, %v9758_v23  ;;  %v9898_v23 = vld [vmem:[%s17286_s9 + $0xe8] sm:$0xff] }
 0xfb9   :  { %5251 = vmatpush.msra.mxu3 %v9873_v13  ;;  %v9882_v13 = vld [vmem:[%s17287_s10 + $0x188] sm:$0xff] }
 0xfba   :  { %9775 = vmatmul.msk.f32.gmra.mxu2 %vm4544_vm10, %v4592_v16  ;;  %9795 = vmatmul.msk.f32.gmra.mxu3 %vm4544_vm10, %v9787_v0  ;;  %v4911_v31 = vpop.f32.mrf.mxu1  ;;  %v9857_v16 = vld [vmem:[%s17287_s10 + $0x140] sm:$0xff] }
 0xfbb   :  { %v9897_v0 = vld [vmem:[%s17286_s9 + $0xe0] sm:$0xff] }
 0xfc0   :  { %9767 = vmatmul.msk.f32.gmra.mxu0 %vm4544_vm10, %v9759_v55 }
 0xfc2   :  { %9776 = vmatmul.msk.f32.gmra.mxu2 %vm4544_vm10, %v4593_v61  ;;  %9796 = vmatmul.msk.f32.gmra.mxu3 %vm4544_vm10, %v9788_v27  ;;  %v4914_v60 = vpop.f32.mrf.mxu1  ;;  %v9838_v61 = vld [vmem:[%s17287_s10 + $0x128] sm:$0xff] }
 0xfc3   :  { %4962 = vmatpush.msra.mxu0 %v4914_v60  ;;  %v9858_v27 = vld [vmem:[%s17287_s10 + $0x148] sm:$0xff] }
 0xfc5   :  { %4963 = vmatpush.msra.mxu0 %v4911_v31 }
 0xfc7   :  { %4964 = vmatpush.msra.mxu0 %v4908_v58  ;;  %v9837_v58 = vld [vmem:[%s17287_s10 + $0x120] sm:$0xff] }
 0xfc8   :  { %9768 = vmatmul.msk.f32.gmra.mxu0 %vm4544_vm10, %v9760_v39 }
 0xfc9   :  { %4965 = vmatpush.msra.mxu0 %v4905_v8  ;;  %v9836_v8 = vld [vmem:[%s17287_s10 + $0x118] sm:$0xff] }
 0xfca   :  { %9797 = vmatmul.msk.f32.gmra.mxu3 %vm4544_vm10, %v9789_v46  ;;  %9829 = vmatmul.msk.f32.vlgmr.msrb.gmra.mxu2 %vm4544_vm10, %v15252_v30 }
 0xfd0   :  { %9817 = vmatmul.msk.f32.vlgmr.msra.gmra.mxu0 %vm4544_vm10, %v9809_v62  ;;  %v9860_v62 = vld [vmem:[%s17287_s10 + $0x158] sm:$0xff] }
 0xfd2   :  { %9798 = vmatmul.msk.f32.gmra.mxu3 %vm4544_vm10, %v9790_v15  ;;  %9830 = vmatmul.msk.f32.gmra.mxu2 %vm4544_vm10, %v15262_v5 }
 0xfd8   :  { %9818 = vmatmul.msk.f32.gmra.mxu0 %vm4544_vm10, %v9810_v63  ;;  %v9924_v63 = vld [vmem:[%s17286_s9 + $0x118] sm:$0xff] }
 0xfda   :  { %9799 = vmatmul.msk.f32.gmra.mxu3 %vm4544_vm10, %v9791_v47  ;;  %9831 = vmatmul.msk.f32.gmra.mxu2 %vm4544_vm10, %v15269_v9  ;;  %v9923_v47 = vld [vmem:[%s17286_s9 + $0x110] sm:$0xff] }
 0xfe0   :  { %9819 = vmatmul.msk.f32.gmra.mxu0 %vm4544_vm10, %v9811_v6  ;;  %v9922_v6 = vld [vmem:[%s17286_s9 + $0x108] sm:$0xff] }
 0xfe2   :  { %9800 = vmatmul.msk.f32.gmra.mxu3 %vm4544_vm10, %v9792_v20  ;;  %9832 = vmatmul.msk.f32.gmra.mxu2 %vm4544_vm10, %v15275_v42 }
 0xfe8   :  { %9820 = vmatmul.msk.f32.gmra.mxu0 %vm4544_vm10, %v9812_v59  ;;  %v9862_v59 = vld [vmem:[%s17287_s10 + $0x168] sm:$0xff] }
 0xfea   :  { %9853 = vmatmul.msk.f32.vlgmr.msrb.gmra.mxu3 %vm4544_vm10, %v15252_v30 }
 0xff0   :  { %9821 = vmatmul.msk.f32.gmra.mxu0 %vm4544_vm10, %v9813_v18 }
 0xff2   :  { %9854 = vmatmul.msk.f32.gmra.mxu3 %vm4544_vm10, %v15262_v5 }
 0xff8   :  { %9822 = vmatmul.msk.f32.gmra.mxu0 %vm4544_vm10, %v9814_v7  ;;  %v9863_v7 = vld [vmem:[%s17287_s10 + $0x170] sm:$0xff] }
 0xffa   :  { %9855 = vmatmul.msk.f32.gmra.mxu3 %vm4544_vm10, %v15269_v9 }
0x1000   :  { %9823 = vmatmul.msk.f32.gmra.mxu0 %vm4544_vm10, %v9815_v25  ;;  %v9883_v25 = vld [vmem:[%s17287_s10 + $0x190] sm:$0xff] }
0x1002   :  { %9856 = vmatmul.msk.f32.gmra.mxu3 %vm4544_vm10, %v15275_v42 }
0x1008   :  { %9824 = vmatmul.msk.f32.gmra.mxu0 %vm4544_vm10, %v9816_v41 }
0x100a   :  { %9877 = vmatmul.msk.f32.vlgmr.msra.gmra.mxu3 %vm4544_vm10, %v15252_v30 }
0x100d   :  { %v15491_v10 = vpop.f32.mrf.mxu2  ;;  %v15563_v31 = vpop.f32.mrf.mxu0 }
0x1012   :  { %9878 = vmatmul.msk.f32.gmra.mxu3 %vm4544_vm10, %v15262_v5 }
0x1015   :  { %v15495_v11 = vpop.f32.mrf.mxu2  ;;  %v15575_v33 = vpop.f32.mrf.mxu0 }
0x101a   :  { %9879 = vmatmul.msk.f32.gmra.mxu3 %vm4544_vm10, %v15269_v9 }
0x101d   :  { %v15499_v3 = vpop.f32.mrf.mxu2  ;;  %v15585_v46 = vpop.f32.mrf.mxu0 }
0x1022   :  { %9880 = vmatmul.msk.f32.gmra.mxu3 %vm4544_vm10, %v15275_v42 }
0x1025   :  { %v15503_v17 = vpop.f32.mrf.mxu2  ;;  %v15604_v20 = vpop.f32.mrf.mxu0 }
0x102d   :  { %v15505_v57 = vpop.f32.mrf.mxu2  ;;  %v15507_v2 = vpop.f32.mrf.mxu3 }
0x102e   :  { %v15625_v18 = vpop.f32.mrf.mxu0 }
0x1035   :  { %v15509_v48 = vpop.f32.mrf.mxu2  ;;  %v15511_v44 = vpop.f32.mrf.mxu3 }
0x1036   :  { %v15641_v41 = vpop.f32.mrf.mxu0 }
0x103d   :  { %v15513_v56 = vpop.f32.mrf.mxu2  ;;  %v15515_v1 = vpop.f32.mrf.mxu3 }
0x103e   :  { %17294 = vst [vmem:[#allocation3_spill] sm:$0xff] %v15513_v56 }
0x1045   :  { %v15517_v22 = vpop.f32.mrf.mxu2  ;;  %v15519_v38 = vpop.f32.mrf.mxu3 }
0x1046   :  { %17295 = vst [vmem:[#allocation4_spill] sm:$0xff] %v15517_v22 }
0x104d   :  { %v5021_v14 = vpop.f32.mrf.mxu2  ;;  %v15521_v21 = vpop.f32.mrf.mxu3 }
0x1055   :  { %v5024_v43 = vpop.f32.mrf.mxu2  ;;  %v15523_v29 = vpop.f32.mrf.mxu3 }
0x1056   :  { %17296 = vst [vmem:[#allocation5_spill] sm:$0xff] %v15523_v29 }
0x105d   :  { %v5027_v19 = vpop.f32.mrf.mxu2  ;;  %v15525_v12 = vpop.f32.mrf.mxu3 }
0x105e   :  { %17297 = vst [vmem:[#allocation6_spill] sm:$0xff] %v15525_v12 }
0x1065   :  { %v5030_v45 = vpop.f32.mrf.mxu2  ;;  %v15527_v52 = vpop.f32.mrf.mxu3 }
0x1066   :  { %17298 = vst [vmem:[#allocation7_spill] sm:$0xff] %v15527_v52  ;;  %5078 = vmatpush.msrb.mxu1 %v5030_v45  ;;  %v9947_v45 = vld [vmem:[%s17286_s9 + $0x130] sm:$0xff] }
0x1068   :  { %5079 = vmatpush.msrb.mxu1 %v5027_v19  ;;  %v9948_v19 = vld [vmem:[%s17286_s9 + $0x138] sm:$0xff] }
0x106a   :  { %5080 = vmatpush.msrb.mxu1 %v5024_v43  ;;  %v9884_v43 = vld [vmem:[%s17287_s10 + $0x198] sm:$0xff] }
0x106c   :  { %5081 = vmatpush.msrb.mxu1 %v5021_v14  ;;  %v9864_v14 = vld [vmem:[%s17287_s10 + $0x178] sm:$0xff] }
0x106d   :  { %9841 = vmatmul.msk.f32.vlgmr.msrb.gmra.mxu1 %vm4544_vm10, %v9833_v24  ;;  %v5137_v28 = vpop.f32.mrf.mxu3  ;;  %v15659_v24 = vpop.f32.mrf.mxu0 }
0x106e   :  { %5364 = vmatpush.msra.mxu1 %v9900_v37  ;;  %17299 = vst [vmem:[#allocation8_spill] sm:$0xff] %v15659_v24  ;;  %v9888_v37 = vld [vmem:[%s17287_s10 + $0x1b8] sm:$0xff] }
0x1070   :  { %5365 = vmatpush.msra.mxu1 %v9899_v54 }
0x1072   :  { %5366 = vmatpush.msra.mxu1 %v9898_v23 }
0x1074   :  { %5367 = vmatpush.msra.mxu1 %v9897_v0 }
0x1075   :  { %9842 = vmatmul.msk.f32.gmra.mxu1 %vm4544_vm10, %v9834_v49  ;;  %v5140_v26 = vpop.f32.mrf.mxu3  ;;  %v9885_v49 = vld [vmem:[%s17287_s10 + $0x1a0] sm:$0xff] }
0x107d   :  { %9843 = vmatmul.msk.f32.gmra.mxu1 %vm4544_vm10, %v9835_v32  ;;  %v5143_v53 = vpop.f32.mrf.mxu3  ;;  %v15673_v32 = vpop.f32.mrf.mxu0 }
0x107e   :  { %17300 = vst [vmem:[#allocation9_spill] sm:$0xff] %v15673_v32 }
0x1085   :  { %9844 = vmatmul.msk.f32.gmra.mxu1 %vm4544_vm10, %v9836_v8  ;;  %v5146_v36 = vpop.f32.mrf.mxu3  ;;  %v9887_v8 = vld [vmem:[%s17287_s10 + $0x1b0] sm:$0xff] }
0x1086   :  { %5194 = vmatpush.msra.mxu2 %v5146_v36  ;;  %v15684_v36 = vpop.f32.mrf.mxu0 }
0x1088   :  { %5195 = vmatpush.msra.mxu2 %v5143_v53  ;;  %v9886_v53 = vld [vmem:[%s17287_s10 + $0x1a8] sm:$0xff] }
0x108a   :  { %5196 = vmatpush.msra.mxu2 %v5140_v26  ;;  %v9945_v26 = vld [vmem:[%s17286_s9 + $0x120] sm:$0xff] }
0x108c   :  { %5197 = vmatpush.msra.mxu2 %v5137_v28  ;;  %v9946_v28 = vld [vmem:[%s17286_s9 + $0x128] sm:$0xff] }
0x108d   :  { %9845 = vmatmul.msk.f32.gmra.mxu1 %vm4544_vm10, %v9837_v58  ;;  %9865 = vmatmul.msk.f32.vlgmr.msra.gmra.mxu2 %vm4544_vm10, %v9857_v16  ;;  %v5253_v55 = vpop.f32.mrf.mxu3 }
0x108e   :  { %5480 = vmatpush.msrb.mxu2 %v9924_v63  ;;  %v15695_v54 = vpop.f32.mrf.mxu0 }
0x1090   :  { %5481 = vmatpush.msrb.mxu2 %v9923_v47 }
0x1092   :  { %5482 = vmatpush.msrb.mxu2 %v9922_v6 }
0x1094   :  { %5483 = vmatpush.msrb.mxu2 %v9921_v51 }
0x1095   :  { %9846 = vmatmul.msk.f32.gmra.mxu1 %vm4544_vm10, %v9838_v61  ;;  %9866 = vmatmul.msk.f32.gmra.mxu2 %vm4544_vm10, %v9858_v27  ;;  %v5256_v60 = vpop.f32.mrf.mxu3 }
0x1096   :  { %v15701_v23 = vpop.f32.mrf.mxu0 }
0x109d   :  { %9847 = vmatmul.msk.f32.gmra.mxu1 %vm4544_vm10, %v9839_v40  ;;  %9867 = vmatmul.msk.f32.gmra.mxu2 %vm4544_vm10, %v9859_v4  ;;  %v5259_v39 = vpop.f32.mrf.mxu3 }
0x10a5   :  { %9848 = vmatmul.msk.f32.gmra.mxu1 %vm4544_vm10, %v9840_v50  ;;  %9868 = vmatmul.msk.f32.gmra.mxu2 %vm4544_vm10, %v9860_v62  ;;  %v5262_v15 = vpop.f32.mrf.mxu3 }
0x10a6   :  { %5310 = vmatpush.msrb.mxu0 %v5262_v15 }
0x10a8   :  { %5311 = vmatpush.msrb.mxu0 %v5259_v39 }
0x10aa   :  { %5312 = vmatpush.msrb.mxu0 %v5256_v60 }
0x10ac   :  { %5313 = vmatpush.msrb.mxu0 %v5253_v55  ;;  %v15709_v55 = vpop.f32.mrf.mxu0 }
0x10ad   :  { %9901 = vmatmul.msk.f32.vlgmr.msra.gmra.mxu1 %vm4544_vm10, %v15252_v30  ;;  %9869 = vmatmul.msk.f32.gmra.mxu2 %vm4544_vm10, %v9861_v35 }
0x10ae   :  { %9889 = vmatmul.msk.f32.vlgmr.msrb.gmra.mxu0 %vm4544_vm10, %v9881_v34 }
0x10af   :  { %5596 = vmatpush.msra.mxu0 %v9948_v19 }
0x10b1   :  { %5597 = vmatpush.msra.mxu0 %v9947_v45 }
0x10b3   :  { %5598 = vmatpush.msra.mxu0 %v9946_v28 }
0x10b4   :  { %v15715_v27 = vpop.f32.mrf.mxu0 }
0x10b5   :  { %9902 = vmatmul.msk.f32.gmra.mxu1 %vm4544_vm10, %v15262_v5  ;;  %9870 = vmatmul.msk.f32.gmra.mxu2 %vm4544_vm10, %v9862_v59 }
0x10b6   :  { %9890 = vmatmul.msk.f32.gmra.mxu0 %vm4544_vm10, %v9882_v13 }
0x10b7   :  { %5599 = vmatpush.msra.mxu0 %v9945_v26 }
0x10bc   :  { %v15721_v40 = vpop.f32.mrf.mxu0 }
0x10bd   :  { %9903 = vmatmul.msk.f32.gmra.mxu1 %vm4544_vm10, %v15269_v9  ;;  %9871 = vmatmul.msk.f32.gmra.mxu2 %vm4544_vm10, %v9863_v7  ;;  %17301 = vst [vmem:[#allocation10_spill] sm:$0xff] %v15721_v40 }
0x10be   :  { %9891 = vmatmul.msk.f32.gmra.mxu0 %vm4544_vm10, %v9883_v25 }
0x10c4   :  { %v15727_v50 = vpop.f32.mrf.mxu0 }
0x10c5   :  { %9904 = vmatmul.msk.f32.gmra.mxu1 %vm4544_vm10, %v15275_v42  ;;  %9872 = vmatmul.msk.f32.gmra.mxu2 %vm4544_vm10, %v9864_v14  ;;  %17303 = vst [vmem:[#allocation12_spill] sm:$0xff] %v15727_v50 }
0x10c6   :  { %9892 = vmatmul.msk.f32.gmra.mxu0 %vm4544_vm10, %v9884_v43 }
0x10cc   :  { %v15737_v6 = vpop.f32.mrf.mxu0 }
0x10cd   :  { %9925 = vmatmul.msk.f32.vlgmr.msrb.gmra.mxu2 %vm4544_vm10, %v15252_v30  ;;  %17306 = vst [vmem:[#allocation15_spill] sm:$0xff] %v15737_v6  ;;  %v9909_v6 = vld [vmem:[%s17287_s10 + $0x1e0] sm:$0xff] }
0x10ce   :  { %9893 = vmatmul.msk.f32.gmra.mxu0 %vm4544_vm10, %v9885_v49  ;;  %v9905_v49 = vld [vmem:[%s17287_s10 + $0x1c0] sm:$0xff] }
0x10d5   :  { %9926 = vmatmul.msk.f32.gmra.mxu2 %vm4544_vm10, %v15262_v5 }
0x10d6   :  { %9894 = vmatmul.msk.f32.gmra.mxu0 %vm4544_vm10, %v9886_v53 }
0x10dd   :  { %9927 = vmatmul.msk.f32.gmra.mxu2 %vm4544_vm10, %v15269_v9 }
0x10de   :  { %9895 = vmatmul.msk.f32.gmra.mxu0 %vm4544_vm10, %v9887_v8  ;;  %v9906_v8 = vld [vmem:[%s17287_s10 + $0x1c8] sm:$0xff] }
0x10e5   :  { %9928 = vmatmul.msk.f32.gmra.mxu2 %vm4544_vm10, %v15275_v42 }
0x10e6   :  { %9896 = vmatmul.msk.f32.gmra.mxu0 %vm4544_vm10, %v9888_v37 }
0x10ea   :  { %v15697_v58 = vpop.f32.mrf.mxu1 }
0x10ee   :  { %9949 = vmatmul.msk.f32.vlgmr.msra.gmra.mxu0 %vm4544_vm10, %v15252_v30 }
0x10f2   :  { %v15703_v16 = vpop.f32.mrf.mxu1 }
0x10f6   :  { %9950 = vmatmul.msk.f32.gmra.mxu0 %vm4544_vm10, %v15262_v5 }
0x10fa   :  { %v15707_v0 = vpop.f32.mrf.mxu1 }
0x10fe   :  { %9951 = vmatmul.msk.f32.gmra.mxu0 %vm4544_vm10, %v15269_v9 }
0x1102   :  { %v15713_v61 = vpop.f32.mrf.mxu1 }
0x1106   :  { %9952 = vmatmul.msk.f32.gmra.mxu0 %vm4544_vm10, %v15275_v42 }
0x110a   :  { %v15719_v60 = vpop.f32.mrf.mxu1 }
0x1110   :  { %v15723_v4 = vpop.f32.mrf.mxu2 }
0x1112   :  { %v15725_v39 = vpop.f32.mrf.mxu1 }
0x1113   :  { %17302 = vst [vmem:[#allocation11_spill] sm:$0xff] %v15725_v39 }
0x1118   :  { %v15729_v62 = vpop.f32.mrf.mxu2 }
0x111a   :  { %v15731_v15 = vpop.f32.mrf.mxu1 }
0x111b   :  { %17304 = vst [vmem:[#allocation13_spill] sm:$0xff] %v15731_v15 }
0x1120   :  { %v15733_v63 = vpop.f32.mrf.mxu2 }
0x1122   :  { %v15735_v47 = vpop.f32.mrf.mxu1 }
0x1123   :  { %17305 = vst [vmem:[#allocation14_spill] sm:$0xff] %v15735_v47 }
0x1128   :  { %v15739_v35 = vpop.f32.mrf.mxu2 }
0x112a   :  { %v5369_v34 = vpop.f32.mrf.mxu1 }
0x112b   :  { %v15741_v51 = vpop.f32.mrf.mxu0 }
0x1130   :  { %v15743_v59 = vpop.f32.mrf.mxu2 }
0x1131   :  { %17307 = vst [vmem:[#allocation16_spill] sm:$0xff] %v15743_v59 }
0x1132   :  { %v5372_v13 = vpop.f32.mrf.mxu1 }
0x1133   :  { %v15745_v7 = vpop.f32.mrf.mxu0 }
0x1138   :  { %v15747_v25 = vpop.f32.mrf.mxu2 }
0x1139   :  { %17308 = vst [vmem:[#allocation17_spill] sm:$0xff] %v15747_v25 }
0x113a   :  { %v5375_v14 = vpop.f32.mrf.mxu1 }
0x113b   :  { %v15749_v43 = vpop.f32.mrf.mxu0 }
0x1140   :  { %v15751_v19 = vpop.f32.mrf.mxu2 }
0x1141   :  { %17309 = vst [vmem:[#allocation18_spill] sm:$0xff] %v15751_v19 }
0x1142   :  { %v5378_v45 = vpop.f32.mrf.mxu1 }
0x1143   :  { %v15753_v28 = vpop.f32.mrf.mxu0  ;;  %5426 = vmatpush.msrb.mxu3 %v5378_v45 }
0x1145   :  { %5427 = vmatpush.msrb.mxu3 %v5375_v14 }
0x1147   :  { %5428 = vmatpush.msrb.mxu3 %v5372_v13  ;;  %v9907_v13 = vld [vmem:[%s17287_s10 + $0x1d0] sm:$0xff] }
0x1148   :  { %v15758_v26 = vpop.f32.mrf.mxu2 }
0x1149   :  { %17310 = vst [vmem:[#allocation19_spill] sm:$0xff] %v15758_v26  ;;  %5429 = vmatpush.msrb.mxu3 %v5369_v34 }
0x114a   :  { %9913 = vmatmul.msk.f32.vlgmr.msrb.gmra.mxu3 %vm4544_vm10, %v9905_v49  ;;  %v9908_v49 = vld [vmem:[%s17287_s10 + $0x1d8] sm:$0xff] }
0x114b   :  { %v15761_v53 = vpop.f32.mrf.mxu0 }
0x114c   :  { %17311 = vst [vmem:[#allocation20_spill] sm:$0xff] %v15761_v53 }
0x1150   :  { %v5485_v37 = vpop.f32.mrf.mxu2 }
0x1152   :  { %9914 = vmatmul.msk.f32.gmra.mxu3 %vm4544_vm10, %v9906_v8  ;;  %v9972_v8 = vld [vmem:[%s17286_s9 + $0x158] sm:$0xff] }
0x1153   :  { %v15767_v14 = vpop.f32.mrf.mxu0  ;;  %5712 = vmatpush.msra.mxu3 %v9972_v8 }
0x1154   :  { %17312 = vst [vmem:[#allocation21_spill] sm:$0xff] %v15767_v14 }
0x1158   :  { %v5488_v45 = vpop.f32.mrf.mxu2 }
0x115a   :  { %9915 = vmatmul.msk.f32.gmra.mxu3 %vm4544_vm10, %v9907_v13  ;;  %v9971_v13 = vld [vmem:[%s17286_s9 + $0x150] sm:$0xff] }
0x115b   :  { %v15773_v34 = vpop.f32.mrf.mxu0  ;;  %5713 = vmatpush.msra.mxu3 %v9971_v13  ;;  %v9929_v13 = vld [vmem:[%s17287_s10 + $0x200] sm:$0xff] }
0x115c   :  { %17313 = vst [vmem:[#allocation22_spill] sm:$0xff] %v15773_v34  ;;  %v9969_v34 = vld [vmem:[%s17286_s9 + $0x140] sm:$0xff] }
0x1160   :  { %v5491_v26 = vpop.f32.mrf.mxu2 }
0x1162   :  { %9916 = vmatmul.msk.f32.gmra.mxu3 %vm4544_vm10, %v9908_v49  ;;  %v9970_v49 = vld [vmem:[%s17286_s9 + $0x148] sm:$0xff] }
0x1163   :  { %v15779_v47 = vpop.f32.mrf.mxu0  ;;  %5714 = vmatpush.msra.mxu3 %v9970_v49  ;;  %v9910_v49 = vld [vmem:[%s17287_s10 + $0x1e8] sm:$0xff] }
0x1164   :  { %17314 = vst [vmem:[#allocation23_spill] sm:$0xff] %v15779_v47 }
0x1165   :  { %5715 = vmatpush.msra.mxu3 %v9969_v34  ;;  %v9912_v34 = vld [vmem:[%s17287_s10 + $0x1f8] sm:$0xff] }
0x1168   :  { %v5494_v47 = vpop.f32.mrf.mxu2 }
0x1169   :  { %5542 = vmatpush.msrb.mxu1 %v5494_v47 }
0x116a   :  { %9917 = vmatmul.msk.f32.gmra.mxu3 %vm4544_vm10, %v9909_v6  ;;  %v9930_v6 = vld [vmem:[%s17287_s10 + $0x208] sm:$0xff] }
0x116b   :  { %v5601_v8 = vpop.f32.mrf.mxu0  ;;  %5543 = vmatpush.msrb.mxu1 %v5491_v26  ;;  %v9911_v26 = vld [vmem:[%s17287_s10 + $0x1f0] sm:$0xff] }
0x116d   :  { %5544 = vmatpush.msrb.mxu1 %v5488_v45 }
0x116f   :  { %5545 = vmatpush.msrb.mxu1 %v5485_v37  ;;  %v9931_v37 = vld [vmem:[%s17287_s10 + $0x210] sm:$0xff] }
0x1170   :  { %9937 = vmatmul.msk.f32.vlgmr.msrb.gmra.mxu1 %vm4544_vm10, %v9929_v13 }
0x1172   :  { %9918 = vmatmul.msk.f32.gmra.mxu3 %vm4544_vm10, %v9910_v49  ;;  %v9932_v49 = vld [vmem:[%s17287_s10 + $0x218] sm:$0xff] }
0x1173   :  { %v5604_v47 = vpop.f32.mrf.mxu0 }
0x1178   :  { %9938 = vmatmul.msk.f32.gmra.mxu1 %vm4544_vm10, %v9930_v6  ;;  %v9953_v6 = vld [vmem:[%s17287_s10 + $0x240] sm:$0xff] }
0x117a   :  { %9919 = vmatmul.msk.f32.gmra.mxu3 %vm4544_vm10, %v9911_v26  ;;  %v9996_v26 = vld [vmem:[%s17286_s9 + $0x178] sm:$0xff] }
0x117b   :  { %v5607_v45 = vpop.f32.mrf.mxu0  ;;  %5828 = vmatpush.msra.mxu1 %v9996_v26  ;;  %v9956_v26 = vld [vmem:[%s17287_s10 + $0x258] sm:$0xff] }
0x1180   :  { %9939 = vmatmul.msk.f32.gmra.mxu1 %vm4544_vm10, %v9931_v37  ;;  %v9933_v37 = vld [vmem:[%s17287_s10 + $0x220] sm:$0xff] }
0x1182   :  { %9920 = vmatmul.msk.f32.gmra.mxu3 %vm4544_vm10, %v9912_v34  ;;  %v9954_v34 = vld [vmem:[%s17287_s10 + $0x248] sm:$0xff] }
0x1183   :  { %v5610_v13 = vpop.f32.mrf.mxu0 }
0x1184   :  { %5658 = vmatpush.msra.mxu2 %v5610_v13  ;;  %v9934_v13 = vld [vmem:[%s17287_s10 + $0x228] sm:$0xff] }
0x1186   :  { %5659 = vmatpush.msra.mxu2 %v5607_v45  ;;  %v9994_v45 = vld [vmem:[%s17286_s9 + $0x168] sm:$0xff] }
0x1188   :  { %5660 = vmatpush.msra.mxu2 %v5604_v47  ;;  %9940 = vmatmul.msk.f32.gmra.mxu1 %vm4544_vm10, %v9932_v49  ;;  %v9995_v47 = vld [vmem:[%s17286_s9 + $0x170] sm:$0xff] }
0x1189   :  { %5829 = vmatpush.msra.mxu1 %v9995_v47  ;;  %v9955_v49 = vld [vmem:[%s17287_s10 + $0x250] sm:$0xff]  ;;  %v10020_v47 = vld [vmem:[%s17286_s9 + $0x198] sm:$0xff] }
0x118a   :  { %5661 = vmatpush.msra.mxu2 %v5601_v8  ;;  %9973 = vmatmul.msk.f32.vlgmr.msra.gmra.mxu3 %vm4544_vm10, %v15252_v30  ;;  %v9993_v8 = vld [vmem:[%s17286_s9 + $0x160] sm:$0xff] }
0x118b   :  { %9961 = vmatmul.msk.f32.vlgmr.msra.gmra.mxu2 %vm4544_vm10, %v9953_v6  ;;  %5830 = vmatpush.msra.mxu1 %v9994_v45  ;;  %v9935_v6 = vld [vmem:[%s17287_s10 + $0x230] sm:$0xff] }
0x118c   :  { %v10019_v45 = vld [vmem:[%s17286_s9 + $0x190] sm:$0xff]  ;;  %5944 = vmatpush.msrb.mxu2 %v10020_v47 }
0x118d   :  { %5831 = vmatpush.msra.mxu1 %v9993_v8  ;;  %v9936_v8 = vld [vmem:[%s17287_s10 + $0x238] sm:$0xff] }
0x118e   :  { %5945 = vmatpush.msrb.mxu2 %v10019_v45 }
0x1190   :  { %9941 = vmatmul.msk.f32.gmra.mxu1 %vm4544_vm10, %v9933_v37  ;;  %v10018_v37 = vld [vmem:[%s17286_s9 + $0x188] sm:$0xff] }
0x1191   :  { %5946 = vmatpush.msrb.mxu2 %v10018_v37 }
0x1192   :  { %9974 = vmatmul.msk.f32.gmra.mxu3 %vm4544_vm10, %v15262_v5 }
0x1193   :  { %9962 = vmatmul.msk.f32.gmra.mxu2 %vm4544_vm10, %v9954_v34  ;;  %v9957_v34 = vld [vmem:[%s17287_s10 + $0x260] sm:$0xff] }
0x1198   :  { %9942 = vmatmul.msk.f32.gmra.mxu1 %vm4544_vm10, %v9934_v13  ;;  %v10017_v13 = vld [vmem:[%s17286_s9 + $0x180] sm:$0xff] }
0x1199   :  { %5947 = vmatpush.msrb.mxu2 %v10017_v13 }
0x119a   :  { %9975 = vmatmul.msk.f32.gmra.mxu3 %vm4544_vm10, %v15269_v9 }
0x119b   :  { %9963 = vmatmul.msk.f32.gmra.mxu2 %vm4544_vm10, %v9955_v49  ;;  %v9958_v49 = vld [vmem:[%s17287_s10 + $0x268] sm:$0xff] }
0x11a0   :  { %9943 = vmatmul.msk.f32.gmra.mxu1 %vm4544_vm10, %v9935_v6  ;;  %v9959_v6 = vld [vmem:[%s17287_s10 + $0x270] sm:$0xff] }
0x11a2   :  { %9976 = vmatmul.msk.f32.gmra.mxu3 %vm4544_vm10, %v15275_v42 }
0x11a3   :  { %9964 = vmatmul.msk.f32.gmra.mxu2 %vm4544_vm10, %v9956_v26  ;;  %v9960_v26 = vld [vmem:[%s17287_s10 + $0x278] sm:$0xff] }
0x11a8   :  { %9944 = vmatmul.msk.f32.gmra.mxu1 %vm4544_vm10, %v9936_v8 }
0x11ab   :  { %9965 = vmatmul.msk.f32.gmra.mxu2 %vm4544_vm10, %v9957_v34 }
0x11b0   :  { %9997 = vmatmul.msk.f32.vlgmr.msra.gmra.mxu1 %vm4544_vm10, %v15252_v30 }
0x11b3   :  { %9966 = vmatmul.msk.f32.gmra.mxu2 %vm4544_vm10, %v9958_v49 }
0x11b8   :  { %9998 = vmatmul.msk.f32.gmra.mxu1 %vm4544_vm10, %v15262_v5 }
0x11bb   :  { %9967 = vmatmul.msk.f32.gmra.mxu2 %vm4544_vm10, %v9959_v6 }
0x11c0   :  { %9999 = vmatmul.msk.f32.gmra.mxu1 %vm4544_vm10, %v15269_v9 }
0x11c3   :  { %9968 = vmatmul.msk.f32.gmra.mxu2 %vm4544_vm10, %v9960_v26 }
0x11c8   :  { %10000 = vmatmul.msk.f32.gmra.mxu1 %vm4544_vm10, %v15275_v42 }
0x11cb   :  { %10021 = vmatmul.msk.f32.vlgmr.msrb.gmra.mxu2 %vm4544_vm10, %v15252_v30 }
0x11cd   :  { %v15915_v47 = vpop.f32.mrf.mxu3 }
0x11d3   :  { %10022 = vmatmul.msk.f32.gmra.mxu2 %vm4544_vm10, %v15262_v5 }
0x11d5   :  { %v15919_v45 = vpop.f32.mrf.mxu3 }
0x11db   :  { %10023 = vmatmul.msk.f32.gmra.mxu2 %vm4544_vm10, %v15269_v9 }
0x11dd   :  { %v15923_v37 = vpop.f32.mrf.mxu3 }
0x11e3   :  { %10024 = vmatmul.msk.f32.gmra.mxu2 %vm4544_vm10, %v15275_v42 }
0x11e5   :  { %v15927_v8 = vpop.f32.mrf.mxu3 }
0x11ed   :  { %v15929_v34 = vpop.f32.mrf.mxu3  ;;  %v15931_v13 = vpop.f32.mrf.mxu1 }
0x11ee   :  { %17315 = vst [vmem:[#allocation24_spill] sm:$0xff] %v15929_v34  ;;  %v9978_v34 = vld [vmem:[%s17287_s10 + $0x288] sm:$0xff] }
0x11f5   :  { %v15933_v49 = vpop.f32.mrf.mxu3  ;;  %v15935_v6 = vpop.f32.mrf.mxu1 }
0x11f6   :  { %17316 = vst [vmem:[#allocation25_spill] sm:$0xff] %v15933_v49 }
0x11fd   :  { %v15937_v26 = vpop.f32.mrf.mxu3  ;;  %v15939_v52 = vpop.f32.mrf.mxu1 }
0x11fe   :  { %17317 = vst [vmem:[#allocation26_spill] sm:$0xff] %v15937_v26 }
0x1205   :  { %v15941_v19 = vpop.f32.mrf.mxu3  ;;  %v15943_v15 = vpop.f32.mrf.mxu1 }
0x1206   :  { %17318 = vst [vmem:[#allocation27_spill] sm:$0xff] %v15941_v19 }
0x1207   :  { %17319 = vst [vmem:[#allocation28_spill] sm:$0xff] %v15943_v15 }
0x120d   :  { %v5717_v22 = vpop.f32.mrf.mxu3  ;;  %v15945_v32 = vpop.f32.mrf.mxu1 }
0x120e   :  { %17320 = vst [vmem:[#allocation29_spill] sm:$0xff] %v15945_v32  ;;  %v15947_v50 = vpop.f32.mrf.mxu2  ;;  %v9977_v32 = vld [vmem:[%s17287_s10 + $0x280] sm:$0xff] }
0x1215   :  { %v5720_v14 = vpop.f32.mrf.mxu3  ;;  %v15949_v12 = vpop.f32.mrf.mxu1 }
0x1216   :  { %17321 = vst [vmem:[#allocation30_spill] sm:$0xff] %v15949_v12  ;;  %v15951_v25 = vpop.f32.mrf.mxu2 }
0x121d   :  { %v5723_v49 = vpop.f32.mrf.mxu3  ;;  %v15953_v39 = vpop.f32.mrf.mxu1 }
0x121e   :  { %17322 = vst [vmem:[#allocation31_spill] sm:$0xff] %v15953_v39  ;;  %v15955_v26 = vpop.f32.mrf.mxu2 }
0x1225   :  { %v5726_v56 = vpop.f32.mrf.mxu3  ;;  %v15957_v24 = vpop.f32.mrf.mxu1 }
0x1226   :  { %17323 = vst [vmem:[#allocation32_spill] sm:$0xff] %v15957_v24  ;;  %v15959_v19 = vpop.f32.mrf.mxu2  ;;  %5774 = vmatpush.msrb.mxu0 %v5726_v56 }
0x1227   :  { %17324 = vst [vmem:[#allocation33_spill] sm:$0xff] %v15959_v19 }
0x1228   :  { %5775 = vmatpush.msrb.mxu0 %v5723_v49  ;;  %v9980_v49 = vld [vmem:[%s17287_s10 + $0x298] sm:$0xff] }
0x122a   :  { %5776 = vmatpush.msrb.mxu0 %v5720_v14  ;;  %v9979_v14 = vld [vmem:[%s17287_s10 + $0x290] sm:$0xff] }
0x122c   :  { %5777 = vmatpush.msrb.mxu0 %v5717_v22 }
0x122d   :  { %9985 = vmatmul.msk.f32.vlgmr.msrb.gmra.mxu0 %vm4544_vm10, %v9977_v32  ;;  %v5833_v39 = vpop.f32.mrf.mxu1 }
0x122e   :  { %v15965_v12 = vpop.f32.mrf.mxu2 }
0x122f   :  { %17325 = vst [vmem:[#allocation34_spill] sm:$0xff] %v15965_v12 }
0x1235   :  { %9986 = vmatmul.msk.f32.gmra.mxu0 %vm4544_vm10, %v9978_v34  ;;  %v5836_v56 = vpop.f32.mrf.mxu1 }
0x1236   :  { %v15971_v24 = vpop.f32.mrf.mxu2 }
0x1237   :  { %17326 = vst [vmem:[#allocation35_spill] sm:$0xff] %v15971_v24  ;;  %v10044_v24 = vld [vmem:[%s17286_s9 + $0x1b8] sm:$0xff] }
0x1238   :  { %6060 = vmatpush.msra.mxu0 %v10044_v24  ;;  %v10041_v24 = vld [vmem:[%s17286_s9 + $0x1a0] sm:$0xff] }
0x123d   :  { %9987 = vmatmul.msk.f32.gmra.mxu0 %vm4544_vm10, %v9979_v14  ;;  %v5839_v32 = vpop.f32.mrf.mxu1  ;;  %v10043_v14 = vld [vmem:[%s17286_s9 + $0x1b0] sm:$0xff] }
0x123e   :  { %v15977_v22 = vpop.f32.mrf.mxu2  ;;  %6061 = vmatpush.msra.mxu0 %v10043_v14  ;;  %v10002_v14 = vld [vmem:[%s17287_s10 + $0x2c8] sm:$0xff] }
0x123f   :  { %17327 = vst [vmem:[#allocation36_spill] sm:$0xff] %v15977_v22  ;;  %v9981_v22 = vld [vmem:[%s17287_s10 + $0x2a0] sm:$0xff] }
0x1245   :  { %9988 = vmatmul.msk.f32.gmra.mxu0 %vm4544_vm10, %v9980_v49  ;;  %v5842_v34 = vpop.f32.mrf.mxu1  ;;  %v10042_v49 = vld [vmem:[%s17286_s9 + $0x1a8] sm:$0xff] }
0x1246   :  { %v15983_v12 = vpop.f32.mrf.mxu2  ;;  %5890 = vmatpush.msrb.mxu3 %v5842_v34  ;;  %v10001_v34 = vld [vmem:[%s17287_s10 + $0x2c0] sm:$0xff]  ;;  %6062 = vmatpush.msra.mxu0 %v10042_v49 }
0x1247   :  { %17328 = vst [vmem:[#allocation37_spill] sm:$0xff] %v15983_v12  ;;  %v10066_v12 = vld [vmem:[%s17286_s9 + $0x1c8] sm:$0xff] }
0x1248   :  { %5891 = vmatpush.msrb.mxu3 %v5839_v32  ;;  %6063 = vmatpush.msra.mxu0 %v10041_v24  ;;  %v9984_v24 = vld [vmem:[%s17287_s10 + $0x2b8] sm:$0xff] }
0x124a   :  { %5892 = vmatpush.msrb.mxu3 %v5836_v56  ;;  %v9982_v56 = vld [vmem:[%s17287_s10 + $0x2a8] sm:$0xff] }
0x124c   :  { %5893 = vmatpush.msrb.mxu3 %v5833_v39  ;;  %v9983_v39 = vld [vmem:[%s17287_s10 + $0x2b0] sm:$0xff] }
0x124d   :  { %9989 = vmatmul.msk.f32.gmra.mxu0 %vm4544_vm10, %v9981_v22  ;;  %10009 = vmatmul.msk.f32.vlgmr.msrb.gmra.mxu3 %vm4544_vm10, %v10001_v34  ;;  %v10003_v22 = vld [vmem:[%s17287_s10 + $0x2d0] sm:$0xff] }
0x124e   :  { %v5949_v32 = vpop.f32.mrf.mxu2 }
0x1255   :  { %9990 = vmatmul.msk.f32.gmra.mxu0 %vm4544_vm10, %v9982_v56  ;;  %10010 = vmatmul.msk.f32.gmra.mxu3 %vm4544_vm10, %v10002_v14  ;;  %v10004_v56 = vld [vmem:[%s17287_s10 + $0x2d8] sm:$0xff] }
0x1256   :  { %v5952_v49 = vpop.f32.mrf.mxu2 }
0x125d   :  { %9991 = vmatmul.msk.f32.gmra.mxu0 %vm4544_vm10, %v9983_v39  ;;  %10011 = vmatmul.msk.f32.gmra.mxu3 %vm4544_vm10, %v10003_v22  ;;  %v10068_v39 = vld [vmem:[%s17286_s9 + $0x1d8] sm:$0xff]  ;;  %v10067_v22 = vld [vmem:[%s17286_s9 + $0x1d0] sm:$0xff] }
0x125e   :  { %v5955_v34 = vpop.f32.mrf.mxu2  ;;  %6176 = vmatpush.msra.mxu3 %v10068_v39  ;;  %v10008_v39 = vld [vmem:[%s17287_s10 + $0x2f8] sm:$0xff] }
0x1260   :  { %6177 = vmatpush.msra.mxu3 %v10067_v22  ;;  %v10028_v22 = vld [vmem:[%s17287_s10 + $0x318] sm:$0xff] }
0x1262   :  { %6178 = vmatpush.msra.mxu3 %v10066_v12  ;;  %v10026_v12 = vld [vmem:[%s17287_s10 + $0x308] sm:$0xff] }
0x1265   :  { %9992 = vmatmul.msk.f32.gmra.mxu0 %vm4544_vm10, %v9984_v24  ;;  %10012 = vmatmul.msk.f32.gmra.mxu3 %vm4544_vm10, %v10004_v56  ;;  %v10005_v24 = vld [vmem:[%s17287_s10 + $0x2e0] sm:$0xff] }
0x1266   :  { %v5958_v14 = vpop.f32.mrf.mxu2  ;;  %v10025_v56 = vld [vmem:[%s17287_s10 + $0x300] sm:$0xff] }
0x1267   :  { %6006 = vmatpush.msrb.mxu1 %v5958_v14  ;;  %v10065_v14 = vld [vmem:[%s17286_s9 + $0x1c0] sm:$0xff] }
0x1268   :  { %6179 = vmatpush.msra.mxu3 %v10065_v14  ;;  %v10090_v14 = vld [vmem:[%s17286_s9 + $0x1e8] sm:$0xff] }
0x1269   :  { %6007 = vmatpush.msrb.mxu1 %v5955_v34  ;;  %v10027_v34 = vld [vmem:[%s17287_s10 + $0x310] sm:$0xff] }
0x126b   :  { %6008 = vmatpush.msrb.mxu1 %v5952_v49  ;;  %v10006_v49 = vld [vmem:[%s17287_s10 + $0x2e8] sm:$0xff] }
0x126d   :  { %6009 = vmatpush.msrb.mxu1 %v5949_v32  ;;  %10045 = vmatmul.msk.f32.vlgmr.msra.gmra.mxu0 %vm4544_vm10, %v15252_v30  ;;  %v10007_v32 = vld [vmem:[%s17287_s10 + $0x2f0] sm:$0xff] }
0x126e   :  { %10013 = vmatmul.msk.f32.gmra.mxu3 %vm4544_vm10, %v10005_v24  ;;  %10033 = vmatmul.msk.f32.vlgmr.msrb.gmra.mxu1 %vm4544_vm10, %v10025_v56  ;;  %v10092_v24 = vld [vmem:[%s17286_s9 + $0x1f8] sm:$0xff]  ;;  %v10091_v56 = vld [vmem:[%s17286_s9 + $0x1f0] sm:$0xff] }
0x126f   :  { %6292 = vmatpush.msra.mxu1 %v10092_v24 }
0x1271   :  { %6293 = vmatpush.msra.mxu1 %v10091_v56 }
0x1273   :  { %6294 = vmatpush.msra.mxu1 %v10090_v14 }
0x1275   :  { %10046 = vmatmul.msk.f32.gmra.mxu0 %vm4544_vm10, %v15262_v5 }
0x1276   :  { %10014 = vmatmul.msk.f32.gmra.mxu3 %vm4544_vm10, %v10006_v49  ;;  %10034 = vmatmul.msk.f32.gmra.mxu1 %vm4544_vm10, %v10026_v12  ;;  %v10029_v49 = vld [vmem:[%s17287_s10 + $0x320] sm:$0xff] }
0x1277   :  { %v10089_v12 = vld [vmem:[%s17286_s9 + $0x1e0] sm:$0xff] }
0x1278   :  { %6295 = vmatpush.msra.mxu1 %v10089_v12 }
0x127d   :  { %10047 = vmatmul.msk.f32.gmra.mxu0 %vm4544_vm10, %v15269_v9 }
0x127e   :  { %10015 = vmatmul.msk.f32.gmra.mxu3 %vm4544_vm10, %v10007_v32  ;;  %10035 = vmatmul.msk.f32.gmra.mxu1 %vm4544_vm10, %v10027_v34  ;;  %v10030_v32 = vld [vmem:[%s17287_s10 + $0x328] sm:$0xff]  ;;  %v10031_v34 = vld [vmem:[%s17287_s10 + $0x330] sm:$0xff] }
0x1285   :  { %10048 = vmatmul.msk.f32.gmra.mxu0 %vm4544_vm10, %v15275_v42 }
0x1286   :  { %10016 = vmatmul.msk.f32.gmra.mxu3 %vm4544_vm10, %v10008_v39  ;;  %10036 = vmatmul.msk.f32.gmra.mxu1 %vm4544_vm10, %v10028_v22  ;;  %v10032_v39 = vld [vmem:[%s17287_s10 + $0x338] sm:$0xff] }
0x128e   :  { %10037 = vmatmul.msk.f32.gmra.mxu1 %vm4544_vm10, %v10029_v49  ;;  %10069 = vmatmul.msk.f32.vlgmr.msra.gmra.mxu3 %vm4544_vm10, %v15252_v30 }
0x1296   :  { %10038 = vmatmul.msk.f32.gmra.mxu1 %vm4544_vm10, %v10030_v32  ;;  %10070 = vmatmul.msk.f32.gmra.mxu3 %vm4544_vm10, %v15262_v5 }
0x129e   :  { %10039 = vmatmul.msk.f32.gmra.mxu1 %vm4544_vm10, %v10031_v34  ;;  %10071 = vmatmul.msk.f32.gmra.mxu3 %vm4544_vm10, %v15269_v9 }
0x12a6   :  { %10040 = vmatmul.msk.f32.gmra.mxu1 %vm4544_vm10, %v10032_v39  ;;  %10072 = vmatmul.msk.f32.gmra.mxu3 %vm4544_vm10, %v15275_v42 }
0x12aa   :  { %v16117_v22 = vpop.f32.mrf.mxu0 }
0x12ae   :  { %10093 = vmatmul.msk.f32.vlgmr.msra.gmra.mxu1 %vm4544_vm10, %v15252_v30 }
0x12b2   :  { %v16121_v24 = vpop.f32.mrf.mxu0 }
0x12b6   :  { %10094 = vmatmul.msk.f32.gmra.mxu1 %vm4544_vm10, %v15262_v5 }
0x12ba   :  { %v16125_v56 = vpop.f32.mrf.mxu0 }
0x12be   :  { %10095 = vmatmul.msk.f32.gmra.mxu1 %vm4544_vm10, %v15269_v9 }
0x12c2   :  { %v16129_v14 = vpop.f32.mrf.mxu0 }
0x12c3   :  { %17329 = vst [vmem:[#allocation38_spill] sm:$0xff] %v16129_v14 }
0x12c6   :  { %10096 = vmatmul.msk.f32.gmra.mxu1 %vm4544_vm10, %v15275_v42 }
0x12ca   :  { %v16133_v49 = vpop.f32.mrf.mxu0 }
0x12cb   :  { %17330 = vst [vmem:[#allocation39_spill] sm:$0xff] %v16133_v49 }
0x12d0   :  { %v16135_v12 = vpop.f32.mrf.mxu3 }
0x12d2   :  { %v16137_v30 = vpop.f32.mrf.mxu0 }
0x12d3   :  { %17331 = vst [vmem:[#allocation40_spill] sm:$0xff] %v16137_v30 }
0x12d8   :  { %v16139_v32 = vpop.f32.mrf.mxu3 }
0x12da   :  { %v16141_v34 = vpop.f32.mrf.mxu0 }
0x12db   :  { %17332 = vst [vmem:[#allocation41_spill] sm:$0xff] %v16141_v34 }
0x12e0   :  { %v16143_v5 = vpop.f32.mrf.mxu3 }
0x12e2   :  { %v16145_v39 = vpop.f32.mrf.mxu0 }
0x12e3   :  { %17333 = vst [vmem:[#allocation42_spill] sm:$0xff] %v16145_v39  ;;  %v10049_v39 = vld [vmem:[%s17287_s10 + $0x340] sm:$0xff] }
0x12e8   :  { %v16147_v9 = vpop.f32.mrf.mxu3 }
0x12e9   :  { %17334 = vst [vmem:[#allocation43_spill] sm:$0xff] %v16147_v9 }
0x12ea   :  { %v6065_v40 = vpop.f32.mrf.mxu0 }
0x12eb   :  { %v16149_v14 = vpop.f32.mrf.mxu1 }
0x12f1   :  { %v16151_v42 = vpop.f32.mrf.mxu3 }
0x12f2   :  { %17335 = vst [vmem:[#allocation44_spill] sm:$0xff] %v16151_v42  ;;  %v6068_v49 = vpop.f32.mrf.mxu0 }
0x12f3   :  { %v16153_v53 = vpop.f32.mrf.mxu1 }
0x12f9   :  { %v16155_v29 = vpop.f32.mrf.mxu3 }
0x12fa   :  { %17336 = vst [vmem:[#allocation45_spill] sm:$0xff] %v16155_v29  ;;  %v6071_v30 = vpop.f32.mrf.mxu0 }
0x12fb   :  { %v16157_v19 = vpop.f32.mrf.mxu1 }
0x12fc   :  { %17337 = vst [vmem:[#allocation46_spill] sm:$0xff] %v16157_v19 }
0x1301   :  { %v16159_v34 = vpop.f32.mrf.mxu3 }
0x1302   :  { %17338 = vst [vmem:[#allocation47_spill] sm:$0xff] %v16159_v34  ;;  %v6074_v59 = vpop.f32.mrf.mxu0  ;;  %v10050_v34 = vld [vmem:[%s17287_s10 + $0x348] sm:$0xff] }
0x1303   :  { %v16161_v15 = vpop.f32.mrf.mxu1  ;;  %6122 = vmatpush.msra.mxu2 %v6074_v59 }
0x1304   :  { %17339 = vst [vmem:[#allocation48_spill] sm:$0xff] %v16161_v15 }
0x1305   :  { %6123 = vmatpush.msra.mxu2 %v6071_v30 }
0x1307   :  { %6124 = vmatpush.msra.mxu2 %v6068_v49  ;;  %v10051_v49 = vld [vmem:[%s17287_s10 + $0x350] sm:$0xff] }
0x1309   :  { %v16166_v42 = vpop.f32.mrf.mxu3  ;;  %6125 = vmatpush.msra.mxu2 %v6065_v40 }
0x130a   :  { %17340 = vst [vmem:[#allocation49_spill] sm:$0xff] %v16166_v42  ;;  %10057 = vmatmul.msk.f32.vlgmr.msra.gmra.mxu2 %vm4544_vm10, %v10049_v39  ;;  %v10052_v39 = vld [vmem:[%s17287_s10 + $0x358] sm:$0xff] }
0x130b   :  { %v16169_v29 = vpop.f32.mrf.mxu1 }
0x130c   :  { %17341 = vst [vmem:[#allocation50_spill] sm:$0xff] %v16169_v29 }
0x1311   :  { %v6181_v9 = vpop.f32.mrf.mxu3 }
0x1312   :  { %10058 = vmatmul.msk.f32.gmra.mxu2 %vm4544_vm10, %v10050_v34  ;;  %v10053_v34 = vld [vmem:[%s17287_s10 + $0x360] sm:$0xff] }
0x1313   :  { %v16175_v59 = vpop.f32.mrf.mxu1 }
0x1314   :  { %17342 = vst [vmem:[#allocation51_spill] sm:$0xff] %v16175_v59 }
0x1319   :  { %v6184_v30 = vpop.f32.mrf.mxu3 }
0x131a   :  { %10059 = vmatmul.msk.f32.gmra.mxu2 %vm4544_vm10, %v10051_v49 }
0x131b   :  { %v16181_v40 = vpop.f32.mrf.mxu1 }
0x131c   :  { %17343 = vst [vmem:[#allocation52_spill] sm:$0xff] %v16181_v40  ;;  %v10073_v40 = vld [vmem:[%s17287_s10 + $0x380] sm:$0xff] }
0x1321   :  { %v6187_v42 = vpop.f32.mrf.mxu3 }
0x1322   :  { %10060 = vmatmul.msk.f32.gmra.mxu2 %vm4544_vm10, %v10052_v39  ;;  %v10054_v39 = vld [vmem:[%s17287_s10 + $0x368] sm:$0xff] }
0x1323   :  { %v16187_v29 = vpop.f32.mrf.mxu1 }
0x1324   :  { %17344 = vst [vmem:[#allocation53_spill] sm:$0xff] %v16187_v29 }
0x1329   :  { %v6190_v59 = vpop.f32.mrf.mxu3 }
0x132a   :  { %6238 = vmatpush.msrb.mxu0 %v6190_v59  ;;  %10061 = vmatmul.msk.f32.gmra.mxu2 %vm4544_vm10, %v10053_v34  ;;  %v10074_v59 = vld [vmem:[%s17287_s10 + $0x388] sm:$0xff] }
0x132b   :  { %v6297_v49 = vpop.f32.mrf.mxu1 }
0x132c   :  { %6239 = vmatpush.msrb.mxu0 %v6187_v42  ;;  %v10055_v42 = vld [vmem:[%s17287_s10 + $0x370] sm:$0xff] }
0x132e   :  { %6240 = vmatpush.msrb.mxu0 %v6184_v30 }
0x1330   :  { %6241 = vmatpush.msrb.mxu0 %v6181_v9  ;;  %v10075_v9 = vld [vmem:[%s17287_s10 + $0x390] sm:$0xff] }
0x1331   :  { %10081 = vmatmul.msk.f32.vlgmr.msrb.gmra.mxu0 %vm4544_vm10, %v10073_v40  ;;  %v10056_v40 = vld [vmem:[%s17287_s10 + $0x378] sm:$0xff] }
0x1332   :  { %10062 = vmatmul.msk.f32.gmra.mxu2 %vm4544_vm10, %v10054_v39  ;;  %v10076_v39 = vld [vmem:[%s17287_s10 + $0x398] sm:$0xff] }
0x1333   :  { %v6300_v29 = vpop.f32.mrf.mxu1 }
0x1339   :  { %10082 = vmatmul.msk.f32.gmra.mxu0 %vm4544_vm10, %v10074_v59  ;;  %v10097_v59 = vld [vmem:[%s17287_s10 + $0x3c0] sm:$0xff] }
0x133a   :  { %10063 = vmatmul.msk.f32.gmra.mxu2 %vm4544_vm10, %v10055_v42  ;;  %v10077_v42 = vld [vmem:[%s17287_s10 + $0x3a0] sm:$0xff] }
0x133b   :  { %v6303_v30 = vpop.f32.mrf.mxu1 }
0x1341   :  { %10083 = vmatmul.msk.f32.gmra.mxu0 %vm4544_vm10, %v10075_v9  ;;  %v10079_v9 = vld [vmem:[%s17287_s10 + $0x3b0] sm:$0xff] }
0x1342   :  { %10064 = vmatmul.msk.f32.gmra.mxu2 %vm4544_vm10, %v10056_v40  ;;  %v10100_v40 = vld [vmem:[%s17287_s10 + $0x3d8] sm:$0xff] }
0x1343   :  { %v6306_v34 = vpop.f32.mrf.mxu1 }
0x1344   :  { %6354 = vmatpush.msrb.mxu3 %v6306_v34  ;;  %v10080_v34 = vld [vmem:[%s17287_s10 + $0x3b8] sm:$0xff] }
0x1346   :  { %6355 = vmatpush.msrb.mxu3 %v6303_v30  ;;  %v10098_v30 = vld [vmem:[%s17287_s10 + $0x3c8] sm:$0xff] }
0x1348   :  { %6356 = vmatpush.msrb.mxu3 %v6300_v29  ;;  %v10078_v29 = vld [vmem:[%s17287_s10 + $0x3a8] sm:$0xff] }
0x1349   :  { %10084 = vmatmul.msk.f32.gmra.mxu0 %vm4544_vm10, %v10076_v39  ;;  %v10101_v39 = vld [vmem:[%s17287_s10 + $0x3e0] sm:$0xff] }
0x134a   :  { %6357 = vmatpush.msrb.mxu3 %v6297_v49  ;;  %v10099_v49 = vld [vmem:[%s17287_s10 + $0x3d0] sm:$0xff] }
0x134b   :  { %10105 = vmatmul.msk.f32.vlgmr.msrb.gmra.mxu3 %vm4544_vm10, %v10097_v59  ;;  %v10102_v59 = vld [vmem:[%s17287_s10 + $0x3e8] sm:$0xff] }
0x1351   :  { %10085 = vmatmul.msk.f32.gmra.mxu0 %vm4544_vm10, %v10077_v42  ;;  %v10103_v42 = vld [vmem:[%s17287_s10 + $0x3f0] sm:$0xff] }
0x1353   :  { %10106 = vmatmul.msk.f32.gmra.mxu3 %vm4544_vm10, %v10098_v30  ;;  %v10104_v30 = vld [vmem:[%s17287_s10 + $0x3f8] sm:$0xff] }
0x1359   :  { %10086 = vmatmul.msk.f32.gmra.mxu0 %vm4544_vm10, %v10078_v29  ;;  %v4744_v29 = vadd.f32 %v15491_v10, %v15563_v31  ;;  %v4747_v10 = vadd.f32 %v15495_v11, %v15575_v33 }
0x135b   :  { %10107 = vmatmul.msk.f32.gmra.mxu3 %vm4544_vm10, %v10099_v49  ;;  %v6471_v49 = vld [vmem:[%s17288_s12] sm:$0xff]  ;;  %v4876_v15 = vadd.f32 %v15511_v44, %v4747_v10 }
0x135c   :  { %6511 = vmatpush.msrb.mxu2 %v6471_v49 }
0x1361   :  { %10087 = vmatmul.msk.f32.gmra.mxu0 %vm4544_vm10, %v10079_v9  ;;  %v10121_v9 = vld [vmem:[%s17288_s12 + $0x8] sm:$0xff] }
0x1362   :  { %6555 = vmatpush.msrb.mxu1 %v10121_v9 }
0x1363   :  { %10108 = vmatmul.msk.f32.gmra.mxu3 %vm4544_vm10, %v10100_v40  ;;  %v10133_v40 = vld [vmem:[%s17288_s12 + $0x10] sm:$0xff] }
0x1364   :  { %6646 = vmatpush.msra.mxu3 %v10133_v40 }
0x1369   :  { %10088 = vmatmul.msk.f32.gmra.mxu0 %vm4544_vm10, %v10080_v34  ;;  %v4875_v34 = vadd.f32 %v15507_v2, %v4744_v29  ;;  %v4992_v2 = vadd.f32 %v15695_v54, %v4876_v15 }
0x136b   :  { %10109 = vmatmul.msk.f32.gmra.mxu3 %vm4544_vm10, %v10101_v39  ;;  %v4991_v39 = vadd.f32 %v15684_v36, %v4875_v34  ;;  %v4750_v36 = vadd.f32 %v15499_v3, %v15585_v46  ;;  %v5108_v49 = vadd.f32 %v15703_v16, %v4992_v2  ;;  %v4753_v16 = vadd.f32 %v15503_v17, %v15604_v20  ;;  %v17346_v2 = vld [vmem:[#allocation46_spill] sm:$0xff] }
0x136d   :  { %v5107_v31 = vadd.f32 %v15697_v58, %v4991_v39  ;;  %v5224_v33 = vadd.f32 %v15729_v62, %v5108_v49  ;;  %v4877_v44 = vadd.f32 %v15515_v1, %v4750_v36  ;;  %v17347_v49 = vld [vmem:[#allocation16_spill] sm:$0xff] }
0x1373   :  { %10110 = vmatmul.msk.f32.gmra.mxu3 %vm4544_vm10, %v10102_v59 }
0x137b   :  { %10111 = vmatmul.msk.f32.gmra.mxu3 %vm4544_vm10, %v10103_v42  ;;  %v5223_v42 = vadd.f32 %v15723_v4, %v5107_v31 }
0x137d   :  { %v5339_v19 = vadd.f32 %v15741_v51, %v5223_v42  ;;  %v5340_v51 = vadd.f32 %v15745_v7, %v5224_v33  ;;  %v17345_v42 = vld [vmem:[#allocation28_spill] sm:$0xff] }
0x137f   :  { %v5455_v29 = vadd.f32 %v15915_v47, %v5339_v19  ;;  %v4993_v19 = vadd.f32 %v15701_v23, %v4877_v44  ;;  %v5456_v3 = vadd.f32 %v15919_v45, %v5340_v51  ;;  %v4878_v23 = vadd.f32 %v15519_v38, %v4753_v16  ;;  %v17349_v44 = vld [vmem:[#allocation5_spill] sm:$0xff] }
0x1381   :  { %v5571_v11 = vadd.f32 %v15931_v13, %v5455_v29  ;;  %v5109_v62 = vadd.f32 %v15707_v0, %v4993_v19  ;;  %v4994_v17 = vadd.f32 %v15709_v55, %v4878_v23  ;;  %v17355_v23 = vld [vmem:[#allocation8_spill] sm:$0xff] }
0x1383   :  { %10112 = vmatmul.msk.f32.gmra.mxu3 %vm4544_vm10, %v10104_v30  ;;  %v5687_v58 = vadd.f32 %v15947_v50, %v5571_v11  ;;  %v5572_v50 = vadd.f32 %v15935_v6, %v5456_v3  ;;  %v5225_v7 = vadd.f32 %v15733_v63, %v5109_v62  ;;  %v6402_v63 = vpop.permute.xlu1 %6401  ;;  %v5110_v38 = vadd.f32 %v15713_v61, %v4994_v17  ;;  %v17352_v3 = vld [vmem:[#allocation10_spill] sm:$0xff]  ;;  %v17353_v62 = vld [vmem:[#allocation24_spill] sm:$0xff] }
0x1385   :  { %v5803_v54 = vadd.f32 %v16117_v22, %v5687_v58  ;;  %v5688_v47 = vadd.f32 %v15951_v25, %v5572_v50  ;;  %v5341_v45 = vadd.f32 %v15749_v43, %v5225_v7  ;;  %v4756_v25 = vadd.f32 %v15505_v57, %v15625_v18 }
0x1386   :  { %v5226_v55 = vadd.f32 %v15739_v35, %v5110_v38 }
0x1387   :  { %v5919_v46 = vadd.f32 %v16135_v12, %v5803_v54  ;;  %v5804_v22 = vadd.f32 %v16121_v24, %v5688_v47  ;;  %v5457_v6 = vadd.f32 %v15923_v37, %v5341_v45  ;;  %v4879_v10 = vadd.f32 %v15521_v21, %v4756_v25  ;;  %v17350_v54 = vld [vmem:[#allocation20_spill] sm:$0xff]  ;;  %v17356_v45 = vld [vmem:[#allocation3_spill] sm:$0xff] }
0x1388   :  { %v5342_v31 = vadd.f32 %v15753_v28, %v5226_v55  ;;  %v6407_v28 = vpop.permute.xlu2 %6406  ;;  %v17362_v55 = vld [vmem:[#allocation6_spill] sm:$0xff] }
0x1389   :  { %v6035_v1 = vadd.f32 %v16149_v14, %v5919_v46  ;;  %v5920_v14 = vadd.f32 %v16139_v32, %v5804_v22  ;;  %v5573_v43 = vadd.f32 %v15939_v52, %v5457_v6  ;;  %v4995_v52 = vadd.f32 %v15715_v27, %v4879_v10  ;;  %v17359_v6 = vld [vmem:[#allocation48_spill] sm:$0xff] }
0x138a   :  { %v5458_v35 = vadd.f32 %v15927_v8, %v5342_v31  ;;  %v4762_v22 = vadd.f32 %v17356_v45, %v17355_v23  ;;  %v17364_v31 = vld [vmem:[#allocation39_spill] sm:$0xff] }
0x138b   :  { %v6036_v24 = vadd.f32 %v16153_v53, %v5920_v14  ;;  %v5689_v39 = vadd.f32 %v15955_v26, %v5573_v43  ;;  %v5111_v27 = vadd.f32 %v15719_v60, %v4995_v52 }
0x138d   :  { %v6127_v59 = vpop.f32.mrf.mxu2  ;;  %v5805_v57 = vadd.f32 %v16125_v56, %v5689_v39  ;;  %v4759_v56 = vadd.f32 %v15509_v48, %v15641_v41  ;;  %v5227_v8 = vadd.f32 %v17347_v49, %v5111_v27  ;;  %v17351_v41 = vld [vmem:[#allocation38_spill] sm:$0xff]  ;;  %v4881_v39 = vadd.f32 %v17362_v55, %v4762_v22 }
0x138e   :  { %v6151_v13 = vadd.f32 %v6127_v59, %v6035_v1  ;;  %v17354_v1 = vld [vmem:[#allocation43_spill] sm:$0xff]  ;;  %v17379_v22 = vld [vmem:[#allocation26_spill] sm:$0xff] }
0x138f   :  { %v5921_v21 = vadd.f32 %v16143_v5, %v5805_v57  ;;  %v17348_v5 = vld [vmem:[#allocation33_spill] sm:$0xff]  ;;  %v4880_v51 = vadd.f32 %v17349_v44, %v4759_v56  ;;  %v5343_v48 = vadd.f32 %v17350_v54, %v5227_v8  ;;  %v17367_v56 = vld [vmem:[#allocation44_spill] sm:$0xff]  ;;  %v17371_v8 = vld [vmem:[#allocation30_spill] sm:$0xff] }
0x1391   :  { %v6037_v29 = vadd.f32 %v17346_v2, %v5921_v21  ;;  %v4996_v46 = vadd.f32 %v17352_v3, %v4880_v51  ;;  %v5459_v50 = vadd.f32 %v17353_v62, %v5343_v48  ;;  %v17369_v2 = vld [vmem:[#allocation4_spill] sm:$0xff]  ;;  %v17374_v51 = vld [vmem:[#allocation35_spill] sm:$0xff] }
0x1392   :  { %v17377_v62 = vld [vmem:[#allocation40_spill] sm:$0xff] }
0x1395   :  { %v6130_v4 = vpop.f32.mrf.mxu2 }
0x1396   :  { %v6152_v37 = vadd.f32 %v6130_v4, %v6036_v24 }
0x139d   :  { %v6133_v20 = vpop.f32.mrf.mxu2 }
0x139e   :  { %v6153_v58 = vadd.f32 %v6133_v20, %v6037_v29  ;;  %v17358_v20 = vld [vmem:[#allocation29_spill] sm:$0xff] }
0x13a5   :  { %v6136_v59 = vpop.f32.mrf.mxu2 }
0x13ad   :  { %v6139_v38 = vpop.f32.mrf.mxu2 }
0x13ae   :  { %v6243_v30 = vpop.f32.mrf.mxu0 }
0x13af   :  { %v6267_v12 = vadd.f32 %v6243_v30, %v6151_v13  ;;  %v5574_v30 = vadd.f32 %v17345_v42, %v5458_v35  ;;  %v6412_v13 = vpop.permute.xlu0 %6411  ;;  %v6417_v42 = vpop.permute.xlu1 %6416 }
0x13b1   :  { %v5690_v33 = vadd.f32 %v17348_v5, %v5574_v30  ;;  %v17368_v30 = vld [vmem:[#allocation9_spill] sm:$0xff]  ;;  %v17372_v5 = vld [vmem:[#allocation50_spill] sm:$0xff] }
0x13b2   :  { %v4765_v29 = vadd.f32 %v17369_v2, %v17368_v30 }
0x13b3   :  { %v5806_v60 = vadd.f32 %v17351_v41, %v5690_v33 }
0x13b5   :  { %v5922_v7 = vadd.f32 %v17354_v1, %v5806_v60  ;;  %v17375_v60 = vld [vmem:[#allocation7_spill] sm:$0xff]  ;;  %v6142_v3 = vpop.f32.mrf.mxu2 }
0x13b6   :  { %v6246_v15 = vpop.f32.mrf.mxu0 }
0x13b7   :  { %v6268_v18 = vadd.f32 %v6246_v15, %v6152_v37  ;;  %v6038_v14 = vadd.f32 %v17359_v6, %v5922_v7  ;;  %v10155_v6 = vld [vmem:[%s17288_s12 + $0x20] sm:$0xff]  ;;  %v6427_v2 = vpop.permute.xlu0 %6426 }
0x13b8   :  { %6784 = vmatpush.msra.mxu1 %v10155_v6 }
0x13b9   :  { %v6154_v24 = vadd.f32 %v6136_v59, %v6038_v14  ;;  %v6422_v14 = vpop.permute.xlu2 %6421 }
0x13be   :  { %v6249_v40 = vpop.f32.mrf.mxu0 }
0x13bf   :  { %v6269_v15 = vadd.f32 %v6249_v40, %v6153_v58  ;;  %v17361_v40 = vld [vmem:[#allocation34_spill] sm:$0xff] }
0x13c6   :  { %v6252_v11 = vpop.f32.mrf.mxu0 }
0x13ce   :  { %v6359_v0 = vpop.f32.mrf.mxu3  ;;  %v6255_v37 = vpop.f32.mrf.mxu0 }
0x13cf   :  { %v6383_v9 = vadd.f32 %v6359_v0, %v6267_v12  ;;  %v17357_v12 = vld [vmem:[#allocation11_spill] sm:$0xff]  ;;  %v5575_v0 = vadd.f32 %v17358_v20, %v5459_v50 }
0x13d0   :  { %v5112_v17 = vadd.f32 %v17357_v12, %v4996_v46  ;;  %v17376_v46 = vld [vmem:[#allocation22_spill] sm:$0xff] }
0x13d1   :  { %v6439_v34 = vadd.f32 %v6402_v63, %v6383_v9  ;;  %v17360_v63 = vld [vmem:[#allocation17_spill] sm:$0xff]  ;;  %v5691_v43 = vadd.f32 %v17361_v40, %v5575_v0  ;;  %v17383_v40 = vld [vmem:[#allocation51_spill] sm:$0xff] }
0x13d2   :  { %v5228_v25 = vadd.f32 %v17360_v63, %v5112_v17  ;;  %v17380_v17 = vld [vmem:[#allocation45_spill] sm:$0xff] }
0x13d3   :  { %vm6447_vm14 = vcmp.ge.f32.partialorder %v6439_v34, 0.0  ;;  %v6455_v32 = vmul.f32 0.2, %v6439_v34  ;;  %v5807_v57 = vadd.f32 %v17364_v31, %v5691_v43  ;;  %v17386_v31 = vld [vmem:[#allocation23_spill] sm:$0xff] }
0x13d5   :  { %v16325_v61 = vsel %vm6447_vm14, %v6439_v34, %v6455_v32  ;;  %v17363_v32 = vld [vmem:[#allocation21_spill] sm:$0xff]  ;;  %v5923_v27 = vadd.f32 %v17367_v56, %v5807_v57  ;;  %v17388_v56 = vld [vmem:[#allocation27_spill] sm:$0xff] }
0x13d6   :  { %v6362_v53 = vpop.f32.mrf.mxu3  ;;  %10113 = vmatmul.msk.f32.vlgmr.msrb.gmra.mxu2 %vm484_vm5, %v16325_v61  ;;  %10122 = vmatmul.msk.f32.vlgmr.msrb.gmra.mxu1 %vm484_vm5, %v16325_v61  ;;  %v5344_v10 = vadd.f32 %v17363_v32, %v5228_v25  ;;  %v6258_v23 = vpop.f32.mrf.mxu0  ;;  %v17382_v25 = vld [vmem:[#allocation31_spill] sm:$0xff] }
0x13d7   :  { %v6384_v26 = vadd.f32 %v6362_v53, %v6268_v18  ;;  %10134 = vmatmul.msk.f32.vlgmr.msra.gmra.mxu3 %vm484_vm5, %v16325_v61  ;;  %v6270_v18 = vadd.f32 %v6252_v11, %v6154_v24  ;;  %v17365_v53 = vld [vmem:[#allocation12_spill] sm:$0xff]  ;;  %v6039_v33 = vadd.f32 %v17372_v5, %v5923_v27 }
0x13d8   :  { %v4997_v35 = vadd.f32 %v17365_v53, %v4881_v39  ;;  %v17385_v39 = vld [vmem:[#allocation36_spill] sm:$0xff] }
0x13d9   :  { %v6440_v36 = vadd.f32 %v6407_v28, %v6384_v26  ;;  %v17366_v26 = vld [vmem:[#allocation25_spill] sm:$0xff]  ;;  %v6155_v48 = vadd.f32 %v6139_v38, %v6039_v33 }
0x13da   :  { %v5460_v28 = vadd.f32 %v17366_v26, %v5344_v10  ;;  %v6145_v26 = vpop.f32.mrf.mxu2  ;;  %v17392_v33 = vld [vmem:[#allocation37_spill] sm:$0xff] }
0x13db   :  { %vm6448_vm15 = vcmp.ge.f32.partialorder %v6440_v36, 0.0  ;;  %v6456_v4 = vmul.f32 0.2, %v6440_v36  ;;  %v6271_v1 = vadd.f32 %v6255_v37, %v6155_v48 }
0x13dc   :  { %v5576_v11 = vadd.f32 %v17371_v8, %v5460_v28  ;;  %v17391_v8 = vld [vmem:[#allocation52_spill] sm:$0xff] }
0x13dd   :  { %v16346_v19 = vsel %vm6448_vm15, %v6440_v36, %v6456_v4  ;;  %v17370_v36 = vld [vmem:[#allocation13_spill] sm:$0xff]  ;;  %v17373_v4 = vld [vmem:[#allocation18_spill] sm:$0xff] }
0x13de   :  { %v6365_v16 = vpop.f32.mrf.mxu3  ;;  %10114 = vmatmul.msk.f32.gmra.mxu2 %vm484_vm5, %v16346_v19  ;;  %10123 = vmatmul.msk.f32.gmra.mxu1 %vm484_vm5, %v16346_v19  ;;  %v5113_v49 = vadd.f32 %v17370_v36, %v4997_v35  ;;  %v5692_v54 = vadd.f32 %v17374_v51, %v5576_v11  ;;  %v17390_v36 = vld [vmem:[#allocation32_spill] sm:$0xff]  ;;  %v17393_v51 = vld [vmem:[#allocation42_spill] sm:$0xff] }
0x13df   :  { %v6385_v47 = vadd.f32 %v6365_v16, %v6269_v15  ;;  %10135 = vmatmul.msk.f32.gmra.mxu3 %vm484_vm5, %v16346_v19  ;;  %v4882_v15 = vadd.f32 %v17375_v60, %v4765_v29  ;;  %v6261_v29 = vpop.f32.mrf.mxu0 }
0x13e0   :  { %v5229_v44 = vadd.f32 %v17373_v4, %v5113_v49  ;;  %v5808_v50 = vadd.f32 %v17377_v62, %v5692_v54 }
0x13e1   :  { %v6441_v9 = vadd.f32 %v6412_v13, %v6385_v47  ;;  %v17378_v47 = vld [vmem:[#allocation15_spill] sm:$0xff] }
0x13e2   :  { %v5345_v16 = vadd.f32 %v17376_v46, %v5229_v44  ;;  %v4998_v13 = vadd.f32 %v17378_v47, %v4882_v15  ;;  %v5924_v20 = vadd.f32 %v17380_v17, %v5808_v50  ;;  %v17394_v15 = vld [vmem:[#allocation49_spill] sm:$0xff]  ;;  %v6148_v62 = vpop.f32.mrf.mxu2 }
0x13e3   :  { %vm6449_vm1 = vcmp.ge.f32.partialorder %v6441_v9, 0.0  ;;  %v6457_v34 = vmul.f32 0.2, %v6441_v9  ;;  %v17395_v50 = vld [vmem:[#allocation53_spill] sm:$0xff] }
0x13e4   :  { %v5461_v12 = vadd.f32 %v17379_v22, %v5345_v16  ;;  %v6040_v43 = vadd.f32 %v17383_v40, %v5924_v20  ;;  %v6432_v16 = vpop.permute.xlu1 %6431 }
0x13e5   :  { %v16367_v52 = vsel %vm6449_vm1, %v6441_v9, %v6457_v34  ;;  %v17381_v9 = vld [vmem:[#allocation14_spill] sm:$0xff]  ;;  %v17384_v34 = vld [vmem:[#allocation19_spill] sm:$0xff] }
0x13e6   :  { %v6368_v21 = vpop.f32.mrf.mxu3  ;;  %10115 = vmatmul.msk.f32.gmra.mxu2 %vm484_vm5, %v16367_v52  ;;  %10124 = vmatmul.msk.f32.gmra.mxu1 %vm484_vm5, %v16367_v52  ;;  %v5114_v63 = vadd.f32 %v17381_v9, %v4998_v13  ;;  %v5577_v38 = vadd.f32 %v17382_v25, %v5461_v12  ;;  %v6156_v32 = vadd.f32 %v6142_v3, %v6040_v43 }
0x13e7   :  { %v6386_v59 = vadd.f32 %v6368_v21, %v6270_v18  ;;  %10136 = vmatmul.msk.f32.gmra.mxu3 %vm484_vm5, %v16367_v52  ;;  %v17387_v18 = vld [vmem:[#allocation41_spill] sm:$0xff]  ;;  %v6264_v13 = vpop.f32.mrf.mxu0 }
0x13e8   :  { %v5230_v55 = vadd.f32 %v17384_v34, %v5114_v63  ;;  %v5693_v37 = vadd.f32 %v17385_v39, %v5577_v38  ;;  %v6272_v35 = vadd.f32 %v6258_v23, %v6156_v32 }
0x13e9   :  { %v6442_v58 = vadd.f32 %v6417_v42, %v6386_v59  ;;  %v17389_v59 = vld [vmem:[#allocation47_spill] sm:$0xff] }
0x13ea   :  { %v5346_v57 = vadd.f32 %v17386_v31, %v5230_v55  ;;  %v5809_v53 = vadd.f32 %v17387_v18, %v5693_v37 }
0x13eb   :  { %vm6450_vm2 = vcmp.ge.f32.partialorder %v6442_v58, 0.0  ;;  %v6458_v41 = vmul.f32 0.2, %v6442_v58 }
0x13ec   :  { %v5462_v27 = vadd.f32 %v17388_v56, %v5346_v57  ;;  %v5925_v42 = vadd.f32 %v17389_v59, %v5809_v53  ;;  %v10130_v59 = vld [vmem:[%s17289_s13 + $0x1] sm:$0x1] }
0x13ed   :  { %v16388_v7 = vsel %vm6450_vm2, %v6442_v58, %v6458_v41 }
0x13ee   :  { %v6371_v45 = vpop.f32.mrf.mxu3  ;;  %10116 = vmatmul.msk.f32.gmra.mxu2 %vm484_vm5, %v16388_v7  ;;  %10125 = vmatmul.msk.f32.gmra.mxu1 %vm484_vm5, %v16388_v7  ;;  %v5578_v49 = vadd.f32 %v17390_v36, %v5462_v27  ;;  %v6041_v11 = vadd.f32 %v17391_v8, %v5925_v42  ;;  %v10142_v36 = vld [vmem:[%s17289_s13 + $0x2] sm:$0x1] }
0x13ef   :  { %v6387_v0 = vadd.f32 %v6371_v45, %v6271_v1  ;;  %10137 = vmatmul.msk.f32.gmra.mxu3 %vm484_vm5, %v16388_v7 }
0x13f0   :  { %v5694_v58 = vadd.f32 %v17392_v33, %v5578_v49  ;;  %v6157_v4 = vadd.f32 %v6145_v26, %v6041_v11  ;;  %v10144_v49 = vld [vmem:[%s17288_s12 + $0x18] sm:$0xff] }
0x13f1   :  { %v6443_v24 = vadd.f32 %v6422_v14, %v6387_v0  ;;  %v6437_v0 = vpop.permute.xlu2 %6436 }
0x13f2   :  { %v5810_v54 = vadd.f32 %v17393_v51, %v5694_v58  ;;  %v6273_v48 = vadd.f32 %v6261_v29, %v6157_v4 }
0x13f3   :  { %vm6451_vm3 = vcmp.ge.f32.partialorder %v6443_v24, 0.0  ;;  %v6459_v10 = vmul.f32 0.2, %v6443_v24 }
0x13f4   :  { %v5926_v3 = vadd.f32 %v17394_v15, %v5810_v54 }
0x13f5   :  { %v16409_v21 = vsel %vm6451_vm3, %v6443_v24, %v6459_v10 }
0x13f6   :  { %v6374_v28 = vpop.f32.mrf.mxu3  ;;  %10117 = vmatmul.msk.f32.gmra.mxu2 %vm484_vm5, %v16409_v21  ;;  %10126 = vmatmul.msk.f32.gmra.mxu1 %vm484_vm5, %v16409_v21  ;;  %v6042_v1 = vadd.f32 %v17395_v50, %v5926_v3 }
0x13f7   :  { %v6388_v30 = vadd.f32 %v6374_v28, %v6272_v35  ;;  %10138 = vmatmul.msk.f32.gmra.mxu3 %vm484_vm5, %v16409_v21 }
0x13f8   :  { %v6158_v23 = vadd.f32 %v6148_v62, %v6042_v1 }
0x13f9   :  { %v6444_v5 = vadd.f32 %v6427_v2, %v6388_v30  ;;  %v6537_v2 = vld [vmem:[%s17289_s13] sm:$0x1] }
0x13fa   :  { %v6274_v22 = vadd.f32 %v6264_v13, %v6158_v23  ;;  %v10164_v23 = vld [vmem:[%s17289_s13 + $0x4] sm:$0x1] }
0x13fb   :  { %vm6452_vm4 = vcmp.ge.f32.partialorder %v6444_v5, 0.0  ;;  %v6460_v44 = vmul.f32 0.2, %v6444_v5 }
0x13fd   :  { %v16423_v41 = vsel %vm6452_vm4, %v6444_v5, %v6460_v44 }
0x13fe   :  { %v6377_v60 = vpop.f32.mrf.mxu3  ;;  %10118 = vmatmul.msk.f32.gmra.mxu2 %vm484_vm5, %v16423_v41  ;;  %10127 = vmatmul.msk.f32.gmra.mxu1 %vm484_vm5, %v16423_v41 }
0x13ff   :  { %v6389_v46 = vadd.f32 %v6377_v60, %v6273_v48  ;;  %10139 = vmatmul.msk.f32.gmra.mxu3 %vm484_vm5, %v16423_v41 }
0x1401   :  { %v6445_v47 = vadd.f32 %v6432_v16, %v6389_v46 }
0x1403   :  { %vm6453_vm6 = vcmp.ge.f32.partialorder %v6445_v47, 0.0  ;;  %v6461_v45 = vmul.f32 0.2, %v6445_v47 }
0x1405   :  { %v16433_v12 = vsel %vm6453_vm6, %v6445_v47, %v6461_v45  ;;  %v10153_v47 = vld [vmem:[%s17289_s13 + $0x3] sm:$0x1]  ;;  %v10166_v45 = vld [vmem:[%s17288_s12 + $0x28] sm:$0xff] }
0x1406   :  { %v6380_v17 = vpop.f32.mrf.mxu3  ;;  %10119 = vmatmul.msk.f32.gmra.mxu2 %vm484_vm5, %v16433_v12  ;;  %10128 = vmatmul.msk.f32.gmra.mxu1 %vm484_vm5, %v16433_v12 }
0x1407   :  { %v6390_v20 = vadd.f32 %v6380_v17, %v6274_v22  ;;  %10140 = vmatmul.msk.f32.gmra.mxu3 %vm484_vm5, %v16433_v12 }
0x1409   :  { %v6446_v6 = vadd.f32 %v6437_v0, %v6390_v20 }
0x140b   :  { %vm6454_vm7 = vcmp.ge.f32.partialorder %v6446_v6, 0.0  ;;  %v6462_v14 = vmul.f32 0.2, %v6446_v6 }
0x140d   :  { %v16441_v9 = vsel %vm6454_vm7, %v6446_v6, %v6462_v14 }
0x140e   :  { %10120 = vmatmul.msk.f32.gmra.mxu2 %vm484_vm5, %v16441_v9  ;;  %10129 = vmatmul.msk.f32.gmra.mxu1 %vm484_vm5, %v16441_v9 }
0x140f   :  { %10141 = vmatmul.msk.f32.gmra.mxu3 %vm484_vm5, %v16441_v9 }
0x1416   :  { %10156 = vmatmul.msk.f32.vlgmr.msra.gmra.mxu1 %vm484_vm5, %v16325_v61 }
0x141e   :  { %10157 = vmatmul.msk.f32.gmra.mxu1 %vm484_vm5, %v16346_v19 }
0x1426   :  { %10158 = vmatmul.msk.f32.gmra.mxu1 %vm484_vm5, %v16367_v52 }
0x142e   :  { %10159 = vmatmul.msk.f32.gmra.mxu1 %vm484_vm5, %v16388_v7 }
0x1436   :  { %10160 = vmatmul.msk.f32.gmra.mxu1 %vm484_vm5, %v16409_v21 }
0x143e   :  { %10161 = vmatmul.msk.f32.gmra.mxu1 %vm484_vm5, %v16423_v41 }
0x1446   :  { %10162 = vmatmul.msk.f32.gmra.mxu1 %vm484_vm5, %v16433_v12 }
0x144e   :  { %10163 = vmatmul.msk.f32.gmra.mxu1 %vm484_vm5, %v16441_v9 }
0x1453   :  { %v6557_v63 = vpop.f32.mrf.mxu1 }
0x1459   :  { %v6513_v25 = vpop.f32.mrf.mxu2 }
0x145a   :  { %v6648_v24 = vpop.f32.mrf.mxu3 }
0x145b   :  { %v6560_v38 = vpop.f32.mrf.mxu1 }
0x1461   :  { %v6516_v40 = vpop.f32.mrf.mxu2 }
0x1462   :  { %v6651_v39 = vpop.f32.mrf.mxu3 }
0x1463   :  { %v6563_v43 = vpop.f32.mrf.mxu1 }
0x1469   :  { %v6519_v34 = vpop.f32.mrf.mxu2 }
0x146a   :  { %v6654_v10 = vpop.f32.mrf.mxu3 }
0x146b   :  { %v6566_v55 = vpop.f32.mrf.mxu1 }
0x1471   :  { %v6522_v37 = vpop.f32.mrf.mxu2 }
0x1472   :  { %v6657_v18 = vpop.f32.mrf.mxu3 }
0x1473   :  { %v6569_v32 = vpop.f32.mrf.mxu1 }
0x1479   :  { %v6525_v57 = vpop.f32.mrf.mxu2 }
0x147a   :  { %v6660_v28 = vpop.f32.mrf.mxu3 }
0x147b   :  { %v6572_v31 = vpop.f32.mrf.mxu1 }
0x1481   :  { %v6528_v35 = vpop.f32.mrf.mxu2 }
0x1482   :  { %v6663_v27 = vpop.f32.mrf.mxu3 }
0x1483   :  { %v6575_v53 = vpop.f32.mrf.mxu1 }
0x1489   :  { %v6531_v56 = vpop.f32.mrf.mxu2 }
0x148a   :  { %v6666_v30 = vpop.f32.mrf.mxu3 }
0x148b   :  { %v6578_v26 = vpop.f32.mrf.mxu1 }
0x148c   :  { %6594 = vmatpush.msra.mxu0 %v6578_v26 }
0x148e   :  { %6595 = vmatpush.msra.mxu0 %v6575_v53  ;;  %v10186_v53 = vld [vmem:[%s17289_s13 + $0x6] sm:$0x1] }
0x1490   :  { %6596 = vmatpush.msra.mxu0 %v6572_v31 }
0x1491   :  { %v6534_v42 = vpop.f32.mrf.mxu2 }
0x1492   :  { %6597 = vmatpush.msra.mxu0 %v6569_v32  ;;  %v6669_v29 = vpop.f32.mrf.mxu3 }
0x1493   :  { %v6786_v58 = vpop.f32.mrf.mxu1 }
0x1494   :  { %6598 = vmatpush.msra.mxu0 %v6566_v55 }
0x1496   :  { %6599 = vmatpush.msra.mxu0 %v6563_v43  ;;  %v10175_v43 = vld [vmem:[%s17289_s13 + $0x5] sm:$0x1] }
0x1498   :  { %6600 = vmatpush.msra.mxu0 %v6560_v38 }
0x149a   :  { %6601 = vmatpush.msra.mxu0 %v6557_v63 }
0x149b   :  { %10131 = vmatmul.msk.f32.vlgmr.msra.gmra.mxu0 %vm94_vm0, %v10130_v59  ;;  %v6789_v44 = vpop.f32.mrf.mxu1 }
0x149c   :  { %6617 = vmatpush.msrb.mxu0 %v6534_v42 }
0x149e   :  { %6618 = vmatpush.msrb.mxu0 %v6531_v56 }
0x14a0   :  { %6619 = vmatpush.msrb.mxu0 %v6528_v35  ;;  %v10188_v35 = vld [vmem:[%s17288_s12 + $0x38] sm:$0xff] }
0x14a2   :  { %6620 = vmatpush.msrb.mxu0 %v6525_v57 }
0x14a3   :  { %v6792_v54 = vpop.f32.mrf.mxu1 }
0x14a4   :  { %6621 = vmatpush.msrb.mxu0 %v6522_v37 }
0x14a6   :  { %6622 = vmatpush.msrb.mxu0 %v6519_v34 }
0x14a8   :  { %6623 = vmatpush.msrb.mxu0 %v6516_v40 }
0x14aa   :  { %6624 = vmatpush.msrb.mxu0 %v6513_v25 }
0x14ab   :  { %10132 = vmatmul.msk.f32.vlgmr.msrb.gmra.mxu0 %vm94_vm0, %v6537_v2  ;;  %v6795_v60 = vpop.f32.mrf.mxu1 }
0x14ac   :  { %6685 = vmatpush.msra.mxu0 %v6669_v29 }
0x14ae   :  { %6686 = vmatpush.msra.mxu0 %v6666_v30 }
0x14b0   :  { %6687 = vmatpush.msra.mxu0 %v6663_v27 }
0x14b2   :  { %6688 = vmatpush.msra.mxu0 %v6660_v28 }
0x14b3   :  { %v6798_v46 = vpop.f32.mrf.mxu1 }
0x14b4   :  { %6689 = vmatpush.msra.mxu0 %v6657_v18 }
0x14b6   :  { %6690 = vmatpush.msra.mxu0 %v6654_v10 }
0x14b8   :  { %6691 = vmatpush.msra.mxu0 %v6651_v39 }
0x14ba   :  { %6692 = vmatpush.msra.mxu0 %v6648_v24  ;;  %v10177_v24 = vld [vmem:[%s17288_s12 + $0x30] sm:$0xff] }
0x14bb   :  { %10143 = vmatmul.msk.f32.vlgmr.msra.gmra.mxu0 %vm94_vm0, %v10142_v36  ;;  %v6801_v62 = vpop.f32.mrf.mxu1  ;;  %v10197_v36 = vld [vmem:[%s17289_s13 + $0x7] sm:$0x1] }
0x14bc   :  { %6715 = vmatpush.msrb.mxu0 %v10144_v49  ;;  %v10199_v49 = vld [vmem:[%s17288_s12 + $0x40] sm:$0xff] }
0x14c3   :  { %10145 = vmatmul.msk.f32.vlgmr.msrb.gmra.mxu0 %vm484_vm5, %v16325_v61  ;;  %v6804_v1 = vpop.f32.mrf.mxu1 }
0x14cb   :  { %10146 = vmatmul.msk.f32.gmra.mxu0 %vm484_vm5, %v16346_v19  ;;  %v6807_v13 = vpop.f32.mrf.mxu1 }
0x14d3   :  { %10147 = vmatmul.msk.f32.gmra.mxu0 %vm484_vm5, %v16367_v52 }
0x14db   :  { %10148 = vmatmul.msk.f32.gmra.mxu0 %vm484_vm5, %v16388_v7 }
0x14e3   :  { %10149 = vmatmul.msk.f32.gmra.mxu0 %vm484_vm5, %v16409_v21 }
0x14eb   :  { %10150 = vmatmul.msk.f32.gmra.mxu0 %vm484_vm5, %v16423_v41 }
0x14f3   :  { %10151 = vmatmul.msk.f32.gmra.mxu0 %vm484_vm5, %v16433_v12 }
0x14fb   :  { %10152 = vmatmul.msk.f32.gmra.mxu0 %vm484_vm5, %v16441_v9 }
0x1518   :  { %v16496_v8 = vpop.f32.mrf.mxu0 }
0x1528   :  { %v16498_v11 = vpop.f32.mrf.mxu0 }
0x1538   :  { %v16500_v5 = vpop.f32.mrf.mxu0 }
0x1540   :  { %v6717_v33 = vpop.f32.mrf.mxu0 }
0x1548   :  { %v6720_v4 = vpop.f32.mrf.mxu0 }
0x1550   :  { %v6723_v51 = vpop.f32.mrf.mxu0 }
0x1558   :  { %v6726_v48 = vpop.f32.mrf.mxu0 }
0x1560   :  { %v6729_v15 = vpop.f32.mrf.mxu0 }
0x1568   :  { %v6732_v3 = vpop.f32.mrf.mxu0 }
0x1570   :  { %v6735_v16 = vpop.f32.mrf.mxu0 }
0x1578   :  { %v6738_v50 = vpop.f32.mrf.mxu0 }
0x1579   :  { %6754 = vmatpush.msra.mxu2 %v6738_v50 }
0x157b   :  { %6755 = vmatpush.msra.mxu2 %v6735_v16 }
0x157d   :  { %6756 = vmatpush.msra.mxu2 %v6732_v3  ;;  %v10208_v3 = vld [vmem:[%s17289_s13 + $0x8] sm:$0x1] }
0x157f   :  { %6757 = vmatpush.msra.mxu2 %v6729_v15 }
0x1581   :  { %6758 = vmatpush.msra.mxu2 %v6726_v48 }
0x1583   :  { %6759 = vmatpush.msra.mxu2 %v6723_v51 }
0x1585   :  { %6760 = vmatpush.msra.mxu2 %v6720_v4 }
0x1587   :  { %6761 = vmatpush.msra.mxu2 %v6717_v33 }
0x1588   :  { %10154 = vmatmul.msk.f32.vlgmr.msra.gmra.mxu2 %vm94_vm0, %v10153_v47 }
0x1589   :  { %6823 = vmatpush.msrb.mxu2 %v6807_v13 }
0x158b   :  { %6824 = vmatpush.msrb.mxu2 %v6804_v1 }
0x158d   :  { %6825 = vmatpush.msrb.mxu2 %v6801_v62 }
0x158f   :  { %6826 = vmatpush.msrb.mxu2 %v6798_v46  ;;  %v10210_v46 = vld [vmem:[%s17288_s12 + $0x48] sm:$0xff] }
0x1591   :  { %6827 = vmatpush.msrb.mxu2 %v6795_v60 }
0x1593   :  { %6828 = vmatpush.msrb.mxu2 %v6792_v54 }
0x1595   :  { %6829 = vmatpush.msrb.mxu2 %v6789_v44 }
0x1597   :  { %6830 = vmatpush.msrb.mxu2 %v6786_v58 }
0x1598   :  { %10165 = vmatmul.msk.f32.vlgmr.msrb.gmra.mxu2 %vm94_vm0, %v10164_v23 }
0x1599   :  { %6853 = vmatpush.msra.mxu2 %v10166_v45 }
0x15a0   :  { %10167 = vmatmul.msk.f32.vlgmr.msra.gmra.mxu2 %vm484_vm5, %v16325_v61 }
0x15a8   :  { %10168 = vmatmul.msk.f32.gmra.mxu2 %vm484_vm5, %v16346_v19 }
0x15b0   :  { %10169 = vmatmul.msk.f32.gmra.mxu2 %vm484_vm5, %v16367_v52 }
0x15b8   :  { %10170 = vmatmul.msk.f32.gmra.mxu2 %vm484_vm5, %v16388_v7 }
0x15c0   :  { %10171 = vmatmul.msk.f32.gmra.mxu2 %vm484_vm5, %v16409_v21 }
0x15c8   :  { %10172 = vmatmul.msk.f32.gmra.mxu2 %vm484_vm5, %v16423_v41 }
0x15d0   :  { %10173 = vmatmul.msk.f32.gmra.mxu2 %vm484_vm5, %v16433_v12 }
0x15d8   :  { %10174 = vmatmul.msk.f32.gmra.mxu2 %vm484_vm5, %v16441_v9 }
0x160b   :  { %v16529_v22 = vpop.f32.mrf.mxu2 }
0x161b   :  { %v16531_v17 = vpop.f32.mrf.mxu2 }
0x1623   :  { %v6855_v20 = vpop.f32.mrf.mxu2 }
0x162b   :  { %v6858_v0 = vpop.f32.mrf.mxu2 }
0x1633   :  { %v6861_v6 = vpop.f32.mrf.mxu2 }
0x163b   :  { %v6864_v14 = vpop.f32.mrf.mxu2 }
0x1643   :  { %v6867_v63 = vpop.f32.mrf.mxu2 }
0x164b   :  { %v6870_v25 = vpop.f32.mrf.mxu2 }
0x1653   :  { %v6873_v38 = vpop.f32.mrf.mxu2 }
0x165b   :  { %v6876_v40 = vpop.f32.mrf.mxu2 }
0x165c   :  { %6892 = vmatpush.msrb.mxu3 %v6876_v40 }
0x165e   :  { %6893 = vmatpush.msrb.mxu3 %v6873_v38 }
0x1660   :  { %6894 = vmatpush.msrb.mxu3 %v6870_v25 }
0x1662   :  { %6895 = vmatpush.msrb.mxu3 %v6867_v63 }
0x1664   :  { %6896 = vmatpush.msrb.mxu3 %v6864_v14  ;;  %v6627_v14 = vadd.f32 %v16498_v11, %v16496_v8 }
0x1666   :  { %6897 = vmatpush.msrb.mxu3 %v6861_v6  ;;  %v10221_v6 = vld [vmem:[%s17288_s12 + $0x50] sm:$0xff]  ;;  %v6697_v63 = vadd.f32 %v16500_v5, %v6627_v14 }
0x1668   :  { %6898 = vmatpush.msrb.mxu3 %v6858_v0  ;;  %v10219_v0 = vld [vmem:[%s17289_s13 + $0x9] sm:$0x1]  ;;  %v6766_v25 = vadd.f32 %v16529_v22, %v6697_v63  ;;  %v10230_v22 = vld [vmem:[%s17289_s13 + $0xa] sm:$0x1] }
0x166a   :  { %6899 = vmatpush.msrb.mxu3 %v6855_v20  ;;  %v6835_v38 = vadd.f32 %v16531_v17, %v6766_v25  ;;  %v10232_v17 = vld [vmem:[%s17288_s12 + $0x58] sm:$0xff] }
0x166b   :  { %10176 = vmatmul.msk.f32.vlgmr.msrb.gmra.mxu3 %vm94_vm0, %v10175_v43 }
0x166c   :  { %6922 = vmatpush.msra.mxu3 %v10177_v24 }
0x1673   :  { %10178 = vmatmul.msk.f32.vlgmr.msra.gmra.mxu3 %vm484_vm5, %v16325_v61 }
0x167b   :  { %10179 = vmatmul.msk.f32.gmra.mxu3 %vm484_vm5, %v16346_v19 }
0x1683   :  { %10180 = vmatmul.msk.f32.gmra.mxu3 %vm484_vm5, %v16367_v52 }
0x168b   :  { %10181 = vmatmul.msk.f32.gmra.mxu3 %vm484_vm5, %v16388_v7 }
0x1693   :  { %10182 = vmatmul.msk.f32.gmra.mxu3 %vm484_vm5, %v16409_v21 }
0x169b   :  { %10183 = vmatmul.msk.f32.gmra.mxu3 %vm484_vm5, %v16423_v41 }
0x16a3   :  { %10184 = vmatmul.msk.f32.gmra.mxu3 %vm484_vm5, %v16433_v12 }
0x16ab   :  { %10185 = vmatmul.msk.f32.gmra.mxu3 %vm484_vm5, %v16441_v9 }
0x16ee   :  { %v16556_v34 = vpop.f32.mrf.mxu3 }
0x16ef   :  { %v6904_v40 = vadd.f32 %v16556_v34, %v6835_v38 }
0x16f6   :  { %v6924_v55 = vpop.f32.mrf.mxu3 }
0x16fe   :  { %v6927_v39 = vpop.f32.mrf.mxu3 }
0x1706   :  { %v6930_v37 = vpop.f32.mrf.mxu3 }
0x170e   :  { %v6933_v32 = vpop.f32.mrf.mxu3 }
0x1716   :  { %v6936_v10 = vpop.f32.mrf.mxu3 }
0x171e   :  { %v6939_v31 = vpop.f32.mrf.mxu3 }
0x1726   :  { %v6942_v57 = vpop.f32.mrf.mxu3 }
0x172e   :  { %v6945_v18 = vpop.f32.mrf.mxu3 }
0x172f   :  { %6961 = vmatpush.msra.mxu0 %v6945_v18 }
0x1731   :  { %6962 = vmatpush.msra.mxu0 %v6942_v57 }
0x1733   :  { %6963 = vmatpush.msra.mxu0 %v6939_v31 }
0x1735   :  { %6964 = vmatpush.msra.mxu0 %v6936_v10 }
0x1737   :  { %6965 = vmatpush.msra.mxu0 %v6933_v32 }
0x1739   :  { %6966 = vmatpush.msra.mxu0 %v6930_v37 }
0x173b   :  { %6967 = vmatpush.msra.mxu0 %v6927_v39 }
0x173d   :  { %6968 = vmatpush.msra.mxu0 %v6924_v55 }
0x173e   :  { %10187 = vmatmul.msk.f32.vlgmr.msra.gmra.mxu0 %vm94_vm0, %v10186_v53 }
0x173f   :  { %6991 = vmatpush.msrb.mxu0 %v10188_v35 }
0x1746   :  { %10189 = vmatmul.msk.f32.vlgmr.msrb.gmra.mxu0 %vm484_vm5, %v16325_v61 }
0x174e   :  { %10190 = vmatmul.msk.f32.gmra.mxu0 %vm484_vm5, %v16346_v19 }
0x1756   :  { %10191 = vmatmul.msk.f32.gmra.mxu0 %vm484_vm5, %v16367_v52 }
0x175e   :  { %10192 = vmatmul.msk.f32.gmra.mxu0 %vm484_vm5, %v16388_v7 }
0x1766   :  { %10193 = vmatmul.msk.f32.gmra.mxu0 %vm484_vm5, %v16409_v21 }
0x176e   :  { %10194 = vmatmul.msk.f32.gmra.mxu0 %vm484_vm5, %v16423_v41 }
0x1776   :  { %10195 = vmatmul.msk.f32.gmra.mxu0 %vm484_vm5, %v16433_v12 }
0x177e   :  { %10196 = vmatmul.msk.f32.gmra.mxu0 %vm484_vm5, %v16441_v9 }
0x17bb   :  { %v16581_v26 = vpop.f32.mrf.mxu0 }
0x17bc   :  { %v6973_v43 = vadd.f32 %v16581_v26, %v6904_v40 }
0x17c3   :  { %v6993_v28 = vpop.f32.mrf.mxu0 }
0x17cb   :  { %v6996_v56 = vpop.f32.mrf.mxu0 }
0x17d3   :  { %v6999_v27 = vpop.f32.mrf.mxu0 }
0x17db   :  { %v7002_v59 = vpop.f32.mrf.mxu0 }
0x17e3   :  { %v7005_v42 = vpop.f32.mrf.mxu0 }
0x17eb   :  { %v7008_v30 = vpop.f32.mrf.mxu0 }
0x17f3   :  { %v7011_v2 = vpop.f32.mrf.mxu0 }
0x17fb   :  { %v7014_v29 = vpop.f32.mrf.mxu0 }
0x17fc   :  { %7030 = vmatpush.msrb.mxu1 %v7014_v29  ;;  %v10243_v29 = vld [vmem:[%s17288_s12 + $0x60] sm:$0xff] }
0x17fe   :  { %7031 = vmatpush.msrb.mxu1 %v7011_v2  ;;  %v10241_v2 = vld [vmem:[%s17289_s13 + $0xb] sm:$0x1] }
0x1800   :  { %7032 = vmatpush.msrb.mxu1 %v7008_v30 }
0x1802   :  { %7033 = vmatpush.msrb.mxu1 %v7005_v42 }
0x1804   :  { %7034 = vmatpush.msrb.mxu1 %v7002_v59 }
0x1806   :  { %7035 = vmatpush.msrb.mxu1 %v6999_v27 }
0x1808   :  { %7036 = vmatpush.msrb.mxu1 %v6996_v56 }
0x180a   :  { %7037 = vmatpush.msrb.mxu1 %v6993_v28 }
0x180b   :  { %10198 = vmatmul.msk.f32.vlgmr.msrb.gmra.mxu1 %vm94_vm0, %v10197_v36 }
0x180c   :  { %7060 = vmatpush.msra.mxu1 %v10199_v49 }
0x1813   :  { %10200 = vmatmul.msk.f32.vlgmr.msra.gmra.mxu1 %vm484_vm5, %v16325_v61 }
0x181b   :  { %10201 = vmatmul.msk.f32.gmra.mxu1 %vm484_vm5, %v16346_v19 }
0x1823   :  { %10202 = vmatmul.msk.f32.gmra.mxu1 %vm484_vm5, %v16367_v52 }
0x182b   :  { %10203 = vmatmul.msk.f32.gmra.mxu1 %vm484_vm5, %v16388_v7 }
0x1833   :  { %10204 = vmatmul.msk.f32.gmra.mxu1 %vm484_vm5, %v16409_v21 }
0x183b   :  { %10205 = vmatmul.msk.f32.gmra.mxu1 %vm484_vm5, %v16423_v41 }
0x1843   :  { %10206 = vmatmul.msk.f32.gmra.mxu1 %vm484_vm5, %v16433_v12 }
0x184b   :  { %10207 = vmatmul.msk.f32.gmra.mxu1 %vm484_vm5, %v16441_v9 }
0x1888   :  { %v16606_v33 = vpop.f32.mrf.mxu1 }
0x1889   :  { %v7042_v24 = vadd.f32 %v16606_v33, %v6973_v43 }
0x1890   :  { %v7062_v58 = vpop.f32.mrf.mxu1 }
0x1898   :  { %v7065_v4 = vpop.f32.mrf.mxu1 }
0x18a0   :  { %v7068_v44 = vpop.f32.mrf.mxu1 }
0x18a8   :  { %v7071_v51 = vpop.f32.mrf.mxu1 }
0x18b0   :  { %v7074_v54 = vpop.f32.mrf.mxu1 }
0x18b8   :  { %v7077_v48 = vpop.f32.mrf.mxu1 }
0x18c0   :  { %v7080_v60 = vpop.f32.mrf.mxu1 }
0x18c8   :  { %v7083_v15 = vpop.f32.mrf.mxu1 }
0x18c9   :  { %7099 = vmatpush.msrb.mxu2 %v7083_v15  ;;  %v10252_v15 = vld [vmem:[%s17289_s13 + $0xc] sm:$0x1] }
0x18cb   :  { %7100 = vmatpush.msrb.mxu2 %v7080_v60 }
0x18cd   :  { %7101 = vmatpush.msrb.mxu2 %v7077_v48 }
0x18cf   :  { %7102 = vmatpush.msrb.mxu2 %v7074_v54 }
0x18d1   :  { %7103 = vmatpush.msrb.mxu2 %v7071_v51 }
0x18d3   :  { %7104 = vmatpush.msrb.mxu2 %v7068_v44 }
0x18d5   :  { %7105 = vmatpush.msrb.mxu2 %v7065_v4 }
0x18d7   :  { %7106 = vmatpush.msrb.mxu2 %v7062_v58 }
0x18d8   :  { %10209 = vmatmul.msk.f32.vlgmr.msrb.gmra.mxu2 %vm94_vm0, %v10208_v3  ;;  %v10254_v3 = vld [vmem:[%s17288_s12 + $0x68] sm:$0xff] }
0x18d9   :  { %7129 = vmatpush.msra.mxu2 %v10210_v46 }
0x18e0   :  { %10211 = vmatmul.msk.f32.vlgmr.msra.gmra.mxu2 %vm484_vm5, %v16325_v61 }
0x18e8   :  { %10212 = vmatmul.msk.f32.gmra.mxu2 %vm484_vm5, %v16346_v19 }
0x18f0   :  { %10213 = vmatmul.msk.f32.gmra.mxu2 %vm484_vm5, %v16367_v52 }
0x18f8   :  { %10214 = vmatmul.msk.f32.gmra.mxu2 %vm484_vm5, %v16388_v7 }
0x1900   :  { %10215 = vmatmul.msk.f32.gmra.mxu2 %vm484_vm5, %v16409_v21 }
0x1908   :  { %10216 = vmatmul.msk.f32.gmra.mxu2 %vm484_vm5, %v16423_v41 }
0x1910   :  { %10217 = vmatmul.msk.f32.gmra.mxu2 %vm484_vm5, %v16433_v12 }
0x1918   :  { %10218 = vmatmul.msk.f32.gmra.mxu2 %vm484_vm5, %v16441_v9 }
0x195b   :  { %v7108_v16 = vpop.f32.mrf.mxu2 }
0x195c   :  { %v7111_v55 = vadd.f32 %v7108_v16, %v7042_v24 }
0x1963   :  { %v7131_v62 = vpop.f32.mrf.mxu2 }
0x196b   :  { %v7134_v50 = vpop.f32.mrf.mxu2 }
0x1973   :  { %v7137_v1 = vpop.f32.mrf.mxu2 }
0x197b   :  { %v7140_v47 = vpop.f32.mrf.mxu2 }
0x1983   :  { %v7143_v13 = vpop.f32.mrf.mxu2 }
0x198b   :  { %v7146_v23 = vpop.f32.mrf.mxu2 }
0x1993   :  { %v7149_v45 = vpop.f32.mrf.mxu2 }
0x199b   :  { %v7152_v20 = vpop.f32.mrf.mxu2 }
0x199c   :  { %7168 = vmatpush.msrb.mxu3 %v7152_v20 }
0x199e   :  { %7169 = vmatpush.msrb.mxu3 %v7149_v45 }
0x19a0   :  { %7170 = vmatpush.msrb.mxu3 %v7146_v23 }
0x19a2   :  { %7171 = vmatpush.msrb.mxu3 %v7143_v13 }
0x19a4   :  { %7172 = vmatpush.msrb.mxu3 %v7140_v47 }
0x19a6   :  { %7173 = vmatpush.msrb.mxu3 %v7137_v1 }
0x19a8   :  { %7174 = vmatpush.msrb.mxu3 %v7134_v50 }
0x19aa   :  { %7175 = vmatpush.msrb.mxu3 %v7131_v62 }
0x19ab   :  { %10220 = vmatmul.msk.f32.vlgmr.msrb.gmra.mxu3 %vm94_vm0, %v10219_v0  ;;  %v10263_v0 = vld [vmem:[%s17289_s13 + $0xd] sm:$0x1] }
0x19ac   :  { %7198 = vmatpush.msra.mxu3 %v10221_v6  ;;  %v10265_v6 = vld [vmem:[%s17288_s12 + $0x70] sm:$0xff] }
0x19b3   :  { %10222 = vmatmul.msk.f32.vlgmr.msra.gmra.mxu3 %vm484_vm5, %v16325_v61 }
0x19bb   :  { %10223 = vmatmul.msk.f32.gmra.mxu3 %vm484_vm5, %v16346_v19 }
0x19c3   :  { %10224 = vmatmul.msk.f32.gmra.mxu3 %vm484_vm5, %v16367_v52 }
0x19cb   :  { %10225 = vmatmul.msk.f32.gmra.mxu3 %vm484_vm5, %v16388_v7 }
0x19d3   :  { %10226 = vmatmul.msk.f32.gmra.mxu3 %vm484_vm5, %v16409_v21 }
0x19db   :  { %10227 = vmatmul.msk.f32.gmra.mxu3 %vm484_vm5, %v16423_v41 }
0x19e3   :  { %10228 = vmatmul.msk.f32.gmra.mxu3 %vm484_vm5, %v16433_v12 }
0x19eb   :  { %10229 = vmatmul.msk.f32.gmra.mxu3 %vm484_vm5, %v16441_v9 }
0x1a2e   :  { %v7177_v39 = vpop.f32.mrf.mxu3 }
0x1a2f   :  { %v7180_v37 = vadd.f32 %v7177_v39, %v7111_v55 }
0x1a36   :  { %v7200_v32 = vpop.f32.mrf.mxu3 }
0x1a3e   :  { %v7203_v10 = vpop.f32.mrf.mxu3 }
0x1a46   :  { %v7206_v31 = vpop.f32.mrf.mxu3 }
0x1a4e   :  { %v7209_v57 = vpop.f32.mrf.mxu3 }
0x1a56   :  { %v7212_v8 = vpop.f32.mrf.mxu3 }
0x1a5e   :  { %v7215_v11 = vpop.f32.mrf.mxu3 }
0x1a66   :  { %v7218_v5 = vpop.f32.mrf.mxu3 }
0x1a6e   :  { %v7221_v18 = vpop.f32.mrf.mxu3 }
0x1a6f   :  { %7237 = vmatpush.msra.mxu0 %v7221_v18  ;;  %v7605_v18 = vld [vmem:[%s17290_s15 + $0x10] sm:$0xff] }
0x1a71   :  { %7238 = vmatpush.msra.mxu0 %v7218_v5 }
0x1a73   :  { %7239 = vmatpush.msra.mxu0 %v7215_v11 }
0x1a75   :  { %7240 = vmatpush.msra.mxu0 %v7212_v8 }
0x1a77   :  { %7241 = vmatpush.msra.mxu0 %v7209_v57 }
0x1a79   :  { %7242 = vmatpush.msra.mxu0 %v7206_v31 }
0x1a7b   :  { %7243 = vmatpush.msra.mxu0 %v7203_v10  ;;  %v10276_v10 = vld [vmem:[%s17288_s12 + $0x78] sm:$0xff] }
0x1a7d   :  { %7244 = vmatpush.msra.mxu0 %v7200_v32  ;;  %v10274_v32 = vld [vmem:[%s17289_s13 + $0xe] sm:$0x1] }
0x1a7e   :  { %10231 = vmatmul.msk.f32.vlgmr.msra.gmra.mxu0 %vm94_vm0, %v10230_v22 }
0x1a7f   :  { %7267 = vmatpush.msrb.mxu0 %v10232_v17 }
0x1a86   :  { %10233 = vmatmul.msk.f32.vlgmr.msrb.gmra.mxu0 %vm484_vm5, %v16325_v61 }
0x1a8e   :  { %10234 = vmatmul.msk.f32.gmra.mxu0 %vm484_vm5, %v16346_v19 }
0x1a96   :  { %10235 = vmatmul.msk.f32.gmra.mxu0 %vm484_vm5, %v16367_v52 }
0x1a9e   :  { %10236 = vmatmul.msk.f32.gmra.mxu0 %vm484_vm5, %v16388_v7 }
0x1aa6   :  { %10237 = vmatmul.msk.f32.gmra.mxu0 %vm484_vm5, %v16409_v21 }
0x1aae   :  { %10238 = vmatmul.msk.f32.gmra.mxu0 %vm484_vm5, %v16423_v41 }
0x1ab6   :  { %10239 = vmatmul.msk.f32.gmra.mxu0 %vm484_vm5, %v16433_v12 }
0x1abe   :  { %10240 = vmatmul.msk.f32.gmra.mxu0 %vm484_vm5, %v16441_v9 }
0x1afb   :  { %v7246_v34 = vpop.f32.mrf.mxu0 }
0x1afc   :  { %v7249_v53 = vadd.f32 %v7246_v34, %v7180_v37 }
0x1b03   :  { %v7269_v35 = vpop.f32.mrf.mxu0 }
0x1b0b   :  { %v7272_v26 = vpop.f32.mrf.mxu0 }
0x1b13   :  { %v7275_v28 = vpop.f32.mrf.mxu0 }
0x1b1b   :  { %v7278_v56 = vpop.f32.mrf.mxu0 }
0x1b23   :  { %v7281_v27 = vpop.f32.mrf.mxu0 }
0x1b2b   :  { %v7284_v59 = vpop.f32.mrf.mxu0 }
0x1b33   :  { %v7287_v42 = vpop.f32.mrf.mxu0 }
0x1b3b   :  { %v7290_v30 = vpop.f32.mrf.mxu0 }
0x1b3c   :  { %7306 = vmatpush.msrb.mxu1 %v7290_v30  ;;  %v7599_v30 = vpop.permute.xlu0 %7598 }
0x1b3e   :  { %7307 = vmatpush.msrb.mxu1 %v7287_v42 }
0x1b40   :  { %7308 = vmatpush.msrb.mxu1 %v7284_v59 }
0x1b42   :  { %7309 = vmatpush.msrb.mxu1 %v7281_v27 }
0x1b44   :  { %7310 = vmatpush.msrb.mxu1 %v7278_v56 }
0x1b46   :  { %7311 = vmatpush.msrb.mxu1 %v7275_v28 }
0x1b48   :  { %7312 = vmatpush.msrb.mxu1 %v7272_v26  ;;  %v7606_v26 = vld [vmem:[%s17290_s15 + $0x18] sm:$0xff] }
0x1b4a   :  { %7313 = vmatpush.msrb.mxu1 %v7269_v35 }
0x1b4b   :  { %10242 = vmatmul.msk.f32.vlgmr.msrb.gmra.mxu1 %vm94_vm0, %v10241_v2 }
0x1b4c   :  { %7336 = vmatpush.msra.mxu1 %v10243_v29  ;;  %v7601_v29 = vperm.slane %v7599_v30, 0 }
0x1b53   :  { %10244 = vmatmul.msk.f32.vlgmr.msra.gmra.mxu1 %vm484_vm5, %v16325_v61 }
0x1b5b   :  { %10245 = vmatmul.msk.f32.gmra.mxu1 %vm484_vm5, %v16346_v19 }
0x1b63   :  { %10246 = vmatmul.msk.f32.gmra.mxu1 %vm484_vm5, %v16367_v52 }
0x1b6b   :  { %10247 = vmatmul.msk.f32.gmra.mxu1 %vm484_vm5, %v16388_v7 }
0x1b73   :  { %10248 = vmatmul.msk.f32.gmra.mxu1 %vm484_vm5, %v16409_v21 }
0x1b7b   :  { %10249 = vmatmul.msk.f32.gmra.mxu1 %vm484_vm5, %v16423_v41 }
0x1b83   :  { %10250 = vmatmul.msk.f32.gmra.mxu1 %vm484_vm5, %v16433_v12 }
0x1b8b   :  { %10251 = vmatmul.msk.f32.gmra.mxu1 %vm484_vm5, %v16441_v9 }
0x1bc8   :  { %v7315_v36 = vpop.f32.mrf.mxu1 }
0x1bc9   :  { %v7318_v49 = vadd.f32 %v7315_v36, %v7249_v53  ;;  %v7604_v53 = vld [vmem:[%s17290_s15 + $0x8] sm:$0xff] }
0x1bca   :  { %7613 = vst [vmem:[#allocation1 + $0x20] ss:$4 sm:$0xff] %v7604_v53 }
0x1bd0   :  { %v7338_v33 = vpop.f32.mrf.mxu1 }
0x1bd1   :  { %v7618_v28 = vld.sshfl [vmem:[#allocation1 + $0x20] sm:$0xff pattern:$0x73625140]  ;;  %v7619_v56 = vld.sshfl [vmem:[#allocation1 + $0x28] sm:$0xff pattern:$0x73625140] }
0x1bd2   :  { %v7620_v27 = vld.sshfl [vmem:[#allocation1 + $0x30] sm:$0xff pattern:$0x73625140]  ;;  %v7621_v59 = vld.sshfl [vmem:[#allocation1 + $0x38] sm:$0xff pattern:$0x73625140] }
0x1bd3   :  { %7623 = vst [vmem:[#allocation1 + $0x20] ss:$4 sm:$0xff] %v7606_v26 }
0x1bd8   :  { %v7341_v58 = vpop.f32.mrf.mxu1 }
0x1bda   :  { %v7628_v42 = vld.sshfl [vmem:[#allocation1 + $0x20] sm:$0xff pattern:$0x73625140] }
0x1be0   :  { %v7344_v4 = vpop.f32.mrf.mxu1 }
0x1be8   :  { %v7347_v44 = vpop.f32.mrf.mxu1 }
0x1bf0   :  { %v7350_v51 = vpop.f32.mrf.mxu1 }
0x1bf8   :  { %v7353_v54 = vpop.f32.mrf.mxu1 }
0x1c00   :  { %v7356_v48 = vpop.f32.mrf.mxu1 }
0x1c08   :  { %v7359_v60 = vpop.f32.mrf.mxu1 }
0x1c09   :  { %7375 = vmatpush.msrb.mxu2 %v7359_v60 }
0x1c0b   :  { %7376 = vmatpush.msrb.mxu2 %v7356_v48 }
0x1c0d   :  { %7377 = vmatpush.msrb.mxu2 %v7353_v54  ;;  %v7629_v54 = vld.sshfl [vmem:[#allocation1 + $0x28] sm:$0xff pattern:$0x73625140] }
0x1c0f   :  { %7378 = vmatpush.msrb.mxu2 %v7350_v51  ;;  %v7630_v51 = vld.sshfl [vmem:[#allocation1 + $0x30] sm:$0xff pattern:$0x73625140] }
0x1c11   :  { %7379 = vmatpush.msrb.mxu2 %v7347_v44 }
0x1c13   :  { %7380 = vmatpush.msrb.mxu2 %v7344_v4 }
0x1c15   :  { %7381 = vmatpush.msrb.mxu2 %v7341_v58 }
0x1c17   :  { %7382 = vmatpush.msrb.mxu2 %v7338_v33  ;;  %v7631_v33 = vld.sshfl [vmem:[#allocation1 + $0x38] sm:$0xff pattern:$0x73625140] }
0x1c18   :  { %10253 = vmatmul.msk.f32.vlgmr.msrb.gmra.mxu2 %vm94_vm0, %v10252_v15 }
0x1c19   :  { %7405 = vmatpush.msra.mxu2 %v10254_v3 }
0x1c20   :  { %10255 = vmatmul.msk.f32.vlgmr.msra.gmra.mxu2 %vm484_vm5, %v16325_v61 }
0x1c28   :  { %10256 = vmatmul.msk.f32.gmra.mxu2 %vm484_vm5, %v16346_v19 }
0x1c30   :  { %10257 = vmatmul.msk.f32.gmra.mxu2 %vm484_vm5, %v16367_v52 }
0x1c38   :  { %10258 = vmatmul.msk.f32.gmra.mxu2 %vm484_vm5, %v16388_v7 }
0x1c40   :  { %10259 = vmatmul.msk.f32.gmra.mxu2 %vm484_vm5, %v16409_v21 }
0x1c48   :  { %10260 = vmatmul.msk.f32.gmra.mxu2 %vm484_vm5, %v16423_v41 }
0x1c50   :  { %10261 = vmatmul.msk.f32.gmra.mxu2 %vm484_vm5, %v16433_v12 }
0x1c58   :  { %10262 = vmatmul.msk.f32.gmra.mxu2 %vm484_vm5, %v16441_v9 }
0x1c9b   :  { %v7384_v46 = vpop.f32.mrf.mxu2 }
0x1c9c   :  { %v7387_v16 = vadd.f32 %v7384_v46, %v7318_v49 }
0x1ca3   :  { %v7407_v62 = vpop.f32.mrf.mxu2 }
0x1cab   :  { %v7410_v50 = vpop.f32.mrf.mxu2 }
0x1cb3   :  { %v7413_v1 = vpop.f32.mrf.mxu2 }
0x1cbb   :  { %v7416_v47 = vpop.f32.mrf.mxu2 }
0x1cc3   :  { %v7419_v13 = vpop.f32.mrf.mxu2 }
0x1ccb   :  { %v7422_v23 = vpop.f32.mrf.mxu2 }
0x1cd3   :  { %v7425_v45 = vpop.f32.mrf.mxu2 }
0x1cdb   :  { %v7428_v20 = vpop.f32.mrf.mxu2 }
0x1cdc   :  { %7444 = vmatpush.msrb.mxu3 %v7428_v20 }
0x1cde   :  { %7445 = vmatpush.msrb.mxu3 %v7425_v45 }
0x1ce0   :  { %7446 = vmatpush.msrb.mxu3 %v7422_v23 }
0x1ce2   :  { %7447 = vmatpush.msrb.mxu3 %v7419_v13 }
0x1ce4   :  { %7448 = vmatpush.msrb.mxu3 %v7416_v47 }
0x1ce6   :  { %7449 = vmatpush.msrb.mxu3 %v7413_v1 }
0x1ce8   :  { %7450 = vmatpush.msrb.mxu3 %v7410_v50 }
0x1cea   :  { %7451 = vmatpush.msrb.mxu3 %v7407_v62 }
0x1ceb   :  { %10264 = vmatmul.msk.f32.vlgmr.msrb.gmra.mxu3 %vm94_vm0, %v10263_v0 }
0x1cec   :  { %7474 = vmatpush.msra.mxu3 %v10265_v6 }
0x1cf3   :  { %10266 = vmatmul.msk.f32.vlgmr.msra.gmra.mxu3 %vm484_vm5, %v16325_v61 }
0x1cfb   :  { %10267 = vmatmul.msk.f32.gmra.mxu3 %vm484_vm5, %v16346_v19 }
0x1d03   :  { %10268 = vmatmul.msk.f32.gmra.mxu3 %vm484_vm5, %v16367_v52 }
0x1d0b   :  { %10269 = vmatmul.msk.f32.gmra.mxu3 %vm484_vm5, %v16388_v7 }
0x1d13   :  { %10270 = vmatmul.msk.f32.gmra.mxu3 %vm484_vm5, %v16409_v21 }
0x1d1b   :  { %10271 = vmatmul.msk.f32.gmra.mxu3 %vm484_vm5, %v16423_v41 }
0x1d23   :  { %10272 = vmatmul.msk.f32.gmra.mxu3 %vm484_vm5, %v16433_v12 }
0x1d2b   :  { %10273 = vmatmul.msk.f32.gmra.mxu3 %vm484_vm5, %v16441_v9 }
0x1d6e   :  { %v7453_v14 = vpop.f32.mrf.mxu3 }
0x1d6f   :  { %v7456_v63 = vadd.f32 %v7453_v14, %v7387_v16 }
0x1d76   :  { %v7476_v25 = vpop.f32.mrf.mxu3 }
0x1d7e   :  { %v7479_v38 = vpop.f32.mrf.mxu3 }
0x1d86   :  { %v7482_v40 = vpop.f32.mrf.mxu3 }
0x1d8e   :  { %v7485_v43 = vpop.f32.mrf.mxu3 }
0x1d96   :  { %v7488_v24 = vpop.f32.mrf.mxu3 }
0x1d9e   :  { %v7491_v55 = vpop.f32.mrf.mxu3 }
0x1da6   :  { %v7494_v39 = vpop.f32.mrf.mxu3 }
0x1dae   :  { %v7497_v37 = vpop.f32.mrf.mxu3 }
0x1daf   :  { %7513 = vmatpush.msra.mxu0 %v7497_v37 }
0x1db1   :  { %7514 = vmatpush.msra.mxu0 %v7494_v39 }
0x1db3   :  { %7515 = vmatpush.msra.mxu0 %v7491_v55 }
0x1db5   :  { %7516 = vmatpush.msra.mxu0 %v7488_v24 }
0x1db7   :  { %7517 = vmatpush.msra.mxu0 %v7485_v43 }
0x1db9   :  { %7518 = vmatpush.msra.mxu0 %v7482_v40 }
0x1dbb   :  { %7519 = vmatpush.msra.mxu0 %v7479_v38 }
0x1dbd   :  { %7520 = vmatpush.msra.mxu0 %v7476_v25 }
0x1dbe   :  { %10275 = vmatmul.msk.f32.vlgmr.msra.gmra.mxu0 %vm94_vm0, %v10274_v32 }
0x1dbf   :  { %7543 = vmatpush.msrb.mxu0 %v10276_v10 }
0x1dc6   :  { %10277 = vmatmul.msk.f32.vlgmr.msrb.gmra.mxu0 %vm484_vm5, %v16325_v61 }
0x1dce   :  { %10278 = vmatmul.msk.f32.gmra.mxu0 %vm484_vm5, %v16346_v19 }
0x1dd6   :  { %10279 = vmatmul.msk.f32.gmra.mxu0 %vm484_vm5, %v16367_v52 }
0x1dde   :  { %10280 = vmatmul.msk.f32.gmra.mxu0 %vm484_vm5, %v16388_v7 }
0x1de6   :  { %10281 = vmatmul.msk.f32.gmra.mxu0 %vm484_vm5, %v16409_v21  ;;  %v7603_v21 = vld [vmem:[%s17290_s15] sm:$0xff] }
0x1de7   :  { %7611 = vst [vmem:[#allocation1] ss:$4 sm:$0xff] %v7603_v21 }
0x1dee   :  { %10282 = vmatmul.msk.f32.gmra.mxu0 %vm484_vm5, %v16423_v41  ;;  %v7616_v5 = vld.sshfl [vmem:[#allocation1 + $0x10] sm:$0xff pattern:$0x73625140]  ;;  %v7614_v22 = vld.sshfl [vmem:[#allocation1] sm:$0xff pattern:$0x73625140] }
0x1def   :  { %10291 = vmatpush.msk.msrb.mxu2 %vm7636_vm8, %v7616_v5  ;;  %v7615_v17 = vld.sshfl [vmem:[#allocation1 + $0x8] sm:$0xff pattern:$0x73625140]  ;;  %v7617_v34 = vld.sshfl [vmem:[#allocation1 + $0x18] sm:$0xff pattern:$0x73625140] }
0x1df0   :  { %7622 = vst [vmem:[#allocation1] ss:$4 sm:$0xff] %v7605_v18 }
0x1df1   :  { %10295 = vmatpush.msk.msra.mxu2 %vm7636_vm8, %v7618_v28 }
0x1df6   :  { %10283 = vmatmul.msk.f32.gmra.mxu0 %vm484_vm5, %v16433_v12 }
0x1df7   :  { %v7625_v35 = vld.sshfl [vmem:[#allocation1 + $0x8] sm:$0xff pattern:$0x73625140]  ;;  %v7624_v58 = vld.sshfl [vmem:[#allocation1] sm:$0xff pattern:$0x73625140] }
0x1df8   :  { %10305 = vmatpush.msk.msrb.mxu3 %vm7636_vm8, %v7625_v35  ;;  %v7627_v4 = vld.sshfl [vmem:[#allocation1 + $0x18] sm:$0xff pattern:$0x73625140]  ;;  %v7626_v44 = vld.sshfl [vmem:[#allocation1 + $0x10] sm:$0xff pattern:$0x73625140] }
0x1dfa   :  { %10311 = vmatpush.msk.msra.mxu3 %vm7636_vm8, %v7628_v42 }
0x1dfe   :  { %10284 = vmatmul.msk.f32.gmra.mxu0 %vm484_vm5, %v16441_v9  ;;  %v10285_v9 = vld [vmem:[%s17289_s13 + $0xf] sm:$0x1] }
0x1e3b   :  { %v7522_v61 = vpop.f32.mrf.mxu0 }
0x1e3c   :  { %v7525_v19 = vadd.f32 %v7522_v61, %v7456_v63 }
0x1e43   :  { %v7545_v31 = vpop.f32.mrf.mxu0 }
0x1e4b   :  { %v7548_v57 = vpop.f32.mrf.mxu0 }
0x1e53   :  { %v7551_v52 = vpop.f32.mrf.mxu0 }
0x1e5b   :  { %v7554_v8 = vpop.f32.mrf.mxu0 }
0x1e63   :  { %v7557_v11 = vpop.f32.mrf.mxu0 }
0x1e6b   :  { %v7560_v7 = vpop.f32.mrf.mxu0 }
0x1e73   :  { %v7563_v41 = vpop.f32.mrf.mxu0 }
0x1e7b   :  { %v7566_v12 = vpop.f32.mrf.mxu0 }
0x1e7c   :  { %7582 = vmatpush.msrb.mxu1 %v7566_v12 }
0x1e7e   :  { %7583 = vmatpush.msrb.mxu1 %v7563_v41 }
0x1e80   :  { %7584 = vmatpush.msrb.mxu1 %v7560_v7 }
0x1e82   :  { %7585 = vmatpush.msrb.mxu1 %v7557_v11 }
0x1e84   :  { %7586 = vmatpush.msrb.mxu1 %v7554_v8 }
0x1e86   :  { %7587 = vmatpush.msrb.mxu1 %v7551_v52 }
0x1e88   :  { %7588 = vmatpush.msrb.mxu1 %v7548_v57 }
0x1e8a   :  { %7589 = vmatpush.msrb.mxu1 %v7545_v31 }
0x1e8b   :  { %10286 = vmatmul.msk.f32.vlgmr.msrb.gmra.mxu1 %vm94_vm0, %v10285_v9  ;;  %vm7632_vm0 = vcmask 15360  }
0x1e8c   :  { %10287 = vmatpush.msk.msra.mxu1 %vm7636_vm8, %v7614_v22 }
0x1e8e   :  { %10289 = vmatpush.msk.msrb.mxu1 %vm7636_vm8, %v7615_v17 }
0x1f08   :  { %v7591_v2 = vpop.f32.mrf.mxu1 }
0x1f09   :  { %v7594_v36 = vadd.f32 %v7591_v2, %v7525_v19 }
0x1f0b   :  { %v7602_v49 = vadd.f32 %v7601_v29, %v7594_v36 }
0x1f0d   :  { %10288 = vmatmul.msk.f32.vlgmr.msra.gmra.mxu1 %vm7632_vm0, %v7602_v49  ;;  %10292 = vmatmul.msk.f32.vlgmr.msrb.gmra.mxu2 %vm7632_vm0, %v7602_v49 }
0x1f0e   :  { %10306 = vmatmul.msk.f32.vlgmr.msrb.gmra.mxu3 %vm7632_vm0, %v7602_v49  ;;  %10293 = vmatpush.msk.msra.mxu1 %vm7636_vm8, %v7617_v34 }
0x1f0f   :  { %10299 = vmatpush.msk.msrb.mxu2 %vm7636_vm8, %v7620_v27  ;;  %10317 = vmatpush.msk.msrb.mxu3 %vm7636_vm8, %v7631_v33 }
0x1f15   :  { %10290 = vmatmul.msk.f32.vlgmr.msrb.gmra.mxu1 %vm7632_vm0, %v7602_v49  ;;  %10296 = vmatmul.msk.f32.vlgmr.msra.gmra.mxu2 %vm7632_vm0, %v7602_v49 }
0x1f16   :  { %10312 = vmatmul.msk.f32.vlgmr.msra.gmra.mxu3 %vm7632_vm0, %v7602_v49  ;;  %10297 = vmatpush.msk.msrb.mxu1 %vm7636_vm8, %v7619_v56 }
0x1f17   :  { %10303 = vmatpush.msk.msra.mxu2 %vm7636_vm8, %v7624_v58 }
0x1f1d   :  { %10294 = vmatmul.msk.f32.vlgmr.msra.gmra.mxu1 %vm7632_vm0, %v7602_v49  ;;  %10300 = vmatmul.msk.f32.vlgmr.msrb.gmra.mxu2 %vm7632_vm0, %v7602_v49 }
0x1f1e   :  { %10318 = vmatmul.msk.f32.vlgmr.msrb.gmra.mxu3 %vm7632_vm0, %v7602_v49  ;;  %10301 = vmatpush.msk.msra.mxu1 %vm7636_vm8, %v7621_v59 }
0x1f1f   :  { %10309 = vmatpush.msk.msrb.mxu2 %vm7636_vm8, %v7627_v4 }
0x1f25   :  { %10298 = vmatmul.msk.f32.vlgmr.msrb.gmra.mxu1 %vm7632_vm0, %v7602_v49  ;;  %10304 = vmatmul.msk.f32.vlgmr.msra.gmra.mxu2 %vm7632_vm0, %v7602_v49 }
0x1f26   :  { %10307 = vmatpush.msk.msrb.mxu1 %vm7636_vm8, %v7626_v44  ;;  %10315 = vmatpush.msk.msra.mxu2 %vm7636_vm8, %v7630_v51 }
0x1f2d   :  { %10302 = vmatmul.msk.f32.vlgmr.msra.gmra.mxu1 %vm7632_vm0, %v7602_v49  ;;  %10310 = vmatmul.msk.f32.vlgmr.msrb.gmra.mxu2 %vm7632_vm0, %v7602_v49 }
0x1f2e   :  { %10313 = vmatpush.msk.msra.mxu1 %vm7636_vm8, %v7629_v54 }
0x1f35   :  { %10308 = vmatmul.msk.f32.vlgmr.msrb.gmra.mxu1 %vm7632_vm0, %v7602_v49  ;;  %10316 = vmatmul.msk.f32.vlgmr.msra.gmra.mxu2 %vm7632_vm0, %v7602_v49 }
0x1f3d   :  { %10314 = vmatmul.msk.f32.vlgmr.msra.gmra.mxu1 %vm7632_vm0, %v7602_v49 }
0x1f8a   :  { %v7686_v48 = vpop.f32.mrf.mxu1 }
0x1f8b   :  { %v10319_v60 = vmul.f32 -1.442695, %v7686_v48 }
0x1f8d   :  { %10339 = vpow2.f32 %v10319_v60 }
0x1f90   :  { %v7726_v15 = vpop.f32.mrf.mxu2 }
0x1f91   :  { %v10321_v3 = vmul.f32 -1.442695, %v7726_v15  ;;  %v7866_v46 = vpop.f32.mrf.mxu3 }
0x1f92   :  { %v10328_v16 = vmul.f32 -1.442695, %v7866_v46  ;;  %v7706_v62 = vpop.f32.mrf.mxu1 }
0x1f93   :  { %v10340_v50 = vpop.eup %10339  ;;  %10341 = vpow2.f32 %v10321_v3  ;;  %v10320_v1 = vmul.f32 -1.442695, %v7706_v62 }
0x1f94   :  { %v16825_v47 = vadd.f32 1.0, %v10340_v50  ;;  %10343 = vpow2.f32 %v10328_v16 }
0x1f95   :  { %10345 = vpow2.f32 %v10320_v1 }
0x1f96   :  { %10347 = vrcp.f32 %v16825_v47  ;;  %v8064_v41 = vand.u32 2147483648, %v16825_v47  ;;  %v8062_v9 = vand.u32 2147483647, %v16825_v47  ;;  %vm8058_vm5 = vweird.f32 %v16825_v47 }
0x1f98   :  { %v7766_v13 = vpop.f32.mrf.mxu2  ;;  %v8065_v26 = vor.u32 1.1754944e-38, %v8064_v41  ;;  %vm16867_vm9 = vcmp.eq.f32.partialorder %v8062_v9, 8.507059e+37 }
0x1f99   :  { %v10342_v23 = vpop.eup %10341  ;;  %v10323_v45 = vmul.f32 -1.442695, %v7766_v13  ;;  %v7926_v6 = vpop.f32.mrf.mxu3 }
0x1f9a   :  { %v7746_v20 = vpop.f32.mrf.mxu1  ;;  %v16828_v0 = vadd.f32 1.0, %v10342_v23  ;;  %v10344_v14 = vpop.eup %10343  ;;  %v10331_v38 = vmul.f32 -1.442695, %v7926_v6 }
0x1f9b   :  { %10349 = vpow2.f32 %v10323_v45  ;;  %v10322_v63 = vmul.f32 -1.442695, %v7746_v20  ;;  %v10346_v25 = vpop.eup %10345  ;;  %v16831_v40 = vadd.f32 1.0, %v10344_v14 }
0x1f9c   :  { %10351 = vrcp.f32 %v16828_v0  ;;  %v16833_v43 = vpop.eup %10347  ;;  %v16835_v39 = vadd.f32 1.0, %v10346_v25  ;;  %v8092_v28 = vand.u32 2147483647, %v16828_v0  ;;  %v8094_v56 = vand.u32 2147483648, %v16828_v0 }
0x1f9d   :  { %10353 = vpow2.f32 %v10322_v63  ;;  %v8054_v32 = vmul.f32 %v16833_v43, %v16825_v47  ;;  %v8199_v42 = vand.u32 2147483648, %v16831_v40  ;;  %vm8059_vm10 = vweird.f32 %v16833_v43 }
0x1f9e   :  { %10355 = vpow2.f32 %v10331_v38  ;;  %vm8088_vm11 = vweird.f32 %v16828_v0  ;;  %v8095_v51 = vor.u32 1.1754944e-38, %v8094_v56  ;;  %vm8193_vm12 = vweird.f32 %v16831_v40  ;;  %vm16892_vm13 = vmor %vm8058_vm5, %vm8059_vm10 }
0x1f9f   :  { %10357 = vrcp.f32 %v16831_v40  ;;  %v8055_v8 = vsub.f32 1.0, %v8054_v32  ;;  %v8197_v54 = vand.u32 2147483647, %v16831_v40  ;;  %v8079_v48 = vand.u32 2147483648, %v16835_v39 }
0x1fa0   :  { %v7806_v24 = vpop.f32.mrf.mxu2  ;;  %10359 = vrcp.f32 %v16835_v39  ;;  %vm16896_vm14 = vcmp.eq.f32.partialorder %v8092_v28, 8.507059e+37  ;;  %v16900_v46 = vor.u32 1.1754944e-38, %v8199_v42  ;;  %v8077_v62 = vand.u32 2147483647, %v16835_v39 }
0x1fa1   :  { %v10350_v55 = vpop.eup %10349  ;;  %v10325_v61 = vmul.f32 -1.442695, %v7806_v24  ;;  %v7986_v5 = vpop.f32.mrf.mxu3  ;;  %v8056_v17 = vmul.f32 %v16833_v43, %v8055_v8  ;;  %vm8073_vm2 = vweird.f32 %v16835_v39  ;;  %v16915_v63 = vor.u32 1.1754944e-38, %v8079_v48 }
0x1fa2   :  { %v16837_v37 = vadd.f32 1.0, %v10350_v55  ;;  %v16842_v10 = vpop.eup %10351  ;;  %v7786_v19 = vpop.f32.mrf.mxu1  ;;  %v10334_v35 = vmul.f32 -1.442695, %v7986_v5  ;;  %vm16942_vm7 = vcmp.eq.f32.partialorder %v8077_v62, 8.507059e+37  ;;  %vm16978_vm10 = vcmp.eq.f32.partialorder %v8197_v54, 8.507059e+37 }
0x1fa3   :  { %v10354_v31 = vpop.eup %10353  ;;  %v8084_v7 = vmul.f32 %v16842_v10, %v16828_v0  ;;  %v8057_v49 = vadd.f32 %v16833_v43, %v8056_v17  ;;  %v10324_v58 = vmul.f32 -1.442695, %v7786_v19  ;;  %vm8089_vm15 = vweird.f32 %v16842_v10 }
0x1fa4   :  { %10361 = vrcp.f32 %v16837_v37  ;;  %v16846_v57 = vadd.f32 1.0, %v10354_v31  ;;  %v10356_v52 = vpop.eup %10355  ;;  %v8122_v20 = vand.u32 2147483647, %v16837_v37  ;;  %v8124_v6 = vand.u32 2147483648, %v16837_v37  ;;  %vm16929_vm4 = vmor %vm8088_vm11, %vm8089_vm15 }
0x1fa5   :  { %v16848_v11 = vpop.eup %10357  ;;  %10363 = vpow2.f32 %v10325_v61  ;;  %v16857_v18 = vadd.f32 1.0, %v10356_v52  ;;  %v8085_v53 = vsub.f32 1.0, %v8084_v7  ;;  %v8061_v13 = vsel %vm16892_vm13, %v16833_v43, %v8057_v49 }
0x1fa6   :  { %10365 = vrcp.f32 %v16846_v57  ;;  %v16854_v12 = vpop.eup %10359  ;;  %v8189_v34 = vmul.f32 %v16848_v11, %v16831_v40  ;;  %vm8194_vm1 = vweird.f32 %v16848_v11  ;;  %vm8118_vm3 = vweird.f32 %v16837_v37 }
0x1fa7   :  { %v8069_v30 = vmul.f32 %v16854_v12, %v16835_v39  ;;  %10367 = vrcp.f32 %v16857_v18  ;;  %v8086_v4 = vmul.f32 %v16842_v10, %v8085_v53  ;;  %v16923_v55 = vsel %vm16867_vm9, %v8065_v26, %v8061_v13  ;;  %vm16960_vm9 = vmor %vm8193_vm12, %vm8194_vm1 }
0x1fa8   :  { %v7846_v21 = vpop.f32.mrf.mxu2  ;;  %v8190_v33 = vsub.f32 1.0, %v8189_v34  ;;  %10369 = vpow2.f32 %v10334_v35  ;;  %vm8074_vm6 = vweird.f32 %v16854_v12  ;;  %vm16946_vm0 = vcmp.eq.f32.partialorder %v8122_v20, 8.507059e+37 }
0x1fa9   :  { %v8070_v16 = vsub.f32 1.0, %v8069_v30  ;;  %10371 = vpow2.f32 %v10324_v58  ;;  %v8087_v45 = vadd.f32 %v16842_v10, %v8086_v4  ;;  %v10327_v24 = vmul.f32 -1.442695, %v7846_v21  ;;  %vm16986_vm11 = vmor %vm8073_vm2, %vm8074_vm6 }
0x1faa   :  { %v16859_v22 = vpop.eup %10361  ;;  %v7826_v29 = vpop.f32.mrf.mxu1  ;;  %v8191_v47 = vmul.f32 %v16848_v11, %v8190_v33  ;;  %v8125_v7 = vor.u32 1.1754944e-38, %v8124_v6  ;;  %v8242_v9 = vand.u32 2147483647, %v16857_v18  ;;  %vm8103_vm15 = vweird.f32 %v16846_v57 }
0x1fab   :  { %v10364_v27 = vpop.eup %10363  ;;  %v8114_v2 = vmul.f32 %v16859_v22, %v16837_v37  ;;  %v8071_v38 = vmul.f32 %v16854_v12, %v8070_v16  ;;  %v10326_v31 = vmul.f32 -1.442695, %v7826_v29  ;;  %v8091_v52 = vsel %vm16929_vm4, %v16842_v10, %v8087_v45 }
0x1fac   :  { %v16877_v36 = vpop.eup %10365  ;;  %v16888_v60 = vadd.f32 1.0, %v10364_v27  ;;  %v16934_v61 = vadd.f32 %v16848_v11, %v8191_v47  ;;  %vm8119_vm5 = vweird.f32 %v16859_v22  ;;  %v8244_v10 = vand.u32 2147483648, %v16857_v18 }
0x1fad   :  { %v8099_v44 = vmul.f32 %v16877_v36, %v16846_v57  ;;  %v8115_v50 = vsub.f32 1.0, %v8114_v2  ;;  %v16908_v23 = vpop.eup %10367  ;;  %v8072_v53 = vadd.f32 %v16854_v12, %v8071_v38  ;;  %v16972_v56 = vsel %vm16896_vm14, %v8095_v51, %v8091_v52  ;;  %vm16998_vm13 = vmor %vm8118_vm3, %vm8119_vm5 }
0x1fae   :  { %10373 = vrcp.f32 %v16888_v60  ;;  %v10370_v25 = vpop.eup %10369  ;;  %v8234_v19 = vmul.f32 %v16908_v23, %v16857_v18  ;;  %v8196_v40 = vsel %vm16960_vm9, %v16848_v11, %v16934_v61  ;;  %vm8104_vm12 = vweird.f32 %v16877_v36 }
0x1faf   :  { %v8100_v14 = vsub.f32 1.0, %v8099_v44  ;;  %v8116_v43 = vmul.f32 %v16859_v22, %v8115_v50  ;;  %v10372_v5 = vpop.eup %10371  ;;  %v16954_v17 = vadd.f32 1.0, %v10370_v25  ;;  %10375 = vpow2.f32 %v10327_v24  ;;  %vm17020_vm1 = vmor %vm8103_vm15, %vm8104_vm12 }
0x1fb0   :  { %v7906_v1 = vpop.f32.mrf.mxu2  ;;  %v16966_v26 = vadd.f32 1.0, %v10372_v5  ;;  %v8235_v59 = vsub.f32 1.0, %v8234_v19  ;;  %10377 = vpow2.f32 %v10326_v31  ;;  %v8107_v11 = vand.u32 2147483647, %v16846_v57 }
0x1fb1   :  { %v8101_v21 = vmul.f32 %v16877_v36, %v8100_v14  ;;  %v8117_v35 = vadd.f32 %v16859_v22, %v8116_v43  ;;  %vm8238_vm14 = vweird.f32 %v16857_v18  ;;  %v17003_v39 = vor.u32 1.1754944e-38, %v8244_v10 }
0x1fb2   :  { %v7886_v41 = vpop.f32.mrf.mxu1  ;;  %10379 = vrcp.f32 %v16966_v26  ;;  %v8109_v49 = vand.u32 2147483648, %v16846_v57  ;;  %v8076_v33 = vsel %vm16986_vm11, %v16854_v12, %v8072_v53  ;;  %v10330_v4 = vmul.f32 -1.442695, %v7906_v1 }
0x1fb3   :  { %v8102_v30 = vadd.f32 %v16877_v36, %v8101_v21  ;;  %10381 = vrcp.f32 %v16954_v17  ;;  %v8121_v37 = vsel %vm16998_vm13, %v16859_v22, %v8117_v35  ;;  %v8310_v44 = vrot.slane %v16972_v56, 6 }
0x1fb4   :  { %v16968_v28 = vpop.eup %10373  ;;  %v8236_v51 = vmul.f32 %v16908_v23, %v8235_v59  ;;  %vm8325_vm2 = vcmask 1042434   ;;  %v10329_v12 = vmul.f32 -1.442695, %v7886_v41  ;;  %vm8239_vm3 = vweird.f32 %v16908_v23 }
0x1fb5   :  { %v8144_v58 = vmul.f32 %v16968_v28, %v16888_v60  ;;  %v10376_v48 = vpop.eup %10375  ;;  %v8106_v22 = vsel %vm17020_vm1, %v16877_v36, %v8102_v30  ;;  %vm17028_vm4 = vcmp.eq.f32.partialorder %v8107_v11, 8.507059e+37  ;;  %10383 = vpow2.f32 %v10330_v4 }
0x1fb6   :  { %v10378_v3 = vpop.eup %10377  ;;  %v8081_v16 = vsel %vm16942_vm7, %v16915_v63, %v8076_v33  ;;  %v17037_v62 = vsel %vm16946_vm0, %v8125_v7, %v8121_v37  ;;  %v8110_v50 = vor.u32 1.1754944e-38, %v8109_v49  ;;  %10385 = vpow2.f32 %v10329_v12  ;;  %vm17070_vm0 = vmor %vm8238_vm14, %vm8239_vm3 }
0x1fb7   :  { %v8145_v13 = vsub.f32 1.0, %v8144_v58  ;;  %v8154_v36 = vand.u32 2147483648, %v16888_v60  ;;  %v17042_v47 = vadd.f32 1.0, %v10378_v3  ;;  %v8237_v6 = vadd.f32 %v16908_v23, %v8236_v51 }
0x1fb8   :  { %v7966_v2 = vpop.f32.mrf.mxu2  ;;  %v17039_v1 = vpop.eup %10379  ;;  %vm17047_vm6 = vcmp.eq.f32.partialorder %v8242_v9, 8.507059e+37  ;;  %v8111_v63 = vsel %vm17028_vm4, %v8110_v50, %v8106_v22  ;;  %v17055_v38 = vadd.f32 1.0, %v10376_v48  ;;  %v17060_v43 = vsel %vm16978_vm10, %v16900_v46, %v8196_v40 }
0x1fb9   :  { %v10333_v54 = vmul.f32 -1.442695, %v7966_v2  ;;  %v17044_v20 = vpop.eup %10381  ;;  %v8129_v25 = vmul.f32 %v17039_v1, %v16966_v26  ;;  %v8309_v24 = vrot.slane %v8081_v16, 7  ;;  %v8152_v32 = vand.u32 2147483647, %v16888_v60 }
0x1fba   :  { %v7946_v45 = vpop.f32.mrf.mxu1  ;;  %v8312_v61 = vrot.slane %v17037_v62, 4  ;;  %vm8148_vm7 = vweird.f32 %v16888_v60  ;;  %v8311_v46 = vrot.slane %v8111_v63, 5  ;;  %v8146_v0 = vmul.f32 %v16968_v28, %v8145_v13 }
0x1fbb   :  { %10387 = vpow2.f32 %v10333_v54  ;;  %v8130_v19 = vsub.f32 1.0, %v8129_v25  ;;  %v10332_v31 = vmul.f32 -1.442695, %v7946_v45  ;;  %v10384_v52 = vpop.eup %10383  ;;  %v8155_v7 = vor.u32 1.1754944e-38, %v8154_v36 }
0x1fbc   :  { %10389 = vrcp.f32 %v17042_v47  ;;  %v8279_v21 = vmul.f32 %v17044_v20, %v16954_v17  ;;  %v10386_v41 = vpop.eup %10385  ;;  %v8241_v5 = vsel %vm17070_vm0, %v16908_v23, %v8237_v6  ;;  %vm8323_vm5 = vcmask 1040384  }
0x1fbd   :  { %v8131_v9 = vmul.f32 %v17039_v1, %v8130_v19  ;;  %10391 = vrcp.f32 %v17055_v38  ;;  %vm8149_vm9 = vweird.f32 %v16968_v28  ;;  %vm17083_vm10 = vcmp.eq.f32.partialorder %v8152_v32, 8.507059e+37 }
0x1fbe   :  { %v8287_v34 = vand.u32 2147483647, %v16954_v17  ;;  %v17088_v53 = vadd.f32 1.0, %v10384_v52  ;;  %v17090_v35 = vadd.f32 1.0, %v10386_v41  ;;  %vm8134_vm11 = vweird.f32 %v17039_v1  ;;  %vm17125_vm3 = vmor %vm8148_vm7, %vm8149_vm9 }
0x1fbf   :  { %v8132_v23 = vadd.f32 %v17039_v1, %v8131_v9  ;;  %v8139_v56 = vand.u32 2147483648, %v16966_v26  ;;  %10393 = vpow2.f32 %v10332_v31  ;;  %v8326_v27 = vsel %vm8325_vm2, %v8310_v44, %v8311_v46 }
0x1fc0   :  { %v8147_v59 = vadd.f32 %v16968_v28, %v8146_v0  ;;  %v8280_v42 = vsub.f32 1.0, %v8279_v21  ;;  %10395 = vrcp.f32 %v17088_v53  ;;  %vm8133_vm12 = vweird.f32 %v16966_v26 }
0x1fc1   :  { %v10388_v18 = vpop.eup %10387  ;;  %v8137_v30 = vand.u32 2147483647, %v16966_v26  ;;  %v17106_v29 = vsel %vm17047_vm6, %v17003_v39, %v8241_v5  ;;  %vm8283_vm13 = vweird.f32 %v16954_v17  ;;  %v8289_v49 = vand.u32 2147483648, %v16954_v17  ;;  %vm17112_vm14 = vmor %vm8133_vm12, %vm8134_vm11 }
0x1fc2   :  { %v10390_v40 = vpop.eup %10389  ;;  %v17101_v2 = vadd.f32 1.0, %v10388_v18  ;;  %vm8328_vm15 = vcmask 1044484   ;;  %v8324_v26 = vsel %vm8323_vm5, %v16923_v55, %v8309_v24  ;;  %vm8330_vm1 = vcmask 1046534  }
0x1fc3   :  { %v8159_v11 = vmul.f32 %v10390_v40, %v17042_v47  ;;  %10397 = vrcp.f32 %v17090_v35  ;;  %v17119_v37 = vpop.eup %10391  ;;  %v8136_v58 = vsel %vm17112_vm14, %v17039_v1, %v8132_v23  ;;  %v8140_v4 = vor.u32 1.1754944e-38, %v8139_v56 }
0x1fc4   :  { %v8327_v55 = vsel %vm7636_vm8, %v8324_v26, %v8326_v27  ;;  %vm8332_vm4 = vcmask 1045508   ;;  %v8151_v51 = vsel %vm17125_vm3, %v16968_v28, %v8147_v59  ;;  %v8281_v57 = vmul.f32 %v17044_v20, %v8280_v42 }
0x1fc5   :  { %v8160_v44 = vsub.f32 1.0, %v8159_v11  ;;  %v8167_v60 = vand.u32 2147483647, %v17042_v47  ;;  %v8169_v12 = vand.u32 2147483648, %v17042_v47  ;;  %v10394_v54 = vpop.eup %10393  ;;  %vm8138_vm6 = vcmp.eq.f32.partialorder %v8137_v30, 8.507059e+37 }
0x1fc6   :  { %vm8164_vm7 = vweird.f32 %v10390_v40  ;;  %10399 = vrcp.f32 %v17101_v2  ;;  %v17140_v22 = vpop.eup %10395  ;;  %vm8284_vm0 = vweird.f32 %v17044_v20  ;;  %v8141_v15 = vsel %vm8138_vm6, %v8140_v4, %v8136_v58 }
0x1fc7   :  { %v8161_v48 = vmul.f32 %v10390_v40, %v8160_v44  ;;  %v8174_v28 = vmul.f32 %v17119_v37, %v17055_v38  ;;  %vm8334_vm9 = vcmask 1043456   ;;  %v8156_v3 = vsel %vm17083_vm10, %v8155_v7, %v8151_v51  ;;  %vm17166_vm10 = vmor %vm8283_vm13, %vm8284_vm0 }
0x1fc8   :  { %vm8163_vm11 = vweird.f32 %v17042_v47  ;;  %v8219_v50 = vmul.f32 %v17140_v22, %v17088_v53  ;;  %v17153_v13 = vadd.f32 %v17044_v20, %v8281_v57  ;;  %vm8168_vm14 = vcmp.eq.f32.partialorder %v8167_v60, 8.507059e+37 }
0x1fc9   :  { %v8162_v16 = vadd.f32 %v10390_v40, %v8161_v48  ;;  %v17150_v1 = vpop.eup %10397  ;;  %vm8165_vm12 = vmor %vm8163_vm11, %vm8164_vm7  ;;  %v8170_v36 = vor.u32 1.1754944e-38, %v8169_v12  ;;  %v17155_v45 = vadd.f32 1.0, %v10394_v54  ;;  %v8313_v6 = vrot.slane %v8141_v15, 3 }
0x1fca   :  { %v8220_v63 = vsub.f32 1.0, %v8219_v50  ;;  %v8204_v25 = vmul.f32 %v17150_v1, %v17090_v35  ;;  %v8314_v47 = vrot.slane %v8156_v3, 2  ;;  %v8175_v24 = vsub.f32 1.0, %v8174_v28 }
0x1fcb   :  { %v8166_v14 = vsel %vm8165_vm12, %v10390_v40, %v8162_v16  ;;  %v8182_v32 = vand.u32 2147483647, %v17055_v38  ;;  %v8184_v8 = vand.u32 2147483648, %v17055_v38  ;;  %10401 = vrcp.f32 %v17155_v45 }
0x1fcc   :  { %v8171_v19 = vsel %vm8168_vm14, %v8170_v36, %v8166_v14  ;;  %v17160_v31 = vpop.eup %10399  ;;  %v8205_v0 = vsub.f32 1.0, %v8204_v25  ;;  %v8286_v7 = vsel %vm17166_vm10, %v17044_v20, %v17153_v13  ;;  %v8221_v21 = vmul.f32 %v17140_v22, %v8220_v63 }
0x1fcd   :  { %v8315_v46 = vrot.slane %v8171_v19, 1  ;;  %v8227_v41 = vand.u32 2147483647, %v17088_v53  ;;  %v8264_v5 = vmul.f32 %v17160_v31, %v17101_v2  ;;  %v8329_v9 = vsel %vm8328_vm15, %v8312_v61, %v8313_v6 }
0x1fce   :  { %v8206_v10 = vmul.f32 %v17150_v1, %v8205_v0  ;;  %vm8208_vm13 = vweird.f32 %v17090_v35  ;;  %v8176_v23 = vmul.f32 %v17119_v37, %v8175_v24  ;;  %vm8178_vm3 = vweird.f32 %v17055_v38 }
0x1fcf   :  { %v8331_v18 = vsel %vm8330_vm1, %v8314_v47, %v8315_v46  ;;  %vm8209_vm6 = vweird.f32 %v17150_v1  ;;  %v8265_v56 = vsub.f32 1.0, %v8264_v5  ;;  %vm8224_vm7 = vweird.f32 %v17140_v22 }
0x1fd0   :  { %v8333_v20 = vsel %vm8332_vm4, %v8329_v9, %v8331_v18  ;;  %v8207_v62 = vadd.f32 %v17150_v1, %v8206_v10  ;;  %v8214_v61 = vand.u32 2147483648, %v17090_v35  ;;  %v8222_v27 = vadd.f32 %v17140_v22, %v8221_v21  ;;  %vm17205_vm12 = vmor %vm8208_vm13, %vm8209_vm6 }
0x1fd1   :  { %v8335_v40 = vsel %vm8334_vm9, %v8327_v55, %v8333_v20  ;;  %v8212_v59 = vand.u32 2147483647, %v17090_v35  ;;  %v8266_v42 = vmul.f32 %v17160_v31, %v8265_v56  ;;  %vm8269_vm0 = vweird.f32 %v17160_v31  ;;  %v10402_v30 = vpop.eup %10401 }
0x1fd2   :  { %8345 = vst [vmem:[%s17291_s16] sm:$0xff] %v8335_v40  ;;  %vm8223_vm11 = vweird.f32 %v17088_v53  ;;  %v8229_v11 = vand.u32 2147483648, %v17088_v53  ;;  %vm8268_vm14 = vweird.f32 %v17101_v2  ;;  %v8274_v26 = vand.u32 2147483648, %v17101_v2 }
0x1fd3   :  { %vm17211_vm10 = vmor %vm8223_vm11, %vm8224_vm7  ;;  %v8211_v58 = vsel %vm17205_vm12, %v17150_v1, %v8207_v62  ;;  %v8267_v53 = vadd.f32 %v17160_v31, %v8266_v42  ;;  %v8272_v35 = vand.u32 2147483647, %v17101_v2  ;;  %v8249_v4 = vmul.f32 %v10402_v30, %v17155_v45 }
0x1fd4   :  { %v8177_v55 = vadd.f32 %v17119_v37, %v8176_v23  ;;  %vm8179_vm13 = vweird.f32 %v17119_v37  ;;  %vm17223_vm6 = vcmp.eq.f32.partialorder %v8227_v41, 8.507059e+37  ;;  %v8215_v51 = vor.u32 1.1754944e-38, %v8214_v61  ;;  %vm17229_vm7 = vmor %vm8268_vm14, %vm8269_vm0 }
0x1fd5   :  { %v8226_v2 = vsel %vm17211_vm10, %v17140_v22, %v8222_v27  ;;  %vm8213_vm11 = vcmp.eq.f32.partialorder %v8212_v59, 8.507059e+37  ;;  %v8271_v60 = vsel %vm17229_vm7, %v17160_v31, %v8267_v53  ;;  %v8250_v12 = vsub.f32 1.0, %v8249_v4  ;;  %vm17249_vm10 = vmor %vm8178_vm3, %vm8179_vm13 }
0x1fd6   :  { %v8230_v54 = vor.u32 1.1754944e-38, %v8229_v11  ;;  %v8216_v48 = vsel %vm8213_vm11, %v8215_v51, %v8211_v58  ;;  %v8275_v15 = vor.u32 1.1754944e-38, %v8274_v26  ;;  %v8259_v28 = vand.u32 2147483648, %v17155_v45 }
0x1fd7   :  { %vm8273_vm12 = vcmp.eq.f32.partialorder %v8272_v35, 8.507059e+37  ;;  %v8251_v3 = vmul.f32 %v10402_v30, %v8250_v12  ;;  %vm8254_vm0 = vweird.f32 %v10402_v30  ;;  %v8257_v16 = vand.u32 2147483647, %v17155_v45 }
0x1fd8   :  { %vm8288_vm14 = vcmp.eq.f32.partialorder %v8287_v34, 8.507059e+37  ;;  %v8290_v22 = vor.u32 1.1754944e-38, %v8289_v49  ;;  %v8231_v1 = vsel %vm17223_vm6, %v8230_v54, %v8226_v2  ;;  %v8276_v13 = vsel %vm8273_vm12, %v8275_v15, %v8271_v60 }
0x1fd9   :  { %v8181_v36 = vsel %vm17249_vm10, %v17119_v37, %v8177_v55  ;;  %v8317_v34 = vrot.slane %v8216_v48, 6  ;;  %v8252_v6 = vadd.f32 %v10402_v30, %v8251_v3  ;;  %vm8253_vm7 = vweird.f32 %v17155_v45 }
0x1fda   :  { %v8291_v17 = vsel %vm8288_vm14, %v8290_v22, %v8286_v7  ;;  %vm8183_vm11 = vcmp.eq.f32.partialorder %v8182_v32, 8.507059e+37  ;;  %v8185_v49 = vor.u32 1.1754944e-38, %v8184_v8  ;;  %vm8255_vm3 = vmor %vm8253_vm7, %vm8254_vm0  ;;  %v8260_v14 = vor.u32 1.1754944e-38, %v8259_v28 }
0x1fdb   :  { %v8318_v63 = vrot.slane %v8231_v1, 5  ;;  %v8321_v25 = vrot.slane %v8276_v13, 2  ;;  %v8256_v47 = vsel %vm8255_vm3, %v10402_v30, %v8252_v6  ;;  %vm8258_vm13 = vcmp.eq.f32.partialorder %v8257_v16, 8.507059e+37 }
0x1fdc   :  { %v8316_v24 = vrot.slane %v17060_v43, 7  ;;  %v8186_v37 = vsel %vm8183_vm11, %v8185_v49, %v8181_v36  ;;  %v8261_v19 = vsel %vm8258_vm13, %v8260_v14, %v8256_v47  ;;  %v8319_v31 = vrot.slane %v17106_v29, 4 }
0x1fdd   :  { %v8322_v45 = vrot.slane %v8291_v17, 1  ;;  %v8337_v52 = vsel %vm8325_vm2, %v8317_v34, %v8318_v63  ;;  %v8320_v46 = vrot.slane %v8261_v19, 3 }
0x1fde   :  { %v8336_v32 = vsel %vm8323_vm5, %v8186_v37, %v8316_v24 }
0x1fdf   :  { %v8340_v38 = vsel %vm8330_vm1, %v8321_v25, %v8322_v45  ;;  %v8339_v8 = vsel %vm8328_vm15, %v8319_v31, %v8320_v46  ;;  %v8338_v0 = vsel %vm7636_vm8, %v8336_v32, %v8337_v52 }
0x1fe0   :  { %v8341_v7 = vsel %vm8332_vm4, %v8339_v8, %v8340_v38 }
0x1fe1   :  { %v8342_v43 = vsel %vm8334_vm9, %v8338_v0, %v8341_v7 }
0x1fe2   :  { %8346 = vst [vmem:[%s17291_s16 + $0x8] sm:$0xff] %v8342_v43 }

</bundles_post_ra>
